<compile_context>
chip_gen: v7x
topology: tpu7x:2x2x1
jax: 0.10.0
libtpu: 0.0.40
codegen_flags: <defaults>
</compile_context>

<pallas_src>
import jax
import jax.numpy as jnp
from jax.experimental import pallas as pl
from jax.experimental.pallas import tpu as pltpu


# -----------------------------------------------------------------------------
# helpers
# -----------------------------------------------------------------------------
def _full_spec(shape):
    n = len(shape)
    return pl.BlockSpec(shape, lambda *_: (0,) * n)


# -----------------------------------------------------------------------------
# The single fused kernel
# -----------------------------------------------------------------------------
def _betavae_kernel(
    # inputs resident in VMEM (auto-DMA'd)
    x_ref, eps_ref,
    we1_ref, be1_ref, we2_ref, be2_ref, we3_ref, be3_ref,
    bmlv_ref, wdec_ref, bdec_ref,
    bt1_ref, bt2_ref, bt3_ref,
    # inputs left in HBM (manually prefetched, overlapped with compute)
    wmlv_hbm, wt1_hbm, wt2_hbm, wt3_hbm,
    # outputs
    mlv_ref, recon_ref, a1_ref, a2_ref, a3_ref,
    # scratch
    wmlv_vmem, wt1_vmem, wt2_vmem, wt3_vmem,
    pad_scr, h3_scr, flat_scr, dma_sem,
):
    f32 = jnp.float32
    B, latent = eps_ref.shape
    BL = x_ref.shape[0]
    L = BL // B

    # ---- prefetch decoder-side weights HBM -> VMEM; DMAs overlap the encoder/fc compute ----
    cp_mlv = pltpu.make_async_copy(wmlv_hbm, wmlv_vmem, dma_sem.at[0])
    cp_t1 = pltpu.make_async_copy(wt1_hbm, wt1_vmem, dma_sem.at[1])
    cp_t2 = pltpu.make_async_copy(wt2_hbm, wt2_vmem, dma_sem.at[2])
    cp_t3 = pltpu.make_async_copy(wt3_hbm, wt3_vmem, dma_sem.at[3])
    cp_mlv.start()
    cp_t1.start()
    cp_t2.start()
    cp_t3.start()

    # ---- encoder: 3x (Conv1d k=3, stride=1, pad=1 + ReLU), one im2col matmul per layer ----
    pad_scr[...] = jnp.zeros(pad_scr.shape, f32)            # rows 0 and BL+1 stay zero (pad)
    row = jax.lax.broadcasted_iota(jnp.int32, (BL, 1), 0)
    first = (row % L) == 0                                  # l == 0     -> zero left neighbor
    last = (row % L) == (L - 1)                             # l == L-1   -> zero right neighbor

    def conv_block(h, w_ref, b_ref):
        c = h.shape[1]
        # stage h into the pre-zeroed scratch at row offset 1 so offset-0 / offset-2 reads give
        # the shifted (prev / next) taps without building a non-aligned concat.
        pad_scr[pl.ds(1, BL), pl.ds(0, c)] = h
        prev = jnp.where(first, 0.0, pad_scr[pl.ds(0, BL), pl.ds(0, c)])
        nxt = jnp.where(last, 0.0, pad_scr[pl.ds(2, BL), pl.ds(0, c)])
        col = jnp.concatenate([prev, h, nxt], axis=1)       # (B*L, 3*C_in) lane-dense im2col
        y = jnp.dot(col, w_ref[...], preferred_element_type=f32) + b_ref[...]
        return jnp.maximum(y, 0.0)

    h = conv_block(x_ref[...], we1_ref, be1_ref)            # (B*L, 64)
    h = conv_block(h, we2_ref, be2_ref)                     # (B*L, 128)
    h = conv_block(h, we3_ref, be3_ref)                     # (B*L, 256)
    c_enc = h.shape[1]

    # ---- channels-last flatten (B*L, 256) -> (B, L*256), entirely in VMEM ----
    h3_scr[...] = h
    for b in range(B):
        for l in range(L):
            flat_scr[pl.ds(b, 1), pl.ds(l * c_enc, c_enc)] = h3_scr[pl.ds(b * L + l, 1), :]
    flat = flat_scr[...]                                    # (B, 8192)

    # ---- merged fc_mean / fc_log_var (one K=8192 sweep), reparameterize, fc_decode ----
    cp_mlv.wait()
    mlv = jax.lax.dot_general(
        flat, wmlv_vmem[...],
        dimension_numbers=(((1,), (1,)), ((), ())),
        preferred_element_type=f32) + bmlv_ref[...]         # (B, 2*latent)
    mlv_ref[...] = mlv                                      # split into mu / log_var in wrapper
    mu = mlv[:, :latent]
    log_var = mlv[:, latent:]
    z = mu + eps_ref[...] * jnp.exp(0.5 * log_var)
    d = jnp.dot(z, wdec_ref[...], preferred_element_type=f32) + bdec_ref[...]   # (B, 256)

    # ---- decoder building blocks ----
    def tconv_stage(xs, w_vmem, b_ref):
        # ConvTranspose1d(k=3, stride=2, pad=1, out_pad=1), per-position form:
        #   out[2m]   = x[m]   @ tap1
        #   out[2m+1] = x[m]   @ tap2 + x[m+1] @ tap0     (x[m+1] absent for the last m)
        # w_vmem rows: [tap1 ; tap2 ; tap0]   (pre-formatted once in prepare_params)
        n = len(xs)
        c_in = w_vmem.shape[0] // 3
        bias = b_ref[...]
        w_even = w_vmem[pl.ds(0, c_in), :]
        w_odd = w_vmem[pl.ds(c_in, 2 * c_in), :]
        x_all = xs[0] if n == 1 else jnp.concatenate(xs, axis=0)            # (n*B, C_in)
        nxt_list = xs[1:] + [jnp.zeros_like(xs[0])]
        x_next = nxt_list[0] if n == 1 else jnp.concatenate(nxt_list, axis=0)
        even = jnp.dot(x_all, w_even, preferred_element_type=f32) + bias    # one dot, M=n*B
        odd = jnp.dot(jnp.concatenate([x_all, x_next], axis=1), w_odd,
                      preferred_element_type=f32) + bias                    # one dot, K=2*C_in
        ys = []
        for m in range(n):
            ys.append(even[m * B:(m + 1) * B])
            ys.append(odd[m * B:(m + 1) * B])
        return ys

    def attention(xs, attn_ref):
        # query == value; channels on lanes, positions in the (2/4/8-long) list -> VPU outer
        # products + lane reduces, no tiny-K MXU passes.
        score = xs[0][:, :, None] * xs[0][:, None, :]
        for x_l in xs[1:]:
            score = score + x_l[:, :, None] * x_l[:, None, :]
        mx = jnp.max(score, axis=-1, keepdims=True)
        e = jnp.exp(score - mx)
        inv = 1.0 / jnp.sum(e, axis=-1, keepdims=True)      # only B*C divides, not B*C*C
        attn = e * inv
        attn_ref[...] = attn
        return [jnp.sum(attn * x_l[:, None, :], axis=-1) for x_l in xs]

    relu = lambda t: jnp.maximum(t, 0.0)

    # stage 1: 256 -> 128 channels, 1 -> 2 positions
    cp_t1.wait()
    xs = [relu(y) for y in tconv_stage([d], wt1_vmem, bt1_ref)]
    xs = [relu(c) for c in attention(xs, a1_ref)]

    # stage 2: 128 -> 64 channels, 2 -> 4 positions
    cp_t2.wait()
    xs = [relu(y) for y in tconv_stage(xs, wt2_vmem, bt2_ref)]
    xs = [relu(c) for c in attention(xs, a2_ref)]

    # stage 3: 64 -> 32 channels, 4 -> 8 positions (sigmoid applied twice, as in the module)
    cp_t3.wait()
    xs = [jax.nn.sigmoid(y) for y in tconv_stage(xs, wt3_vmem, bt3_ref)]
    ctx = attention(xs, a3_ref)
    # lane-dense (B, 8*32) slab, one sigmoid stream + one unmasked store
    recon_ref[...] = jax.nn.sigmoid(jnp.concatenate(ctx, axis=1))


# -----------------------------------------------------------------------------
# One-time parameter pre-formatting (hoisted out of the per-call path)
# -----------------------------------------------------------------------------
def prepare_params(params, L):
    f32 = jnp.float32
    pp = {}
    # encoder convs: torch (C_out, C_in, 3) -> (3*C_in, C_out), tap rows [w0; w1; w2]
    for i in (1, 2, 3):
        w = params[f"e_conv{i}_w"].astype(f32)
        pp[f"we{i}"] = jnp.transpose(w, (2, 1, 0)).reshape(-1, w.shape[0])
        pp[f"be{i}"] = params[f"e_conv{i}_b"].reshape(1, -1).astype(f32)
    latent = params["fc_mean_w"].shape[0]
    c3 = params["e_conv3_w"].shape[0]

    def perm_fc(w):  # torch flatten order (c*L + l) -> channels-last order (l*C + c)
        return w.reshape(latent, c3, L).transpose(0, 2, 1).reshape(latent, c3 * L)

    pp["wmlv"] = jnp.concatenate([perm_fc(params["fc_mean_w"]),
                                  perm_fc(params["fc_logvar_w"])], axis=0).astype(f32)
    pp["bmlv"] = jnp.concatenate([params["fc_mean_b"],
                                  params["fc_logvar_b"]]).reshape(1, -1).astype(f32)
    pp["wdec"] = params["fc_decode_w"].T.astype(f32)                       # (latent, 256)
    pp["bdec"] = params["fc_decode_b"].reshape(1, -1).astype(f32)
    # transpose convs: torch (C_in, C_out, 3) -> rows [tap1 ; tap2 ; tap0] (3*C_in, C_out)
    for i in (1, 2, 3):
        w = params[f"tc{i}_w"].astype(f32)
        pp[f"wt{i}"] = jnp.concatenate([w[:, :, 1], w[:, :, 2], w[:, :, 0]], axis=0)
        pp[f"bt{i}"] = params[f"tc{i}_b"].reshape(1, -1).astype(f32)
    return pp


# -----------------------------------------------------------------------------
# Forward: single pallas_call + trivial output plumbing
# -----------------------------------------------------------------------------
def beta_vae_forward(pp, x, eps):
    f32 = jnp.float32
    B, c_in, L = x.shape
    latent = eps.shape[1]
    x_cl = jnp.transpose(x, (0, 2, 1)).reshape(B * L, c_in).astype(f32)   # channels-last rows

    c_enc = pp["we3"].shape[1]                # 256
    c1 = pp["wt1"].shape[1]                   # 128
    c2 = pp["wt2"].shape[1]                   # 64
    c3 = pp["wt3"].shape[1]                   # 32
    pad_lanes = max(c_in, pp["we3"].shape[0] // 3)   # widest conv-layer input (128)

    vmem_args = (x_cl, eps.astype(f32),
                 pp["we1"], pp["be1"], pp["we2"], pp["be2"], pp["we3"], pp["be3"],
                 pp["bmlv"], pp["wdec"], pp["bdec"],
                 pp["bt1"], pp["bt2"], pp["bt3"])
    hbm_args = (pp["wmlv"], pp["wt1"], pp["wt2"], pp["wt3"])

    out_shapes = (
        jax.ShapeDtypeStruct((B, 2 * latent), f32),          # [mu | log_var]
        jax.ShapeDtypeStruct((B, 8 * c3), f32),              # recon, lane-dense slab
        jax.ShapeDtypeStruct((B, c1, c1), f32),              # attn1
        jax.ShapeDtypeStruct((B, c2, c2), f32),              # attn2
        jax.ShapeDtypeStruct((B, c3, c3), f32),              # attn3
    )

    mlv, recon_flat, a1, a2, a3 = pl.pallas_call(
        _betavae_kernel,
        out_shape=out_shapes,
        grid=(1,),
        in_specs=[_full_spec(a.shape) for a in vmem_args]
                 + [pl.BlockSpec(memory_space=pl.ANY)] * len(hbm_args),
        out_specs=tuple(_full_spec(s.shape) for s in out_shapes),
        scratch_shapes=[
            pltpu.VMEM(pp["wmlv"].shape, f32),               # prefetched fc_mean/log_var weight
            pltpu.VMEM(pp["wt1"].shape, f32),                # prefetched tconv stage weights
            pltpu.VMEM(pp["wt2"].shape, f32),
            pltpu.VMEM(pp["wt3"].shape, f32),
            pltpu.VMEM((B * L + 8, pad_lanes), f32),         # zero-padded im2col staging
            pltpu.VMEM((B * L, c_enc), f32),                 # conv3 output
            pltpu.VMEM((B, L * c_enc), f32),                 # channels-last flatten
            pltpu.SemaphoreType.DMA((4,)),
        ],
        compiler_params=pltpu.CompilerParams(dimension_semantics=("arbitrary",)),
    )(*vmem_args, *hbm_args)

    mu = mlv[:, :latent]
    log_var = mlv[:, latent:]
    recon = jnp.transpose(recon_flat.reshape(B, 8, c3), (0, 2, 1))        # (B, 32, 8)
    return recon, mu, log_var, [a1, a2, a3]


# -----------------------------------------------------------------------------
# Pure-JAX (XLA) reference of the PyTorch module, for correctness checking
# -----------------------------------------------------------------------------
def _ref_conv1d(x, w, b):
    L = x.shape[2]
    k = w.shape[2]
    xp = jnp.pad(x, ((0, 0), (0, 0), (1, 1)))
    cols = jnp.stack([xp[:, :, j:j + L] for j in range(k)], axis=2)       # (B, Cin, k, L)
    return jnp.einsum("bcjl,ocj->bol", cols, w) + b[None, :, None]


def _ref_conv_transpose1d(x, w, b, stride=2, pad=1, out_pad=1):
    B, c_in, L = x.shape
    k = w.shape[2]
    xd = jnp.zeros((B, c_in, (L - 1) * stride + 1), x.dtype).at[:, :, ::stride].set(x)
    left, right = k - 1 - pad, k - 1 - pad + out_pad
    xp = jnp.pad(xd, ((0, 0), (0, 0), (left, right)))
    l_out = xp.shape[2] - k + 1
    cols = jnp.stack([xp[:, :, j:j + l_out] for j in range(k)], axis=2)   # (B, Cin, k, Lout)
    wf = jnp.flip(w, axis=2)                                              # (Cin, Cout, k)
    return jnp.einsum("bcjl,coj->bol", cols, wf) + b[None, :, None]


def _ref_attention(x):
    score = jnp.einsum("bcl,bdl->bcd", x, x)
    attn = jax.nn.softmax(score, axis=-1)
    ctx = jnp.einsum("bcd,bdl->bcl", attn, x)
    return ctx, attn


def beta_vae_reference(params, x, eps):
    B = x.shape[0]
    relu, sigmoid = jax.nn.relu, jax.nn.sigmoid
    h = relu(_ref_conv1d(x, params["e_conv1_w"], params["e_conv1_b"]))
    h = relu(_ref_conv1d(h, params["e_conv2_w"], params["e_conv2_b"]))
    h = relu(_ref_conv1d(h, params["e_conv3_w"], params["e_conv3_b"]))
    flat = h.reshape(B, -1)
    mu = flat @ params["fc_mean_w"].T + params["fc_mean_b"]
    log_var = flat @ params["fc_logvar_w"].T + params["fc_logvar_b"]
    z = mu + eps * jnp.exp(0.5 * log_var)
    d = z @ params["fc_decode_w"].T + params["fc_decode_b"]
    xd = d.reshape(B, 256, 1)
    x1 = relu(_ref_conv_transpose1d(xd, params["tc1_w"], params["tc1_b"]))
    c1, a1 = _ref_attention(x1); x1 = relu(c1)
    x2 = relu(_ref_conv_transpose1d(x1, params["tc2_w"], params["tc2_b"]))
    c2, a2 = _ref_attention(x2); x2 = relu(c2)
    x3 = sigmoid(_ref_conv_transpose1d(x2, params["tc3_w"], params["tc3_b"]))
    c3, a3 = _ref_attention(x3); x3 = sigmoid(c3)
    return x3, mu, log_var, [a1, a2, a3]


# -----------------------------------------------------------------------------
# Deterministic parameter init (PyTorch-native weight layouts)
# -----------------------------------------------------------------------------
def init_params(key, in_ch, latent_dim):
    ks = jax.random.split(key, 18)
    w = lambda k, shape, s=0.05: jax.random.normal(k, shape, jnp.float32) * s
    return {
        "e_conv1_w": w(ks[0], (64, in_ch, 3)),   "e_conv1_b": w(ks[1], (64,)),
        "e_conv2_w": w(ks[2], (128, 64, 3)),     "e_conv2_b": w(ks[3], (128,)),
        "e_conv3_w": w(ks[4], (256, 128, 3)),    "e_conv3_b": w(ks[5], (256,)),
        "fc_mean_w": w(ks[6], (latent_dim, 8192), 0.01),   "fc_mean_b": w(ks[7], (latent_dim,)),
        "fc_logvar_w": w(ks[8], (latent_dim, 8192), 0.01), "fc_logvar_b": w(ks[9], (latent_dim,)),
        "fc_decode_w": w(ks[10], (256, latent_dim)),       "fc_decode_b": w(ks[11], (256,)),
        "tc1_w": w(ks[12], (256, 128, 3)),       "tc1_b": w(ks[13], (128,)),
        "tc2_w": w(ks[14], (128, 64, 3)),        "tc2_b": w(ks[15], (64,)),
        "tc3_w": w(ks[16], (64, 32, 3)),         "tc3_b": w(ks[17], (32,)),
    }


if __name__ == "__main__":
    key = jax.random.PRNGKey(0)
    k_x, k_eps, k_p = jax.random.split(key, 3)

    # Encoder flatten is hard-coded to 8192 = 256 * 32 in the module, so sequence length L = 32.
    B, C_in, L, latent_dim = 2, 4, 32, 8
    x = jax.random.normal(k_x, (B, C_in, L), jnp.float32)
    eps = jax.random.normal(k_eps, (B, latent_dim), jnp.float32)   # torch.randn_like(std)
    params = init_params(k_p, C_in, latent_dim)

    # one-time weight layout prep (hoisted out of the per-call path, as per the perf review)
    pp = prepare_params(params, L)
    pp = jax.block_until_ready(pp)

    fwd = jax.jit(beta_vae_forward)
    recon, mu, log_var, attns = fwd(pp, x, eps)
    jax.block_until_ready((recon, mu, log_var, attns))

    # shape / sanity checks
    assert recon.shape == (B, 32, 8)
    assert mu.shape == (B, latent_dim) and log_var.shape == (B, latent_dim)
    assert attns[0].shape == (B, 128, 128)
    assert attns[1].shape == (B, 64, 64)
    assert attns[2].shape == (B, 32, 32)
    assert bool(jnp.all(jnp.isfinite(recon)))

    # numerical check against a pure-JAX/XLA reference of the PyTorch module
    r_recon, r_mu, r_lv, r_attns = jax.jit(beta_vae_reference)(params, x, eps)
    ok = lambda a, b: bool(jnp.allclose(a, b, rtol=2e-2, atol=2e-3))
    assert ok(mu, r_mu) and ok(log_var, r_lv)
    assert ok(recon, r_recon)
    assert all(ok(a, b) for a, b in zip(attns, r_attns))

    print("KERNEL_OK")
</pallas_src>

<mosaic_0001>
module attributes {stable_mosaic.version = 11 : i64} {
  func.func @_betavae_kernel(%arg0: i32, %arg1: memref<64x4xf32, #tpu.memory_space<vmem>>, %arg2: memref<2x8xf32, #tpu.memory_space<vmem>>, %arg3: memref<12x64xf32, #tpu.memory_space<vmem>>, %arg4: memref<1x64xf32, #tpu.memory_space<vmem>>, %arg5: memref<192x128xf32, #tpu.memory_space<vmem>>, %arg6: memref<1x128xf32, #tpu.memory_space<vmem>>, %arg7: memref<384x256xf32, #tpu.memory_space<vmem>>, %arg8: memref<1x256xf32, #tpu.memory_space<vmem>>, %arg9: memref<1x16xf32, #tpu.memory_space<vmem>>, %arg10: memref<8x256xf32, #tpu.memory_space<vmem>>, %arg11: memref<1x256xf32, #tpu.memory_space<vmem>>, %arg12: memref<1x128xf32, #tpu.memory_space<vmem>>, %arg13: memref<1x64xf32, #tpu.memory_space<vmem>>, %arg14: memref<1x32xf32, #tpu.memory_space<vmem>>, %arg15: memref<16x8192xf32, #tpu.memory_space<any>>, %arg16: memref<768x128xf32, #tpu.memory_space<any>>, %arg17: memref<384x64xf32, #tpu.memory_space<any>>, %arg18: memref<192x32xf32, #tpu.memory_space<any>>, %arg19: memref<2x16xf32, #tpu.memory_space<vmem>>, %arg20: memref<2x256xf32, #tpu.memory_space<vmem>>, %arg21: memref<2x128x128xf32, #tpu.memory_space<vmem>>, %arg22: memref<2x64x64xf32, #tpu.memory_space<vmem>>, %arg23: memref<2x32x32xf32, #tpu.memory_space<vmem>>, %arg24: memref<16x8192xf32, #tpu.memory_space<vmem>>, %arg25: memref<768x128xf32, #tpu.memory_space<vmem>>, %arg26: memref<384x64xf32, #tpu.memory_space<vmem>>, %arg27: memref<192x32xf32, #tpu.memory_space<vmem>>, %arg28: memref<72x128xf32, #tpu.memory_space<vmem>>, %arg29: memref<64x256xf32, #tpu.memory_space<vmem>>, %arg30: memref<2x8192xf32, #tpu.memory_space<vmem>>, %arg31: memref<4x!tpu.dma_semaphore, #tpu.memory_space<semaphore_mem>>) attributes {dimension_semantics = [#tpu.dimension_semantics<arbitrary>], iteration_bounds = array<i64: 1>, scalar_prefetch = 0 : i64, scratch_operands = 8 : i64, tpu.core_type = #tpu.core_type<tc>, window_params = [{pipeline_mode = #tpu.pipeline_mode<synchronous>, transform_indices = @transform_0, window_bounds = array<i64: 64, 4>}, {pipeline_mode = #tpu.pipeline_mode<synchronous>, transform_indices = @transform_1, window_bounds = array<i64: 2, 8>}, {pipeline_mode = #tpu.pipeline_mode<synchronous>, transform_indices = @transform_2, window_bounds = array<i64: 12, 64>}, {pipeline_mode = #tpu.pipeline_mode<synchronous>, transform_indices = @transform_3, window_bounds = array<i64: 1, 64>}, {pipeline_mode = #tpu.pipeline_mode<synchronous>, transform_indices = @transform_4, window_bounds = array<i64: 192, 128>}, {pipeline_mode = #tpu.pipeline_mode<synchronous>, transform_indices = @transform_5, window_bounds = array<i64: 1, 128>}, {pipeline_mode = #tpu.pipeline_mode<synchronous>, transform_indices = @transform_6, window_bounds = array<i64: 384, 256>}, {pipeline_mode = #tpu.pipeline_mode<synchronous>, transform_indices = @transform_7, window_bounds = array<i64: 1, 256>}, {pipeline_mode = #tpu.pipeline_mode<synchronous>, transform_indices = @transform_8, window_bounds = array<i64: 1, 16>}, {pipeline_mode = #tpu.pipeline_mode<synchronous>, transform_indices = @transform_9, window_bounds = array<i64: 8, 256>}, {pipeline_mode = #tpu.pipeline_mode<synchronous>, transform_indices = @transform_10, window_bounds = array<i64: 1, 256>}, {pipeline_mode = #tpu.pipeline_mode<synchronous>, transform_indices = @transform_11, window_bounds = array<i64: 1, 128>}, {pipeline_mode = #tpu.pipeline_mode<synchronous>, transform_indices = @transform_12, window_bounds = array<i64: 1, 64>}, {pipeline_mode = #tpu.pipeline_mode<synchronous>, transform_indices = @transform_13, window_bounds = array<i64: 1, 32>}, {}, {}, {}, {}, {pipeline_mode = #tpu.pipeline_mode<synchronous>, transform_indices = @transform_18, window_bounds = array<i64: 2, 16>}, {pipeline_mode = #tpu.pipeline_mode<synchronous>, transform_indices = @transform_19, window_bounds = array<i64: 2, 256>}, {pipeline_mode = #tpu.pipeline_mode<synchronous>, transform_indices = @transform_20, window_bounds = array<i64: 2, 128, 128>}, {pipeline_mode = #tpu.pipeline_mode<synchronous>, transform_indices = @transform_21, window_bounds = array<i64: 2, 64, 64>}, {pipeline_mode = #tpu.pipeline_mode<synchronous>, transform_indices = @transform_22, window_bounds = array<i64: 2, 32, 32>}]} {
    %c0_i32 = arith.constant 0 : i32
    %0 = tpu.memref_slice %arg31[%c0_i32] : memref<4x!tpu.dma_semaphore, #tpu.memory_space<semaphore_mem>> -> memref<1x!tpu.dma_semaphore, #tpu.memory_space<semaphore_mem>>
    %1 = tpu.memref_squeeze %0 : memref<1x!tpu.dma_semaphore, #tpu.memory_space<semaphore_mem>> -> memref<!tpu.dma_semaphore, #tpu.memory_space<semaphore_mem>>
    tpu.enqueue_dma source(%arg15 : memref<16x8192xf32, #tpu.memory_space<any>>) target(%arg24 : memref<16x8192xf32, #tpu.memory_space<vmem>>) target_semaphore(%1 : memref<!tpu.dma_semaphore, #tpu.memory_space<semaphore_mem>>)
    %c1_i32 = arith.constant 1 : i32
    %2 = tpu.memref_slice %arg31[%c1_i32] : memref<4x!tpu.dma_semaphore, #tpu.memory_space<semaphore_mem>> -> memref<1x!tpu.dma_semaphore, #tpu.memory_space<semaphore_mem>>
    %3 = tpu.memref_squeeze %2 : memref<1x!tpu.dma_semaphore, #tpu.memory_space<semaphore_mem>> -> memref<!tpu.dma_semaphore, #tpu.memory_space<semaphore_mem>>
    tpu.enqueue_dma source(%arg16 : memref<768x128xf32, #tpu.memory_space<any>>) target(%arg25 : memref<768x128xf32, #tpu.memory_space<vmem>>) target_semaphore(%3 : memref<!tpu.dma_semaphore, #tpu.memory_space<semaphore_mem>>)
    %c2_i32 = arith.constant 2 : i32
    %4 = tpu.memref_slice %arg31[%c2_i32] : memref<4x!tpu.dma_semaphore, #tpu.memory_space<semaphore_mem>> -> memref<1x!tpu.dma_semaphore, #tpu.memory_space<semaphore_mem>>
    %5 = tpu.memref_squeeze %4 : memref<1x!tpu.dma_semaphore, #tpu.memory_space<semaphore_mem>> -> memref<!tpu.dma_semaphore, #tpu.memory_space<semaphore_mem>>
    tpu.enqueue_dma source(%arg17 : memref<384x64xf32, #tpu.memory_space<any>>) target(%arg26 : memref<384x64xf32, #tpu.memory_space<vmem>>) target_semaphore(%5 : memref<!tpu.dma_semaphore, #tpu.memory_space<semaphore_mem>>)
    %c3_i32 = arith.constant 3 : i32
    %6 = tpu.memref_slice %arg31[%c3_i32] : memref<4x!tpu.dma_semaphore, #tpu.memory_space<semaphore_mem>> -> memref<1x!tpu.dma_semaphore, #tpu.memory_space<semaphore_mem>>
    %7 = tpu.memref_squeeze %6 : memref<1x!tpu.dma_semaphore, #tpu.memory_space<semaphore_mem>> -> memref<!tpu.dma_semaphore, #tpu.memory_space<semaphore_mem>>
    tpu.enqueue_dma source(%arg18 : memref<192x32xf32, #tpu.memory_space<any>>) target(%arg27 : memref<192x32xf32, #tpu.memory_space<vmem>>) target_semaphore(%7 : memref<!tpu.dma_semaphore, #tpu.memory_space<semaphore_mem>>)
    %cst = arith.constant 0.000000e+00 : f32
    %8 = vector.broadcast %cst : f32 to vector<72x128xf32>
    %c0 = arith.constant 0 : index
    %c0_0 = arith.constant 0 : index
    %9 = vector.load %arg28[%c0, %c0_0] : memref<72x128xf32, #tpu.memory_space<vmem>>, vector<72x128xf32>
    tpu.vector_store %arg28[%c0, %c0_0], %8 {strides = array<i32>} : memref<72x128xf32, #tpu.memory_space<vmem>>, vector<72x128xf32>,
    %10 = tpu.iota {dimensions = array<i32: 0>} : vector<64x1xi32>
    %c32_i32 = arith.constant 32 : i32
    %c0_i32_1 = arith.constant 0 : i32
    %11 = arith.cmpi eq, %c32_i32, %c0_i32_1 : i32
    %c1_i32_2 = arith.constant 1 : i32
    %12 = arith.select %11, %c1_i32_2, %c32_i32 : i32
    %13 = vector.broadcast %12 : i32 to vector<64x1xi32>
    %14 = arith.remsi %10, %13 : vector<64x1xi32>
    %c0_i32_3 = arith.constant 0 : i32
    %15 = vector.broadcast %c0_i32_3 : i32 to vector<64x1xi32>
    %16 = arith.cmpi ne, %14, %15 : vector<64x1xi32>
    %c0_i32_4 = arith.constant 0 : i32
    %17 = vector.broadcast %c0_i32_4 : i32 to vector<64x1xi32>
    %18 = arith.cmpi slt, %14, %17 : vector<64x1xi32>
    %c0_i32_5 = arith.constant 0 : i32
    %19 = arith.cmpi slt, %12, %c0_i32_5 : i32
    %20 = vector.broadcast %19 : i1 to vector<64x1xi1>
    %21 = vector.broadcast %20 : vector<64x1xi1> to vector<64x1xi1>
    %22 = arith.xori %18, %21 : vector<64x1xi1>
    %23 = arith.andi %22, %16 : vector<64x1xi1>
    %24 = vector.broadcast %12 : i32 to vector<64x1xi32>
    %25 = arith.addi %14, %24 : vector<64x1xi32>
    %26 = arith.select %23, %25, %14 : vector<64x1xi1>, vector<64x1xi32>
    %c0_i32_6 = arith.constant 0 : i32
    %27 = vector.broadcast %c0_i32_6 : i32 to vector<64x1xi32>
    %28 = arith.cmpi eq, %26, %27 : vector<64x1xi32>
    %c32_i32_7 = arith.constant 32 : i32
    %c0_i32_8 = arith.constant 0 : i32
    %29 = arith.cmpi eq, %c32_i32_7, %c0_i32_8 : i32
    %c1_i32_9 = arith.constant 1 : i32
    %30 = arith.select %29, %c1_i32_9, %c32_i32_7 : i32
    %31 = vector.broadcast %30 : i32 to vector<64x1xi32>
    %32 = arith.remsi %10, %31 : vector<64x1xi32>
    %c0_i32_10 = arith.constant 0 : i32
    %33 = vector.broadcast %c0_i32_10 : i32 to vector<64x1xi32>
    %34 = arith.cmpi ne, %32, %33 : vector<64x1xi32>
    %c0_i32_11 = arith.constant 0 : i32
    %35 = vector.broadcast %c0_i32_11 : i32 to vector<64x1xi32>
    %36 = arith.cmpi slt, %32, %35 : vector<64x1xi32>
    %c0_i32_12 = arith.constant 0 : i32
    %37 = arith.cmpi slt, %30, %c0_i32_12 : i32
    %38 = vector.broadcast %37 : i1 to vector<64x1xi1>
    %39 = vector.broadcast %38 : vector<64x1xi1> to vector<64x1xi1>
    %40 = arith.xori %36, %39 : vector<64x1xi1>
    %41 = arith.andi %40, %34 : vector<64x1xi1>
    %42 = vector.broadcast %30 : i32 to vector<64x1xi32>
    %43 = arith.addi %32, %42 : vector<64x1xi32>
    %44 = arith.select %41, %43, %32 : vector<64x1xi1>, vector<64x1xi32>
    %c31_i32 = arith.constant 31 : i32
    %45 = vector.broadcast %c31_i32 : i32 to vector<64x1xi32>
    %46 = arith.cmpi eq, %44, %45 : vector<64x1xi32>
    %c0_13 = arith.constant 0 : index
    %c0_14 = arith.constant 0 : index
    %47 = vector.load %arg1[%c0_13, %c0_14] : memref<64x4xf32, #tpu.memory_space<vmem>>, vector<64x4xf32>
    %c1 = arith.constant 1 : index
    %c0_15 = arith.constant 0 : index
    %48 = vector.load %arg28[%c1, %c0_15] : memref<72x128xf32, #tpu.memory_space<vmem>>, vector<64x4xf32>
    tpu.vector_store %arg28[%c1, %c0_15], %47 {strides = array<i32>} : memref<72x128xf32, #tpu.memory_space<vmem>>, vector<64x4xf32>,
    %c0_16 = arith.constant 0 : index
    %c0_17 = arith.constant 0 : index
    %49 = vector.load %arg28[%c0_16, %c0_17] : memref<72x128xf32, #tpu.memory_space<vmem>>, vector<64x4xf32>
    %cst_18 = arith.constant 0.000000e+00 : f32
    %50 = vector.shape_cast %28 : vector<64x1xi1> to vector<64x1xi1>
    %51 = vector.broadcast %50 : vector<64x1xi1> to vector<64x4xi1>
    %52 = vector.broadcast %cst_18 : f32 to vector<64x4xf32>
    %53 = arith.select %51, %52, %49 : vector<64x4xi1>, vector<64x4xf32>
    %c2 = arith.constant 2 : index
    %c0_19 = arith.constant 0 : index
    %54 = vector.load %arg28[%c2, %c0_19] : memref<72x128xf32, #tpu.memory_space<vmem>>, vector<64x4xf32>
    %cst_20 = arith.constant 0.000000e+00 : f32
    %55 = vector.shape_cast %46 : vector<64x1xi1> to vector<64x1xi1>
    %56 = vector.broadcast %55 : vector<64x1xi1> to vector<64x4xi1>
    %57 = vector.broadcast %cst_20 : f32 to vector<64x4xf32>
    %58 = arith.select %56, %57, %54 : vector<64x4xi1>, vector<64x4xf32>
    %59 = tpu.concatenate %53, %47, %58 in 1 : vector<64x4xf32>, vector<64x4xf32>, vector<64x4xf32> -> vector<64x12xf32>
    %c0_21 = arith.constant 0 : index
    %c0_22 = arith.constant 0 : index
    %60 = vector.load %arg3[%c0_21, %c0_22] : memref<12x64xf32, #tpu.memory_space<vmem>>, vector<12x64xf32>
    %cst_23 = arith.constant dense<0.000000e+00> : vector<64x64xf32>
    %61 = tpu.matmul %59, %60, %cst_23 {dimension_numbers = #tpu.dot_dimension_numbers<[1], [0], [0], [1], [0, 0, 1, 1], [], []>} : vector<64x12xf32>, vector<12x64xf32>, vector<64x64xf32> -> vector<64x64xf32>
    %c0_24 = arith.constant 0 : index
    %c0_25 = arith.constant 0 : index
    %62 = vector.load %arg4[%c0_24, %c0_25] : memref<1x64xf32, #tpu.memory_space<vmem>>, vector<1x64xf32>
    %63 = vector.broadcast %62 : vector<1x64xf32> to vector<64x64xf32>
    %64 = arith.addf %61, %63 : vector<64x64xf32>
    %cst_26 = arith.constant 0.000000e+00 : f32
    %65 = vector.broadcast %cst_26 : f32 to vector<64x64xf32>
    %66 = arith.maximumf %64, %65 : vector<64x64xf32>
    %c1_27 = arith.constant 1 : index
    %c0_28 = arith.constant 0 : index
    %67 = vector.load %arg28[%c1_27, %c0_28] : memref<72x128xf32, #tpu.memory_space<vmem>>, vector<64x64xf32>
    tpu.vector_store %arg28[%c1_27, %c0_28], %66 {strides = array<i32>} : memref<72x128xf32, #tpu.memory_space<vmem>>, vector<64x64xf32>,
    %c0_29 = arith.constant 0 : index
    %c0_30 = arith.constant 0 : index
    %68 = vector.load %arg28[%c0_29, %c0_30] : memref<72x128xf32, #tpu.memory_space<vmem>>, vector<64x64xf32>
    %cst_31 = arith.constant 0.000000e+00 : f32
    %69 = vector.shape_cast %28 : vector<64x1xi1> to vector<64x1xi1>
    %70 = vector.broadcast %69 : vector<64x1xi1> to vector<64x64xi1>
    %71 = vector.broadcast %cst_31 : f32 to vector<64x64xf32>
    %72 = arith.select %70, %71, %68 : vector<64x64xi1>, vector<64x64xf32>
    %c2_32 = arith.constant 2 : index
    %c0_33 = arith.constant 0 : index
    %73 = vector.load %arg28[%c2_32, %c0_33] : memref<72x128xf32, #tpu.memory_space<vmem>>, vector<64x64xf32>
    %cst_34 = arith.constant 0.000000e+00 : f32
    %74 = vector.shape_cast %46 : vector<64x1xi1> to vector<64x1xi1>
    %75 = vector.broadcast %74 : vector<64x1xi1> to vector<64x64xi1>
    %76 = vector.broadcast %cst_34 : f32 to vector<64x64xf32>
    %77 = arith.select %75, %76, %73 : vector<64x64xi1>, vector<64x64xf32>
    %78 = tpu.concatenate %72, %66, %77 in 1 : vector<64x64xf32>, vector<64x64xf32>, vector<64x64xf32> -> vector<64x192xf32>
    %c0_35 = arith.constant 0 : index
    %c0_36 = arith.constant 0 : index
    %79 = vector.load %arg5[%c0_35, %c0_36] : memref<192x128xf32, #tpu.memory_space<vmem>>, vector<192x128xf32>
    %cst_37 = arith.constant dense<0.000000e+00> : vector<64x128xf32>
    %80 = tpu.matmul %78, %79, %cst_37 {dimension_numbers = #tpu.dot_dimension_numbers<[1], [0], [0], [1], [0, 0, 1, 1], [], []>} : vector<64x192xf32>, vector<192x128xf32>, vector<64x128xf32> -> vector<64x128xf32>
    %c0_38 = arith.constant 0 : index
    %c0_39 = arith.constant 0 : index
    %81 = vector.load %arg6[%c0_38, %c0_39] : memref<1x128xf32, #tpu.memory_space<vmem>>, vector<1x128xf32>
    %82 = vector.broadcast %81 : vector<1x128xf32> to vector<64x128xf32>
    %83 = arith.addf %80, %82 : vector<64x128xf32>
    %cst_40 = arith.constant 0.000000e+00 : f32
    %84 = vector.broadcast %cst_40 : f32 to vector<64x128xf32>
    %85 = arith.maximumf %83, %84 : vector<64x128xf32>
    %c1_41 = arith.constant 1 : index
    %c0_42 = arith.constant 0 : index
    %86 = vector.load %arg28[%c1_41, %c0_42] : memref<72x128xf32, #tpu.memory_space<vmem>>, vector<64x128xf32>
    tpu.vector_store %arg28[%c1_41, %c0_42], %85 {strides = array<i32>} : memref<72x128xf32, #tpu.memory_space<vmem>>, vector<64x128xf32>,
    %c0_43 = arith.constant 0 : index
    %c0_44 = arith.constant 0 : index
    %87 = vector.load %arg28[%c0_43, %c0_44] : memref<72x128xf32, #tpu.memory_space<vmem>>, vector<64x128xf32>
    %cst_45 = arith.constant 0.000000e+00 : f32
    %88 = vector.shape_cast %28 : vector<64x1xi1> to vector<64x1xi1>
    %89 = vector.broadcast %88 : vector<64x1xi1> to vector<64x128xi1>
    %90 = vector.broadcast %cst_45 : f32 to vector<64x128xf32>
    %91 = arith.select %89, %90, %87 : vector<64x128xi1>, vector<64x128xf32>
    %c2_46 = arith.constant 2 : index
    %c0_47 = arith.constant 0 : index
    %92 = vector.load %arg28[%c2_46, %c0_47] : memref<72x128xf32, #tpu.memory_space<vmem>>, vector<64x128xf32>
    %cst_48 = arith.constant 0.000000e+00 : f32
    %93 = vector.shape_cast %46 : vector<64x1xi1> to vector<64x1xi1>
    %94 = vector.broadcast %93 : vector<64x1xi1> to vector<64x128xi1>
    %95 = vector.broadcast %cst_48 : f32 to vector<64x128xf32>
    %96 = arith.select %94, %95, %92 : vector<64x128xi1>, vector<64x128xf32>
    %97 = tpu.concatenate %91, %85, %96 in 1 : vector<64x128xf32>, vector<64x128xf32>, vector<64x128xf32> -> vector<64x384xf32>
    %c0_49 = arith.constant 0 : index
    %c0_50 = arith.constant 0 : index
    %98 = vector.load %arg7[%c0_49, %c0_50] : memref<384x256xf32, #tpu.memory_space<vmem>>, vector<384x256xf32>
    %cst_51 = arith.constant dense<0.000000e+00> : vector<64x256xf32>
    %99 = tpu.matmul %97, %98, %cst_51 {dimension_numbers = #tpu.dot_dimension_numbers<[1], [0], [0], [1], [0, 0, 1, 1], [], []>} : vector<64x384xf32>, vector<384x256xf32>, vector<64x256xf32> -> vector<64x256xf32>
    %c0_52 = arith.constant 0 : index
    %c0_53 = arith.constant 0 : index
    %100 = vector.load %arg8[%c0_52, %c0_53] : memref<1x256xf32, #tpu.memory_space<vmem>>, vector<1x256xf32>
    %101 = vector.broadcast %100 : vector<1x256xf32> to vector<64x256xf32>
    %102 = arith.addf %99, %101 : vector<64x256xf32>
    %cst_54 = arith.constant 0.000000e+00 : f32
    %103 = vector.broadcast %cst_54 : f32 to vector<64x256xf32>
    %104 = arith.maximumf %102, %103 : vector<64x256xf32>
    %c0_55 = arith.constant 0 : index
    %c0_56 = arith.constant 0 : index
    %105 = vector.load %arg29[%c0_55, %c0_56] : memref<64x256xf32, #tpu.memory_space<vmem>>, vector<64x256xf32>
    tpu.vector_store %arg29[%c0_55, %c0_56], %104 {strides = array<i32>} : memref<64x256xf32, #tpu.memory_space<vmem>>, vector<64x256xf32>,
    %c0_57 = arith.constant 0 : index
    %c0_58 = arith.constant 0 : index
    %106 = vector.load %arg29[%c0_57, %c0_58] : memref<64x256xf32, #tpu.memory_space<vmem>>, vector<1x256xf32>
    %c0_59 = arith.constant 0 : index
    %c0_60 = arith.constant 0 : index
    %107 = vector.load %arg30[%c0_59, %c0_60] : memref<2x8192xf32, #tpu.memory_space<vmem>>, vector<1x256xf32>
    tpu.vector_store %arg30[%c0_59, %c0_60], %106 {strides = array<i32>} : memref<2x8192xf32, #tpu.memory_space<vmem>>, vector<1x256xf32>,
    %c1_61 = arith.constant 1 : index
    %c0_62 = arith.constant 0 : index
    %108 = vector.load %arg29[%c1_61, %c0_62] : memref<64x256xf32, #tpu.memory_space<vmem>>, vector<1x256xf32>
    %c0_63 = arith.constant 0 : index
    %c256 = arith.constant 256 : index
    %109 = vector.load %arg30[%c0_63, %c256] : memref<2x8192xf32, #tpu.memory_space<vmem>>, vector<1x256xf32>
    tpu.vector_store %arg30[%c0_63, %c256], %108 {strides = array<i32>} : memref<2x8192xf32, #tpu.memory_space<vmem>>, vector<1x256xf32>,
    %c2_64 = arith.constant 2 : index
    %c0_65 = arith.constant 0 : index
    %110 = vector.load %arg29[%c2_64, %c0_65] : memref<64x256xf32, #tpu.memory_space<vmem>>, vector<1x256xf32>
    %c0_66 = arith.constant 0 : index
    %c512 = arith.constant 512 : index
    %111 = vector.load %arg30[%c0_66, %c512] : memref<2x8192xf32, #tpu.memory_space<vmem>>, vector<1x256xf32>
    tpu.vector_store %arg30[%c0_66, %c512], %110 {strides = array<i32>} : memref<2x8192xf32, #tpu.memory_space<vmem>>, vector<1x256xf32>,
    %c3 = arith.constant 3 : index
    %c0_67 = arith.constant 0 : index
    %112 = vector.load %arg29[%c3, %c0_67] : memref<64x256xf32, #tpu.memory_space<vmem>>, vector<1x256xf32>
    %c0_68 = arith.constant 0 : index
    %c768 = arith.constant 768 : index
    %113 = vector.load %arg30[%c0_68, %c768] : memref<2x8192xf32, #tpu.memory_space<vmem>>, vector<1x256xf32>
    tpu.vector_store %arg30[%c0_68, %c768], %112 {strides = array<i32>} : memref<2x8192xf32, #tpu.memory_space<vmem>>, vector<1x256xf32>,
    %c4 = arith.constant 4 : index
    %c0_69 = arith.constant 0 : index
    %114 = vector.load %arg29[%c4, %c0_69] : memref<64x256xf32, #tpu.memory_space<vmem>>, vector<1x256xf32>
    %c0_70 = arith.constant 0 : index
    %c1024 = arith.constant 1024 : index
    %115 = vector.load %arg30[%c0_70, %c1024] : memref<2x8192xf32, #tpu.memory_space<vmem>>, vector<1x256xf32>
    tpu.vector_store %arg30[%c0_70, %c1024], %114 {strides = array<i32>} : memref<2x8192xf32, #tpu.memory_space<vmem>>, vector<1x256xf32>,
    %c5 = arith.constant 5 : index
    %c0_71 = arith.constant 0 : index
    %116 = vector.load %arg29[%c5, %c0_71] : memref<64x256xf32, #tpu.memory_space<vmem>>, vector<1x256xf32>
    %c0_72 = arith.constant 0 : index
    %c1280 = arith.constant 1280 : index
    %117 = vector.load %arg30[%c0_72, %c1280] : memref<2x8192xf32, #tpu.memory_space<vmem>>, vector<1x256xf32>
    tpu.vector_store %arg30[%c0_72, %c1280], %116 {strides = array<i32>} : memref<2x8192xf32, #tpu.memory_space<vmem>>, vector<1x256xf32>,
    %c6 = arith.constant 6 : index
    %c0_73 = arith.constant 0 : index
    %118 = vector.load %arg29[%c6, %c0_73] : memref<64x256xf32, #tpu.memory_space<vmem>>, vector<1x256xf32>
    %c0_74 = arith.constant 0 : index
    %c1536 = arith.constant 1536 : index
    %119 = vector.load %arg30[%c0_74, %c1536] : memref<2x8192xf32, #tpu.memory_space<vmem>>, vector<1x256xf32>
    tpu.vector_store %arg30[%c0_74, %c1536], %118 {strides = array<i32>} : memref<2x8192xf32, #tpu.memory_space<vmem>>, vector<1x256xf32>,
    %c7 = arith.constant 7 : index
    %c0_75 = arith.constant 0 : index
    %120 = vector.load %arg29[%c7, %c0_75] : memref<64x256xf32, #tpu.memory_space<vmem>>, vector<1x256xf32>
    %c0_76 = arith.constant 0 : index
    %c1792 = arith.constant 1792 : index
    %121 = vector.load %arg30[%c0_76, %c1792] : memref<2x8192xf32, #tpu.memory_space<vmem>>, vector<1x256xf32>
    tpu.vector_store %arg30[%c0_76, %c1792], %120 {strides = array<i32>} : memref<2x8192xf32, #tpu.memory_space<vmem>>, vector<1x256xf32>,
    %c8 = arith.constant 8 : index
    %c0_77 = arith.constant 0 : index
    %122 = vector.load %arg29[%c8, %c0_77] : memref<64x256xf32, #tpu.memory_space<vmem>>, vector<1x256xf32>
    %c0_78 = arith.constant 0 : index
    %c2048 = arith.constant 2048 : index
    %123 = vector.load %arg30[%c0_78, %c2048] : memref<2x8192xf32, #tpu.memory_space<vmem>>, vector<1x256xf32>
    tpu.vector_store %arg30[%c0_78, %c2048], %122 {strides = array<i32>} : memref<2x8192xf32, #tpu.memory_space<vmem>>, vector<1x256xf32>,
    %c9 = arith.constant 9 : index
    %c0_79 = arith.constant 0 : index
    %124 = vector.load %arg29[%c9, %c0_79] : memref<64x256xf32, #tpu.memory_space<vmem>>, vector<1x256xf32>
    %c0_80 = arith.constant 0 : index
    %c2304 = arith.constant 2304 : index
    %125 = vector.load %arg30[%c0_80, %c2304] : memref<2x8192xf32, #tpu.memory_space<vmem>>, vector<1x256xf32>
    tpu.vector_store %arg30[%c0_80, %c2304], %124 {strides = array<i32>} : memref<2x8192xf32, #tpu.memory_space<vmem>>, vector<1x256xf32>,
    %c10 = arith.constant 10 : index
    %c0_81 = arith.constant 0 : index
    %126 = vector.load %arg29[%c10, %c0_81] : memref<64x256xf32, #tpu.memory_space<vmem>>, vector<1x256xf32>
    %c0_82 = arith.constant 0 : index
    %c2560 = arith.constant 2560 : index
    %127 = vector.load %arg30[%c0_82, %c2560] : memref<2x8192xf32, #tpu.memory_space<vmem>>, vector<1x256xf32>
    tpu.vector_store %arg30[%c0_82, %c2560], %126 {strides = array<i32>} : memref<2x8192xf32, #tpu.memory_space<vmem>>, vector<1x256xf32>,
    %c11 = arith.constant 11 : index
    %c0_83 = arith.constant 0 : index
    %128 = vector.load %arg29[%c11, %c0_83] : memref<64x256xf32, #tpu.memory_space<vmem>>, vector<1x256xf32>
    %c0_84 = arith.constant 0 : index
    %c2816 = arith.constant 2816 : index
    %129 = vector.load %arg30[%c0_84, %c2816] : memref<2x8192xf32, #tpu.memory_space<vmem>>, vector<1x256xf32>
    tpu.vector_store %arg30[%c0_84, %c2816], %128 {strides = array<i32>} : memref<2x8192xf32, #tpu.memory_space<vmem>>, vector<1x256xf32>,
    %c12 = arith.constant 12 : index
    %c0_85 = arith.constant 0 : index
    %130 = vector.load %arg29[%c12, %c0_85] : memref<64x256xf32, #tpu.memory_space<vmem>>, vector<1x256xf32>
    %c0_86 = arith.constant 0 : index
    %c3072 = arith.constant 3072 : index
    %131 = vector.load %arg30[%c0_86, %c3072] : memref<2x8192xf32, #tpu.memory_space<vmem>>, vector<1x256xf32>
    tpu.vector_store %arg30[%c0_86, %c3072], %130 {strides = array<i32>} : memref<2x8192xf32, #tpu.memory_space<vmem>>, vector<1x256xf32>,
    %c13 = arith.constant 13 : index
    %c0_87 = arith.constant 0 : index
    %132 = vector.load %arg29[%c13, %c0_87] : memref<64x256xf32, #tpu.memory_space<vmem>>, vector<1x256xf32>
    %c0_88 = arith.constant 0 : index
    %c3328 = arith.constant 3328 : index
    %133 = vector.load %arg30[%c0_88, %c3328] : memref<2x8192xf32, #tpu.memory_space<vmem>>, vector<1x256xf32>
    tpu.vector_store %arg30[%c0_88, %c3328], %132 {strides = array<i32>} : memref<2x8192xf32, #tpu.memory_space<vmem>>, vector<1x256xf32>,
    %c14 = arith.constant 14 : index
    %c0_89 = arith.constant 0 : index
    %134 = vector.load %arg29[%c14, %c0_89] : memref<64x256xf32, #tpu.memory_space<vmem>>, vector<1x256xf32>
    %c0_90 = arith.constant 0 : index
    %c3584 = arith.constant 3584 : index
    %135 = vector.load %arg30[%c0_90, %c3584] : memref<2x8192xf32, #tpu.memory_space<vmem>>, vector<1x256xf32>
    tpu.vector_store %arg30[%c0_90, %c3584], %134 {strides = array<i32>} : memref<2x8192xf32, #tpu.memory_space<vmem>>, vector<1x256xf32>,
    %c15 = arith.constant 15 : index
    %c0_91 = arith.constant 0 : index
    %136 = vector.load %arg29[%c15, %c0_91] : memref<64x256xf32, #tpu.memory_space<vmem>>, vector<1x256xf32>
    %c0_92 = arith.constant 0 : index
    %c3840 = arith.constant 3840 : index
    %137 = vector.load %arg30[%c0_92, %c3840] : memref<2x8192xf32, #tpu.memory_space<vmem>>, vector<1x256xf32>
    tpu.vector_store %arg30[%c0_92, %c3840], %136 {strides = array<i32>} : memref<2x8192xf32, #tpu.memory_space<vmem>>, vector<1x256xf32>,
    %c16 = arith.constant 16 : index
    %c0_93 = arith.constant 0 : index
    %138 = vector.load %arg29[%c16, %c0_93] : memref<64x256xf32, #tpu.memory_space<vmem>>, vector<1x256xf32>
    %c0_94 = arith.constant 0 : index
    %c4096 = arith.constant 4096 : index
    %139 = vector.load %arg30[%c0_94, %c4096] : memref<2x8192xf32, #tpu.memory_space<vmem>>, vector<1x256xf32>
    tpu.vector_store %arg30[%c0_94, %c4096], %138 {strides = array<i32>} : memref<2x8192xf32, #tpu.memory_space<vmem>>, vector<1x256xf32>,
    %c17 = arith.constant 17 : index
    %c0_95 = arith.constant 0 : index
    %140 = vector.load %arg29[%c17, %c0_95] : memref<64x256xf32, #tpu.memory_space<vmem>>, vector<1x256xf32>
    %c0_96 = arith.constant 0 : index
    %c4352 = arith.constant 4352 : index
    %141 = vector.load %arg30[%c0_96, %c4352] : memref<2x8192xf32, #tpu.memory_space<vmem>>, vector<1x256xf32>
    tpu.vector_store %arg30[%c0_96, %c4352], %140 {strides = array<i32>} : memref<2x8192xf32, #tpu.memory_space<vmem>>, vector<1x256xf32>,
    %c18 = arith.constant 18 : index
    %c0_97 = arith.constant 0 : index
    %142 = vector.load %arg29[%c18, %c0_97] : memref<64x256xf32, #tpu.memory_space<vmem>>, vector<1x256xf32>
    %c0_98 = arith.constant 0 : index
    %c4608 = arith.constant 4608 : index
    %143 = vector.load %arg30[%c0_98, %c4608] : memref<2x8192xf32, #tpu.memory_space<vmem>>, vector<1x256xf32>
    tpu.vector_store %arg30[%c0_98, %c4608], %142 {strides = array<i32>} : memref<2x8192xf32, #tpu.memory_space<vmem>>, vector<1x256xf32>,
    %c19 = arith.constant 19 : index
    %c0_99 = arith.constant 0 : index
    %144 = vector.load %arg29[%c19, %c0_99] : memref<64x256xf32, #tpu.memory_space<vmem>>, vector<1x256xf32>
    %c0_100 = arith.constant 0 : index
    %c4864 = arith.constant 4864 : index
    %145 = vector.load %arg30[%c0_100, %c4864] : memref<2x8192xf32, #tpu.memory_space<vmem>>, vector<1x256xf32>
    tpu.vector_store %arg30[%c0_100, %c4864], %144 {strides = array<i32>} : memref<2x8192xf32, #tpu.memory_space<vmem>>, vector<1x256xf32>,
    %c20 = arith.constant 20 : index
    %c0_101 = arith.constant 0 : index
    %146 = vector.load %arg29[%c20, %c0_101] : memref<64x256xf32, #tpu.memory_space<vmem>>, vector<1x256xf32>
    %c0_102 = arith.constant 0 : index
    %c5120 = arith.constant 5120 : index
    %147 = vector.load %arg30[%c0_102, %c5120] : memref<2x8192xf32, #tpu.memory_space<vmem>>, vector<1x256xf32>
    tpu.vector_store %arg30[%c0_102, %c5120], %146 {strides = array<i32>} : memref<2x8192xf32, #tpu.memory_space<vmem>>, vector<1x256xf32>,
    %c21 = arith.constant 21 : index
    %c0_103 = arith.constant 0 : index
    %148 = vector.load %arg29[%c21, %c0_103] : memref<64x256xf32, #tpu.memory_space<vmem>>, vector<1x256xf32>
    %c0_104 = arith.constant 0 : index
    %c5376 = arith.constant 5376 : index
    %149 = vector.load %arg30[%c0_104, %c5376] : memref<2x8192xf32, #tpu.memory_space<vmem>>, vector<1x256xf32>
    tpu.vector_store %arg30[%c0_104, %c5376], %148 {strides = array<i32>} : memref<2x8192xf32, #tpu.memory_space<vmem>>, vector<1x256xf32>,
    %c22 = arith.constant 22 : index
    %c0_105 = arith.constant 0 : index
    %150 = vector.load %arg29[%c22, %c0_105] : memref<64x256xf32, #tpu.memory_space<vmem>>, vector<1x256xf32>
    %c0_106 = arith.constant 0 : index
    %c5632 = arith.constant 5632 : index
    %151 = vector.load %arg30[%c0_106, %c5632] : memref<2x8192xf32, #tpu.memory_space<vmem>>, vector<1x256xf32>
    tpu.vector_store %arg30[%c0_106, %c5632], %150 {strides = array<i32>} : memref<2x8192xf32, #tpu.memory_space<vmem>>, vector<1x256xf32>,
    %c23 = arith.constant 23 : index
    %c0_107 = arith.constant 0 : index
    %152 = vector.load %arg29[%c23, %c0_107] : memref<64x256xf32, #tpu.memory_space<vmem>>, vector<1x256xf32>
    %c0_108 = arith.constant 0 : index
    %c5888 = arith.constant 5888 : index
    %153 = vector.load %arg30[%c0_108, %c5888] : memref<2x8192xf32, #tpu.memory_space<vmem>>, vector<1x256xf32>
    tpu.vector_store %arg30[%c0_108, %c5888], %152 {strides = array<i32>} : memref<2x8192xf32, #tpu.memory_space<vmem>>, vector<1x256xf32>,
    %c24 = arith.constant 24 : index
    %c0_109 = arith.constant 0 : index
    %154 = vector.load %arg29[%c24, %c0_109] : memref<64x256xf32, #tpu.memory_space<vmem>>, vector<1x256xf32>
    %c0_110 = arith.constant 0 : index
    %c6144 = arith.constant 6144 : index
    %155 = vector.load %arg30[%c0_110, %c6144] : memref<2x8192xf32, #tpu.memory_space<vmem>>, vector<1x256xf32>
    tpu.vector_store %arg30[%c0_110, %c6144], %154 {strides = array<i32>} : memref<2x8192xf32, #tpu.memory_space<vmem>>, vector<1x256xf32>,
    %c25 = arith.constant 25 : index
    %c0_111 = arith.constant 0 : index
    %156 = vector.load %arg29[%c25, %c0_111] : memref<64x256xf32, #tpu.memory_space<vmem>>, vector<1x256xf32>
    %c0_112 = arith.constant 0 : index
    %c6400 = arith.constant 6400 : index
    %157 = vector.load %arg30[%c0_112, %c6400] : memref<2x8192xf32, #tpu.memory_space<vmem>>, vector<1x256xf32>
    tpu.vector_store %arg30[%c0_112, %c6400], %156 {strides = array<i32>} : memref<2x8192xf32, #tpu.memory_space<vmem>>, vector<1x256xf32>,
    %c26 = arith.constant 26 : index
    %c0_113 = arith.constant 0 : index
    %158 = vector.load %arg29[%c26, %c0_113] : memref<64x256xf32, #tpu.memory_space<vmem>>, vector<1x256xf32>
    %c0_114 = arith.constant 0 : index
    %c6656 = arith.constant 6656 : index
    %159 = vector.load %arg30[%c0_114, %c6656] : memref<2x8192xf32, #tpu.memory_space<vmem>>, vector<1x256xf32>
    tpu.vector_store %arg30[%c0_114, %c6656], %158 {strides = array<i32>} : memref<2x8192xf32, #tpu.memory_space<vmem>>, vector<1x256xf32>,
    %c27 = arith.constant 27 : index
    %c0_115 = arith.constant 0 : index
    %160 = vector.load %arg29[%c27, %c0_115] : memref<64x256xf32, #tpu.memory_space<vmem>>, vector<1x256xf32>
    %c0_116 = arith.constant 0 : index
    %c6912 = arith.constant 6912 : index
    %161 = vector.load %arg30[%c0_116, %c6912] : memref<2x8192xf32, #tpu.memory_space<vmem>>, vector<1x256xf32>
    tpu.vector_store %arg30[%c0_116, %c6912], %160 {strides = array<i32>} : memref<2x8192xf32, #tpu.memory_space<vmem>>, vector<1x256xf32>,
    %c28 = arith.constant 28 : index
    %c0_117 = arith.constant 0 : index
    %162 = vector.load %arg29[%c28, %c0_117] : memref<64x256xf32, #tpu.memory_space<vmem>>, vector<1x256xf32>
    %c0_118 = arith.constant 0 : index
    %c7168 = arith.constant 7168 : index
    %163 = vector.load %arg30[%c0_118, %c7168] : memref<2x8192xf32, #tpu.memory_space<vmem>>, vector<1x256xf32>
    tpu.vector_store %arg30[%c0_118, %c7168], %162 {strides = array<i32>} : memref<2x8192xf32, #tpu.memory_space<vmem>>, vector<1x256xf32>,
    %c29 = arith.constant 29 : index
    %c0_119 = arith.constant 0 : index
    %164 = vector.load %arg29[%c29, %c0_119] : memref<64x256xf32, #tpu.memory_space<vmem>>, vector<1x256xf32>
    %c0_120 = arith.constant 0 : index
    %c7424 = arith.constant 7424 : index
    %165 = vector.load %arg30[%c0_120, %c7424] : memref<2x8192xf32, #tpu.memory_space<vmem>>, vector<1x256xf32>
    tpu.vector_store %arg30[%c0_120, %c7424], %164 {strides = array<i32>} : memref<2x8192xf32, #tpu.memory_space<vmem>>, vector<1x256xf32>,
    %c30 = arith.constant 30 : index
    %c0_121 = arith.constant 0 : index
    %166 = vector.load %arg29[%c30, %c0_121] : memref<64x256xf32, #tpu.memory_space<vmem>>, vector<1x256xf32>
    %c0_122 = arith.constant 0 : index
    %c7680 = arith.constant 7680 : index
    %167 = vector.load %arg30[%c0_122, %c7680] : memref<2x8192xf32, #tpu.memory_space<vmem>>, vector<1x256xf32>
    tpu.vector_store %arg30[%c0_122, %c7680], %166 {strides = array<i32>} : memref<2x8192xf32, #tpu.memory_space<vmem>>, vector<1x256xf32>,
    %c31 = arith.constant 31 : index
    %c0_123 = arith.constant 0 : index
    %168 = vector.load %arg29[%c31, %c0_123] : memref<64x256xf32, #tpu.memory_space<vmem>>, vector<1x256xf32>
    %c0_124 = arith.constant 0 : index
    %c7936 = arith.constant 7936 : index
    %169 = vector.load %arg30[%c0_124, %c7936] : memref<2x8192xf32, #tpu.memory_space<vmem>>, vector<1x256xf32>
    tpu.vector_store %arg30[%c0_124, %c7936], %168 {strides = array<i32>} : memref<2x8192xf32, #tpu.memory_space<vmem>>, vector<1x256xf32>,
    %c32 = arith.constant 32 : index
    %c0_125 = arith.constant 0 : index
    %170 = vector.load %arg29[%c32, %c0_125] : memref<64x256xf32, #tpu.memory_space<vmem>>, vector<1x256xf32>
    %c1_126 = arith.constant 1 : index
    %c0_127 = arith.constant 0 : index
    %171 = vector.load %arg30[%c1_126, %c0_127] : memref<2x8192xf32, #tpu.memory_space<vmem>>, vector<1x256xf32>
    tpu.vector_store %arg30[%c1_126, %c0_127], %170 {strides = array<i32>} : memref<2x8192xf32, #tpu.memory_space<vmem>>, vector<1x256xf32>,
    %c33 = arith.constant 33 : index
    %c0_128 = arith.constant 0 : index
    %172 = vector.load %arg29[%c33, %c0_128] : memref<64x256xf32, #tpu.memory_space<vmem>>, vector<1x256xf32>
    %c1_129 = arith.constant 1 : index
    %c256_130 = arith.constant 256 : index
    %173 = vector.load %arg30[%c1_129, %c256_130] : memref<2x8192xf32, #tpu.memory_space<vmem>>, vector<1x256xf32>
    tpu.vector_store %arg30[%c1_129, %c256_130], %172 {strides = array<i32>} : memref<2x8192xf32, #tpu.memory_space<vmem>>, vector<1x256xf32>,
    %c34 = arith.constant 34 : index
    %c0_131 = arith.constant 0 : index
    %174 = vector.load %arg29[%c34, %c0_131] : memref<64x256xf32, #tpu.memory_space<vmem>>, vector<1x256xf32>
    %c1_132 = arith.constant 1 : index
    %c512_133 = arith.constant 512 : index
    %175 = vector.load %arg30[%c1_132, %c512_133] : memref<2x8192xf32, #tpu.memory_space<vmem>>, vector<1x256xf32>
    tpu.vector_store %arg30[%c1_132, %c512_133], %174 {strides = array<i32>} : memref<2x8192xf32, #tpu.memory_space<vmem>>, vector<1x256xf32>,
    %c35 = arith.constant 35 : index
    %c0_134 = arith.constant 0 : index
    %176 = vector.load %arg29[%c35, %c0_134] : memref<64x256xf32, #tpu.memory_space<vmem>>, vector<1x256xf32>
    %c1_135 = arith.constant 1 : index
    %c768_136 = arith.constant 768 : index
    %177 = vector.load %arg30[%c1_135, %c768_136] : memref<2x8192xf32, #tpu.memory_space<vmem>>, vector<1x256xf32>
    tpu.vector_store %arg30[%c1_135, %c768_136], %176 {strides = array<i32>} : memref<2x8192xf32, #tpu.memory_space<vmem>>, vector<1x256xf32>,
    %c36 = arith.constant 36 : index
    %c0_137 = arith.constant 0 : index
    %178 = vector.load %arg29[%c36, %c0_137] : memref<64x256xf32, #tpu.memory_space<vmem>>, vector<1x256xf32>
    %c1_138 = arith.constant 1 : index
    %c1024_139 = arith.constant 1024 : index
    %179 = vector.load %arg30[%c1_138, %c1024_139] : memref<2x8192xf32, #tpu.memory_space<vmem>>, vector<1x256xf32>
    tpu.vector_store %arg30[%c1_138, %c1024_139], %178 {strides = array<i32>} : memref<2x8192xf32, #tpu.memory_space<vmem>>, vector<1x256xf32>,
    %c37 = arith.constant 37 : index
    %c0_140 = arith.constant 0 : index
    %180 = vector.load %arg29[%c37, %c0_140] : memref<64x256xf32, #tpu.memory_space<vmem>>, vector<1x256xf32>
    %c1_141 = arith.constant 1 : index
    %c1280_142 = arith.constant 1280 : index
    %181 = vector.load %arg30[%c1_141, %c1280_142] : memref<2x8192xf32, #tpu.memory_space<vmem>>, vector<1x256xf32>
    tpu.vector_store %arg30[%c1_141, %c1280_142], %180 {strides = array<i32>} : memref<2x8192xf32, #tpu.memory_space<vmem>>, vector<1x256xf32>,
    %c38 = arith.constant 38 : index
    %c0_143 = arith.constant 0 : index
    %182 = vector.load %arg29[%c38, %c0_143] : memref<64x256xf32, #tpu.memory_space<vmem>>, vector<1x256xf32>
    %c1_144 = arith.constant 1 : index
    %c1536_145 = arith.constant 1536 : index
    %183 = vector.load %arg30[%c1_144, %c1536_145] : memref<2x8192xf32, #tpu.memory_space<vmem>>, vector<1x256xf32>
    tpu.vector_store %arg30[%c1_144, %c1536_145], %182 {strides = array<i32>} : memref<2x8192xf32, #tpu.memory_space<vmem>>, vector<1x256xf32>,
    %c39 = arith.constant 39 : index
    %c0_146 = arith.constant 0 : index
    %184 = vector.load %arg29[%c39, %c0_146] : memref<64x256xf32, #tpu.memory_space<vmem>>, vector<1x256xf32>
    %c1_147 = arith.constant 1 : index
    %c1792_148 = arith.constant 1792 : index
    %185 = vector.load %arg30[%c1_147, %c1792_148] : memref<2x8192xf32, #tpu.memory_space<vmem>>, vector<1x256xf32>
    tpu.vector_store %arg30[%c1_147, %c1792_148], %184 {strides = array<i32>} : memref<2x8192xf32, #tpu.memory_space<vmem>>, vector<1x256xf32>,
    %c40 = arith.constant 40 : index
    %c0_149 = arith.constant 0 : index
    %186 = vector.load %arg29[%c40, %c0_149] : memref<64x256xf32, #tpu.memory_space<vmem>>, vector<1x256xf32>
    %c1_150 = arith.constant 1 : index
    %c2048_151 = arith.constant 2048 : index
    %187 = vector.load %arg30[%c1_150, %c2048_151] : memref<2x8192xf32, #tpu.memory_space<vmem>>, vector<1x256xf32>
    tpu.vector_store %arg30[%c1_150, %c2048_151], %186 {strides = array<i32>} : memref<2x8192xf32, #tpu.memory_space<vmem>>, vector<1x256xf32>,
    %c41 = arith.constant 41 : index
    %c0_152 = arith.constant 0 : index
    %188 = vector.load %arg29[%c41, %c0_152] : memref<64x256xf32, #tpu.memory_space<vmem>>, vector<1x256xf32>
    %c1_153 = arith.constant 1 : index
    %c2304_154 = arith.constant 2304 : index
    %189 = vector.load %arg30[%c1_153, %c2304_154] : memref<2x8192xf32, #tpu.memory_space<vmem>>, vector<1x256xf32>
    tpu.vector_store %arg30[%c1_153, %c2304_154], %188 {strides = array<i32>} : memref<2x8192xf32, #tpu.memory_space<vmem>>, vector<1x256xf32>,
    %c42 = arith.constant 42 : index
    %c0_155 = arith.constant 0 : index
    %190 = vector.load %arg29[%c42, %c0_155] : memref<64x256xf32, #tpu.memory_space<vmem>>, vector<1x256xf32>
    %c1_156 = arith.constant 1 : index
    %c2560_157 = arith.constant 2560 : index
    %191 = vector.load %arg30[%c1_156, %c2560_157] : memref<2x8192xf32, #tpu.memory_space<vmem>>, vector<1x256xf32>
    tpu.vector_store %arg30[%c1_156, %c2560_157], %190 {strides = array<i32>} : memref<2x8192xf32, #tpu.memory_space<vmem>>, vector<1x256xf32>,
    %c43 = arith.constant 43 : index
    %c0_158 = arith.constant 0 : index
    %192 = vector.load %arg29[%c43, %c0_158] : memref<64x256xf32, #tpu.memory_space<vmem>>, vector<1x256xf32>
    %c1_159 = arith.constant 1 : index
    %c2816_160 = arith.constant 2816 : index
    %193 = vector.load %arg30[%c1_159, %c2816_160] : memref<2x8192xf32, #tpu.memory_space<vmem>>, vector<1x256xf32>
    tpu.vector_store %arg30[%c1_159, %c2816_160], %192 {strides = array<i32>} : memref<2x8192xf32, #tpu.memory_space<vmem>>, vector<1x256xf32>,
    %c44 = arith.constant 44 : index
    %c0_161 = arith.constant 0 : index
    %194 = vector.load %arg29[%c44, %c0_161] : memref<64x256xf32, #tpu.memory_space<vmem>>, vector<1x256xf32>
    %c1_162 = arith.constant 1 : index
    %c3072_163 = arith.constant 3072 : index
    %195 = vector.load %arg30[%c1_162, %c3072_163] : memref<2x8192xf32, #tpu.memory_space<vmem>>, vector<1x256xf32>
    tpu.vector_store %arg30[%c1_162, %c3072_163], %194 {strides = array<i32>} : memref<2x8192xf32, #tpu.memory_space<vmem>>, vector<1x256xf32>,
    %c45 = arith.constant 45 : index
    %c0_164 = arith.constant 0 : index
    %196 = vector.load %arg29[%c45, %c0_164] : memref<64x256xf32, #tpu.memory_space<vmem>>, vector<1x256xf32>
    %c1_165 = arith.constant 1 : index
    %c3328_166 = arith.constant 3328 : index
    %197 = vector.load %arg30[%c1_165, %c3328_166] : memref<2x8192xf32, #tpu.memory_space<vmem>>, vector<1x256xf32>
    tpu.vector_store %arg30[%c1_165, %c3328_166], %196 {strides = array<i32>} : memref<2x8192xf32, #tpu.memory_space<vmem>>, vector<1x256xf32>,
    %c46 = arith.constant 46 : index
    %c0_167 = arith.constant 0 : index
    %198 = vector.load %arg29[%c46, %c0_167] : memref<64x256xf32, #tpu.memory_space<vmem>>, vector<1x256xf32>
    %c1_168 = arith.constant 1 : index
    %c3584_169 = arith.constant 3584 : index
    %199 = vector.load %arg30[%c1_168, %c3584_169] : memref<2x8192xf32, #tpu.memory_space<vmem>>, vector<1x256xf32>
    tpu.vector_store %arg30[%c1_168, %c3584_169], %198 {strides = array<i32>} : memref<2x8192xf32, #tpu.memory_space<vmem>>, vector<1x256xf32>,
    %c47 = arith.constant 47 : index
    %c0_170 = arith.constant 0 : index
    %200 = vector.load %arg29[%c47, %c0_170] : memref<64x256xf32, #tpu.memory_space<vmem>>, vector<1x256xf32>
    %c1_171 = arith.constant 1 : index
    %c3840_172 = arith.constant 3840 : index
    %201 = vector.load %arg30[%c1_171, %c3840_172] : memref<2x8192xf32, #tpu.memory_space<vmem>>, vector<1x256xf32>
    tpu.vector_store %arg30[%c1_171, %c3840_172], %200 {strides = array<i32>} : memref<2x8192xf32, #tpu.memory_space<vmem>>, vector<1x256xf32>,
    %c48 = arith.constant 48 : index
    %c0_173 = arith.constant 0 : index
    %202 = vector.load %arg29[%c48, %c0_173] : memref<64x256xf32, #tpu.memory_space<vmem>>, vector<1x256xf32>
    %c1_174 = arith.constant 1 : index
    %c4096_175 = arith.constant 4096 : index
    %203 = vector.load %arg30[%c1_174, %c4096_175] : memref<2x8192xf32, #tpu.memory_space<vmem>>, vector<1x256xf32>
    tpu.vector_store %arg30[%c1_174, %c4096_175], %202 {strides = array<i32>} : memref<2x8192xf32, #tpu.memory_space<vmem>>, vector<1x256xf32>,
    %c49 = arith.constant 49 : index
    %c0_176 = arith.constant 0 : index
    %204 = vector.load %arg29[%c49, %c0_176] : memref<64x256xf32, #tpu.memory_space<vmem>>, vector<1x256xf32>
    %c1_177 = arith.constant 1 : index
    %c4352_178 = arith.constant 4352 : index
    %205 = vector.load %arg30[%c1_177, %c4352_178] : memref<2x8192xf32, #tpu.memory_space<vmem>>, vector<1x256xf32>
    tpu.vector_store %arg30[%c1_177, %c4352_178], %204 {strides = array<i32>} : memref<2x8192xf32, #tpu.memory_space<vmem>>, vector<1x256xf32>,
    %c50 = arith.constant 50 : index
    %c0_179 = arith.constant 0 : index
    %206 = vector.load %arg29[%c50, %c0_179] : memref<64x256xf32, #tpu.memory_space<vmem>>, vector<1x256xf32>
    %c1_180 = arith.constant 1 : index
    %c4608_181 = arith.constant 4608 : index
    %207 = vector.load %arg30[%c1_180, %c4608_181] : memref<2x8192xf32, #tpu.memory_space<vmem>>, vector<1x256xf32>
    tpu.vector_store %arg30[%c1_180, %c4608_181], %206 {strides = array<i32>} : memref<2x8192xf32, #tpu.memory_space<vmem>>, vector<1x256xf32>,
    %c51 = arith.constant 51 : index
    %c0_182 = arith.constant 0 : index
    %208 = vector.load %arg29[%c51, %c0_182] : memref<64x256xf32, #tpu.memory_space<vmem>>, vector<1x256xf32>
    %c1_183 = arith.constant 1 : index
    %c4864_184 = arith.constant 4864 : index
    %209 = vector.load %arg30[%c1_183, %c4864_184] : memref<2x8192xf32, #tpu.memory_space<vmem>>, vector<1x256xf32>
    tpu.vector_store %arg30[%c1_183, %c4864_184], %208 {strides = array<i32>} : memref<2x8192xf32, #tpu.memory_space<vmem>>, vector<1x256xf32>,
    %c52 = arith.constant 52 : index
    %c0_185 = arith.constant 0 : index
    %210 = vector.load %arg29[%c52, %c0_185] : memref<64x256xf32, #tpu.memory_space<vmem>>, vector<1x256xf32>
    %c1_186 = arith.constant 1 : index
    %c5120_187 = arith.constant 5120 : index
    %211 = vector.load %arg30[%c1_186, %c5120_187] : memref<2x8192xf32, #tpu.memory_space<vmem>>, vector<1x256xf32>
    tpu.vector_store %arg30[%c1_186, %c5120_187], %210 {strides = array<i32>} : memref<2x8192xf32, #tpu.memory_space<vmem>>, vector<1x256xf32>,
    %c53 = arith.constant 53 : index
    %c0_188 = arith.constant 0 : index
    %212 = vector.load %arg29[%c53, %c0_188] : memref<64x256xf32, #tpu.memory_space<vmem>>, vector<1x256xf32>
    %c1_189 = arith.constant 1 : index
    %c5376_190 = arith.constant 5376 : index
    %213 = vector.load %arg30[%c1_189, %c5376_190] : memref<2x8192xf32, #tpu.memory_space<vmem>>, vector<1x256xf32>
    tpu.vector_store %arg30[%c1_189, %c5376_190], %212 {strides = array<i32>} : memref<2x8192xf32, #tpu.memory_space<vmem>>, vector<1x256xf32>,
    %c54 = arith.constant 54 : index
    %c0_191 = arith.constant 0 : index
    %214 = vector.load %arg29[%c54, %c0_191] : memref<64x256xf32, #tpu.memory_space<vmem>>, vector<1x256xf32>
    %c1_192 = arith.constant 1 : index
    %c5632_193 = arith.constant 5632 : index
    %215 = vector.load %arg30[%c1_192, %c5632_193] : memref<2x8192xf32, #tpu.memory_space<vmem>>, vector<1x256xf32>
    tpu.vector_store %arg30[%c1_192, %c5632_193], %214 {strides = array<i32>} : memref<2x8192xf32, #tpu.memory_space<vmem>>, vector<1x256xf32>,
    %c55 = arith.constant 55 : index
    %c0_194 = arith.constant 0 : index
    %216 = vector.load %arg29[%c55, %c0_194] : memref<64x256xf32, #tpu.memory_space<vmem>>, vector<1x256xf32>
    %c1_195 = arith.constant 1 : index
    %c5888_196 = arith.constant 5888 : index
    %217 = vector.load %arg30[%c1_195, %c5888_196] : memref<2x8192xf32, #tpu.memory_space<vmem>>, vector<1x256xf32>
    tpu.vector_store %arg30[%c1_195, %c5888_196], %216 {strides = array<i32>} : memref<2x8192xf32, #tpu.memory_space<vmem>>, vector<1x256xf32>,
    %c56 = arith.constant 56 : index
    %c0_197 = arith.constant 0 : index
    %218 = vector.load %arg29[%c56, %c0_197] : memref<64x256xf32, #tpu.memory_space<vmem>>, vector<1x256xf32>
    %c1_198 = arith.constant 1 : index
    %c6144_199 = arith.constant 6144 : index
    %219 = vector.load %arg30[%c1_198, %c6144_199] : memref<2x8192xf32, #tpu.memory_space<vmem>>, vector<1x256xf32>
    tpu.vector_store %arg30[%c1_198, %c6144_199], %218 {strides = array<i32>} : memref<2x8192xf32, #tpu.memory_space<vmem>>, vector<1x256xf32>,
    %c57 = arith.constant 57 : index
    %c0_200 = arith.constant 0 : index
    %220 = vector.load %arg29[%c57, %c0_200] : memref<64x256xf32, #tpu.memory_space<vmem>>, vector<1x256xf32>
    %c1_201 = arith.constant 1 : index
    %c6400_202 = arith.constant 6400 : index
    %221 = vector.load %arg30[%c1_201, %c6400_202] : memref<2x8192xf32, #tpu.memory_space<vmem>>, vector<1x256xf32>
    tpu.vector_store %arg30[%c1_201, %c6400_202], %220 {strides = array<i32>} : memref<2x8192xf32, #tpu.memory_space<vmem>>, vector<1x256xf32>,
    %c58 = arith.constant 58 : index
    %c0_203 = arith.constant 0 : index
    %222 = vector.load %arg29[%c58, %c0_203] : memref<64x256xf32, #tpu.memory_space<vmem>>, vector<1x256xf32>
    %c1_204 = arith.constant 1 : index
    %c6656_205 = arith.constant 6656 : index
    %223 = vector.load %arg30[%c1_204, %c6656_205] : memref<2x8192xf32, #tpu.memory_space<vmem>>, vector<1x256xf32>
    tpu.vector_store %arg30[%c1_204, %c6656_205], %222 {strides = array<i32>} : memref<2x8192xf32, #tpu.memory_space<vmem>>, vector<1x256xf32>,
    %c59 = arith.constant 59 : index
    %c0_206 = arith.constant 0 : index
    %224 = vector.load %arg29[%c59, %c0_206] : memref<64x256xf32, #tpu.memory_space<vmem>>, vector<1x256xf32>
    %c1_207 = arith.constant 1 : index
    %c6912_208 = arith.constant 6912 : index
    %225 = vector.load %arg30[%c1_207, %c6912_208] : memref<2x8192xf32, #tpu.memory_space<vmem>>, vector<1x256xf32>
    tpu.vector_store %arg30[%c1_207, %c6912_208], %224 {strides = array<i32>} : memref<2x8192xf32, #tpu.memory_space<vmem>>, vector<1x256xf32>,
    %c60 = arith.constant 60 : index
    %c0_209 = arith.constant 0 : index
    %226 = vector.load %arg29[%c60, %c0_209] : memref<64x256xf32, #tpu.memory_space<vmem>>, vector<1x256xf32>
    %c1_210 = arith.constant 1 : index
    %c7168_211 = arith.constant 7168 : index
    %227 = vector.load %arg30[%c1_210, %c7168_211] : memref<2x8192xf32, #tpu.memory_space<vmem>>, vector<1x256xf32>
    tpu.vector_store %arg30[%c1_210, %c7168_211], %226 {strides = array<i32>} : memref<2x8192xf32, #tpu.memory_space<vmem>>, vector<1x256xf32>,
    %c61 = arith.constant 61 : index
    %c0_212 = arith.constant 0 : index
    %228 = vector.load %arg29[%c61, %c0_212] : memref<64x256xf32, #tpu.memory_space<vmem>>, vector<1x256xf32>
    %c1_213 = arith.constant 1 : index
    %c7424_214 = arith.constant 7424 : index
    %229 = vector.load %arg30[%c1_213, %c7424_214] : memref<2x8192xf32, #tpu.memory_space<vmem>>, vector<1x256xf32>
    tpu.vector_store %arg30[%c1_213, %c7424_214], %228 {strides = array<i32>} : memref<2x8192xf32, #tpu.memory_space<vmem>>, vector<1x256xf32>,
    %c62 = arith.constant 62 : index
    %c0_215 = arith.constant 0 : index
    %230 = vector.load %arg29[%c62, %c0_215] : memref<64x256xf32, #tpu.memory_space<vmem>>, vector<1x256xf32>
    %c1_216 = arith.constant 1 : index
    %c7680_217 = arith.constant 7680 : index
    %231 = vector.load %arg30[%c1_216, %c7680_217] : memref<2x8192xf32, #tpu.memory_space<vmem>>, vector<1x256xf32>
    tpu.vector_store %arg30[%c1_216, %c7680_217], %230 {strides = array<i32>} : memref<2x8192xf32, #tpu.memory_space<vmem>>, vector<1x256xf32>,
    %c63 = arith.constant 63 : index
    %c0_218 = arith.constant 0 : index
    %232 = vector.load %arg29[%c63, %c0_218] : memref<64x256xf32, #tpu.memory_space<vmem>>, vector<1x256xf32>
    %c1_219 = arith.constant 1 : index
    %c7936_220 = arith.constant 7936 : index
    %233 = vector.load %arg30[%c1_219, %c7936_220] : memref<2x8192xf32, #tpu.memory_space<vmem>>, vector<1x256xf32>
    tpu.vector_store %arg30[%c1_219, %c7936_220], %232 {strides = array<i32>} : memref<2x8192xf32, #tpu.memory_space<vmem>>, vector<1x256xf32>,
    %c0_221 = arith.constant 0 : index
    %c0_222 = arith.constant 0 : index
    %234 = vector.load %arg30[%c0_221, %c0_222] : memref<2x8192xf32, #tpu.memory_space<vmem>>, vector<2x8192xf32>
    %c0_i32_223 = arith.constant 0 : i32
    %235 = tpu.memref_slice %arg31[%c0_i32_223] : memref<4x!tpu.dma_semaphore, #tpu.memory_space<semaphore_mem>> -> memref<1x!tpu.dma_semaphore, #tpu.memory_space<semaphore_mem>>
    %236 = tpu.memref_squeeze %235 : memref<1x!tpu.dma_semaphore, #tpu.memory_space<semaphore_mem>> -> memref<!tpu.dma_semaphore, #tpu.memory_space<semaphore_mem>>
    tpu.wait_dma2 semaphore(%236 : memref<!tpu.dma_semaphore, #tpu.memory_space<semaphore_mem>>) src(%arg15 : memref<16x8192xf32, #tpu.memory_space<any>>) dst(%arg24 : memref<16x8192xf32, #tpu.memory_space<vmem>>)
    %c0_224 = arith.constant 0 : index
    %c0_225 = arith.constant 0 : index
    %237 = vector.load %arg24[%c0_224, %c0_225] : memref<16x8192xf32, #tpu.memory_space<vmem>>, vector<16x8192xf32>
    %cst_226 = arith.constant dense<0.000000e+00> : vector<2x16xf32>
    %238 = tpu.matmul %234, %237, %cst_226 {dimension_numbers = #tpu.dot_dimension_numbers<[1], [1], [0], [0], [0, 0, 1, 0], [], []>} : vector<2x8192xf32>, vector<16x8192xf32>, vector<2x16xf32> -> vector<2x16xf32>
    %c0_227 = arith.constant 0 : index
    %c0_228 = arith.constant 0 : index
    %239 = vector.load %arg9[%c0_227, %c0_228] : memref<1x16xf32, #tpu.memory_space<vmem>>, vector<1x16xf32>
    %240 = vector.broadcast %239 : vector<1x16xf32> to vector<2x16xf32>
    %241 = arith.addf %238, %240 : vector<2x16xf32>
    %c0_229 = arith.constant 0 : index
    %c0_230 = arith.constant 0 : index
    %242 = vector.load %arg19[%c0_229, %c0_230] : memref<2x16xf32, #tpu.memory_space<vmem>>, vector<2x16xf32>
    tpu.vector_store %arg19[%c0_229, %c0_230], %241 {strides = array<i32>} : memref<2x16xf32, #tpu.memory_space<vmem>>, vector<2x16xf32>,
    %243 = vector.extract_strided_slice %241 {offsets = [0, 0], sizes = [2, 8], strides = [1, 1]} : vector<2x16xf32> to vector<2x8xf32>
    %244 = vector.extract_strided_slice %241 {offsets = [0, 8], sizes = [2, 8], strides = [1, 1]} : vector<2x16xf32> to vector<2x8xf32>
    %c0_231 = arith.constant 0 : index
    %c0_232 = arith.constant 0 : index
    %245 = vector.load %arg2[%c0_231, %c0_232] : memref<2x8xf32, #tpu.memory_space<vmem>>, vector<2x8xf32>
    %cst_233 = arith.constant 5.000000e-01 : f32
    %246 = vector.broadcast %cst_233 : f32 to vector<2x8xf32>
    %247 = arith.mulf %246, %244 : vector<2x8xf32>
    %248 = math.exp %247 : vector<2x8xf32>
    %249 = arith.mulf %245, %248 : vector<2x8xf32>
    %250 = arith.addf %243, %249 : vector<2x8xf32>
    %c0_234 = arith.constant 0 : index
    %c0_235 = arith.constant 0 : index
    %251 = vector.load %arg10[%c0_234, %c0_235] : memref<8x256xf32, #tpu.memory_space<vmem>>, vector<8x256xf32>
    %cst_236 = arith.constant dense<0.000000e+00> : vector<2x256xf32>
    %252 = tpu.matmul %250, %251, %cst_236 {dimension_numbers = #tpu.dot_dimension_numbers<[1], [0], [0], [1], [0, 0, 1, 1], [], []>} : vector<2x8xf32>, vector<8x256xf32>, vector<2x256xf32> -> vector<2x256xf32>
    %c0_237 = arith.constant 0 : index
    %c0_238 = arith.constant 0 : index
    %253 = vector.load %arg11[%c0_237, %c0_238] : memref<1x256xf32, #tpu.memory_space<vmem>>, vector<1x256xf32>
    %254 = vector.broadcast %253 : vector<1x256xf32> to vector<2x256xf32>
    %255 = arith.addf %252, %254 : vector<2x256xf32>
    %c1_i32_239 = arith.constant 1 : i32
    %256 = tpu.memref_slice %arg31[%c1_i32_239] : memref<4x!tpu.dma_semaphore, #tpu.memory_space<semaphore_mem>> -> memref<1x!tpu.dma_semaphore, #tpu.memory_space<semaphore_mem>>
    %257 = tpu.memref_squeeze %256 : memref<1x!tpu.dma_semaphore, #tpu.memory_space<semaphore_mem>> -> memref<!tpu.dma_semaphore, #tpu.memory_space<semaphore_mem>>
    tpu.wait_dma2 semaphore(%257 : memref<!tpu.dma_semaphore, #tpu.memory_space<semaphore_mem>>) src(%arg16 : memref<768x128xf32, #tpu.memory_space<any>>) dst(%arg25 : memref<768x128xf32, #tpu.memory_space<vmem>>)
    %c0_240 = arith.constant 0 : index
    %c0_241 = arith.constant 0 : index
    %258 = vector.load %arg12[%c0_240, %c0_241] : memref<1x128xf32, #tpu.memory_space<vmem>>, vector<1x128xf32>
    %c0_242 = arith.constant 0 : index
    %c0_243 = arith.constant 0 : index
    %259 = vector.load %arg25[%c0_242, %c0_243] : memref<768x128xf32, #tpu.memory_space<vmem>>, vector<256x128xf32>
    %c256_244 = arith.constant 256 : index
    %c0_245 = arith.constant 0 : index
    %260 = vector.load %arg25[%c256_244, %c0_245] : memref<768x128xf32, #tpu.memory_space<vmem>>, vector<512x128xf32>
    %cst_246 = arith.constant 0.000000e+00 : f32
    %261 = vector.broadcast %cst_246 : f32 to vector<2x256xf32>
    %cst_247 = arith.constant dense<0.000000e+00> : vector<2x128xf32>
    %262 = tpu.matmul %255, %259, %cst_247 {dimension_numbers = #tpu.dot_dimension_numbers<[1], [0], [0], [1], [0, 0, 1, 1], [], []>} : vector<2x256xf32>, vector<256x128xf32>, vector<2x128xf32> -> vector<2x128xf32>
    %263 = vector.broadcast %258 : vector<1x128xf32> to vector<2x128xf32>
    %264 = arith.addf %262, %263 : vector<2x128xf32>
    %265 = tpu.concatenate %255, %261 in 1 : vector<2x256xf32>, vector<2x256xf32> -> vector<2x512xf32>
    %cst_248 = arith.constant dense<0.000000e+00> : vector<2x128xf32>
    %266 = tpu.matmul %265, %260, %cst_248 {dimension_numbers = #tpu.dot_dimension_numbers<[1], [0], [0], [1], [0, 0, 1, 1], [], []>} : vector<2x512xf32>, vector<512x128xf32>, vector<2x128xf32> -> vector<2x128xf32>
    %267 = vector.broadcast %258 : vector<1x128xf32> to vector<2x128xf32>
    %268 = arith.addf %266, %267 : vector<2x128xf32>
    %cst_249 = arith.constant 0.000000e+00 : f32
    %269 = vector.broadcast %cst_249 : f32 to vector<2x128xf32>
    %270 = arith.maximumf %264, %269 : vector<2x128xf32>
    %cst_250 = arith.constant 0.000000e+00 : f32
    %271 = vector.broadcast %cst_250 : f32 to vector<2x128xf32>
    %272 = arith.maximumf %268, %271 : vector<2x128xf32>
    %273 = vector.shape_cast %270 : vector<2x128xf32> to vector<2x128x1xf32>
    %274 = vector.shape_cast %270 : vector<2x128xf32> to vector<2x1x128xf32>
    %275 = vector.broadcast %273 : vector<2x128x1xf32> to vector<2x128x128xf32>
    %276 = vector.broadcast %274 : vector<2x1x128xf32> to vector<2x128x128xf32>
    %277 = arith.mulf %275, %276 : vector<2x128x128xf32>
    %278 = vector.shape_cast %272 : vector<2x128xf32> to vector<2x128x1xf32>
    %279 = vector.shape_cast %272 : vector<2x128xf32> to vector<2x1x128xf32>
    %280 = vector.broadcast %278 : vector<2x128x1xf32> to vector<2x128x128xf32>
    %281 = vector.broadcast %279 : vector<2x1x128xf32> to vector<2x128x128xf32>
    %282 = arith.mulf %280, %281 : vector<2x128x128xf32>
    %283 = arith.addf %277, %282 : vector<2x128x128xf32>
    %cst_251 = arith.constant dense<0xFF800000> : vector<2x128xf32>
    %284 = vector.multi_reduction <maximumf>, %283, %cst_251 [2] : vector<2x128x128xf32> to vector<2x128xf32>
    %285 = vector.shape_cast %284 : vector<2x128xf32> to vector<2x128x1xf32>
    %286 = vector.broadcast %285 : vector<2x128x1xf32> to vector<2x128x128xf32>
    %287 = arith.subf %283, %286 : vector<2x128x128xf32>
    %288 = math.exp %287 : vector<2x128x128xf32>
    %cst_252 = arith.constant dense<0.000000e+00> : vector<2x128xf32>
    %289 = vector.multi_reduction <add>, %288, %cst_252 [2] : vector<2x128x128xf32> to vector<2x128xf32>
    %290 = vector.shape_cast %289 : vector<2x128xf32> to vector<2x128x1xf32>
    %cst_253 = arith.constant 1.000000e+00 : f32
    %291 = vector.broadcast %cst_253 : f32 to vector<2x128x1xf32>
    %292 = arith.divf %291, %290 : vector<2x128x1xf32>
    %293 = vector.broadcast %292 : vector<2x128x1xf32> to vector<2x128x128xf32>
    %294 = arith.mulf %288, %293 : vector<2x128x128xf32>
    %c0_254 = arith.constant 0 : index
    %c0_255 = arith.constant 0 : index
    %c0_256 = arith.constant 0 : index
    %295 = vector.load %arg21[%c0_254, %c0_255, %c0_256] : memref<2x128x128xf32, #tpu.memory_space<vmem>>, vector<2x128x128xf32>
    tpu.vector_store %arg21[%c0_254, %c0_255, %c0_256], %294 {strides = array<i32>} : memref<2x128x128xf32, #tpu.memory_space<vmem>>, vector<2x128x128xf32>,
    %296 = vector.shape_cast %270 : vector<2x128xf32> to vector<2x1x128xf32>
    %297 = vector.broadcast %296 : vector<2x1x128xf32> to vector<2x128x128xf32>
    %298 = arith.mulf %294, %297 : vector<2x128x128xf32>
    %cst_257 = arith.constant dense<0.000000e+00> : vector<2x128xf32>
    %299 = vector.multi_reduction <add>, %298, %cst_257 [2] : vector<2x128x128xf32> to vector<2x128xf32>
    %300 = vector.shape_cast %272 : vector<2x128xf32> to vector<2x1x128xf32>
    %301 = vector.broadcast %300 : vector<2x1x128xf32> to vector<2x128x128xf32>
    %302 = arith.mulf %294, %301 : vector<2x128x128xf32>
    %cst_258 = arith.constant dense<0.000000e+00> : vector<2x128xf32>
    %303 = vector.multi_reduction <add>, %302, %cst_258 [2] : vector<2x128x128xf32> to vector<2x128xf32>
    %cst_259 = arith.constant 0.000000e+00 : f32
    %304 = vector.broadcast %cst_259 : f32 to vector<2x128xf32>
    %305 = arith.maximumf %299, %304 : vector<2x128xf32>
    %cst_260 = arith.constant 0.000000e+00 : f32
    %306 = vector.broadcast %cst_260 : f32 to vector<2x128xf32>
    %307 = arith.maximumf %303, %306 : vector<2x128xf32>
    %c2_i32_261 = arith.constant 2 : i32
    %308 = tpu.memref_slice %arg31[%c2_i32_261] : memref<4x!tpu.dma_semaphore, #tpu.memory_space<semaphore_mem>> -> memref<1x!tpu.dma_semaphore, #tpu.memory_space<semaphore_mem>>
    %309 = tpu.memref_squeeze %308 : memref<1x!tpu.dma_semaphore, #tpu.memory_space<semaphore_mem>> -> memref<!tpu.dma_semaphore, #tpu.memory_space<semaphore_mem>>
    tpu.wait_dma2 semaphore(%309 : memref<!tpu.dma_semaphore, #tpu.memory_space<semaphore_mem>>) src(%arg17 : memref<384x64xf32, #tpu.memory_space<any>>) dst(%arg26 : memref<384x64xf32, #tpu.memory_space<vmem>>)
    %c0_262 = arith.constant 0 : index
    %c0_263 = arith.constant 0 : index
    %310 = vector.load %arg13[%c0_262, %c0_263] : memref<1x64xf32, #tpu.memory_space<vmem>>, vector<1x64xf32>
    %c0_264 = arith.constant 0 : index
    %c0_265 = arith.constant 0 : index
    %311 = vector.load %arg26[%c0_264, %c0_265] : memref<384x64xf32, #tpu.memory_space<vmem>>, vector<128x64xf32>
    %c128 = arith.constant 128 : index
    %c0_266 = arith.constant 0 : index
    %312 = vector.load %arg26[%c128, %c0_266] : memref<384x64xf32, #tpu.memory_space<vmem>>, vector<256x64xf32>
    %313 = tpu.concatenate %305, %307 in 0 : vector<2x128xf32>, vector<2x128xf32> -> vector<4x128xf32>
    %cst_267 = arith.constant 0.000000e+00 : f32
    %314 = vector.broadcast %cst_267 : f32 to vector<2x128xf32>
    %315 = tpu.concatenate %307, %314 in 0 : vector<2x128xf32>, vector<2x128xf32> -> vector<4x128xf32>
    %cst_268 = arith.constant dense<0.000000e+00> : vector<4x64xf32>
    %316 = tpu.matmul %313, %311, %cst_268 {dimension_numbers = #tpu.dot_dimension_numbers<[1], [0], [0], [1], [0, 0, 1, 1], [], []>} : vector<4x128xf32>, vector<128x64xf32>, vector<4x64xf32> -> vector<4x64xf32>
    %317 = vector.broadcast %310 : vector<1x64xf32> to vector<4x64xf32>
    %318 = arith.addf %316, %317 : vector<4x64xf32>
    %319 = tpu.concatenate %313, %315 in 1 : vector<4x128xf32>, vector<4x128xf32> -> vector<4x256xf32>
    %cst_269 = arith.constant dense<0.000000e+00> : vector<4x64xf32>
    %320 = tpu.matmul %319, %312, %cst_269 {dimension_numbers = #tpu.dot_dimension_numbers<[1], [0], [0], [1], [0, 0, 1, 1], [], []>} : vector<4x256xf32>, vector<256x64xf32>, vector<4x64xf32> -> vector<4x64xf32>
    %321 = vector.broadcast %310 : vector<1x64xf32> to vector<4x64xf32>
    %322 = arith.addf %320, %321 : vector<4x64xf32>
    %323 = vector.extract_strided_slice %318 {offsets = [0, 0], sizes = [2, 64], strides = [1, 1]} : vector<4x64xf32> to vector<2x64xf32>
    %324 = vector.extract_strided_slice %322 {offsets = [0, 0], sizes = [2, 64], strides = [1, 1]} : vector<4x64xf32> to vector<2x64xf32>
    %325 = vector.extract_strided_slice %318 {offsets = [2, 0], sizes = [2, 64], strides = [1, 1]} : vector<4x64xf32> to vector<2x64xf32>
    %326 = vector.extract_strided_slice %322 {offsets = [2, 0], sizes = [2, 64], strides = [1, 1]} : vector<4x64xf32> to vector<2x64xf32>
    %cst_270 = arith.constant 0.000000e+00 : f32
    %327 = vector.broadcast %cst_270 : f32 to vector<2x64xf32>
    %328 = arith.maximumf %323, %327 : vector<2x64xf32>
    %cst_271 = arith.constant 0.000000e+00 : f32
    %329 = vector.broadcast %cst_271 : f32 to vector<2x64xf32>
    %330 = arith.maximumf %324, %329 : vector<2x64xf32>
    %cst_272 = arith.constant 0.000000e+00 : f32
    %331 = vector.broadcast %cst_272 : f32 to vector<2x64xf32>
    %332 = arith.maximumf %325, %331 : vector<2x64xf32>
    %cst_273 = arith.constant 0.000000e+00 : f32
    %333 = vector.broadcast %cst_273 : f32 to vector<2x64xf32>
    %334 = arith.maximumf %326, %333 : vector<2x64xf32>
    %335 = vector.shape_cast %328 : vector<2x64xf32> to vector<2x64x1xf32>
    %336 = vector.shape_cast %328 : vector<2x64xf32> to vector<2x1x64xf32>
    %337 = vector.broadcast %335 : vector<2x64x1xf32> to vector<2x64x64xf32>
    %338 = vector.broadcast %336 : vector<2x1x64xf32> to vector<2x64x64xf32>
    %339 = arith.mulf %337, %338 : vector<2x64x64xf32>
    %340 = vector.shape_cast %330 : vector<2x64xf32> to vector<2x64x1xf32>
    %341 = vector.shape_cast %330 : vector<2x64xf32> to vector<2x1x64xf32>
    %342 = vector.broadcast %340 : vector<2x64x1xf32> to vector<2x64x64xf32>
    %343 = vector.broadcast %341 : vector<2x1x64xf32> to vector<2x64x64xf32>
    %344 = arith.mulf %342, %343 : vector<2x64x64xf32>
    %345 = arith.addf %339, %344 : vector<2x64x64xf32>
    %346 = vector.shape_cast %332 : vector<2x64xf32> to vector<2x64x1xf32>
    %347 = vector.shape_cast %332 : vector<2x64xf32> to vector<2x1x64xf32>
    %348 = vector.broadcast %346 : vector<2x64x1xf32> to vector<2x64x64xf32>
    %349 = vector.broadcast %347 : vector<2x1x64xf32> to vector<2x64x64xf32>
    %350 = arith.mulf %348, %349 : vector<2x64x64xf32>
    %351 = arith.addf %345, %350 : vector<2x64x64xf32>
    %352 = vector.shape_cast %334 : vector<2x64xf32> to vector<2x64x1xf32>
    %353 = vector.shape_cast %334 : vector<2x64xf32> to vector<2x1x64xf32>
    %354 = vector.broadcast %352 : vector<2x64x1xf32> to vector<2x64x64xf32>
    %355 = vector.broadcast %353 : vector<2x1x64xf32> to vector<2x64x64xf32>
    %356 = arith.mulf %354, %355 : vector<2x64x64xf32>
    %357 = arith.addf %351, %356 : vector<2x64x64xf32>
    %cst_274 = arith.constant dense<0xFF800000> : vector<2x64xf32>
    %358 = vector.multi_reduction <maximumf>, %357, %cst_274 [2] : vector<2x64x64xf32> to vector<2x64xf32>
    %359 = vector.shape_cast %358 : vector<2x64xf32> to vector<2x64x1xf32>
    %360 = vector.broadcast %359 : vector<2x64x1xf32> to vector<2x64x64xf32>
    %361 = arith.subf %357, %360 : vector<2x64x64xf32>
    %362 = math.exp %361 : vector<2x64x64xf32>
    %cst_275 = arith.constant dense<0.000000e+00> : vector<2x64xf32>
    %363 = vector.multi_reduction <add>, %362, %cst_275 [2] : vector<2x64x64xf32> to vector<2x64xf32>
    %364 = vector.shape_cast %363 : vector<2x64xf32> to vector<2x64x1xf32>
    %cst_276 = arith.constant 1.000000e+00 : f32
    %365 = vector.broadcast %cst_276 : f32 to vector<2x64x1xf32>
    %366 = arith.divf %365, %364 : vector<2x64x1xf32>
    %367 = vector.broadcast %366 : vector<2x64x1xf32> to vector<2x64x64xf32>
    %368 = arith.mulf %362, %367 : vector<2x64x64xf32>
    %c0_277 = arith.constant 0 : index
    %c0_278 = arith.constant 0 : index
    %c0_279 = arith.constant 0 : index
    %369 = vector.load %arg22[%c0_277, %c0_278, %c0_279] : memref<2x64x64xf32, #tpu.memory_space<vmem>>, vector<2x64x64xf32>
    tpu.vector_store %arg22[%c0_277, %c0_278, %c0_279], %368 {strides = array<i32>} : memref<2x64x64xf32, #tpu.memory_space<vmem>>, vector<2x64x64xf32>,
    %370 = vector.shape_cast %328 : vector<2x64xf32> to vector<2x1x64xf32>
    %371 = vector.broadcast %370 : vector<2x1x64xf32> to vector<2x64x64xf32>
    %372 = arith.mulf %368, %371 : vector<2x64x64xf32>
    %cst_280 = arith.constant dense<0.000000e+00> : vector<2x64xf32>
    %373 = vector.multi_reduction <add>, %372, %cst_280 [2] : vector<2x64x64xf32> to vector<2x64xf32>
    %374 = vector.shape_cast %330 : vector<2x64xf32> to vector<2x1x64xf32>
    %375 = vector.broadcast %374 : vector<2x1x64xf32> to vector<2x64x64xf32>
    %376 = arith.mulf %368, %375 : vector<2x64x64xf32>
    %cst_281 = arith.constant dense<0.000000e+00> : vector<2x64xf32>
    %377 = vector.multi_reduction <add>, %376, %cst_281 [2] : vector<2x64x64xf32> to vector<2x64xf32>
    %378 = vector.shape_cast %332 : vector<2x64xf32> to vector<2x1x64xf32>
    %379 = vector.broadcast %378 : vector<2x1x64xf32> to vector<2x64x64xf32>
    %380 = arith.mulf %368, %379 : vector<2x64x64xf32>
    %cst_282 = arith.constant dense<0.000000e+00> : vector<2x64xf32>
    %381 = vector.multi_reduction <add>, %380, %cst_282 [2] : vector<2x64x64xf32> to vector<2x64xf32>
    %382 = vector.shape_cast %334 : vector<2x64xf32> to vector<2x1x64xf32>
    %383 = vector.broadcast %382 : vector<2x1x64xf32> to vector<2x64x64xf32>
    %384 = arith.mulf %368, %383 : vector<2x64x64xf32>
    %cst_283 = arith.constant dense<0.000000e+00> : vector<2x64xf32>
    %385 = vector.multi_reduction <add>, %384, %cst_283 [2] : vector<2x64x64xf32> to vector<2x64xf32>
    %cst_284 = arith.constant 0.000000e+00 : f32
    %386 = vector.broadcast %cst_284 : f32 to vector<2x64xf32>
    %387 = arith.maximumf %373, %386 : vector<2x64xf32>
    %cst_285 = arith.constant 0.000000e+00 : f32
    %388 = vector.broadcast %cst_285 : f32 to vector<2x64xf32>
    %389 = arith.maximumf %377, %388 : vector<2x64xf32>
    %cst_286 = arith.constant 0.000000e+00 : f32
    %390 = vector.broadcast %cst_286 : f32 to vector<2x64xf32>
    %391 = arith.maximumf %381, %390 : vector<2x64xf32>
    %cst_287 = arith.constant 0.000000e+00 : f32
    %392 = vector.broadcast %cst_287 : f32 to vector<2x64xf32>
    %393 = arith.maximumf %385, %392 : vector<2x64xf32>
    %c3_i32_288 = arith.constant 3 : i32
    %394 = tpu.memref_slice %arg31[%c3_i32_288] : memref<4x!tpu.dma_semaphore, #tpu.memory_space<semaphore_mem>> -> memref<1x!tpu.dma_semaphore, #tpu.memory_space<semaphore_mem>>
    %395 = tpu.memref_squeeze %394 : memref<1x!tpu.dma_semaphore, #tpu.memory_space<semaphore_mem>> -> memref<!tpu.dma_semaphore, #tpu.memory_space<semaphore_mem>>
    tpu.wait_dma2 semaphore(%395 : memref<!tpu.dma_semaphore, #tpu.memory_space<semaphore_mem>>) src(%arg18 : memref<192x32xf32, #tpu.memory_space<any>>) dst(%arg27 : memref<192x32xf32, #tpu.memory_space<vmem>>)
    %c0_289 = arith.constant 0 : index
    %c0_290 = arith.constant 0 : index
    %396 = vector.load %arg14[%c0_289, %c0_290] : memref<1x32xf32, #tpu.memory_space<vmem>>, vector<1x32xf32>
    %c0_291 = arith.constant 0 : index
    %c0_292 = arith.constant 0 : index
    %397 = vector.load %arg27[%c0_291, %c0_292] : memref<192x32xf32, #tpu.memory_space<vmem>>, vector<64x32xf32>
    %c64 = arith.constant 64 : index
    %c0_293 = arith.constant 0 : index
    %398 = vector.load %arg27[%c64, %c0_293] : memref<192x32xf32, #tpu.memory_space<vmem>>, vector<128x32xf32>
    %399 = tpu.concatenate %387, %389, %391, %393 in 0 : vector<2x64xf32>, vector<2x64xf32>, vector<2x64xf32>, vector<2x64xf32> -> vector<8x64xf32>
    %cst_294 = arith.constant 0.000000e+00 : f32
    %400 = vector.broadcast %cst_294 : f32 to vector<2x64xf32>
    %401 = tpu.concatenate %389, %391, %393, %400 in 0 : vector<2x64xf32>, vector<2x64xf32>, vector<2x64xf32>, vector<2x64xf32> -> vector<8x64xf32>
    %cst_295 = arith.constant dense<0.000000e+00> : vector<8x32xf32>
    %402 = tpu.matmul %399, %397, %cst_295 {dimension_numbers = #tpu.dot_dimension_numbers<[1], [0], [0], [1], [0, 0, 1, 1], [], []>} : vector<8x64xf32>, vector<64x32xf32>, vector<8x32xf32> -> vector<8x32xf32>
    %403 = vector.broadcast %396 : vector<1x32xf32> to vector<8x32xf32>
    %404 = arith.addf %402, %403 : vector<8x32xf32>
    %405 = tpu.concatenate %399, %401 in 1 : vector<8x64xf32>, vector<8x64xf32> -> vector<8x128xf32>
    %cst_296 = arith.constant dense<0.000000e+00> : vector<8x32xf32>
    %406 = tpu.matmul %405, %398, %cst_296 {dimension_numbers = #tpu.dot_dimension_numbers<[1], [0], [0], [1], [0, 0, 1, 1], [], []>} : vector<8x128xf32>, vector<128x32xf32>, vector<8x32xf32> -> vector<8x32xf32>
    %407 = vector.broadcast %396 : vector<1x32xf32> to vector<8x32xf32>
    %408 = arith.addf %406, %407 : vector<8x32xf32>
    %409 = vector.extract_strided_slice %404 {offsets = [0, 0], sizes = [2, 32], strides = [1, 1]} : vector<8x32xf32> to vector<2x32xf32>
    %410 = vector.extract_strided_slice %408 {offsets = [0, 0], sizes = [2, 32], strides = [1, 1]} : vector<8x32xf32> to vector<2x32xf32>
    %411 = vector.extract_strided_slice %404 {offsets = [2, 0], sizes = [2, 32], strides = [1, 1]} : vector<8x32xf32> to vector<2x32xf32>
    %412 = vector.extract_strided_slice %408 {offsets = [2, 0], sizes = [2, 32], strides = [1, 1]} : vector<8x32xf32> to vector<2x32xf32>
    %413 = vector.extract_strided_slice %404 {offsets = [4, 0], sizes = [2, 32], strides = [1, 1]} : vector<8x32xf32> to vector<2x32xf32>
    %414 = vector.extract_strided_slice %408 {offsets = [4, 0], sizes = [2, 32], strides = [1, 1]} : vector<8x32xf32> to vector<2x32xf32>
    %415 = vector.extract_strided_slice %404 {offsets = [6, 0], sizes = [2, 32], strides = [1, 1]} : vector<8x32xf32> to vector<2x32xf32>
    %416 = vector.extract_strided_slice %408 {offsets = [6, 0], sizes = [2, 32], strides = [1, 1]} : vector<8x32xf32> to vector<2x32xf32>
    %417 = arith.negf %409 : vector<2x32xf32>
    %418 = math.exp %417 : vector<2x32xf32>
    %cst_297 = arith.constant 1.000000e+00 : f32
    %419 = vector.broadcast %cst_297 : f32 to vector<2x32xf32>
    %420 = arith.addf %419, %418 : vector<2x32xf32>
    %421 = arith.divf %419, %420 : vector<2x32xf32>
    %422 = arith.negf %410 : vector<2x32xf32>
    %423 = math.exp %422 : vector<2x32xf32>
    %cst_298 = arith.constant 1.000000e+00 : f32
    %424 = vector.broadcast %cst_298 : f32 to vector<2x32xf32>
    %425 = arith.addf %424, %423 : vector<2x32xf32>
    %426 = arith.divf %424, %425 : vector<2x32xf32>
    %427 = arith.negf %411 : vector<2x32xf32>
    %428 = math.exp %427 : vector<2x32xf32>
    %cst_299 = arith.constant 1.000000e+00 : f32
    %429 = vector.broadcast %cst_299 : f32 to vector<2x32xf32>
    %430 = arith.addf %429, %428 : vector<2x32xf32>
    %431 = arith.divf %429, %430 : vector<2x32xf32>
    %432 = arith.negf %412 : vector<2x32xf32>
    %433 = math.exp %432 : vector<2x32xf32>
    %cst_300 = arith.constant 1.000000e+00 : f32
    %434 = vector.broadcast %cst_300 : f32 to vector<2x32xf32>
    %435 = arith.addf %434, %433 : vector<2x32xf32>
    %436 = arith.divf %434, %435 : vector<2x32xf32>
    %437 = arith.negf %413 : vector<2x32xf32>
    %438 = math.exp %437 : vector<2x32xf32>
    %cst_301 = arith.constant 1.000000e+00 : f32
    %439 = vector.broadcast %cst_301 : f32 to vector<2x32xf32>
    %440 = arith.addf %439, %438 : vector<2x32xf32>
    %441 = arith.divf %439, %440 : vector<2x32xf32>
    %442 = arith.negf %414 : vector<2x32xf32>
    %443 = math.exp %442 : vector<2x32xf32>
    %cst_302 = arith.constant 1.000000e+00 : f32
    %444 = vector.broadcast %cst_302 : f32 to vector<2x32xf32>
    %445 = arith.addf %444, %443 : vector<2x32xf32>
    %446 = arith.divf %444, %445 : vector<2x32xf32>
    %447 = arith.negf %415 : vector<2x32xf32>
    %448 = math.exp %447 : vector<2x32xf32>
    %cst_303 = arith.constant 1.000000e+00 : f32
    %449 = vector.broadcast %cst_303 : f32 to vector<2x32xf32>
    %450 = arith.addf %449, %448 : vector<2x32xf32>
    %451 = arith.divf %449, %450 : vector<2x32xf32>
    %452 = arith.negf %416 : vector<2x32xf32>
    %453 = math.exp %452 : vector<2x32xf32>
    %cst_304 = arith.constant 1.000000e+00 : f32
    %454 = vector.broadcast %cst_304 : f32 to vector<2x32xf32>
    %455 = arith.addf %454, %453 : vector<2x32xf32>
    %456 = arith.divf %454, %455 : vector<2x32xf32>
    %457 = vector.shape_cast %421 : vector<2x32xf32> to vector<2x32x1xf32>
    %458 = vector.shape_cast %421 : vector<2x32xf32> to vector<2x1x32xf32>
    %459 = vector.broadcast %457 : vector<2x32x1xf32> to vector<2x32x32xf32>
    %460 = vector.broadcast %458 : vector<2x1x32xf32> to vector<2x32x32xf32>
    %461 = arith.mulf %459, %460 : vector<2x32x32xf32>
    %462 = vector.shape_cast %426 : vector<2x32xf32> to vector<2x32x1xf32>
    %463 = vector.shape_cast %426 : vector<2x32xf32> to vector<2x1x32xf32>
    %464 = vector.broadcast %462 : vector<2x32x1xf32> to vector<2x32x32xf32>
    %465 = vector.broadcast %463 : vector<2x1x32xf32> to vector<2x32x32xf32>
    %466 = arith.mulf %464, %465 : vector<2x32x32xf32>
    %467 = arith.addf %461, %466 : vector<2x32x32xf32>
    %468 = vector.shape_cast %431 : vector<2x32xf32> to vector<2x32x1xf32>
    %469 = vector.shape_cast %431 : vector<2x32xf32> to vector<2x1x32xf32>
    %470 = vector.broadcast %468 : vector<2x32x1xf32> to vector<2x32x32xf32>
    %471 = vector.broadcast %469 : vector<2x1x32xf32> to vector<2x32x32xf32>
    %472 = arith.mulf %470, %471 : vector<2x32x32xf32>
    %473 = arith.addf %467, %472 : vector<2x32x32xf32>
    %474 = vector.shape_cast %436 : vector<2x32xf32> to vector<2x32x1xf32>
    %475 = vector.shape_cast %436 : vector<2x32xf32> to vector<2x1x32xf32>
    %476 = vector.broadcast %474 : vector<2x32x1xf32> to vector<2x32x32xf32>
    %477 = vector.broadcast %475 : vector<2x1x32xf32> to vector<2x32x32xf32>
    %478 = arith.mulf %476, %477 : vector<2x32x32xf32>
    %479 = arith.addf %473, %478 : vector<2x32x32xf32>
    %480 = vector.shape_cast %441 : vector<2x32xf32> to vector<2x32x1xf32>
    %481 = vector.shape_cast %441 : vector<2x32xf32> to vector<2x1x32xf32>
    %482 = vector.broadcast %480 : vector<2x32x1xf32> to vector<2x32x32xf32>
    %483 = vector.broadcast %481 : vector<2x1x32xf32> to vector<2x32x32xf32>
    %484 = arith.mulf %482, %483 : vector<2x32x32xf32>
    %485 = arith.addf %479, %484 : vector<2x32x32xf32>
    %486 = vector.shape_cast %446 : vector<2x32xf32> to vector<2x32x1xf32>
    %487 = vector.shape_cast %446 : vector<2x32xf32> to vector<2x1x32xf32>
    %488 = vector.broadcast %486 : vector<2x32x1xf32> to vector<2x32x32xf32>
    %489 = vector.broadcast %487 : vector<2x1x32xf32> to vector<2x32x32xf32>
    %490 = arith.mulf %488, %489 : vector<2x32x32xf32>
    %491 = arith.addf %485, %490 : vector<2x32x32xf32>
    %492 = vector.shape_cast %451 : vector<2x32xf32> to vector<2x32x1xf32>
    %493 = vector.shape_cast %451 : vector<2x32xf32> to vector<2x1x32xf32>
    %494 = vector.broadcast %492 : vector<2x32x1xf32> to vector<2x32x32xf32>
    %495 = vector.broadcast %493 : vector<2x1x32xf32> to vector<2x32x32xf32>
    %496 = arith.mulf %494, %495 : vector<2x32x32xf32>
    %497 = arith.addf %491, %496 : vector<2x32x32xf32>
    %498 = vector.shape_cast %456 : vector<2x32xf32> to vector<2x32x1xf32>
    %499 = vector.shape_cast %456 : vector<2x32xf32> to vector<2x1x32xf32>
    %500 = vector.broadcast %498 : vector<2x32x1xf32> to vector<2x32x32xf32>
    %501 = vector.broadcast %499 : vector<2x1x32xf32> to vector<2x32x32xf32>
    %502 = arith.mulf %500, %501 : vector<2x32x32xf32>
    %503 = arith.addf %497, %502 : vector<2x32x32xf32>
    %cst_305 = arith.constant dense<0xFF800000> : vector<2x32xf32>
    %504 = vector.multi_reduction <maximumf>, %503, %cst_305 [2] : vector<2x32x32xf32> to vector<2x32xf32>
    %505 = vector.shape_cast %504 : vector<2x32xf32> to vector<2x32x1xf32>
    %506 = vector.broadcast %505 : vector<2x32x1xf32> to vector<2x32x32xf32>
    %507 = arith.subf %503, %506 : vector<2x32x32xf32>
    %508 = math.exp %507 : vector<2x32x32xf32>
    %cst_306 = arith.constant dense<0.000000e+00> : vector<2x32xf32>
    %509 = vector.multi_reduction <add>, %508, %cst_306 [2] : vector<2x32x32xf32> to vector<2x32xf32>
    %510 = vector.shape_cast %509 : vector<2x32xf32> to vector<2x32x1xf32>
    %cst_307 = arith.constant 1.000000e+00 : f32
    %511 = vector.broadcast %cst_307 : f32 to vector<2x32x1xf32>
    %512 = arith.divf %511, %510 : vector<2x32x1xf32>
    %513 = vector.broadcast %512 : vector<2x32x1xf32> to vector<2x32x32xf32>
    %514 = arith.mulf %508, %513 : vector<2x32x32xf32>
    %c0_308 = arith.constant 0 : index
    %c0_309 = arith.constant 0 : index
    %c0_310 = arith.constant 0 : index
    %515 = vector.load %arg23[%c0_308, %c0_309, %c0_310] : memref<2x32x32xf32, #tpu.memory_space<vmem>>, vector<2x32x32xf32>
    tpu.vector_store %arg23[%c0_308, %c0_309, %c0_310], %514 {strides = array<i32>} : memref<2x32x32xf32, #tpu.memory_space<vmem>>, vector<2x32x32xf32>,
    %516 = vector.shape_cast %421 : vector<2x32xf32> to vector<2x1x32xf32>
    %517 = vector.broadcast %516 : vector<2x1x32xf32> to vector<2x32x32xf32>
    %518 = arith.mulf %514, %517 : vector<2x32x32xf32>
    %cst_311 = arith.constant dense<0.000000e+00> : vector<2x32xf32>
    %519 = vector.multi_reduction <add>, %518, %cst_311 [2] : vector<2x32x32xf32> to vector<2x32xf32>
    %520 = vector.shape_cast %426 : vector<2x32xf32> to vector<2x1x32xf32>
    %521 = vector.broadcast %520 : vector<2x1x32xf32> to vector<2x32x32xf32>
    %522 = arith.mulf %514, %521 : vector<2x32x32xf32>
    %cst_312 = arith.constant dense<0.000000e+00> : vector<2x32xf32>
    %523 = vector.multi_reduction <add>, %522, %cst_312 [2] : vector<2x32x32xf32> to vector<2x32xf32>
    %524 = vector.shape_cast %431 : vector<2x32xf32> to vector<2x1x32xf32>
    %525 = vector.broadcast %524 : vector<2x1x32xf32> to vector<2x32x32xf32>
    %526 = arith.mulf %514, %525 : vector<2x32x32xf32>
    %cst_313 = arith.constant dense<0.000000e+00> : vector<2x32xf32>
    %527 = vector.multi_reduction <add>, %526, %cst_313 [2] : vector<2x32x32xf32> to vector<2x32xf32>
    %528 = vector.shape_cast %436 : vector<2x32xf32> to vector<2x1x32xf32>
    %529 = vector.broadcast %528 : vector<2x1x32xf32> to vector<2x32x32xf32>
    %530 = arith.mulf %514, %529 : vector<2x32x32xf32>
    %cst_314 = arith.constant dense<0.000000e+00> : vector<2x32xf32>
    %531 = vector.multi_reduction <add>, %530, %cst_314 [2] : vector<2x32x32xf32> to vector<2x32xf32>
    %532 = vector.shape_cast %441 : vector<2x32xf32> to vector<2x1x32xf32>
    %533 = vector.broadcast %532 : vector<2x1x32xf32> to vector<2x32x32xf32>
    %534 = arith.mulf %514, %533 : vector<2x32x32xf32>
    %cst_315 = arith.constant dense<0.000000e+00> : vector<2x32xf32>
    %535 = vector.multi_reduction <add>, %534, %cst_315 [2] : vector<2x32x32xf32> to vector<2x32xf32>
    %536 = vector.shape_cast %446 : vector<2x32xf32> to vector<2x1x32xf32>
    %537 = vector.broadcast %536 : vector<2x1x32xf32> to vector<2x32x32xf32>
    %538 = arith.mulf %514, %537 : vector<2x32x32xf32>
    %cst_316 = arith.constant dense<0.000000e+00> : vector<2x32xf32>
    %539 = vector.multi_reduction <add>, %538, %cst_316 [2] : vector<2x32x32xf32> to vector<2x32xf32>
    %540 = vector.shape_cast %451 : vector<2x32xf32> to vector<2x1x32xf32>
    %541 = vector.broadcast %540 : vector<2x1x32xf32> to vector<2x32x32xf32>
    %542 = arith.mulf %514, %541 : vector<2x32x32xf32>
    %cst_317 = arith.constant dense<0.000000e+00> : vector<2x32xf32>
    %543 = vector.multi_reduction <add>, %542, %cst_317 [2] : vector<2x32x32xf32> to vector<2x32xf32>
    %544 = vector.shape_cast %456 : vector<2x32xf32> to vector<2x1x32xf32>
    %545 = vector.broadcast %544 : vector<2x1x32xf32> to vector<2x32x32xf32>
    %546 = arith.mulf %514, %545 : vector<2x32x32xf32>
    %cst_318 = arith.constant dense<0.000000e+00> : vector<2x32xf32>
    %547 = vector.multi_reduction <add>, %546, %cst_318 [2] : vector<2x32x32xf32> to vector<2x32xf32>
    %548 = tpu.concatenate %519, %523, %527, %531, %535, %539, %543, %547 in 1 : vector<2x32xf32>, vector<2x32xf32>, vector<2x32xf32>, vector<2x32xf32>, vector<2x32xf32>, vector<2x32xf32>, vector<2x32xf32>, vector<2x32xf32> -> vector<2x256xf32>
    %549 = arith.negf %548 : vector<2x256xf32>
    %550 = math.exp %549 : vector<2x256xf32>
    %cst_319 = arith.constant 1.000000e+00 : f32
    %551 = vector.broadcast %cst_319 : f32 to vector<2x256xf32>
    %552 = arith.addf %551, %550 : vector<2x256xf32>
    %553 = arith.divf %551, %552 : vector<2x256xf32>
    %c0_320 = arith.constant 0 : index
    %c0_321 = arith.constant 0 : index
    %554 = vector.load %arg20[%c0_320, %c0_321] : memref<2x256xf32, #tpu.memory_space<vmem>>, vector<2x256xf32>
    tpu.vector_store %arg20[%c0_320, %c0_321], %553 {strides = array<i32>} : memref<2x256xf32, #tpu.memory_space<vmem>>, vector<2x256xf32>,
    return
  }
  func.func @transform_0(%arg0: i32) -> (i32, i32) {
    %c0_i32 = arith.constant 0 : i32
    %c0_i32_0 = arith.constant 0 : i32
    %c0_i32_1 = arith.constant 0 : i32
    return %c0_i32, %c0_i32_0 : i32, i32
  }
  func.func @transform_1(%arg0: i32) -> (i32, i32) {
    %c0_i32 = arith.constant 0 : i32
    %c0_i32_0 = arith.constant 0 : i32
    %c0_i32_1 = arith.constant 0 : i32
    return %c0_i32, %c0_i32_0 : i32, i32
  }
  func.func @transform_2(%arg0: i32) -> (i32, i32) {
    %c0_i32 = arith.constant 0 : i32
    %c0_i32_0 = arith.constant 0 : i32
    %c0_i32_1 = arith.constant 0 : i32
    return %c0_i32, %c0_i32_0 : i32, i32
  }
  func.func @transform_3(%arg0: i32) -> (i32, i32) {
    %c0_i32 = arith.constant 0 : i32
    %c0_i32_0 = arith.constant 0 : i32
    %c0_i32_1 = arith.constant 0 : i32
    return %c0_i32, %c0_i32_0 : i32, i32
  }
  func.func @transform_4(%arg0: i32) -> (i32, i32) {
    %c0_i32 = arith.constant 0 : i32
    %c0_i32_0 = arith.constant 0 : i32
    %c0_i32_1 = arith.constant 0 : i32
    return %c0_i32, %c0_i32_0 : i32, i32
  }
  func.func @transform_5(%arg0: i32) -> (i32, i32) {
    %c0_i32 = arith.constant 0 : i32
    %c0_i32_0 = arith.constant 0 : i32
    %c0_i32_1 = arith.constant 0 : i32
    return %c0_i32, %c0_i32_0 : i32, i32
  }
  func.func @transform_6(%arg0: i32) -> (i32, i32) {
    %c0_i32 = arith.constant 0 : i32
    %c0_i32_0 = arith.constant 0 : i32
    %c0_i32_1 = arith.constant 0 : i32
    return %c0_i32, %c0_i32_0 : i32, i32
  }
  func.func @transform_7(%arg0: i32) -> (i32, i32) {
    %c0_i32 = arith.constant 0 : i32
    %c0_i32_0 = arith.constant 0 : i32
    %c0_i32_1 = arith.constant 0 : i32
    return %c0_i32, %c0_i32_0 : i32, i32
  }
  func.func @transform_8(%arg0: i32) -> (i32, i32) {
    %c0_i32 = arith.constant 0 : i32
    %c0_i32_0 = arith.constant 0 : i32
    %c0_i32_1 = arith.constant 0 : i32
    return %c0_i32, %c0_i32_0 : i32, i32
  }
  func.func @transform_9(%arg0: i32) -> (i32, i32) {
    %c0_i32 = arith.constant 0 : i32
    %c0_i32_0 = arith.constant 0 : i32
    %c0_i32_1 = arith.constant 0 : i32
    return %c0_i32, %c0_i32_0 : i32, i32
  }
  func.func @transform_10(%arg0: i32) -> (i32, i32) {
    %c0_i32 = arith.constant 0 : i32
    %c0_i32_0 = arith.constant 0 : i32
    %c0_i32_1 = arith.constant 0 : i32
    return %c0_i32, %c0_i32_0 : i32, i32
  }
  func.func @transform_11(%arg0: i32) -> (i32, i32) {
    %c0_i32 = arith.constant 0 : i32
    %c0_i32_0 = arith.constant 0 : i32
    %c0_i32_1 = arith.constant 0 : i32
    return %c0_i32, %c0_i32_0 : i32, i32
  }
  func.func @transform_12(%arg0: i32) -> (i32, i32) {
    %c0_i32 = arith.constant 0 : i32
    %c0_i32_0 = arith.constant 0 : i32
    %c0_i32_1 = arith.constant 0 : i32
    return %c0_i32, %c0_i32_0 : i32, i32
  }
  func.func @transform_13(%arg0: i32) -> (i32, i32) {
    %c0_i32 = arith.constant 0 : i32
    %c0_i32_0 = arith.constant 0 : i32
    %c0_i32_1 = arith.constant 0 : i32
    return %c0_i32, %c0_i32_0 : i32, i32
  }
  func.func @transform_18(%arg0: i32) -> (i32, i32) {
    %c0_i32 = arith.constant 0 : i32
    %c0_i32_0 = arith.constant 0 : i32
    %c0_i32_1 = arith.constant 0 : i32
    return %c0_i32, %c0_i32_0 : i32, i32
  }
  func.func @transform_19(%arg0: i32) -> (i32, i32) {
    %c0_i32 = arith.constant 0 : i32
    %c0_i32_0 = arith.constant 0 : i32
    %c0_i32_1 = arith.constant 0 : i32
    return %c0_i32, %c0_i32_0 : i32, i32
  }
  func.func @transform_20(%arg0: i32) -> (i32, i32, i32) {
    %c0_i32 = arith.constant 0 : i32
    %c0_i32_0 = arith.constant 0 : i32
    %c0_i32_1 = arith.constant 0 : i32
    %c0_i32_2 = arith.constant 0 : i32
    return %c0_i32, %c0_i32_0, %c0_i32_1 : i32, i32, i32
  }
  func.func @transform_21(%arg0: i32) -> (i32, i32, i32) {
    %c0_i32 = arith.constant 0 : i32
    %c0_i32_0 = arith.constant 0 : i32
    %c0_i32_1 = arith.constant 0 : i32
    %c0_i32_2 = arith.constant 0 : i32
    return %c0_i32, %c0_i32_0, %c0_i32_1 : i32, i32, i32
  }
  func.func @transform_22(%arg0: i32) -> (i32, i32, i32) {
    %c0_i32 = arith.constant 0 : i32
    %c0_i32_0 = arith.constant 0 : i32
    %c0_i32_1 = arith.constant 0 : i32
    %c0_i32_2 = arith.constant 0 : i32
    return %c0_i32, %c0_i32_0, %c0_i32_1 : i32, i32, i32
  }
}

</mosaic_0001>

<bundles_post_ra>
// kernel: beta_vae_forward.1
= control target key start
LH: loop header
LB: loop body
LE: loop exit
PB: predicated region body
PF: predicated region fallthrough
CT: control target
= control target key end

     0   :  { %s15890_s0 = inlined_call_operand.vmem [shape: f32[64,4], index: 0, kind: input, shape index: {}]   ;;  %s15891_s1 = inlined_call_operand.vmem [shape: f32[2,8], index: 1, kind: input, shape index: {}]   ;;  %s15892_s2 = inlined_call_operand.hbm [shape: f32[12,64], index: 2, kind: input, shape index: {}]   ;;  %s15893_s3 = inlined_call_operand.hbm [shape: f32[1,64], index: 3, kind: input, shape index: {}]   ;;  %s15894_s4 = inlined_call_operand.hbm [shape: f32[192,128], index: 4, kind: input, shape index: {}]   ;;  %s15895_s5 = inlined_call_operand.hbm [shape: f32[1,128], index: 5, kind: input, shape index: {}]   ;;  %s15896_s6 = inlined_call_operand.vmem [shape: f32[384,256], index: 6, kind: input, shape index: {}]   ;;  %s15897_s7 = inlined_call_operand.hbm [shape: f32[1,256], index: 7, kind: input, shape index: {}]   ;;  %s15898_s8 = inlined_call_operand.hbm [shape: f32[1,16], index: 8, kind: input, shape index: {}]   ;;  %s15899_s9 = inlined_call_operand.hbm [shape: f32[8,256], index: 9, kind: input, shape index: {}]   ;;  %s15900_s10 = inlined_call_operand.hbm [shape: f32[1,256], index: 10, kind: input, shape index: {}]   ;;  %s15901_s11 = inlined_call_operand.hbm [shape: f32[1,128], index: 11, kind: input, shape index: {}]   ;;  %s15902_s12 = inlined_call_operand.hbm [shape: f32[1,64], index: 12, kind: input, shape index: {}]   ;;  %s15903_s13 = inlined_call_operand.hbm [shape: f32[1,32], index: 13, kind: input, shape index: {}]   ;;  %s15904_s14 = inlined_call_operand.hbm [shape: f32[16,8192], index: 14, kind: input, shape index: {}]   ;;  %s15905_s15 = inlined_call_operand.hbm [shape: f32[768,128], index: 15, kind: input, shape index: {}]   ;;  %s15906_s16 = inlined_call_operand.vmem [shape: f32[384,64], index: 16, kind: input, shape index: {}]   ;;  %s15907_s17 = inlined_call_operand.vmem [shape: f32[192,32], index: 17, kind: input, shape index: {}]   ;;  %s15908_s18 = inlined_call_operand.vmem [shape: f32[2,16], index: 18, kind: output, shape index: {0}]   ;;  %s15909_s19 = inlined_call_operand.vmem [shape: f32[2,256], index: 19, kind: output, shape index: {1}]   ;;  %s15910_s20 = inlined_call_operand.hbm [shape: f32[2,128,128], index: 20, kind: output, shape index: {2}]   ;;  %s15911_s21 = inlined_call_operand.hbm [shape: f32[2,64,64], index: 21, kind: output, shape index: {3}]   ;;  %s15912_s22 = inlined_call_operand.hbm [shape: f32[2,32,32], index: 22, kind: output, shape index: {4}]  }
   0x1   :  { %16042 = sst [smem:[#allocation155_spill]] %s15890_s0 }
   0x2   :  { %16043 = sst [smem:[#allocation156_spill]] %s15891_s1 }
   0x3   :  { %16044 = sst [smem:[#allocation157_spill]] %s15892_s2 }
   0x4   :  { %16045 = sst [smem:[#allocation158_spill]] %s15893_s3 }
   0x5   :  { %16046 = sst [smem:[#allocation159_spill]] %s15894_s4 }
   0x6   :  { %16047 = sst [smem:[#allocation160_spill]] %s15895_s5 }
   0x7   :  { %16048 = sst [smem:[#allocation161_spill]] %s15896_s6 }
   0x8   :  { %28 = vsyncpa [#allocation11], 0 }
   0x9   :  { %29 = vsyncpa [#allocation14], 0 }
   0xa   :  { %30 = vsyncpa [#allocation17], 0 }
   0xb   :  { %31 = vsyncpa [#allocation20], 0 }
   0xc   :  { %32 = vsyncpa [#allocation23], 0 }
   0xd   :  { %33 = vsyncpa [#allocation26], 0 }
   0xe   :  { %34 = vsyncpa [#allocation12], 0 }
   0xf   :  { %35 = vsyncpa [#allocation30], 0  ;;  %s11242_s3 = smov [#allocation13]   ;;  %s11243_s29 = smov [#allocation16]  }
  0x10   :  { %s58_s28 = sshll.u32 %s11242_s3, 4  ;;  %s80_s30 = sshll.u32 %s11243_s29, 4  ;;  %s59_s28 = int_to_ptr.vmem [resolvable:$true] %s58_s28  ;;  %s81_s30 = int_to_ptr.vmem [resolvable:$true] %s80_s30 }
  0x11   :  { %s16049_s23 = sld [smem:[#allocation158_spill]] }
  0x17   :  { %s10866_s1 = scalar_lea.hbm %s16049_s23, 16 }
  0x18   :  { %p10867_p0 = scmp.ne.s32.totalorder %s16049_s23, %s10866_s1  ;;  %p10870_p1 = scmp.lt.u32.totalorder %s10866_s1, %s16049_s23 }
  0x1a   :  { %p10872_p2 = pnand %p10870_p1, %p10867_p0 }
  0x1c   :  { %10875 = shalt.err (!%p10872_p2)
}
  0x1d   :  { %s10876_s26 = scalar_lea.vmem %s59_s28, 16  ;;  %s10880_s2 = scalar_lea.vmem %s59_s28, 32 }
  0x1e   :  { %p10877_p3 = scmp.ne.s32.totalorder %s59_s28, %s10876_s26  ;;  %p10881_p4 = scmp.lt.s32.totalorder %s59_s28, %s59_s28 }
  0x1f   :  { %p10882_p5 = scmp.lt.s32.totalorder %s10880_s2, %s10876_s26 }
  0x21   :  { %p10883_p6 = por %p10882_p5, %p10881_p4 }
  0x23   :  { %p10884_p7 = pnand %p10883_p6, %p10877_p3 }
  0x25   :  { %10887 = shalt.err (!%p10884_p7)
}
  0x26   :  { %61 = dma.hbm_to_vmem [thread:$0]  %s16049_s23, 16, %s59_s28, [#allocation14]  }
  0x27   :  { %s16050_s0 = sld [smem:[#allocation160_spill]] }
  0x2d   :  { %s10888_s5 = scalar_lea.hbm %s16050_s0, 16 }
  0x2e   :  { %p10889_p8 = scmp.ne.s32.totalorder %s16050_s0, %s10888_s5  ;;  %p10892_p9 = scmp.lt.u32.totalorder %s10888_s5, %s16050_s0 }
  0x30   :  { %p10894_p10 = pnand %p10892_p9, %p10889_p8 }
  0x32   :  { %10897 = shalt.err (!%p10894_p10)
}
  0x33   :  { %s10898_s26 = scalar_lea.vmem %s81_s30, 16  ;;  %s10902_s2 = scalar_lea.vmem %s81_s30, 32 }
  0x34   :  { %p10899_p11 = scmp.ne.s32.totalorder %s81_s30, %s10898_s26  ;;  %p10903_p12 = scmp.lt.s32.totalorder %s81_s30, %s81_s30 }
  0x35   :  { %p10904_p13 = scmp.lt.s32.totalorder %s10902_s2, %s10898_s26 }
  0x37   :  { %p10905_p0 = por %p10904_p13, %p10903_p12 }
  0x39   :  { %p10906_p1 = pnand %p10905_p0, %p10899_p11 }
  0x3b   :  { %10909 = shalt.err (!%p10906_p1)
}
  0x3c   :  { %83 = dma.hbm_to_vmem [thread:$0]  %s16050_s0, 16, %s81_s30, [#allocation17]  }
  0x3d   :  { %s11244_s27 = smov [#allocation19]   ;;  %s11245_s29 = smov [#allocation22]  }
  0x3e   :  { %s102_s3 = sshll.u32 %s11244_s27, 4  ;;  %s122_s4 = sshll.u32 %s11245_s29, 4  ;;  %s103_s3 = int_to_ptr.vmem [resolvable:$true] %s102_s3  ;;  %s123_s4 = int_to_ptr.vmem [resolvable:$true] %s122_s4 }
  0x3f   :  { %s10910_s1 = scalar_lea.hbm %s15898_s8, 16 }
  0x40   :  { %p10911_p2 = scmp.ne.s32.totalorder %s15898_s8, %s10910_s1  ;;  %p10914_p3 = scmp.lt.u32.totalorder %s10910_s1, %s15898_s8 }
  0x42   :  { %p10916_p4 = pnand %p10914_p3, %p10911_p2 }
  0x44   :  { %10919 = shalt.err (!%p10916_p4)
}
  0x45   :  { %s10920_s30 = scalar_lea.vmem %s103_s3, 16  ;;  %s10924_s0 = scalar_lea.vmem %s103_s3, 32 }
  0x46   :  { %p10921_p5 = scmp.ne.s32.totalorder %s103_s3, %s10920_s30  ;;  %p10925_p6 = scmp.lt.s32.totalorder %s103_s3, %s103_s3 }
  0x47   :  { %p10926_p7 = scmp.lt.s32.totalorder %s10924_s0, %s10920_s30 }
  0x49   :  { %p10927_p8 = por %p10926_p7, %p10925_p6 }
  0x4b   :  { %p10928_p9 = pnand %p10927_p8, %p10921_p5 }
  0x4d   :  { %10931 = shalt.err (!%p10928_p9)
}
  0x4e   :  { %105 = dma.hbm_to_vmem [thread:$0]  %s15898_s8, 16, %s103_s3, [#allocation20]  }
  0x4f   :  { %s10932_s5 = scalar_lea.hbm %s15900_s10, 32 }
  0x50   :  { %p10933_p10 = scmp.ne.s32.totalorder %s15900_s10, %s10932_s5  ;;  %p10936_p11 = scmp.lt.u32.totalorder %s10932_s5, %s15900_s10 }
  0x52   :  { %p10938_p12 = pnand %p10936_p11, %p10933_p10 }
  0x54   :  { %10941 = shalt.err (!%p10938_p12)
}
  0x55   :  { %s10942_s26 = scalar_lea.vmem %s123_s4, 32  ;;  %p10947_p0 = scmp.lt.s32.totalorder %s123_s4, %s123_s4 }
  0x56   :  { %p10943_p13 = scmp.ne.s32.totalorder %s123_s4, %s10942_s26  ;;  %p10948_p1 = scmp.lt.s32.totalorder %s10942_s26, %s10942_s26 }
  0x58   :  { %p10949_p2 = por %p10948_p1, %p10947_p0 }
  0x5a   :  { %p10950_p3 = pnand %p10949_p2, %p10943_p13 }
  0x5c   :  { %10953 = shalt.err (!%p10950_p3)
}
  0x5d   :  { %125 = dma.hbm_to_vmem [thread:$0]  %s15900_s10, 32, %s123_s4, [#allocation23]  }
  0x5e   :  { %s11246_s2 = smov [#allocation25]   ;;  %s11247_s0 = smov [#allocation10]  }
  0x5f   :  { %s142_s30 = sshll.u32 %s11246_s2, 4  ;;  %s45_s28 = sshll.u32 %s11247_s0, 4  ;;  %s143_s30 = int_to_ptr.vmem [resolvable:$true] %s142_s30  ;;  %s11432_s28 = int_to_ptr.vmem [resolvable:$true] %s45_s28 }
  0x60   :  { %s10954_s29 = scalar_lea.hbm %s15902_s12, 16 }
  0x61   :  { %p10955_p4 = scmp.ne.s32.totalorder %s15902_s12, %s10954_s29  ;;  %p10958_p5 = scmp.lt.u32.totalorder %s10954_s29, %s15902_s12 }
  0x63   :  { %p10960_p6 = pnand %p10958_p5, %p10955_p4 }
  0x65   :  { %10963 = shalt.err (!%p10960_p6)
}
  0x66   :  { %s10964_s10 = scalar_lea.vmem %s143_s30, 16  ;;  %s10968_s4 = scalar_lea.vmem %s143_s30, 32 }
  0x67   :  { %p10965_p7 = scmp.ne.s32.totalorder %s143_s30, %s10964_s10  ;;  %p10969_p8 = scmp.lt.s32.totalorder %s143_s30, %s143_s30 }
  0x68   :  { %p10970_p9 = scmp.lt.s32.totalorder %s10968_s4, %s10964_s10 }
  0x6a   :  { %p10971_p10 = por %p10970_p9, %p10969_p8 }
  0x6c   :  { %p10972_p11 = pnand %p10971_p10, %p10965_p7 }
  0x6e   :  { %10975 = shalt.err (!%p10972_p11)
}
  0x6f   :  { %145 = dma.hbm_to_vmem [thread:$0]  %s15902_s12, 16, %s143_s30, [#allocation26]  }
  0x70   :  { %s16051_s2 = sld [smem:[#allocation157_spill]] }
  0x76   :  { %s10976_s0 = scalar_lea.hbm %s16051_s2, 256 }
  0x77   :  { %p10977_p12 = scmp.ne.s32.totalorder %s16051_s2, %s10976_s0  ;;  %p10980_p13 = scmp.lt.u32.totalorder %s10976_s0, %s16051_s2 }
  0x79   :  { %p10982_p0 = pnand %p10980_p13, %p10977_p12 }
  0x7b   :  { %10985 = shalt.err (!%p10982_p0)
}
  0x7c   :  { %s10986_s24 = scalar_lea.vmem %s11432_s28, 256  ;;  %p10991_p2 = scmp.lt.s32.totalorder %s11432_s28, %s11432_s28 }
  0x7d   :  { %p10987_p1 = scmp.ne.s32.totalorder %s11432_s28, %s10986_s24  ;;  %p10992_p3 = scmp.lt.s32.totalorder %s10986_s24, %s10986_s24 }
  0x7f   :  { %p10993_p4 = por %p10992_p3, %p10991_p2 }
  0x81   :  { %p10994_p5 = pnand %p10993_p4, %p10987_p1 }
  0x83   :  { %10997 = shalt.err (!%p10994_p5)
}
  0x84   :  { %s11248_s12 = smov 128   ;;  %s11249_s30 = smov 8  }
  0x85   :  { %51 = dma.hbm_to_vmem [thread:$0]  %s16051_s2, 256, %s11432_s28, [#allocation11], %s11248_s12, %s11248_s12, %s11249_s30  }
  0x86   :  { %s11250_s10 = smov [#allocation15]   ;;  %s11251_s25 = smov [#allocation18]  }
  0x87   :  { %s67_s4 = sshll.u32 %s11250_s10, 4  ;;  %s92_s26 = sshll.u32 %s11251_s25, 4  ;;  %s68_s4 = int_to_ptr.vmem [resolvable:$true] %s67_s4  ;;  %s93_s26 = int_to_ptr.vmem [resolvable:$true] %s92_s26 }
  0x88   :  { %s16052_s0 = sld [smem:[#allocation159_spill]] }
  0x8e   :  { %s10998_s23 = scalar_lea.hbm %s16052_s0, 3072 }
  0x8f   :  { %p10999_p6 = scmp.ne.s32.totalorder %s16052_s0, %s10998_s23  ;;  %p11002_p7 = scmp.lt.u32.totalorder %s10998_s23, %s16052_s0 }
  0x91   :  { %p11004_p8 = pnand %p11002_p7, %p10999_p6 }
  0x93   :  { %11007 = shalt.err (!%p11004_p8)
}
  0x94   :  { %s11008_s28 = scalar_lea.vmem %s68_s4, 3072  ;;  %p11013_p10 = scmp.lt.s32.totalorder %s68_s4, %s68_s4 }
  0x95   :  { %p11009_p9 = scmp.ne.s32.totalorder %s68_s4, %s11008_s28  ;;  %p11014_p11 = scmp.lt.s32.totalorder %s11008_s28, %s11008_s28 }
  0x97   :  { %p11015_p12 = por %p11014_p11, %p11013_p10 }
  0x99   :  { %p11016_p13 = pnand %p11015_p12, %p11009_p9 }
  0x9b   :  { %11019 = shalt.err (!%p11016_p13)
}
  0x9c   :  { %73 = dma.hbm_to_vmem [thread:$0]  %s16052_s0, 3072, %s68_s4, [#allocation14], %s11248_s12, %s11248_s12, %s11249_s30  }
  0x9d   :  { %s11020_s25 = scalar_lea.hbm %s15897_s7, 32 }
  0x9e   :  { %p11021_p0 = scmp.ne.s32.totalorder %s15897_s7, %s11020_s25  ;;  %p11024_p1 = scmp.lt.u32.totalorder %s11020_s25, %s15897_s7 }
  0xa0   :  { %p11026_p2 = pnand %p11024_p1, %p11021_p0 }
  0xa2   :  { %11029 = shalt.err (!%p11026_p2)
}
  0xa3   :  { %s11030_s29 = scalar_lea.vmem %s93_s26, 32  ;;  %p11035_p4 = scmp.lt.s32.totalorder %s93_s26, %s93_s26 }
  0xa4   :  { %p11031_p3 = scmp.ne.s32.totalorder %s93_s26, %s11030_s29  ;;  %p11036_p5 = scmp.lt.s32.totalorder %s11030_s29, %s11030_s29 }
  0xa6   :  { %p11037_p6 = por %p11036_p5, %p11035_p4 }
  0xa8   :  { %p11038_p7 = pnand %p11037_p6, %p11031_p3 }
  0xaa   :  { %11041 = shalt.err (!%p11038_p7)
}
  0xab   :  { %95 = dma.hbm_to_vmem [thread:$0]  %s15897_s7, 32, %s93_s26, [#allocation17]  }
  0xac   :  { %s11252_s5 = smov [#allocation21]   ;;  %s11253_s28 = smov [#allocation24]  }
  0xad   :  { %s112_s24 = sshll.u32 %s11252_s5, 4  ;;  %s132_s2 = sshll.u32 %s11253_s28, 4  ;;  %s113_s24 = int_to_ptr.vmem [resolvable:$true] %s112_s24  ;;  %s133_s2 = int_to_ptr.vmem [resolvable:$true] %s132_s2 }
  0xae   :  { %s11042_s10 = scalar_lea.hbm %s15899_s9, 256 }
  0xaf   :  { %p11043_p8 = scmp.ne.s32.totalorder %s15899_s9, %s11042_s10  ;;  %p11046_p9 = scmp.lt.u32.totalorder %s11042_s10, %s15899_s9 }
  0xb1   :  { %p11048_p10 = pnand %p11046_p9, %p11043_p8 }
  0xb3   :  { %11051 = shalt.err (!%p11048_p10)
}
  0xb4   :  { %s11052_s7 = scalar_lea.vmem %s113_s24, 256  ;;  %p11057_p12 = scmp.lt.s32.totalorder %s113_s24, %s113_s24 }
  0xb5   :  { %p11053_p11 = scmp.ne.s32.totalorder %s113_s24, %s11052_s7  ;;  %p11058_p13 = scmp.lt.s32.totalorder %s11052_s7, %s11052_s7 }
  0xb7   :  { %p11059_p0 = por %p11058_p13, %p11057_p12 }
  0xb9   :  { %p11060_p1 = pnand %p11059_p0, %p11053_p11 }
  0xbb   :  { %11063 = shalt.err (!%p11060_p1)
}
  0xbc   :  { %115 = dma.hbm_to_vmem [thread:$0]  %s15899_s9, 256, %s113_s24, [#allocation20]  }
  0xbd   :  { %s11064_s0 = scalar_lea.hbm %s15901_s11, 16 }
  0xbe   :  { %p11065_p2 = scmp.ne.s32.totalorder %s15901_s11, %s11064_s0  ;;  %p11068_p3 = scmp.lt.u32.totalorder %s11064_s0, %s15901_s11 }
  0xc0   :  { %p11070_p4 = pnand %p11068_p3, %p11065_p2 }
  0xc2   :  { %11073 = shalt.err (!%p11070_p4)
}
  0xc3   :  { %s11074_s10 = scalar_lea.vmem %s133_s2, 16  ;;  %s11078_s25 = scalar_lea.vmem %s133_s2, 32 }
  0xc4   :  { %p11075_p5 = scmp.ne.s32.totalorder %s133_s2, %s11074_s10  ;;  %p11079_p6 = scmp.lt.s32.totalorder %s133_s2, %s133_s2 }
  0xc5   :  { %p11080_p7 = scmp.lt.s32.totalorder %s11078_s25, %s11074_s10 }
  0xc7   :  { %p11081_p8 = por %p11080_p7, %p11079_p6 }
  0xc9   :  { %p11082_p9 = pnand %p11081_p8, %p11075_p5 }
  0xcb   :  { %11085 = shalt.err (!%p11082_p9)
}
  0xcc   :  { %135 = dma.hbm_to_vmem [thread:$0]  %s15901_s11, 16, %s133_s2, [#allocation23]  }
  0xcd   :  { %s11254_s8 = smov [#allocation27]   ;;  %s11086_s26 = scalar_lea.hbm %s15903_s13, 16 }
  0xce   :  { %s152_s3 = sshll.u32 %s11254_s8, 4  ;;  %p11087_p10 = scmp.ne.s32.totalorder %s15903_s13, %s11086_s26  ;;  %s153_s3 = int_to_ptr.vmem [resolvable:$true] %s152_s3 }
  0xcf   :  { %p11090_p11 = scmp.lt.u32.totalorder %s11086_s26, %s15903_s13 }
  0xd1   :  { %p11092_p12 = pnand %p11090_p11, %p11087_p10 }
  0xd3   :  { %11095 = shalt.err (!%p11092_p12)
}
  0xd4   :  { %s11096_s5 = scalar_lea.vmem %s153_s3, 16  ;;  %s11100_s11 = scalar_lea.vmem %s153_s3, 32 }
  0xd5   :  { %p11097_p13 = scmp.ne.s32.totalorder %s153_s3, %s11096_s5  ;;  %p11101_p0 = scmp.lt.s32.totalorder %s153_s3, %s153_s3 }
  0xd6   :  { %p11102_p1 = scmp.lt.s32.totalorder %s11100_s11, %s11096_s5 }
  0xd8   :  { %p11103_p2 = por %p11102_p1, %p11101_p0 }
  0xda   :  { %p11104_p3 = pnand %p11103_p2, %p11097_p13 }
  0xdc   :  { %11107 = shalt.err (!%p11104_p3)
}
  0xdd   :  { %155 = dma.hbm_to_vmem [thread:$0]  %s15903_s13, 16, %s153_s3, [#allocation26]  }
  0xde   :  { %11218 = dma.done.wait [#allocation11], 256  }
  0xdf   :  { %11219 = vsyncadd [#allocation11], 4294967040 }
  0xe0   :  { %11220 = dma.done.wait [#allocation14], 3088  }
  0xe1   :  { %11221 = vsyncadd [#allocation14], 4294964208 }
  0xe2   :  { %11222 = dma.done.wait [#allocation17], 48  }
  0xe3   :  { %11223 = vsyncadd [#allocation17], 4294967248 }
  0xe4   :  { %11224 = dma.done.wait [#allocation20], 272  }
  0xe5   :  { %11225 = vsyncadd [#allocation20], 4294967024 }
  0xe6   :  { %11226 = dma.done.wait [#allocation23], 48  }
  0xe7   :  { %11227 = vsyncadd [#allocation23], 4294967248 }
  0xe8   :  { %11228 = dma.done.wait [#allocation26], 32  }
  0xe9   :  { %11229 = vsyncadd [#allocation26], 4294967264  ;;  %s11255_s1 = smov [#allocation2]   ;;  %s11256_s10 = smov [#allocation3]  }
  0xea   :  { %s196_s6 = sshll.u32 %s11255_s1, 4  ;;  %s208_s25 = sshll.u32 %s11256_s10, 4  ;;  %s197_s6 = int_to_ptr.vmem [resolvable:$true] %s196_s6  ;;  %s209_s25 = int_to_ptr.vmem [resolvable:$true] %s208_s25 }
  0xeb   :  { %s11108_s24 = scalar_lea.hbm %s15904_s14, 16384 }
  0xec   :  { %p11109_p4 = scmp.ne.s32.totalorder %s15904_s14, %s11108_s24  ;;  %p11112_p5 = scmp.lt.u32.totalorder %s11108_s24, %s15904_s14 }
  0xee   :  { %p11114_p6 = pnand %p11112_p5, %p11109_p4 }
  0xf0   :  { %11117 = shalt.err (!%p11114_p6)  }
  0xf1   :  { %s11118_s26 = scalar_lea.vmem %s197_s6, 16384  ;;  %p11123_p8 = scmp.lt.s32.totalorder %s197_s6, %s197_s6 }
  0xf2   :  { %p11119_p7 = scmp.ne.s32.totalorder %s197_s6, %s11118_s26  ;;  %p11124_p9 = scmp.lt.s32.totalorder %s11118_s26, %s11118_s26 }
  0xf4   :  { %p11125_p10 = por %p11124_p9, %p11123_p8 }
  0xf6   :  { %p11126_p11 = pnand %p11125_p10, %p11119_p7 }
  0xf8   :  { %11129 = shalt.err (!%p11126_p11)  }
  0xf9   :  { %199 = dma.hbm_to_vmem [thread:$0]  %s15904_s14, 16384, %s197_s6, [#allocation9] }
  0xfa   :  { %s11130_s5 = scalar_lea.hbm %s15905_s15, 12288 }
  0xfb   :  { %p11131_p12 = scmp.ne.s32.totalorder %s15905_s15, %s11130_s5  ;;  %p11134_p13 = scmp.lt.u32.totalorder %s11130_s5, %s15905_s15 }
  0xfd   :  { %p11136_p0 = pnand %p11134_p13, %p11131_p12 }
  0xff   :  { %11139 = shalt.err (!%p11136_p0)  }
 0x100   :  { %s11140_s10 = scalar_lea.vmem %s209_s25, 12288  ;;  %p11145_p2 = scmp.lt.s32.totalorder %s209_s25, %s209_s25 }
 0x101   :  { %p11141_p1 = scmp.ne.s32.totalorder %s209_s25, %s11140_s10  ;;  %p11146_p3 = scmp.lt.s32.totalorder %s11140_s10, %s11140_s10 }
 0x103   :  { %p11147_p4 = por %p11146_p3, %p11145_p2 }
 0x105   :  { %p11148_p5 = pnand %p11147_p4, %p11141_p1 }
 0x107   :  { %11151 = shalt.err (!%p11148_p5)  }
 0x108   :  { %211 = dma.hbm_to_vmem [thread:$0]  %s15905_s15, 12288, %s209_s25, [#allocation9 + $0x1]  ;;  %v11556_v0 = vld [vmem:[%s15906_s16] sm:$0xff]  ;;  %v11561_v1 = vld [vmem:[%s15906_s16 + $0x8] sm:$0xff]  ;;  %v11566_v2 = vld [vmem:[%s15906_s16 + $0x10] sm:$0xff] }
 0x109   :  { %v11571_v3 = vld [vmem:[%s15906_s16 + $0x18] sm:$0xff]  ;;  %v11576_v4 = vld [vmem:[%s15906_s16 + $0x20] sm:$0xff]  ;;  %v11581_v5 = vld [vmem:[%s15906_s16 + $0x28] sm:$0xff] }
 0x10a   :  { %v11586_v6 = vld [vmem:[%s15906_s16 + $0x30] sm:$0xff]  ;;  %v11591_v7 = vld [vmem:[%s15906_s16 + $0x38] sm:$0xff]  ;;  %v11596_v8 = vld [vmem:[%s15906_s16 + $0x40] sm:$0xff] }
 0x10b   :  { %v11601_v9 = vld [vmem:[%s15906_s16 + $0x48] sm:$0xff]  ;;  %v11606_v10 = vld [vmem:[%s15906_s16 + $0x50] sm:$0xff]  ;;  %v11611_v11 = vld [vmem:[%s15906_s16 + $0x58] sm:$0xff] }
 0x10c   :  { %16053 = vst [vmem:[#allocation52_spill] sm:$0xff] %v11606_v10  ;;  %16054 = vst [vmem:[#allocation53_spill] sm:$0xff] %v11611_v11  ;;  %v11616_v12 = vld [vmem:[%s15906_s16 + $0x60] sm:$0xff]  ;;  %v11621_v13 = vld [vmem:[%s15906_s16 + $0x68] sm:$0xff] }
 0x10d   :  { %16055 = vst [vmem:[#allocation54_spill] sm:$0xff] %v11616_v12  ;;  %16056 = vst [vmem:[#allocation55_spill] sm:$0xff] %v11621_v13  ;;  %v11626_v14 = vld [vmem:[%s15906_s16 + $0x70] sm:$0xff]  ;;  %v11631_v15 = vld [vmem:[%s15906_s16 + $0x78] sm:$0xff] }
 0x10e   :  { %16057 = vst [vmem:[#allocation56_spill] sm:$0xff] %v11626_v14  ;;  %16058 = vst [vmem:[#allocation57_spill] sm:$0xff] %v11631_v15  ;;  %v11636_v16 = vld [vmem:[%s15906_s16 + $0x80] sm:$0xff]  ;;  %v11641_v17 = vld [vmem:[%s15906_s16 + $0x88] sm:$0xff] }
 0x10f   :  { %16059 = vst [vmem:[#allocation58_spill] sm:$0xff] %v11636_v16  ;;  %16060 = vst [vmem:[#allocation59_spill] sm:$0xff] %v11641_v17  ;;  %v11646_v18 = vld [vmem:[%s15906_s16 + $0x90] sm:$0xff]  ;;  %v11651_v19 = vld [vmem:[%s15906_s16 + $0x98] sm:$0xff] }
 0x110   :  { %16061 = vst [vmem:[#allocation60_spill] sm:$0xff] %v11646_v18  ;;  %16062 = vst [vmem:[#allocation61_spill] sm:$0xff] %v11651_v19  ;;  %v11656_v20 = vld [vmem:[%s15906_s16 + $0xa0] sm:$0xff]  ;;  %v11661_v21 = vld [vmem:[%s15906_s16 + $0xa8] sm:$0xff] }
 0x111   :  { %16063 = vst [vmem:[#allocation62_spill] sm:$0xff] %v11656_v20  ;;  %16064 = vst [vmem:[#allocation63_spill] sm:$0xff] %v11661_v21  ;;  %v11666_v22 = vld [vmem:[%s15906_s16 + $0xb0] sm:$0xff]  ;;  %v11671_v23 = vld [vmem:[%s15906_s16 + $0xb8] sm:$0xff] }
 0x112   :  { %16065 = vst [vmem:[#allocation64_spill] sm:$0xff] %v11666_v22  ;;  %16066 = vst [vmem:[#allocation65_spill] sm:$0xff] %v11671_v23  ;;  %v11676_v24 = vld [vmem:[%s15906_s16 + $0xc0] sm:$0xff]  ;;  %v11681_v25 = vld [vmem:[%s15906_s16 + $0xc8] sm:$0xff] }
 0x113   :  { %16067 = vst [vmem:[#allocation66_spill] sm:$0xff] %v11676_v24  ;;  %16068 = vst [vmem:[#allocation67_spill] sm:$0xff] %v11681_v25  ;;  %v11686_v26 = vld [vmem:[%s15906_s16 + $0xd0] sm:$0xff]  ;;  %v11691_v27 = vld [vmem:[%s15906_s16 + $0xd8] sm:$0xff] }
 0x114   :  { %16069 = vst [vmem:[#allocation68_spill] sm:$0xff] %v11686_v26  ;;  %16070 = vst [vmem:[#allocation69_spill] sm:$0xff] %v11691_v27  ;;  %v11696_v28 = vld [vmem:[%s15906_s16 + $0xe0] sm:$0xff]  ;;  %v11701_v29 = vld [vmem:[%s15906_s16 + $0xe8] sm:$0xff] }
 0x115   :  { %16071 = vst [vmem:[#allocation70_spill] sm:$0xff] %v11696_v28  ;;  %16072 = vst [vmem:[#allocation71_spill] sm:$0xff] %v11701_v29  ;;  %v11706_v30 = vld [vmem:[%s15906_s16 + $0xf0] sm:$0xff]  ;;  %v11711_v31 = vld [vmem:[%s15906_s16 + $0xf8] sm:$0xff] }
 0x116   :  { %16073 = vst [vmem:[#allocation72_spill] sm:$0xff] %v11706_v30  ;;  %16074 = vst [vmem:[#allocation73_spill] sm:$0xff] %v11711_v31  ;;  %v11716_v32 = vld [vmem:[%s15906_s16 + $0x100] sm:$0xff]  ;;  %v11721_v33 = vld [vmem:[%s15906_s16 + $0x108] sm:$0xff] }
 0x117   :  { %16075 = vst [vmem:[#allocation74_spill] sm:$0xff] %v11716_v32  ;;  %16076 = vst [vmem:[#allocation75_spill] sm:$0xff] %v11721_v33  ;;  %v11726_v34 = vld [vmem:[%s15906_s16 + $0x110] sm:$0xff]  ;;  %v11731_v35 = vld [vmem:[%s15906_s16 + $0x118] sm:$0xff] }
 0x118   :  { %16077 = vst [vmem:[#allocation76_spill] sm:$0xff] %v11726_v34  ;;  %16078 = vst [vmem:[#allocation77_spill] sm:$0xff] %v11731_v35  ;;  %v11736_v36 = vld [vmem:[%s15906_s16 + $0x120] sm:$0xff]  ;;  %v11741_v37 = vld [vmem:[%s15906_s16 + $0x128] sm:$0xff] }
 0x119   :  { %16079 = vst [vmem:[#allocation78_spill] sm:$0xff] %v11736_v36  ;;  %16080 = vst [vmem:[#allocation79_spill] sm:$0xff] %v11741_v37  ;;  %v11746_v38 = vld [vmem:[%s15906_s16 + $0x130] sm:$0xff]  ;;  %v11751_v39 = vld [vmem:[%s15906_s16 + $0x138] sm:$0xff] }
 0x11a   :  { %16081 = vst [vmem:[#allocation80_spill] sm:$0xff] %v11746_v38  ;;  %16082 = vst [vmem:[#allocation81_spill] sm:$0xff] %v11751_v39  ;;  %v11756_v40 = vld [vmem:[%s15906_s16 + $0x140] sm:$0xff]  ;;  %v11761_v41 = vld [vmem:[%s15906_s16 + $0x148] sm:$0xff] }
 0x11b   :  { %16083 = vst [vmem:[#allocation82_spill] sm:$0xff] %v11756_v40  ;;  %16084 = vst [vmem:[#allocation83_spill] sm:$0xff] %v11761_v41  ;;  %v11766_v42 = vld [vmem:[%s15906_s16 + $0x150] sm:$0xff]  ;;  %v11771_v43 = vld [vmem:[%s15906_s16 + $0x158] sm:$0xff] }
 0x11c   :  { %16085 = vst [vmem:[#allocation84_spill] sm:$0xff] %v11766_v42  ;;  %16086 = vst [vmem:[#allocation85_spill] sm:$0xff] %v11771_v43  ;;  %v11776_v44 = vld [vmem:[%s15906_s16 + $0x160] sm:$0xff]  ;;  %v11781_v45 = vld [vmem:[%s15906_s16 + $0x168] sm:$0xff] }
 0x11d   :  { %16087 = vst [vmem:[#allocation86_spill] sm:$0xff] %v11776_v44  ;;  %16088 = vst [vmem:[#allocation87_spill] sm:$0xff] %v11781_v45  ;;  %v11786_v46 = vld [vmem:[%s15906_s16 + $0x170] sm:$0xff]  ;;  %v11791_v47 = vld [vmem:[%s15906_s16 + $0x178] sm:$0xff] }
 0x11e   :  { %16089 = vst [vmem:[#allocation88_spill] sm:$0xff] %v11786_v46  ;;  %16090 = vst [vmem:[#allocation89_spill] sm:$0xff] %v11791_v47 }
 0x11f   :  { %348 = vsyncadd [#allocation9 + $0x2], 6144  ;;  %v11796_v48 = vld [vmem:[%s15907_s17] sm:$0xff]  ;;  %v11801_v49 = vld [vmem:[%s15907_s17 + $0x8] sm:$0xff]  ;;  %s16115_s4 = sld [smem:[#allocation155_spill]]  ;;  %vm576_vm0 = vcmask 31744  }
 0x120   :  { %16091 = vst [vmem:[#allocation90_spill] sm:$0xff] %v11796_v48  ;;  %16092 = vst [vmem:[#allocation91_spill] sm:$0xff] %v11801_v49  ;;  %v11806_v50 = vld [vmem:[%s15907_s17 + $0x10] sm:$0xff]  ;;  %v11811_v51 = vld [vmem:[%s15907_s17 + $0x18] sm:$0xff]  ;;  %s11257_s2 = smov 4   ;;  %vm15955_vm1 = vcmask 1043456  }
 0x121   :  { %16093 = vst [vmem:[#allocation92_spill] sm:$0xff] %v11806_v50  ;;  %16094 = vst [vmem:[#allocation93_spill] sm:$0xff] %v11811_v51  ;;  %v11816_v52 = vld [vmem:[%s15907_s17 + $0x20] sm:$0xff]  ;;  %v11821_v53 = vld [vmem:[%s15907_s17 + $0x28] sm:$0xff] }
 0x122   :  { %16095 = vst [vmem:[#allocation94_spill] sm:$0xff] %v11816_v52  ;;  %16096 = vst [vmem:[#allocation95_spill] sm:$0xff] %v11821_v53  ;;  %v11826_v54 = vld [vmem:[%s15907_s17 + $0x30] sm:$0xff]  ;;  %v11831_v55 = vld [vmem:[%s15907_s17 + $0x38] sm:$0xff] }
 0x123   :  { %16097 = vst [vmem:[#allocation96_spill] sm:$0xff] %v11826_v54  ;;  %16098 = vst [vmem:[#allocation97_spill] sm:$0xff] %v11831_v55  ;;  %v11836_v56 = vld [vmem:[%s15907_s17 + $0x40] sm:$0xff]  ;;  %v11841_v57 = vld [vmem:[%s15907_s17 + $0x48] sm:$0xff] }
 0x124   :  { %16099 = vst [vmem:[#allocation98_spill] sm:$0xff] %v11836_v56  ;;  %16100 = vst [vmem:[#allocation99_spill] sm:$0xff] %v11841_v57  ;;  %v11846_v58 = vld [vmem:[%s15907_s17 + $0x50] sm:$0xff]  ;;  %v11851_v59 = vld [vmem:[%s15907_s17 + $0x58] sm:$0xff] }
 0x125   :  { %16101 = vst [vmem:[#allocation100_spill] sm:$0xff] %v11846_v58  ;;  %16102 = vst [vmem:[#allocation101_spill] sm:$0xff] %v11851_v59  ;;  %v11856_v60 = vld [vmem:[%s15907_s17 + $0x60] sm:$0xff]  ;;  %v11861_v61 = vld [vmem:[%s15907_s17 + $0x68] sm:$0xff] }
 0x126   :  { %16103 = vst [vmem:[#allocation102_spill] sm:$0xff] %v11856_v60  ;;  %16104 = vst [vmem:[#allocation103_spill] sm:$0xff] %v11861_v61  ;;  %v11866_v62 = vld [vmem:[%s15907_s17 + $0x70] sm:$0xff]  ;;  %v11871_v63 = vld [vmem:[%s15907_s17 + $0x78] sm:$0xff] }
 0x127   :  { %16105 = vst [vmem:[#allocation104_spill] sm:$0xff] %v11866_v62  ;;  %16106 = vst [vmem:[#allocation105_spill] sm:$0xff] %v11871_v63  ;;  %v11876_v59 = vld [vmem:[%s15907_s17 + $0x80] sm:$0xff]  ;;  %v11881_v60 = vld [vmem:[%s15907_s17 + $0x88] sm:$0xff] }
 0x128   :  { %16107 = vst [vmem:[#allocation106_spill] sm:$0xff] %v11876_v59  ;;  %16108 = vst [vmem:[#allocation107_spill] sm:$0xff] %v11881_v60  ;;  %v11886_v61 = vld [vmem:[%s15907_s17 + $0x90] sm:$0xff]  ;;  %v11891_v62 = vld [vmem:[%s15907_s17 + $0x98] sm:$0xff] }
 0x129   :  { %16109 = vst [vmem:[#allocation108_spill] sm:$0xff] %v11886_v61  ;;  %16110 = vst [vmem:[#allocation109_spill] sm:$0xff] %v11891_v62  ;;  %v11896_v63 = vld [vmem:[%s15907_s17 + $0xa0] sm:$0xff]  ;;  %v11901_v59 = vld [vmem:[%s15907_s17 + $0xa8] sm:$0xff] }
 0x12a   :  { %16111 = vst [vmem:[#allocation110_spill] sm:$0xff] %v11896_v63  ;;  %16112 = vst [vmem:[#allocation111_spill] sm:$0xff] %v11901_v59  ;;  %v11906_v60 = vld [vmem:[%s15907_s17 + $0xb0] sm:$0xff]  ;;  %v11911_v61 = vld [vmem:[%s15907_s17 + $0xb8] sm:$0xff] }
 0x12b   :  { %16113 = vst [vmem:[#allocation112_spill] sm:$0xff] %v11906_v60  ;;  %16114 = vst [vmem:[#allocation113_spill] sm:$0xff] %v11911_v61  ;;  %v568_v62 = vld [vmem:[%s16115_s4] sm:$0xff]  ;;  %v569_v63 = vld [vmem:[%s16115_s4 + $0x8] sm:$0xff]  ;;  %v15920_v60 = vmov 0.0  }
 0x12c   :  { %v570_v59 = vld [vmem:[%s16115_s4 + $0x10] sm:$0xff]  ;;  %657 = vrot.lane.b32.xlu0 %v568_v62, %s11257_s2  ;;  %438 = vst [vmem:[#allocation6] sm:$0xff] %v15920_v60  ;;  %439 = vst [vmem:[#allocation6 + $0x8] sm:$0xff] %v15920_v60  ;;  %v571_v58 = vld [vmem:[%s16115_s4 + $0x18] sm:$0xff] }
 0x12d   :  { %440 = vst [vmem:[#allocation6 + $0x10] sm:$0xff] %v15920_v60  ;;  %441 = vst [vmem:[#allocation6 + $0x18] sm:$0xff] %v15920_v60  ;;  %v572_v61 = vld [vmem:[%s16115_s4 + $0x20] sm:$0xff]  ;;  %v573_v57 = vld [vmem:[%s16115_s4 + $0x28] sm:$0xff] }
 0x12e   :  { %442 = vst [vmem:[#allocation6 + $0x20] sm:$0xff] %v15920_v60  ;;  %443 = vst [vmem:[#allocation6 + $0x28] sm:$0xff] %v15920_v60  ;;  %v575_v56 = vld [vmem:[%s16115_s4 + $0x38] sm:$0xff] }
 0x12f   :  { %444 = vst [vmem:[#allocation6 + $0x30] sm:$0xff] %v15920_v60  ;;  %445 = vst [vmem:[#allocation6 + $0x38] sm:$0xff] %v15920_v60 }
 0x130   :  { %446 = vst [vmem:[#allocation6 + $0x40] sm:$0xff] %v15920_v60  ;;  %577 = vst.msk [vmem:[#allocation6 + $0x1] sm:$0xff] %vm576_vm0, %v568_v62  ;;  %v574_v60 = vld [vmem:[%s16115_s4 + $0x30] sm:$0xff] }
 0x131   :  { %578 = vst.msk [vmem:[#allocation6 + $0x9] sm:$0xff] %vm576_vm0, %v569_v63  ;;  %579 = vst.msk [vmem:[#allocation6 + $0x11] sm:$0xff] %vm576_vm0, %v570_v59 }
 0x132   :  { %580 = vst.msk [vmem:[#allocation6 + $0x19] sm:$0xff] %vm576_vm0, %v571_v58  ;;  %581 = vst.msk [vmem:[#allocation6 + $0x21] sm:$0xff] %vm576_vm0, %v572_v61 }
 0x133   :  { %582 = vst.msk [vmem:[#allocation6 + $0x29] sm:$0xff] %vm576_vm0, %v573_v57 }
 0x134   :  { %437 = vsyncadd [#allocation9 + $0x3], 3072  ;;  %583 = vst.msk [vmem:[#allocation6 + $0x31] sm:$0xff] %vm576_vm0, %v574_v60  ;;  %v730_v62 = vld [vmem:[#allocation10] sm:$0xff]  ;;  %v731_v55 = vld [vmem:[#allocation10 + $0x8] sm:$0xf]  ;;  %v16116_v54 = vlaneseq  ;;  %659 = vrot.lane.b32.xlu0 %v569_v63, %s11257_s2 }
 0x135   :  { %584 = vst.msk [vmem:[#allocation6 + $0x39] sm:$0xff] %vm576_vm0, %v575_v56  ;;  %vm11259_vm2 = vmmov 1   ;;  %v10048_v52 = vpack.c.bf16 %v731_v55, %v730_v62  ;;  %vm721_vm7 = vcmask 64512   ;;  %vm739_vm8 = vcmask 97280   ;;  %s11261_s3 = smov 64   ;;  %s16126_s26 = sld [smem:[#allocation161_spill]] }
 0x136   :  { %vm10049_vm3 = vmpackc.low %vm15955_vm1, %vm11259_vm2  ;;  %v11957_v53 = vshrl.u32 %v16116_v54, 7  ;;  %vm881_vm10 = vcmask 523264   ;;  %vm12411_vm15 = vcmp.lt.s32.totalorder %v16116_v54, 256 }
 0x137   :  { %10050 = vmatprep.subr.msk.bf16.mxu0 %vm10049_vm3, %v10048_v52 }
 0x138   :  { %16117 = vst [vmem:[#allocation114_spill] sm:$0xff] %v11957_v53  ;;  %10053 = vmatpush3.bf16.msk.msra.mxu0 %vm10049_vm3, %v10048_v52  ;;  %v451_v51 = vadd.s32 24, %v11957_v53  ;;  %v617_v50 = vld [vmem:[#allocation6 + $0x2] sm:$0xff]  ;;  %661 = vrot.lane.b32.xlu0 %v570_v59, %s11257_s2  ;;  %v618_v48 = vld [vmem:[#allocation6 + $0xa] sm:$0xff] }
 0x139   :  { %689 = vrot.lane.b32.xlu1 %v617_v50, %s11249_s30  ;;  %v619_v49 = vld [vmem:[#allocation6 + $0x12] sm:$0xff]  ;;  %v620_v63 = vld [vmem:[#allocation6 + $0x1a] sm:$0xff] }
 0x13a   :  { %v481_v31 = vand.u32 31, %v451_v51  ;;  %v621_v52 = vld [vmem:[#allocation6 + $0x22] sm:$0xff] }
 0x13b   :  { %v1245_v62 = vld [vmem:[%s16126_s26 + $0x258] sm:$0xff] }
 0x13c   :  { %693 = vrot.lane.b32.xlu0 %v619_v49, %s11249_s30  ;;  %vm11965_vm4 = vcmp.eq.s32.totalorder %v481_v31, 31  ;;  %v455_v49 = vadd.s32 56, %v11957_v53  ;;  %v623_v31 = vld [vmem:[#allocation6 + $0x32] sm:$0xff]  ;;  %v624_v59 = vld [vmem:[#allocation6 + $0x3a] sm:$0xff] }
 0x13d   :  { %691 = vrot.lane.b32.xlu1 %v618_v48, %s11249_s30  ;;  %v644_v50 = vsel %vm11965_vm4, 0.0, %v620_v63  ;;  %v622_v48 = vld [vmem:[#allocation6 + $0x2a] sm:$0xff]  ;;  %v585_v63 = vld [vmem:[#allocation6] sm:$0xff]  ;;  %v1261_v46 = vld [vmem:[%s16126_s26 + $0x2d8] sm:$0xff] }
 0x13e   :  { %v509_v51 = vand.u32 31, %v455_v49  ;;  %v452_v49 = vadd.s32 32, %v11957_v53  ;;  %vm9730_vm13 = vmneg %vm11965_vm4 }
 0x140   :  { %665 = vrot.lane.b32.xlu0 %v572_v61, %s11257_s2  ;;  %vm11980_vm5 = vcmp.eq.s32.totalorder %v509_v51, 31 }
 0x141   :  { %663 = vrot.lane.b32.xlu1 %v571_v58, %s11257_s2  ;;  %v648_v61 = vsel %vm11980_vm5, 0.0, %v624_v59  ;;  %v488_v59 = vand.u32 31, %v452_v49  ;;  %vm9732_vm14 = vmneg %vm11980_vm5 }
 0x143   :  { %vm12001_vm9 = vcmp.eq.s32.totalorder %v488_v59, 0 }
 0x144   :  { %697 = vrot.lane.b32.xlu0 %v621_v52, %s11249_s30  ;;  %vm9728_vm12 = vmneg %vm12001_vm9 }
 0x145   :  { %695 = vrot.lane.b32.xlu1 %v644_v50, %s11249_s30 }
 0x148   :  { %669 = vrot.lane.b32.xlu0 %v574_v60, %s11257_s2 }
 0x149   :  { %667 = vrot.lane.b32.xlu1 %v573_v57, %s11257_s2  ;;  %v460_v57 = vand.u32 31, %v11957_v53 }
 0x14b   :  { %vm11989_vm6 = vcmp.eq.s32.totalorder %v460_v57, 0 }
 0x14c   :  { %701 = vrot.lane.b32.xlu0 %v623_v31, %s11249_s30  ;;  %v609_v52 = vsel %vm11989_vm6, 0.0, %v585_v63  ;;  %v587_v31 = vld [vmem:[#allocation6 + $0x10] sm:$0xff]  ;;  %vm9726_vm11 = vmneg %vm11989_vm6 }
 0x14d   :  { %699 = vrot.lane.b32.xlu1 %v622_v48, %s11249_s30  ;;  %v586_v48 = vld [vmem:[#allocation6 + $0x8] sm:$0xff] }
 0x151   :  { %671 = vrot.lane.b32.xlu1 %v575_v56, %s11257_s2 }
 0x155   :  { %703 = vrot.lane.b32.xlu1 %v648_v61, %s11249_s30 }
 0x19e   :  { %v658_v60 = vpop.permute.xlu0 %657 }
 0x19f   :  { %v713_v56 = vsel %vm576_vm0, %v609_v52, %v658_v60  ;;  %v589_v60 = vld [vmem:[#allocation6 + $0x20] sm:$0xff] }
 0x1a6   :  { %v660_v50 = vpop.permute.xlu0 %659 }
 0x1a7   :  { %v714_v47 = vsel %vm576_vm0, %v586_v48, %v660_v50  ;;  %v588_v48 = vld [vmem:[#allocation6 + $0x18] sm:$0xff] }
 0x1aa   :  { %v662_v51 = vpop.permute.xlu0 %661 }
 0x1ab   :  { %v690_v61 = vpop.permute.xlu1 %689  ;;  %v715_v30 = vsel %vm576_vm0, %v587_v31, %v662_v51 }
 0x1ac   :  { %v722_v57 = vsel %vm721_vm7, %v713_v56, %v690_v61  ;;  %v613_v56 = vsel %vm12001_vm9, 0.0, %v589_v60 }
 0x1ad   :  { %9947 = vmatprep.mubr.msk.f32.mxu0 %vm739_vm8, %v722_v57 }
 0x1ae   :  { %v694_v63 = vpop.permute.xlu0 %693 }
 0x1af   :  { %v692_v52 = vpop.permute.xlu1 %691  ;;  %v724_v29 = vsel %vm721_vm7, %v715_v30, %v694_v63  ;;  %v591_v63 = vld [vmem:[#allocation6 + $0x30] sm:$0xff] }
 0x1b0   :  { %v723_v49 = vsel %vm721_vm7, %v714_v47, %v692_v52  ;;  %v590_v52 = vld [vmem:[#allocation6 + $0x28] sm:$0xff] }
 0x1b1   :  { %9948 = vmatmul.mubr.msk.f32.vlgmr.msra.gmra.mrb[0].mxu0 %vm739_vm8, %v723_v49 }
 0x1b2   :  { %9950 = vmatprep.mubr.msk.f32.mxu0 %vm739_vm8, %v724_v29  ;;  %v666_v50 = vpop.permute.xlu0 %665 }
 0x1b3   :  { %v664_v31 = vpop.permute.xlu1 %663  ;;  %v717_v51 = vsel %vm576_vm0, %v613_v56, %v666_v50 }
 0x1b4   :  { %v716_v61 = vsel %vm576_vm0, %v588_v48, %v664_v31 }
 0x1b6   :  { %v698_v59 = vpop.permute.xlu0 %697 }
 0x1b7   :  { %v696_v57 = vpop.permute.xlu1 %695  ;;  %v726_v30 = vsel %vm721_vm7, %v717_v51, %v698_v59  ;;  %v592_v59 = vld [vmem:[#allocation6 + $0x38] sm:$0xff] }
 0x1b8   :  { %v725_v47 = vsel %vm721_vm7, %v716_v61, %v696_v57 }
 0x1b9   :  { %9951 = vmatmul.mubr.msk.f32.gmra.mrb[2].mxu0 %vm739_vm8, %v725_v47  ;;  %v962_v47 = vld [vmem:[#allocation15] sm:$0xff] }
 0x1ba   :  { %9953 = vmatprep.mubr.msk.f32.mxu0 %vm739_vm8, %v726_v30  ;;  %v670_v60 = vpop.permute.xlu0 %669 }
 0x1bb   :  { %v668_v29 = vpop.permute.xlu1 %667  ;;  %v719_v49 = vsel %vm576_vm0, %v591_v63, %v670_v60  ;;  %v963_v63 = vld [vmem:[#allocation15 + $0x8] sm:$0xff]  ;;  %v964_v60 = vld [vmem:[#allocation15 + $0x10] sm:$0xff] }
 0x1bc   :  { %v718_v56 = vsel %vm576_vm0, %v590_v52, %v668_v29  ;;  %v15922_v29 = vmov 0.0|0.0   ;;  %v965_v52 = vld [vmem:[#allocation15 + $0x18] sm:$0xff] }
 0x1bd   :  { %10054 = vmatprep.subr.bf16.mxu1 %v15922_v29 }
 0x1be   :  { %v702_v28 = vpop.permute.xlu0 %701 }
 0x1bf   :  { %v700_v50 = vpop.permute.xlu1 %699  ;;  %v728_v31 = vsel %vm721_vm7, %v719_v49, %v702_v28  ;;  %v10055_v28 = vpack.c.bf16 %v963_v63, %v962_v47  ;;  %v10058_v49 = vpack.c.bf16 %v965_v52, %v964_v60  ;;  %v972_v47 = vld [vmem:[#allocation15 + $0x50] sm:$0xff]  ;;  %v973_v63 = vld [vmem:[#allocation15 + $0x58] sm:$0xff]  ;;  %v975_v52 = vld [vmem:[#allocation15 + $0x68] sm:$0xff] }
 0x1c0   :  { %v727_v48 = vsel %vm721_vm7, %v718_v56, %v700_v50  ;;  %v966_v56 = vld [vmem:[#allocation15 + $0x20] sm:$0xff]  ;;  %v967_v50 = vld [vmem:[#allocation15 + $0x28] sm:$0xff]  ;;  %v10070_v60 = vpack.c.bf16 %v973_v63, %v972_v47 }
 0x1c1   :  { %9954 = vmatmul.mubr.msk.f32.gmra.mrb[4].mxu0 %vm739_vm8, %v727_v48  ;;  %10056 = vmatpush1.bf16.msra.mxu1 %v10055_v28  ;;  %v968_v48 = vld [vmem:[#allocation15 + $0x30] sm:$0xff]  ;;  %v974_v28 = vld [vmem:[#allocation15 + $0x60] sm:$0xff]  ;;  %v983_v63 = vld [vmem:[#allocation15 + $0xa8] sm:$0xff] }
 0x1c2   :  { %9956 = vmatprep.mubr.msk.f32.mxu0 %vm739_vm8, %v728_v31  ;;  %10057 = vmatprep.subr.bf16.mxu1 %v15922_v29  ;;  %v10061_v31 = vpack.c.bf16 %v967_v50, %v966_v56  ;;  %v976_v56 = vld [vmem:[#allocation15 + $0x70] sm:$0xff]  ;;  %v977_v50 = vld [vmem:[#allocation15 + $0x78] sm:$0xff]  ;;  %v982_v47 = vld [vmem:[#allocation15 + $0xa0] sm:$0xff] }
 0x1c3   :  { %v672_v51 = vpop.permute.xlu1 %671 }
 0x1c4   :  { %v720_v61 = vsel %vm576_vm0, %v592_v59, %v672_v51  ;;  %v969_v51 = vld [vmem:[#allocation15 + $0x38] sm:$0xff] }
 0x1c5   :  { %10059 = vmatpush1.bf16.msra.mxu1 %v10058_v49  ;;  %v10064_v59 = vpack.c.bf16 %v969_v51, %v968_v48  ;;  %v10073_v49 = vpack.c.bf16 %v975_v52, %v974_v28  ;;  %v978_v48 = vld [vmem:[#allocation15 + $0x80] sm:$0xff]  ;;  %v979_v51 = vld [vmem:[#allocation15 + $0x88] sm:$0xff]  ;;  %v984_v28 = vld [vmem:[#allocation15 + $0xb0] sm:$0xff] }
 0x1c6   :  { %10060 = vmatprep.subr.bf16.mxu1 %v15922_v29  ;;  %v985_v52 = vld [vmem:[#allocation15 + $0xb8] sm:$0xff] }
 0x1c7   :  { %v704_v57 = vpop.permute.xlu1 %703 }
 0x1c8   :  { %v729_v30 = vsel %vm721_vm7, %v720_v61, %v704_v57  ;;  %v970_v61 = vld [vmem:[#allocation15 + $0x40] sm:$0xff]  ;;  %v971_v57 = vld [vmem:[#allocation15 + $0x48] sm:$0xff] }
 0x1c9   :  { %9957 = vmatmul.mubr.msk.f32.gmra.mrb[6].mxu0 %vm739_vm8, %v729_v30  ;;  %10062 = vmatpush1.bf16.msra.mxu1 %v10061_v31  ;;  %v10067_v30 = vpack.c.bf16 %v971_v57, %v970_v61  ;;  %v10076_v31 = vpack.c.bf16 %v977_v50, %v976_v56  ;;  %v980_v61 = vld [vmem:[#allocation15 + $0x90] sm:$0xff]  ;;  %v981_v57 = vld [vmem:[#allocation15 + $0x98] sm:$0xff] }
 0x1ca   :  { %10063 = vmatprep.subr.bf16.mxu1 %v15922_v29  ;;  %v9707_v56 = vld [vmem:[#allocation13] ss:$0 sm:$0xff] }
 0x1cd   :  { %10065 = vmatpush1.bf16.msra.mxu1 %v10064_v59  ;;  %v10079_v59 = vpack.c.bf16 %v979_v51, %v978_v48 }
 0x1ce   :  { %10066 = vmatprep.subr.bf16.mxu1 %v15922_v29 }
 0x1d1   :  { %10068 = vmatpush1.bf16.msra.mxu1 %v10067_v30  ;;  %v10082_v30 = vpack.c.bf16 %v981_v57, %v980_v61 }
 0x1d2   :  { %10069 = vmatprep.subr.bf16.mxu1 %v15922_v29 }
 0x1d5   :  { %10071 = vmatpush1.bf16.msra.mxu1 %v10070_v60  ;;  %v10085_v60 = vpack.c.bf16 %v983_v63, %v982_v47 }
 0x1d6   :  { %10072 = vmatprep.subr.bf16.mxu1 %v15922_v29 }
 0x1d9   :  { %10074 = vmatpush1.bf16.msra.mxu1 %v10073_v49  ;;  %v10088_v49 = vpack.c.bf16 %v985_v52, %v984_v28 }
 0x1da   :  { %10075 = vmatprep.subr.bf16.mxu1 %v15922_v29 }
 0x1dd   :  { %10077 = vmatpush1.bf16.msra.mxu1 %v10076_v31 }
 0x1de   :  { %10078 = vmatprep.subr.bf16.mxu1 %v15922_v29 }
 0x1e1   :  { %10080 = vmatpush1.bf16.msra.mxu1 %v10079_v59 }
 0x1e2   :  { %10081 = vmatprep.subr.bf16.mxu1 %v15922_v29 }
 0x1e5   :  { %10083 = vmatpush1.bf16.msra.mxu1 %v10082_v30 }
 0x1e6   :  { %10084 = vmatprep.subr.bf16.mxu1 %v15922_v29 }
 0x1e9   :  { %10086 = vmatpush1.bf16.msra.mxu1 %v10085_v60 }
 0x1ea   :  { %10087 = vmatprep.subr.bf16.mxu1 %v15922_v29 }
 0x1ed   :  { %10089 = vmatpush1.bf16.msra.mxu1 %v10088_v49 }
 0x284   :  { %v9949_v50 = vpop.f32.mrb[0].mxu0 }
 0x285   :  { %v840_v31 = vadd.f32 %v9949_v50, %v9707_v56  ;;  %v834_v48 = vpop.f32.mrb[1].mxu0 }
 0x286   :  { %v835_v51 = vadd.f32 %v9707_v56, %v834_v48 }
 0x287   :  { %v874_v59 = vmax.f32 %v840_v31, 0.0 }
 0x288   :  { %v873_v61 = vmax.f32 %v835_v51, 0.0 }
 0x289   :  { %883 = vst.msk [vmem:[#allocation6 + $0x9] sm:$0xff] %vm881_vm10, %v874_v59  ;;  %932 = vrot.lane.b32.xlu1 %v874_v59, %s11261_s3 }
 0x28a   :  { %882 = vst.msk [vmem:[#allocation6 + $0x1] sm:$0xff] %vm881_vm10, %v873_v61  ;;  %930 = vrot.lane.b32.xlu0 %v873_v61, %s11261_s3  ;;  %v1171_v61 = vld [vmem:[%s16126_s26 + $0x8] sm:$0xff] }
 0x28c   :  { %v9952_v57 = vpop.f32.mrb[2].mxu0 }
 0x28d   :  { %v850_v30 = vadd.f32 %v9952_v57, %v9707_v56  ;;  %v844_v47 = vpop.f32.mrb[3].mxu0  ;;  %v1173_v57 = vld [vmem:[%s16126_s26 + $0x18] sm:$0xff] }
 0x28e   :  { %v845_v63 = vadd.f32 %v9707_v56, %v844_v47  ;;  %v1170_v47 = vld [vmem:[%s16126_s26] sm:$0xff] }
 0x28f   :  { %v876_v60 = vmax.f32 %v850_v30, 0.0  ;;  %v10090_v30 = vpack.c.bf16 %v1173_v57, %v1171_v61  ;;  %v1179_v61 = vld [vmem:[%s16126_s26 + $0x48] sm:$0xff]  ;;  %v1181_v57 = vld [vmem:[%s16126_s26 + $0x58] sm:$0xff] }
 0x290   :  { %v875_v28 = vmax.f32 %v845_v63, 0.0  ;;  %v1172_v63 = vld [vmem:[%s16126_s26 + $0x10] sm:$0xff]  ;;  %v10098_v45 = vpack.c.bf16 %v1181_v57, %v1179_v61  ;;  %v1186_v61 = vld [vmem:[%s16126_s26 + $0x80] sm:$0xff] }
 0x291   :  { %885 = vst.msk [vmem:[#allocation6 + $0x19] sm:$0xff] %vm881_vm10, %v876_v60  ;;  %936 = vrot.lane.b32.xlu1 %v876_v60, %s11261_s3  ;;  %v906_v52 = vld [vmem:[#allocation6 + $0x2] sm:$0xff]  ;;  %10091 = vmatprep.subr.bf16.mxu0 %v10090_v30  ;;  %v1180_v30 = vld [vmem:[%s16126_s26 + $0x50] sm:$0xff] }
 0x292   :  { %884 = vst.msk [vmem:[#allocation6 + $0x11] sm:$0xff] %vm881_vm10, %v875_v28  ;;  %934 = vrot.lane.b32.xlu0 %v875_v28, %s11261_s3  ;;  %9718 = vmatprep.mubr.msk.f32.mxu1 %vm881_vm10, %v906_v52  ;;  %v1175_v60 = vld [vmem:[%s16126_s26 + $0x28] sm:$0xff]  ;;  %v10092_v52 = vpack.c.bf16 %v1172_v63, %v1170_v47  ;;  %v1188_v57 = vld [vmem:[%s16126_s26 + $0x90] sm:$0xff] }
 0x294   :  { %v9955_v49 = vpop.f32.mrb[4].mxu0  ;;  %10093 = vmatpush1.bf16.msra.mxu0 %v10092_v52 }
 0x295   :  { %v860_v50 = vadd.f32 %v9955_v49, %v9707_v56  ;;  %v854_v31 = vpop.f32.mrb[5].mxu0  ;;  %v1177_v49 = vld [vmem:[%s16126_s26 + $0x38] sm:$0xff] }
 0x296   :  { %v855_v48 = vadd.f32 %v9707_v56, %v854_v31  ;;  %v1176_v31 = vld [vmem:[%s16126_s26 + $0x30] sm:$0xff] }
 0x297   :  { %v878_v51 = vmax.f32 %v860_v50, 0.0  ;;  %v1174_v50 = vld [vmem:[%s16126_s26 + $0x20] sm:$0xff] }
 0x298   :  { %v877_v59 = vmax.f32 %v855_v48, 0.0  ;;  %v10096_v63 = vpack.c.bf16 %v1176_v31, %v1174_v50  ;;  %v1182_v31 = vld [vmem:[%s16126_s26 + $0x60] sm:$0xff] }
 0x299   :  { %887 = vst.msk [vmem:[#allocation6 + $0x29] sm:$0xff] %vm881_vm10, %v878_v51  ;;  %940 = vrot.lane.b32.xlu1 %v878_v51, %s11261_s3 }
 0x29a   :  { %886 = vst.msk [vmem:[#allocation6 + $0x21] sm:$0xff] %vm881_vm10, %v877_v59  ;;  %938 = vrot.lane.b32.xlu0 %v877_v59, %s11261_s3  ;;  %v10094_v59 = vpack.c.bf16 %v1177_v49, %v1175_v60  ;;  %v1183_v49 = vld [vmem:[%s16126_s26 + $0x68] sm:$0xff] }
 0x29c   :  { %v9958_v28 = vpop.f32.mrb[6].mxu0  ;;  %10095 = vmatprep.subr.bf16.mxu0 %v10094_v59 }
 0x29d   :  { %v870_v48 = vadd.f32 %v9958_v28, %v9707_v56  ;;  %v864_v51 = vpop.f32.mrb[7].mxu0  ;;  %v1178_v28 = vld [vmem:[%s16126_s26 + $0x40] sm:$0xff]  ;;  %10097 = vmatpush1.bf16.msra.mxu0 %v10096_v63  ;;  %v1193_v63 = vld [vmem:[%s16126_s26 + $0xb8] sm:$0xff] }
 0x29e   :  { %v865_v47 = vadd.f32 %v9707_v56, %v864_v51  ;;  %v1185_v56 = vld [vmem:[%s16126_s26 + $0x78] sm:$0xff]  ;;  %v10100_v52 = vpack.c.bf16 %v1180_v30, %v1178_v28  ;;  %10099 = vmatprep.subr.bf16.mxu0 %v10098_v45  ;;  %v10108_v28 = vpack.c.bf16 %v1188_v57, %v1186_v61  ;;  %v1198_v57 = vld [vmem:[%s16126_s26 + $0xe0] sm:$0xff] }
 0x29f   :  { %v880_v29 = vmax.f32 %v870_v48, 0.0  ;;  %v10102_v50 = vpack.c.bf16 %v1185_v56, %v1183_v49  ;;  %v1184_v48 = vld [vmem:[%s16126_s26 + $0x70] sm:$0xff]  ;;  %v1189_v51 = vld [vmem:[%s16126_s26 + $0x98] sm:$0xff]  ;;  %v1195_v56 = vld [vmem:[%s16126_s26 + $0xc8] sm:$0xff] }
 0x2a0   :  { %v879_v60 = vmax.f32 %v865_v47, 0.0  ;;  %v10104_v59 = vpack.c.bf16 %v1184_v48, %v1182_v31  ;;  %v1191_v47 = vld [vmem:[%s16126_s26 + $0xa8] sm:$0xff]  ;;  %v1192_v49 = vld [vmem:[%s16126_s26 + $0xb0] sm:$0xff]  ;;  %v1194_v48 = vld [vmem:[%s16126_s26 + $0xc0] sm:$0xff] }
 0x2a1   :  { %889 = vst.msk [vmem:[#allocation6 + $0x39] sm:$0xff] %vm881_vm10, %v880_v29  ;;  %944 = vrot.lane.b32.xlu1 %v880_v29, %s11261_s3  ;;  %v1187_v29 = vld [vmem:[%s16126_s26 + $0x88] sm:$0xff]  ;;  %10101 = vmatpush1.bf16.msra.mxu0 %v10100_v52  ;;  %v10110_v30 = vpack.c.bf16 %v1193_v63, %v1191_v47  ;;  %v1197_v52 = vld [vmem:[%s16126_s26 + $0xd8] sm:$0xff]  ;;  %v1200_v47 = vld [vmem:[%s16126_s26 + $0xf0] sm:$0xff] }
 0x2a2   :  { %888 = vst.msk [vmem:[#allocation6 + $0x31] sm:$0xff] %vm881_vm10, %v879_v60  ;;  %942 = vrot.lane.b32.xlu0 %v879_v60, %s11261_s3  ;;  %10103 = vmatprep.subr.bf16.mxu0 %v10102_v50  ;;  %v10106_v45 = vpack.c.bf16 %v1189_v51, %v1187_v29  ;;  %v1190_v60 = vld [vmem:[%s16126_s26 + $0xa0] sm:$0xff]  ;;  %v10114_v31 = vpack.c.bf16 %v1197_v52, %v1195_v56  ;;  %v1196_v29 = vld [vmem:[%s16126_s26 + $0xd0] sm:$0xff]  ;;  %v1199_v51 = vld [vmem:[%s16126_s26 + $0xe8] sm:$0xff] }
 0x2a3   :  { %v10112_v50 = vpack.c.bf16 %v1192_v49, %v1190_v60  ;;  %v1203_v63 = vld [vmem:[%s16126_s26 + $0x108] sm:$0xff]  ;;  %v1202_v49 = vld [vmem:[%s16126_s26 + $0x100] sm:$0xff]  ;;  %v1204_v56 = vld [vmem:[%s16126_s26 + $0x110] sm:$0xff] }
 0x2a4   :  { %v1207_v52 = vld [vmem:[%s16126_s26 + $0x128] sm:$0xff] }
 0x2a5   :  { %10105 = vmatpush1.bf16.msra.mxu0 %v10104_v59  ;;  %v1201_v59 = vld [vmem:[%s16126_s26 + $0xf8] sm:$0xff] }
 0x2a6   :  { %10107 = vmatprep.subr.bf16.mxu0 %v10106_v45  ;;  %v10116_v45 = vpack.c.bf16 %v1196_v29, %v1194_v48  ;;  %v10118_v61 = vpack.c.bf16 %v1201_v59, %v1199_v51  ;;  %v1206_v29 = vld [vmem:[%s16126_s26 + $0x120] sm:$0xff]  ;;  %v1208_v51 = vld [vmem:[%s16126_s26 + $0x130] sm:$0xff]  ;;  %v1211_v59 = vld [vmem:[%s16126_s26 + $0x148] sm:$0xff] }
 0x2a9   :  { %10109 = vmatpush1.bf16.msra.mxu0 %v10108_v28  ;;  %v1205_v28 = vld [vmem:[%s16126_s26 + $0x118] sm:$0xff] }
 0x2aa   :  { %10111 = vmatprep.subr.bf16.mxu0 %v10110_v30  ;;  %v10120_v30 = vpack.c.bf16 %v1200_v47, %v1198_v57  ;;  %v10122_v60 = vpack.c.bf16 %v1205_v28, %v1203_v63  ;;  %v1210_v47 = vld [vmem:[%s16126_s26 + $0x140] sm:$0xff]  ;;  %v1212_v63 = vld [vmem:[%s16126_s26 + $0x150] sm:$0xff]  ;;  %v1215_v28 = vld [vmem:[%s16126_s26 + $0x168] sm:$0xff] }
 0x2ad   :  { %10113 = vmatpush1.bf16.msra.mxu0 %v10112_v50  ;;  %v1209_v50 = vld [vmem:[%s16126_s26 + $0x138] sm:$0xff] }
 0x2ae   :  { %10115 = vmatprep.subr.bf16.mxu0 %v10114_v31  ;;  %v10124_v31 = vpack.c.bf16 %v1204_v56, %v1202_v49  ;;  %v10126_v48 = vpack.c.bf16 %v1209_v50, %v1207_v52  ;;  %v1214_v56 = vld [vmem:[%s16126_s26 + $0x160] sm:$0xff]  ;;  %v1216_v52 = vld [vmem:[%s16126_s26 + $0x170] sm:$0xff]  ;;  %v1219_v50 = vld [vmem:[%s16126_s26 + $0x188] sm:$0xff] }
 0x2b1   :  { %10117 = vmatpush1.bf16.msra.mxu0 %v10116_v45  ;;  %v1213_v45 = vld [vmem:[%s16126_s26 + $0x158] sm:$0xff] }
 0x2b2   :  { %10119 = vmatprep.subr.bf16.mxu0 %v10118_v61  ;;  %v10128_v61 = vpack.c.bf16 %v1208_v51, %v1206_v29  ;;  %v10130_v57 = vpack.c.bf16 %v1213_v45, %v1211_v59  ;;  %v1218_v51 = vld [vmem:[%s16126_s26 + $0x180] sm:$0xff]  ;;  %v1220_v59 = vld [vmem:[%s16126_s26 + $0x190] sm:$0xff] }
 0x2b3   :  { %v10140_v45 = vpack.c.bf16 %v1220_v59, %v1218_v51  ;;  %v893_v59 = vld [vmem:[#allocation6 + $0x18] sm:$0xff] }
 0x2b5   :  { %10121 = vmatpush1.bf16.msra.mxu0 %v10120_v30  ;;  %v1217_v30 = vld [vmem:[%s16126_s26 + $0x178] sm:$0xff] }
 0x2b6   :  { %10123 = vmatprep.subr.bf16.mxu0 %v10122_v60  ;;  %v10132_v60 = vpack.c.bf16 %v1212_v63, %v1210_v47  ;;  %v10134_v49 = vpack.c.bf16 %v1217_v30, %v1215_v28  ;;  %v907_v30 = vld [vmem:[#allocation6 + $0xa] sm:$0xff] }
 0x2b9   :  { %10125 = vmatpush1.bf16.msra.mxu0 %v10124_v31  ;;  %v1221_v31 = vld [vmem:[%s16126_s26 + $0x198] sm:$0xff] }
 0x2ba   :  { %10127 = vmatprep.subr.bf16.mxu0 %v10126_v48  ;;  %v10136_v48 = vpack.c.bf16 %v1216_v52, %v1214_v56  ;;  %v10138_v29 = vpack.c.bf16 %v1221_v31, %v1219_v50  ;;  %v908_v56 = vld [vmem:[#allocation6 + $0x12] sm:$0xff]  ;;  %v909_v52 = vld [vmem:[#allocation6 + $0x1a] sm:$0xff] }
 0x2bb   :  { %v892_v31 = vld [vmem:[#allocation6 + $0x10] sm:$0xff]  ;;  %v917_v51 = vsel %vm11965_vm4, 0.0, %v909_v52 }
 0x2bc   :  { %v912_v52 = vld [vmem:[#allocation6 + $0x32] sm:$0xff] }
 0x2bd   :  { %10129 = vmatpush1.bf16.msra.mxu0 %v10128_v61  ;;  %v890_v61 = vld [vmem:[#allocation6] sm:$0xff] }
 0x2be   :  { %10131 = vmatprep.subr.bf16.mxu0 %v10130_v57  ;;  %v898_v47 = vsel %vm11989_vm6, 0.0, %v890_v61  ;;  %v894_v61 = vld [vmem:[#allocation6 + $0x20] sm:$0xff] }
 0x2c1   :  { %10133 = vmatpush1.bf16.msra.mxu0 %v10132_v60  ;;  %v891_v60 = vld [vmem:[#allocation6 + $0x8] sm:$0xff] }
 0x2c2   :  { %10135 = vmatprep.subr.bf16.mxu0 %v10134_v49 }
 0x2c5   :  { %10137 = vmatpush1.bf16.msra.mxu0 %v10136_v48 }
 0x2c6   :  { %10139 = vmatprep.subr.bf16.mxu0 %v10138_v29 }
 0x2c9   :  { %10141 = vmatpush1.bf16.msra.mxu0 %v10140_v45 }
 0x2fb   :  { %v933_v28 = vpop.permute.xlu1 %932 }
 0x2fc   :  { %v931_v57 = vpop.permute.xlu0 %930  ;;  %v955_v49 = vsel %vm881_vm10, %v891_v60, %v933_v28  ;;  %v911_v60 = vld [vmem:[#allocation6 + $0x2a] sm:$0xff] }
 0x2fd   :  { %v954_v63 = vsel %vm881_vm10, %v898_v47, %v931_v57  ;;  %v910_v57 = vld [vmem:[#allocation6 + $0x22] sm:$0xff] }
 0x2fe   :  { %1082 = vmatmul.mubr.f32.vlgmr.msra.gmra.mrb[0].mxu1 %v954_v63  ;;  %v902_v63 = vsel %vm12001_vm9, 0.0, %v894_v61 }
 0x2ff   :  { %9719 = vmatprep.mubr.msk.f32.mxu1 %vm881_vm10, %v907_v30 }
 0x302   :  { %1087 = vmatmul.mubr.f32.gmra.mrb[2].mxu1 %v955_v49  ;;  %v895_v49 = vld [vmem:[#allocation6 + $0x28] sm:$0xff] }
 0x303   :  { %9720 = vmatprep.mubr.msk.f32.mxu1 %vm881_vm10, %v908_v56  ;;  %v937_v29 = vpop.permute.xlu1 %936 }
 0x304   :  { %v935_v50 = vpop.permute.xlu0 %934  ;;  %v957_v45 = vsel %vm881_vm10, %v893_v59, %v937_v29 }
 0x305   :  { %v956_v48 = vsel %vm881_vm10, %v892_v31, %v935_v50  ;;  %v913_v50 = vld [vmem:[#allocation6 + $0x3a] sm:$0xff] }
 0x306   :  { %1092 = vmatmul.mubr.f32.gmra.mrb[4].mxu1 %v956_v48  ;;  %v896_v48 = vld [vmem:[#allocation6 + $0x30] sm:$0xff]  ;;  %v921_v59 = vsel %vm11980_vm5, 0.0, %v913_v50  ;;  %v1226_v50 = vld [vmem:[%s16126_s26 + $0x1c0] sm:$0xff] }
 0x307   :  { %9721 = vmatprep.mubr.msk.f32.mxu1 %vm881_vm10, %v917_v51 }
 0x30a   :  { %1097 = vmatmul.mubr.f32.gmra.mrb[6].mxu1 %v957_v45  ;;  %v897_v45 = vld [vmem:[#allocation6 + $0x38] sm:$0xff] }
 0x30b   :  { %9722 = vmatprep.mubr.msk.f32.mxu1 %vm881_vm10, %v910_v57  ;;  %v941_v30 = vpop.permute.xlu1 %940  ;;  %v1223_v57 = vld [vmem:[%s16126_s26 + $0x1a8] sm:$0xff] }
 0x30c   :  { %v939_v47 = vpop.permute.xlu0 %938  ;;  %v959_v56 = vsel %vm881_vm10, %v895_v49, %v941_v30  ;;  %v1224_v30 = vld [vmem:[%s16126_s26 + $0x1b0] sm:$0xff]  ;;  %v1227_v49 = vld [vmem:[%s16126_s26 + $0x1c8] sm:$0xff] }
 0x30d   :  { %v958_v28 = vsel %vm881_vm10, %v902_v63, %v939_v47  ;;  %v1225_v47 = vld [vmem:[%s16126_s26 + $0x1b8] sm:$0xff] }
 0x30e   :  { %1102 = vmatmul.mubr.f32.gmra.mrb[8].mxu1 %v958_v28  ;;  %v10142_v63 = vpack.c.bf16 %v1225_v47, %v1223_v57  ;;  %v1222_v28 = vld [vmem:[%s16126_s26 + $0x1a0] sm:$0xff]  ;;  %v1235_v47 = vld [vmem:[%s16126_s26 + $0x208] sm:$0xff] }
 0x30f   :  { %9723 = vmatprep.mubr.msk.f32.mxu1 %vm881_vm10, %v911_v60  ;;  %v10144_v60 = vpack.c.bf16 %v1224_v30, %v1222_v28  ;;  %v12276_v30 = vld [vmem:[#allocation16] ss:$0 sm:$0xff] }
 0x310   :  { %10143 = vmatprep.subr.bf16.mxu0 %v10142_v63  ;;  %v1237_v63 = vld [vmem:[%s16126_s26 + $0x218] sm:$0xff] }
 0x311   :  { %10145 = vmatpush1.bf16.msra.mxu0 %v10144_v60  ;;  %v10154_v28 = vpack.c.bf16 %v1237_v63, %v1235_v47 }
 0x312   :  { %1107 = vmatmul.mubr.f32.gmra.mrb[10].mxu1 %v959_v56  ;;  %v1229_v56 = vld [vmem:[%s16126_s26 + $0x1d8] sm:$0xff] }
 0x313   :  { %9724 = vmatprep.mubr.msk.f32.mxu1 %vm881_vm10, %v912_v52  ;;  %v945_v51 = vpop.permute.xlu1 %944  ;;  %v10146_v52 = vpack.c.bf16 %v1229_v56, %v1227_v49 }
 0x314   :  { %v943_v31 = vpop.permute.xlu0 %942  ;;  %v961_v61 = vsel %vm881_vm10, %v897_v45, %v945_v51  ;;  %v1233_v51 = vld [vmem:[%s16126_s26 + $0x1f8] sm:$0xff]  ;;  %v1230_v45 = vld [vmem:[%s16126_s26 + $0x1e0] sm:$0xff] }
 0x315   :  { %v960_v29 = vsel %vm881_vm10, %v896_v48, %v943_v31  ;;  %v1228_v31 = vld [vmem:[%s16126_s26 + $0x1d0] sm:$0xff]  ;;  %10147 = vmatprep.subr.bf16.mxu0 %v10146_v52 }
 0x316   :  { %1112 = vmatmul.mubr.f32.gmra.mrb[12].mxu1 %v960_v29  ;;  %v10148_v48 = vpack.c.bf16 %v1228_v31, %v1226_v50  ;;  %v1231_v29 = vld [vmem:[%s16126_s26 + $0x1e8] sm:$0xff] }
 0x317   :  { %9725 = vmatprep.mubr.msk.f32.mxu1 %vm881_vm10, %v921_v59  ;;  %v10150_v59 = vpack.c.bf16 %v1233_v51, %v1231_v29  ;;  %v1234_v51 = vld [vmem:[%s16126_s26 + $0x200] sm:$0xff] }
 0x318   :  { %10149 = vmatpush1.bf16.msra.mxu0 %v10148_v48 }
 0x319   :  { %10151 = vmatprep.subr.bf16.mxu0 %v10150_v59  ;;  %v1236_v59 = vld [vmem:[%s16126_s26 + $0x210] sm:$0xff] }
 0x31a   :  { %1117 = vmatmul.mubr.f32.gmra.mrb[14].mxu1 %v961_v61  ;;  %v1232_v61 = vld [vmem:[%s16126_s26 + $0x1f0] sm:$0xff] }
 0x31b   :  { %v10152_v57 = vpack.c.bf16 %v1232_v61, %v1230_v45  ;;  %v1239_v61 = vld [vmem:[%s16126_s26 + $0x228] sm:$0xff] }
 0x31d   :  { %10153 = vmatpush1.bf16.msra.mxu0 %v10152_v57  ;;  %v1241_v57 = vld [vmem:[%s16126_s26 + $0x238] sm:$0xff] }
 0x31e   :  { %10155 = vmatprep.subr.bf16.mxu0 %v10154_v28  ;;  %v10156_v28 = vpack.c.bf16 %v1236_v59, %v1234_v51 }
 0x3d1   :  { %v1083_v60 = vpop.f32.mrb[0].mxu1 }
 0x3d2   :  { %v1084_v49 = vadd.f32 %v12276_v30, %v1083_v60  ;;  %v1085_v56 = vpop.f32.mrb[1].mxu1 }
 0x3d3   :  { %v1238_v56 = vld [vmem:[%s16126_s26 + $0x220] sm:$0xff] }
 0x3d4   :  { %v1122_v52 = vmax.f32 %v1084_v49, 0.0  ;;  %v10158_v49 = vpack.c.bf16 %v1241_v57, %v1239_v61 }
 0x3d5   :  { %v1088_v50 = vpop.f32.mrb[2].mxu1 }
 0x3d6   :  { %1130 = vst [vmem:[#allocation6 + $0x1] sm:$0xff] %v1122_v52  ;;  %v1089_v31 = vadd.f32 %v12276_v30, %v1088_v50  ;;  %v1090_v48 = vpop.f32.mrb[3].mxu1  ;;  %1342 = vmatprep.mubr.f32.mxu0 %v1122_v52  ;;  %v1240_v52 = vld [vmem:[%s16126_s26 + $0x230] sm:$0xff] }
 0x3d7   :  { %v1243_v48 = vld [vmem:[%s16126_s26 + $0x248] sm:$0xff] }
 0x3d8   :  { %v1123_v29 = vmax.f32 %v1089_v31, 0.0  ;;  %v10162_v57 = vpack.c.bf16 %v1245_v62, %v1243_v48  ;;  %v1246_v48 = vld [vmem:[%s16126_s26 + $0x260] sm:$0xff]  ;;  %v1248_v62 = vld [vmem:[%s16126_s26 + $0x270] sm:$0xff] }
 0x3d9   :  { %v1093_v45 = vpop.f32.mrb[4].mxu1 }
 0x3da   :  { %1131 = vst [vmem:[#allocation6 + $0x9] sm:$0xff] %v1123_v29  ;;  %v1094_v47 = vadd.f32 %v12276_v30, %v1093_v45  ;;  %v1095_v63 = vpop.f32.mrb[5].mxu1  ;;  %v10160_v45 = vpack.c.bf16 %v1240_v52, %v1238_v56 }
 0x3db   :  { %v1244_v63 = vld [vmem:[%s16126_s26 + $0x250] sm:$0xff] }
 0x3dc   :  { %v1124_v60 = vmax.f32 %v1094_v47, 0.0  ;;  %v1242_v47 = vld [vmem:[%s16126_s26 + $0x240] sm:$0xff] }
 0x3dd   :  { %v1098_v50 = vpop.f32.mrb[6].mxu1  ;;  %v1138_v31 = vld [vmem:[#allocation6] sm:$0xff]  ;;  %v10164_v56 = vpack.c.bf16 %v1244_v63, %v1242_v47 }
 0x3de   :  { %1132 = vst [vmem:[#allocation6 + $0x11] sm:$0xff] %v1124_v60  ;;  %v1099_v51 = vadd.f32 %v12276_v30, %v1098_v50  ;;  %v1100_v59 = vpop.f32.mrb[7].mxu1  ;;  %9727 = vmatmul.mubr.msk.f32.vlgmr.msra.gmra.mrb[8].mxu0 %vm9726_vm11, %v1138_v31  ;;  %v1247_v50 = vld [vmem:[%s16126_s26 + $0x268] sm:$0xff] }
 0x3df   :  { %10157 = vmatpush1.bf16.msra.mxu0 %v10156_v28  ;;  %1348 = vmatprep.mubr.f32.mxu0 %v1123_v29  ;;  %v1249_v29 = vld [vmem:[%s16126_s26 + $0x278] sm:$0xff] }
 0x3e0   :  { %v1125_v61 = vmax.f32 %v1099_v51, 0.0  ;;  %10159 = vmatprep.subr.bf16.mxu0 %v10158_v49  ;;  %v10166_v31 = vpack.c.bf16 %v1249_v29, %v1247_v50  ;;  %v1250_v50 = vld [vmem:[%s16126_s26 + $0x280] sm:$0xff]  ;;  %v1252_v29 = vld [vmem:[%s16126_s26 + $0x290] sm:$0xff] }
 0x3e1   :  { %v1103_v44 = vpop.f32.mrb[8].mxu1  ;;  %v1139_v27 = vld [vmem:[#allocation6 + $0x8] sm:$0xff] }
 0x3e2   :  { %1133 = vst [vmem:[#allocation6 + $0x19] sm:$0xff] %v1125_v61  ;;  %v1104_v28 = vadd.f32 %v12276_v30, %v1103_v44  ;;  %v1105_v49 = vpop.f32.mrb[9].mxu1  ;;  %1349 = vmatmul.mubr.f32.gmra.mrb[10].mxu0 %v1139_v27  ;;  %v1251_v27 = vld [vmem:[%s16126_s26 + $0x288] sm:$0xff]  ;;  %v1253_v44 = vld [vmem:[%s16126_s26 + $0x298] sm:$0xff] }
 0x3e3   :  { %10161 = vmatpush1.bf16.msra.mxu0 %v10160_v45  ;;  %1354 = vmatprep.mubr.f32.mxu0 %v1124_v60  ;;  %v10170_v63 = vpack.c.bf16 %v1253_v44, %v1251_v27  ;;  %v1254_v27 = vld [vmem:[%s16126_s26 + $0x2a0] sm:$0xff]  ;;  %v1256_v44 = vld [vmem:[%s16126_s26 + $0x2b0] sm:$0xff] }
 0x3e4   :  { %v1126_v52 = vmax.f32 %v1104_v28, 0.0  ;;  %10163 = vmatprep.subr.bf16.mxu0 %v10162_v57  ;;  %v10168_v57 = vpack.c.bf16 %v1248_v62, %v1246_v48  ;;  %v10172_v48 = vpack.c.bf16 %v1252_v29, %v1250_v50  ;;  %v10176_v50 = vpack.c.bf16 %v1256_v44, %v1254_v27 }
 0x3e5   :  { %v1108_v51 = vpop.f32.mrb[10].mxu1  ;;  %v1140_v59 = vld [vmem:[#allocation6 + $0x10] sm:$0xff] }
 0x3e6   :  { %1134 = vst [vmem:[#allocation6 + $0x21] sm:$0xff] %v1126_v52  ;;  %v1109_v60 = vadd.f32 %v12276_v30, %v1108_v51  ;;  %v1110_v45 = vpop.f32.mrb[11].mxu1  ;;  %1355 = vmatmul.mubr.f32.gmra.mrb[12].mxu0 %v1140_v59  ;;  %v1255_v51 = vld [vmem:[%s16126_s26 + $0x2a8] sm:$0xff] }
 0x3e7   :  { %10165 = vmatpush1.bf16.msra.mxu0 %v10164_v56  ;;  %1360 = vmatprep.mubr.f32.mxu0 %v1125_v61  ;;  %v1257_v61 = vld [vmem:[%s16126_s26 + $0x2b8] sm:$0xff] }
 0x3e8   :  { %v1127_v47 = vmax.f32 %v1109_v60, 0.0  ;;  %10167 = vmatprep.subr.bf16.mxu0 %v10166_v31  ;;  %v10174_v59 = vpack.c.bf16 %v1257_v61, %v1255_v51  ;;  %v1260_v51 = vld [vmem:[%s16126_s26 + $0x2d0] sm:$0xff] }
 0x3e9   :  { %v1113_v28 = vpop.f32.mrb[12].mxu1  ;;  %v1141_v49 = vld [vmem:[#allocation6 + $0x18] sm:$0xff] }
 0x3ea   :  { %1135 = vst [vmem:[#allocation6 + $0x29] sm:$0xff] %v1127_v47  ;;  %v1114_v56 = vadd.f32 %v12276_v30, %v1113_v28  ;;  %v1115_v31 = vpop.f32.mrb[13].mxu1  ;;  %1361 = vmatmul.mubr.f32.gmra.mrb[14].mxu0 %v1141_v49  ;;  %v1258_v49 = vld [vmem:[%s16126_s26 + $0x2c0] sm:$0xff] }
 0x3eb   :  { %10169 = vmatpush1.bf16.msra.mxu0 %v10168_v57  ;;  %1366 = vmatprep.mubr.f32.mxu0 %v1126_v52  ;;  %v1259_v52 = vld [vmem:[%s16126_s26 + $0x2c8] sm:$0xff] }
 0x3ec   :  { %v1128_v62 = vmax.f32 %v1114_v56, 0.0  ;;  %10171 = vmatprep.subr.bf16.mxu0 %v10170_v63  ;;  %v10178_v28 = vpack.c.bf16 %v1261_v46, %v1259_v52  ;;  %v10180_v56 = vpack.c.bf16 %v1260_v51, %v1258_v49  ;;  %v1155_v52 = vld [vmem:[#allocation6 + $0xa] sm:$0xff]  ;;  %v1156_v46 = vld [vmem:[#allocation6 + $0x12] sm:$0xff]  ;;  %v1266_v49 = vld [vmem:[#allocation18] sm:$0x3]  ;;  %v12396_v51 = vsub.s32 1, %v11957_v53 }
 0x3ed   :  { %v1118_v60 = vpop.f32.mrb[14].mxu1  ;;  %v1142_v45 = vld [vmem:[#allocation6 + $0x20] sm:$0xff] }
 0x3ee   :  { %1136 = vst [vmem:[#allocation6 + $0x31] sm:$0xff] %v1128_v62  ;;  %v1119_v57 = vadd.f32 %v12276_v30, %v1118_v60  ;;  %v1120_v63 = vpop.f32.mrb[15].mxu1  ;;  %9729 = vmatmul.mubr.msk.f32.gmra.mrb[16].mxu0 %vm9728_vm12, %v1142_v45  ;;  %v1263_v30 = vld [vmem:[%s16126_s26 + $0x2e8] sm:$0xff]  ;;  %16129 = vst [vmem:[#allocation116_spill] sm:$0xff] %v12396_v51 }
 0x3ef   :  { %10173 = vmatpush1.bf16.msra.mxu0 %v10172_v48  ;;  %1372 = vmatprep.mubr.f32.mxu0 %v1127_v47  ;;  %v1265_v47 = vld [vmem:[%s16126_s26 + $0x2f8] sm:$0xff]  ;;  %v1262_v48 = vld [vmem:[%s16126_s26 + $0x2e0] sm:$0xff] }
 0x3f0   :  { %v1129_v29 = vmax.f32 %v1119_v57, 0.0  ;;  %10175 = vmatprep.subr.bf16.mxu0 %v10174_v59  ;;  %v10182_v31 = vpack.c.bf16 %v1265_v47, %v1263_v30  ;;  %v1264_v59 = vld [vmem:[%s16126_s26 + $0x2f0] sm:$0xff]  ;;  %v1154_v45 = vld [vmem:[#allocation6 + $0x2] sm:$0xff]  ;;  %v1157_v57 = vld [vmem:[#allocation6 + $0x1a] sm:$0xff]  ;;  %v12402_v30 = vrot.slane %v1266_v49, %v12396_v51 }
 0x3f1   :  { %v1143_v61 = vld [vmem:[#allocation6 + $0x28] sm:$0xff]  ;;  %v10184_v44 = vpack.c.bf16 %v1264_v59, %v1262_v48 }
 0x3f2   :  { %1137 = vst [vmem:[#allocation6 + $0x39] sm:$0xff] %v1129_v29  ;;  %1373 = vmatmul.mubr.f32.gmra.mrb[18].mxu0 %v1143_v61  ;;  %v1158_v63 = vld [vmem:[#allocation6 + $0x22] sm:$0xff] }
 0x3f3   :  { %10177 = vmatpush1.bf16.msra.mxu0 %v10176_v50  ;;  %1378 = vmatprep.mubr.f32.mxu0 %v1128_v62  ;;  %v16127_v62 = vmov 0.0  }
 0x3f4   :  { %10179 = vmatprep.subr.bf16.mxu0 %v10178_v28  ;;  %v12393_v28 = vsub.s32 0, %v11957_v53 }
 0x3f5   :  { %v1144_v27 = vld [vmem:[#allocation6 + $0x30] sm:$0xff] }
 0x3f6   :  { %1379 = vmatmul.mubr.f32.gmra.mrb[20].mxu0 %v1144_v27  ;;  %v1159_v50 = vld [vmem:[#allocation6 + $0x2a] sm:$0xff]  ;;  %16128 = vst [vmem:[#allocation115_spill] sm:$0xff] %v12393_v28  ;;  %v12399_v61 = vrot.slane %v1266_v49, %v12393_v28 }
 0x3f7   :  { %10181 = vmatpush1.bf16.msra.mxu0 %v10180_v56  ;;  %1384 = vmatprep.mubr.f32.mxu0 %v1129_v29 }
 0x3f8   :  { %10183 = vmatprep.subr.bf16.mxu0 %v10182_v31 }
 0x3f9   :  { %v1145_v60 = vld [vmem:[#allocation6 + $0x38] sm:$0xff] }
 0x3fa   :  { %1385 = vmatmul.mubr.f32.gmra.mrb[22].mxu0 %v1145_v60  ;;  %v1160_v29 = vld [vmem:[#allocation6 + $0x32] sm:$0xff]  ;;  %v1161_v55 = vld [vmem:[#allocation6 + $0x3a] sm:$0xff] }
 0x3fb   :  { %10185 = vmatpush1.bf16.msra.mxu0 %v10184_v44  ;;  %1455 = vmatprep.mubr.f32.mxu0 %v16127_v62 }
 0x3fe   :  { %1456 = vmatmul.mubr.f32.vlgmr.msra.gmra.mrb[8].mxu0 %v1154_v45 }
 0x3ff   :  { %1461 = vmatprep.mubr.f32.mxu0 %v16127_v62 }
 0x402   :  { %1462 = vmatmul.mubr.f32.gmra.mrb[10].mxu0 %v1155_v52 }
 0x403   :  { %1467 = vmatprep.mubr.f32.mxu0 %v16127_v62 }
 0x406   :  { %1468 = vmatmul.mubr.f32.gmra.mrb[12].mxu0 %v1156_v46 }
 0x407   :  { %1473 = vmatprep.mubr.f32.mxu0 %v16127_v62 }
 0x40a   :  { %9731 = vmatmul.mubr.msk.f32.gmra.mrb[14].mxu0 %vm9730_vm13, %v1157_v57 }
 0x40b   :  { %1479 = vmatprep.mubr.f32.mxu0 %v16127_v62 }
 0x40e   :  { %1480 = vmatmul.mubr.f32.gmra.mrb[16].mxu0 %v1158_v63 }
 0x40f   :  { %1485 = vmatprep.mubr.f32.mxu0 %v16127_v62 }
 0x412   :  { %1486 = vmatmul.mubr.f32.gmra.mrb[18].mxu0 %v1159_v50 }
 0x413   :  { %1491 = vmatprep.mubr.f32.mxu0 %v16127_v62 }
 0x416   :  { %1492 = vmatmul.mubr.f32.gmra.mrb[20].mxu0 %v1160_v29 }
 0x417   :  { %1497 = vmatprep.mubr.f32.mxu0 %v16127_v62 }
 0x41a   :  { %9733 = vmatmul.mubr.msk.f32.gmra.mrb[22].mxu0 %vm9732_vm14, %v1161_v55 }
 0x4d1   :  { %v1457_v47 = vpop.f32.mrb[8].mxu0 }
 0x4d2   :  { %v10502_v56 = vadd.f32 %v1457_v47, %v12399_v61  ;;  %v1459_v58 = vpop.f32.mrb[9].mxu0 }
 0x4d3   :  { %v10503_v31 = vadd.f32 %v1459_v58, %v12402_v30 }
 0x4d4   :  { %v1504_v48 = vmax.f32 %v10502_v56, 0.0 }
 0x4d5   :  { %v1505_v59 = vmax.f32 %v10503_v31, 0.0  ;;  %v1463_v27 = vpop.f32.mrb[10].mxu0 }
 0x4d6   :  { %1520 = vst [vmem:[#allocation7] sm:$0xff] %v1504_v48  ;;  %v10504_v44 = vadd.f32 %v1463_v27, %v12399_v61  ;;  %v1465_v60 = vpop.f32.mrb[11].mxu0 }
 0x4d7   :  { %1521 = vst [vmem:[#allocation7 + $0x8] sm:$0xff] %v1505_v59  ;;  %v10505_v45 = vadd.f32 %v1465_v60, %v12402_v30 }
 0x4d8   :  { %v1506_v52 = vmax.f32 %v10504_v44, 0.0 }
 0x4d9   :  { %v1507_v46 = vmax.f32 %v10505_v45, 0.0  ;;  %v1469_v57 = vpop.f32.mrb[12].mxu0 }
 0x4da   :  { %1522 = vst [vmem:[#allocation7 + $0x10] sm:$0xff] %v1506_v52  ;;  %v10506_v63 = vadd.f32 %v1469_v57, %v12399_v61  ;;  %v1471_v50 = vpop.f32.mrb[13].mxu0 }
 0x4db   :  { %1523 = vst [vmem:[#allocation7 + $0x18] sm:$0xff] %v1507_v46  ;;  %v10507_v29 = vadd.f32 %v1471_v50, %v12402_v30 }
 0x4dc   :  { %v1508_v49 = vmax.f32 %v10506_v63, 0.0 }
 0x4dd   :  { %v1509_v47 = vmax.f32 %v10507_v29, 0.0  ;;  %v1475_v56 = vpop.f32.mrb[14].mxu0 }
 0x4de   :  { %v1536_v58 = vld [vmem:[#allocation7] ss:$8 sm:$0x3]  ;;  %v1543_v31 = vld [vmem:[#allocation7 + $0x1] ss:$8 sm:$0x3] }
 0x4df   :  { %1524 = vst [vmem:[#allocation7 + $0x20] sm:$0xff] %v1508_v49  ;;  %1541 = vst.msk [vmem:[#allocation8] ss:$2 sm:$0x3] %vm12411_vm15, %v1536_v58 }
 0x4e0   :  { %1545 = vst.msk [vmem:[#allocation8 + $0x4] ss:$2 sm:$0x3] %vm12411_vm15, %v1543_v31  ;;  %v1547_v48 = vld [vmem:[#allocation7 + $0x2] ss:$8 sm:$0x3] }
 0x4e1   :  { %v1551_v59 = vld [vmem:[#allocation7 + $0x3] ss:$8 sm:$0x3]  ;;  %1525 = vst [vmem:[#allocation7 + $0x28] sm:$0xff] %v1509_v47 }
 0x4e2   :  { %1549 = vst.msk [vmem:[#allocation8 + $0x8] ss:$2 sm:$0x3] %vm12411_vm15, %v1547_v48  ;;  %1553 = vst.msk [vmem:[#allocation8 + $0xc] ss:$2 sm:$0x3] %vm12411_vm15, %v1551_v59  ;;  %v10508_v48 = vadd.f32 %v1475_v56, %v12399_v61 }
 0x4e3   :  { %v1555_v27 = vld [vmem:[#allocation7 + $0x4] ss:$8 sm:$0x3]  ;;  %v1559_v44 = vld [vmem:[#allocation7 + $0x5] ss:$8 sm:$0x3] }
 0x4e4   :  { %1557 = vst.msk [vmem:[#allocation8 + $0x10] ss:$2 sm:$0x3] %vm12411_vm15, %v1555_v27  ;;  %1561 = vst.msk [vmem:[#allocation8 + $0x14] ss:$2 sm:$0x3] %vm12411_vm15, %v1559_v44 }
 0x4e5   :  { %v1563_v60 = vld [vmem:[#allocation7 + $0x6] ss:$8 sm:$0x3]  ;;  %v1567_v45 = vld [vmem:[#allocation7 + $0x7] ss:$8 sm:$0x3] }
 0x4e6   :  { %1565 = vst.msk [vmem:[#allocation8 + $0x18] ss:$2 sm:$0x3] %vm12411_vm15, %v1563_v60  ;;  %1569 = vst.msk [vmem:[#allocation8 + $0x1c] ss:$2 sm:$0x3] %vm12411_vm15, %v1567_v45 }
 0x4e7   :  { %v1571_v52 = vld [vmem:[#allocation7 + $0x10] ss:$8 sm:$0x3]  ;;  %v1575_v46 = vld [vmem:[#allocation7 + $0x11] ss:$8 sm:$0x3] }
 0x4e8   :  { %1573 = vst.msk [vmem:[#allocation8 + $0x20] ss:$2 sm:$0x3] %vm12411_vm15, %v1571_v52  ;;  %1577 = vst.msk [vmem:[#allocation8 + $0x24] ss:$2 sm:$0x3] %vm12411_vm15, %v1575_v46 }
 0x4e9   :  { %v1579_v57 = vld [vmem:[#allocation7 + $0x12] ss:$8 sm:$0x3]  ;;  %v1583_v63 = vld [vmem:[#allocation7 + $0x13] ss:$8 sm:$0x3] }
 0x4ea   :  { %1581 = vst.msk [vmem:[#allocation8 + $0x28] ss:$2 sm:$0x3] %vm12411_vm15, %v1579_v57  ;;  %1585 = vst.msk [vmem:[#allocation8 + $0x2c] ss:$2 sm:$0x3] %vm12411_vm15, %v1583_v63 }
 0x4eb   :  { %v1587_v50 = vld [vmem:[#allocation7 + $0x14] ss:$8 sm:$0x3]  ;;  %v1591_v29 = vld [vmem:[#allocation7 + $0x15] ss:$8 sm:$0x3] }
 0x4ec   :  { %1589 = vst.msk [vmem:[#allocation8 + $0x30] ss:$2 sm:$0x3] %vm12411_vm15, %v1587_v50  ;;  %1593 = vst.msk [vmem:[#allocation8 + $0x34] ss:$2 sm:$0x3] %vm12411_vm15, %v1591_v29 }
 0x4ed   :  { %v1595_v49 = vld [vmem:[#allocation7 + $0x16] ss:$8 sm:$0x3]  ;;  %v1599_v47 = vld [vmem:[#allocation7 + $0x17] ss:$8 sm:$0x3] }
 0x4ee   :  { %1597 = vst.msk [vmem:[#allocation8 + $0x38] ss:$2 sm:$0x3] %vm12411_vm15, %v1595_v49  ;;  %1601 = vst.msk [vmem:[#allocation8 + $0x3c] ss:$2 sm:$0x3] %vm12411_vm15, %v1599_v47 }
 0x4ef   :  { %v1603_v58 = vld [vmem:[#allocation7 + $0x20] ss:$8 sm:$0x3]  ;;  %v1607_v31 = vld [vmem:[#allocation7 + $0x21] ss:$8 sm:$0x3] }
 0x4f0   :  { %1605 = vst.msk [vmem:[#allocation8 + $0x40] ss:$2 sm:$0x3] %vm12411_vm15, %v1603_v58  ;;  %1609 = vst.msk [vmem:[#allocation8 + $0x44] ss:$2 sm:$0x3] %vm12411_vm15, %v1607_v31 }
 0x4f1   :  { %v1611_v59 = vld [vmem:[#allocation7 + $0x22] ss:$8 sm:$0x3]  ;;  %v1615_v27 = vld [vmem:[#allocation7 + $0x23] ss:$8 sm:$0x3] }
 0x4f2   :  { %1613 = vst.msk [vmem:[#allocation8 + $0x48] ss:$2 sm:$0x3] %vm12411_vm15, %v1611_v59  ;;  %1617 = vst.msk [vmem:[#allocation8 + $0x4c] ss:$2 sm:$0x3] %vm12411_vm15, %v1615_v27 }
 0x4f3   :  { %v1619_v44 = vld [vmem:[#allocation7 + $0x24] ss:$8 sm:$0x3]  ;;  %v1623_v60 = vld [vmem:[#allocation7 + $0x25] ss:$8 sm:$0x3] }
 0x4f4   :  { %1621 = vst.msk [vmem:[#allocation8 + $0x50] ss:$2 sm:$0x3] %vm12411_vm15, %v1619_v44  ;;  %1625 = vst.msk [vmem:[#allocation8 + $0x54] ss:$2 sm:$0x3] %vm12411_vm15, %v1623_v60 }
 0x4f5   :  { %v1627_v56 = vld [vmem:[#allocation7 + $0x26] ss:$8 sm:$0x3]  ;;  %v1631_v45 = vld [vmem:[#allocation7 + $0x27] ss:$8 sm:$0x3] }
 0x4f6   :  { %1629 = vst.msk [vmem:[#allocation8 + $0x58] ss:$2 sm:$0x3] %vm12411_vm15, %v1627_v56  ;;  %1633 = vst.msk [vmem:[#allocation8 + $0x5c] ss:$2 sm:$0x3] %vm12411_vm15, %v1631_v45 }
 0x4f7   :  { %v1510_v52 = vmax.f32 %v10508_v48, 0.0  ;;  %v1477_v46 = vpop.f32.mrb[15].mxu0 }
 0x4f8   :  { %v10509_v57 = vadd.f32 %v1477_v46, %v12402_v30  ;;  %v1481_v63 = vpop.f32.mrb[16].mxu0 }
 0x4f9   :  { %1526 = vst [vmem:[#allocation7 + $0x30] sm:$0xff] %v1510_v52  ;;  %v10510_v50 = vadd.f32 %v1481_v63, %v12399_v61  ;;  %v1483_v29 = vpop.f32.mrb[17].mxu0 }
 0x4fa   :  { %v1511_v49 = vmax.f32 %v10509_v57, 0.0  ;;  %v10511_v47 = vadd.f32 %v1483_v29, %v12402_v30  ;;  %v1487_v58 = vpop.f32.mrb[18].mxu0 }
 0x4fb   :  { %v1512_v31 = vmax.f32 %v10510_v50, 0.0  ;;  %v10512_v59 = vadd.f32 %v1487_v58, %v12399_v61  ;;  %v1489_v27 = vpop.f32.mrb[19].mxu0 }
 0x4fc   :  { %1527 = vst [vmem:[#allocation7 + $0x38] sm:$0xff] %v1511_v49  ;;  %v1513_v44 = vmax.f32 %v10511_v47, 0.0  ;;  %v10513_v48 = vadd.f32 %v1489_v27, %v12402_v30  ;;  %v1493_v60 = vpop.f32.mrb[20].mxu0 }
 0x4fd   :  { %1528 = vst [vmem:[#allocation7 + $0x40] sm:$0xff] %v1512_v31  ;;  %v1514_v56 = vmax.f32 %v10512_v59, 0.0  ;;  %v10514_v45 = vadd.f32 %v1493_v60, %v12399_v61  ;;  %v1495_v52 = vpop.f32.mrb[21].mxu0 }
 0x4fe   :  { %1529 = vst [vmem:[#allocation7 + $0x48] sm:$0xff] %v1513_v44  ;;  %v1515_v46 = vmax.f32 %v10513_v48, 0.0  ;;  %v10515_v57 = vadd.f32 %v1495_v52, %v12402_v30  ;;  %v1499_v63 = vpop.f32.mrb[22].mxu0 }
 0x4ff   :  { %1530 = vst [vmem:[#allocation7 + $0x50] sm:$0xff] %v1514_v56  ;;  %v1516_v50 = vmax.f32 %v10514_v45, 0.0  ;;  %v10516_v29 = vadd.f32 %v1499_v63, %v12399_v61  ;;  %v1501_v58 = vpop.f32.mrb[23].mxu0 }
 0x500   :  { %1531 = vst [vmem:[#allocation7 + $0x58] sm:$0xff] %v1515_v46  ;;  %v1517_v49 = vmax.f32 %v10515_v57, 0.0  ;;  %v10517_v47 = vadd.f32 %v1501_v58, %v12402_v30 }
 0x501   :  { %1532 = vst [vmem:[#allocation7 + $0x60] sm:$0xff] %v1516_v50  ;;  %v1518_v31 = vmax.f32 %v10516_v29, 0.0 }
 0x502   :  { %1533 = vst [vmem:[#allocation7 + $0x68] sm:$0xff] %v1517_v49  ;;  %v1519_v59 = vmax.f32 %v10517_v47, 0.0 }
 0x503   :  { %v1635_v27 = vld [vmem:[#allocation7 + $0x30] ss:$8 sm:$0x3]  ;;  %v1639_v60 = vld [vmem:[#allocation7 + $0x31] ss:$8 sm:$0x3] }
 0x504   :  { %1534 = vst [vmem:[#allocation7 + $0x70] sm:$0xff] %v1518_v31  ;;  %1637 = vst.msk [vmem:[#allocation8 + $0x60] ss:$2 sm:$0x3] %vm12411_vm15, %v1635_v27 }
 0x505   :  { %1641 = vst.msk [vmem:[#allocation8 + $0x64] ss:$2 sm:$0x3] %vm12411_vm15, %v1639_v60  ;;  %v1643_v44 = vld [vmem:[#allocation7 + $0x32] ss:$8 sm:$0x3] }
 0x506   :  { %v1647_v61 = vld [vmem:[#allocation7 + $0x33] ss:$8 sm:$0x3]  ;;  %1535 = vst [vmem:[#allocation7 + $0x78] sm:$0xff] %v1519_v59 }
 0x507   :  { %1645 = vst.msk [vmem:[#allocation8 + $0x68] ss:$2 sm:$0x3] %vm12411_vm15, %v1643_v44  ;;  %1649 = vst.msk [vmem:[#allocation8 + $0x6c] ss:$2 sm:$0x3] %vm12411_vm15, %v1647_v61 }
 0x508   :  { %v1651_v30 = vld [vmem:[#allocation7 + $0x34] ss:$8 sm:$0x3]  ;;  %v1655_v48 = vld [vmem:[#allocation7 + $0x35] ss:$8 sm:$0x3] }
 0x509   :  { %1653 = vst.msk [vmem:[#allocation8 + $0x70] ss:$2 sm:$0x3] %vm12411_vm15, %v1651_v30  ;;  %1657 = vst.msk [vmem:[#allocation8 + $0x74] ss:$2 sm:$0x3] %vm12411_vm15, %v1655_v48 }
 0x50a   :  { %v1659_v56 = vld [vmem:[#allocation7 + $0x36] ss:$8 sm:$0x3]  ;;  %v1663_v45 = vld [vmem:[#allocation7 + $0x37] ss:$8 sm:$0x3] }
 0x50b   :  { %1661 = vst.msk [vmem:[#allocation8 + $0x78] ss:$2 sm:$0x3] %vm12411_vm15, %v1659_v56  ;;  %1665 = vst.msk [vmem:[#allocation8 + $0x7c] ss:$2 sm:$0x3] %vm12411_vm15, %v1663_v45 }
 0x50c   :  { %v1667_v52 = vld [vmem:[#allocation7 + $0x40] ss:$8 sm:$0x3]  ;;  %v1671_v46 = vld [vmem:[#allocation7 + $0x41] ss:$8 sm:$0x3] }
 0x50d   :  { %1669 = vst.msk [vmem:[#allocation8 + $0x1] ss:$2 sm:$0x3] %vm12411_vm15, %v1667_v52  ;;  %1673 = vst.msk [vmem:[#allocation8 + $0x5] ss:$2 sm:$0x3] %vm12411_vm15, %v1671_v46 }
 0x50e   :  { %v1675_v57 = vld [vmem:[#allocation7 + $0x42] ss:$8 sm:$0x3]  ;;  %v1679_v63 = vld [vmem:[#allocation7 + $0x43] ss:$8 sm:$0x3] }
 0x50f   :  { %1677 = vst.msk [vmem:[#allocation8 + $0x9] ss:$2 sm:$0x3] %vm12411_vm15, %v1675_v57  ;;  %1681 = vst.msk [vmem:[#allocation8 + $0xd] ss:$2 sm:$0x3] %vm12411_vm15, %v1679_v63 }
 0x510   :  { %v1683_v50 = vld [vmem:[#allocation7 + $0x44] ss:$8 sm:$0x3]  ;;  %v1687_v29 = vld [vmem:[#allocation7 + $0x45] ss:$8 sm:$0x3] }
 0x511   :  { %1685 = vst.msk [vmem:[#allocation8 + $0x11] ss:$2 sm:$0x3] %vm12411_vm15, %v1683_v50  ;;  %1689 = vst.msk [vmem:[#allocation8 + $0x15] ss:$2 sm:$0x3] %vm12411_vm15, %v1687_v29 }
 0x512   :  { %v1691_v58 = vld [vmem:[#allocation7 + $0x46] ss:$8 sm:$0x3]  ;;  %v1695_v49 = vld [vmem:[#allocation7 + $0x47] ss:$8 sm:$0x3] }
 0x513   :  { %1693 = vst.msk [vmem:[#allocation8 + $0x19] ss:$2 sm:$0x3] %vm12411_vm15, %v1691_v58  ;;  %1697 = vst.msk [vmem:[#allocation8 + $0x1d] ss:$2 sm:$0x3] %vm12411_vm15, %v1695_v49 }
 0x514   :  { %v1699_v47 = vld [vmem:[#allocation7 + $0x50] ss:$8 sm:$0x3]  ;;  %v1703_v31 = vld [vmem:[#allocation7 + $0x51] ss:$8 sm:$0x3] }
 0x515   :  { %1701 = vst.msk [vmem:[#allocation8 + $0x21] ss:$2 sm:$0x3] %vm12411_vm15, %v1699_v47  ;;  %1705 = vst.msk [vmem:[#allocation8 + $0x25] ss:$2 sm:$0x3] %vm12411_vm15, %v1703_v31 }
 0x516   :  { %v1707_v59 = vld [vmem:[#allocation7 + $0x52] ss:$8 sm:$0x3]  ;;  %v1711_v27 = vld [vmem:[#allocation7 + $0x53] ss:$8 sm:$0x3] }
 0x517   :  { %1709 = vst.msk [vmem:[#allocation8 + $0x29] ss:$2 sm:$0x3] %vm12411_vm15, %v1707_v59  ;;  %1713 = vst.msk [vmem:[#allocation8 + $0x2d] ss:$2 sm:$0x3] %vm12411_vm15, %v1711_v27 }
 0x518   :  { %v1715_v60 = vld [vmem:[#allocation7 + $0x54] ss:$8 sm:$0x3]  ;;  %v1719_v44 = vld [vmem:[#allocation7 + $0x55] ss:$8 sm:$0x3] }
 0x519   :  { %1717 = vst.msk [vmem:[#allocation8 + $0x31] ss:$2 sm:$0x3] %vm12411_vm15, %v1715_v60  ;;  %1721 = vst.msk [vmem:[#allocation8 + $0x35] ss:$2 sm:$0x3] %vm12411_vm15, %v1719_v44 }
 0x51a   :  { %v1723_v61 = vld [vmem:[#allocation7 + $0x56] ss:$8 sm:$0x3]  ;;  %v1727_v30 = vld [vmem:[#allocation7 + $0x57] ss:$8 sm:$0x3] }
 0x51b   :  { %v12517_v48 = vld [vmem:[#allocation8] sm:$0xff]  ;;  %1725 = vst.msk [vmem:[#allocation8 + $0x39] ss:$2 sm:$0x3] %vm12411_vm15, %v1723_v61  ;;  %v12523_v45 = vld [vmem:[#allocation8 + $0x8] sm:$0xff]  ;;  %v12527_v46 = vld [vmem:[#allocation8 + $0x10] sm:$0xff] }
 0x51c   :  { %1729 = vst.msk [vmem:[#allocation8 + $0x3d] ss:$2 sm:$0x3] %vm12411_vm15, %v1727_v30  ;;  %v1731_v56 = vld [vmem:[#allocation7 + $0x60] ss:$8 sm:$0x3] }
 0x51d   :  { %1733 = vst.msk [vmem:[#allocation8 + $0x41] ss:$2 sm:$0x3] %vm12411_vm15, %v1731_v56  ;;  %v1735_v52 = vld [vmem:[#allocation7 + $0x61] ss:$8 sm:$0x3] }
 0x51e   :  { %1737 = vst.msk [vmem:[#allocation8 + $0x45] ss:$2 sm:$0x3] %vm12411_vm15, %v1735_v52  ;;  %v1739_v57 = vld [vmem:[#allocation7 + $0x62] ss:$8 sm:$0x3] }
 0x51f   :  { %v12531_v63 = vld [vmem:[#allocation8 + $0x18] sm:$0xff]  ;;  %1741 = vst.msk [vmem:[#allocation8 + $0x49] ss:$2 sm:$0x3] %vm12411_vm15, %v1739_v57  ;;  %v12535_v29 = vld [vmem:[#allocation8 + $0x20] sm:$0xff]  ;;  %v12539_v49 = vld [vmem:[#allocation8 + $0x28] sm:$0xff] }
 0x520   :  { %v1743_v50 = vld [vmem:[#allocation7 + $0x63] ss:$8 sm:$0x3]  ;;  %v1747_v58 = vld [vmem:[#allocation7 + $0x64] ss:$8 sm:$0x3] }
 0x521   :  { %1745 = vst.msk [vmem:[#allocation8 + $0x4d] ss:$2 sm:$0x3] %vm12411_vm15, %v1743_v50  ;;  %1749 = vst.msk [vmem:[#allocation8 + $0x51] ss:$2 sm:$0x3] %vm12411_vm15, %v1747_v58 }
 0x522   :  { %v1751_v47 = vld [vmem:[#allocation7 + $0x65] ss:$8 sm:$0x3]  ;;  %v12543_v31 = vld [vmem:[#allocation8 + $0x30] sm:$0xff] }
 0x523   :  { %1753 = vst.msk [vmem:[#allocation8 + $0x55] ss:$2 sm:$0x3] %vm12411_vm15, %v1751_v47  ;;  %v1755_v59 = vld [vmem:[#allocation7 + $0x66] ss:$8 sm:$0x3] }
 0x524   :  { %v12547_v27 = vld [vmem:[#allocation8 + $0x38] sm:$0xff]  ;;  %1757 = vst.msk [vmem:[#allocation8 + $0x59] ss:$2 sm:$0x3] %vm12411_vm15, %v1755_v59 }
 0x525   :  { %v1759_v60 = vld [vmem:[#allocation7 + $0x67] ss:$8 sm:$0x3]  ;;  %v1763_v44 = vld [vmem:[#allocation7 + $0x70] ss:$8 sm:$0x3] }
 0x526   :  { %1761 = vst.msk [vmem:[#allocation8 + $0x5d] ss:$2 sm:$0x3] %vm12411_vm15, %v1759_v60  ;;  %v1767_v61 = vld [vmem:[#allocation7 + $0x71] ss:$8 sm:$0x3] }
 0x527   :  { %v12553_v30 = vld [vmem:[#allocation8 + $0x40] sm:$0xff]  ;;  %1765 = vst.msk [vmem:[#allocation8 + $0x61] ss:$2 sm:$0x3] %vm12411_vm15, %v1763_v44 }
 0x528   :  { %1769 = vst.msk [vmem:[#allocation8 + $0x65] ss:$2 sm:$0x3] %vm12411_vm15, %v1767_v61  ;;  %v1771_v56 = vld [vmem:[#allocation7 + $0x72] ss:$8 sm:$0x3] }
 0x529   :  { %1773 = vst.msk [vmem:[#allocation8 + $0x69] ss:$2 sm:$0x3] %vm12411_vm15, %v1771_v56  ;;  %v1775_v52 = vld [vmem:[#allocation7 + $0x73] ss:$8 sm:$0x3] }
 0x52a   :  { %v1779_v57 = vld [vmem:[#allocation7 + $0x74] ss:$8 sm:$0x3]  ;;  %v12561_v50 = vld [vmem:[#allocation8 + $0x48] sm:$0xff] }
 0x52b   :  { %1777 = vst.msk [vmem:[#allocation8 + $0x6d] ss:$2 sm:$0x3] %vm12411_vm15, %v1775_v52  ;;  %1781 = vst.msk [vmem:[#allocation8 + $0x71] ss:$2 sm:$0x3] %vm12411_vm15, %v1779_v57 }
 0x52c   :  { %v1783_v58 = vld [vmem:[#allocation7 + $0x75] ss:$8 sm:$0x3]  ;;  %v1787_v47 = vld [vmem:[#allocation7 + $0x76] ss:$8 sm:$0x3] }
 0x52d   :  { %1785 = vst.msk [vmem:[#allocation8 + $0x75] ss:$2 sm:$0x3] %vm12411_vm15, %v1783_v58  ;;  %v1791_v59 = vld [vmem:[#allocation7 + $0x77] ss:$8 sm:$0x3] }
 0x52e   :  { %v12569_v60 = vld [vmem:[#allocation8 + $0x50] sm:$0xff]  ;;  %1789 = vst.msk [vmem:[#allocation8 + $0x79] ss:$2 sm:$0x3] %vm12411_vm15, %v1787_v47  ;;  %v12575_v44 = vld [vmem:[#allocation8 + $0x58] sm:$0xff] }
 0x52f   :  { %1793 = vst.msk [vmem:[#allocation8 + $0x7d] ss:$2 sm:$0x3] %vm12411_vm15, %v1791_v59  ;;  %v12577_v61 = vld [vmem:[#allocation8 + $0x60] sm:$0xff] }
 0x532   :  { %v12579_v56 = vld [vmem:[#allocation8 + $0x68] sm:$0xff] }
 0x534   :  { %v12581_v52 = vld [vmem:[#allocation8 + $0x70] sm:$0xff] }
 0x536   :  { %v12583_v57 = vld [vmem:[#allocation8 + $0x78] sm:$0xff] }
 0x537   :  { %11230 = dma.done.wait [#allocation9], 16384 }
 0x538   :  { %11231 = vsyncadd [#allocation9], 4294950912  ;;  %v11262_v58 = vmov 1983009808   ;;  %v1815_v55 = vld [vmem:[#allocation2 + $0x8] sm:$0xff]  ;;  %v1814_v42 = vld [vmem:[#allocation2] sm:$0xff]  ;;  %v1965_v24 = vcombine.high %v12517_v48, %v12517_v48 }
 0x539   :  { %v1967_v26 = vunpack.c.l.s4 %v11262_v58  ;;  %v1879_v59 = vld [vmem:[#allocation2 + $0x208] sm:$0xff]  ;;  %v1878_v40 = vld [vmem:[#allocation2 + $0x200] sm:$0xff]  ;;  %v1817_v23 = vld [vmem:[#allocation2 + $0x18] sm:$0xff]  ;;  %vm4541_vm0 = vcmask 123904   ;;  %s11263_s6 = smov 120   ;;  %s16132_s24 = sld [smem:[#allocation156_spill]] }
 0x53a   :  { %v10186_v41 = vpack.c.bf16 %v1879_v59, %v1815_v55  ;;  %v1881_v22 = vld [vmem:[#allocation2 + $0x218] sm:$0xff]  ;;  %v10188_v39 = vpack.c.bf16 %v1878_v40, %v1814_v42  ;;  %v1880_v21 = vld [vmem:[#allocation2 + $0x210] sm:$0xff]  ;;  %v1819_v20 = vld [vmem:[#allocation2 + $0x28] sm:$0xff]  ;;  %v1982_v42 = vcombine.high %v12523_v45, %v12523_v45 }
 0x53b   :  { %v1968_v43 = vunpack.c.0.s8 %v1967_v26  ;;  %v10190_v58 = vpack.c.bf16 %v1881_v22, %v1817_v23  ;;  %v1883_v37 = vld [vmem:[#allocation2 + $0x228] sm:$0xff]  ;;  %v1818_v22 = vld [vmem:[#allocation2 + $0x20] sm:$0xff] }
 0x53c   :  { %10187 = vmatprep.subr.bf16.mxu1 %v10186_v41  ;;  %v1882_v23 = vld [vmem:[#allocation2 + $0x220] sm:$0xff] }
 0x53d   :  { %v12586_v47 = vsub.s32 %v1968_v43, %v11957_v53  ;;  %10189 = vmatpush1.bf16.xpose.msra.mxu1 %v10188_v39  ;;  %v1816_v43 = vld [vmem:[#allocation2 + $0x10] sm:$0xff]  ;;  %v1885_v39 = vld [vmem:[#allocation2 + $0x238] sm:$0xff] }
 0x53e   :  { %10191 = vmatprep.subr.bf16.mxu1 %v10190_v58  ;;  %v10192_v36 = vpack.c.bf16 %v1880_v21, %v1816_v43  ;;  %v1884_v21 = vld [vmem:[#allocation2 + $0x230] sm:$0xff]  ;;  %v1886_v43 = vld [vmem:[#allocation2 + $0x240] sm:$0xff] }
 0x53f   :  { %v1972_v25 = vrot.slane %v12517_v48, %v12586_v47  ;;  %v1979_v26 = vrot.slane %v1965_v24, %v12586_v47  ;;  %v10194_v48 = vpack.c.bf16 %v1883_v37, %v1819_v20  ;;  %v1989_v40 = vrot.slane %v12523_v45, %v12586_v47 }
 0x540   :  { %v10196_v24 = vpack.c.bf16 %v1882_v23, %v1818_v22  ;;  %v1996_v20 = vrot.slane %v1982_v42, %v12586_v47  ;;  %v2006_v45 = vrot.slane %v12527_v46, %v12586_v47  ;;  %v1889_v22 = vld [vmem:[#allocation2 + $0x258] sm:$0xff]  ;;  %v1888_v42 = vld [vmem:[#allocation2 + $0x250] sm:$0xff] }
 0x541   :  { %v1980_v38 = vcombine.high %v1972_v25, %v1972_v25  ;;  %v1981_v19 = vcombine.high %v1979_v26, %v1979_v26  ;;  %v1997_v41 = vcombine.high %v1989_v40, %v1989_v40 }
 0x542   :  { %v1998_v59 = vcombine.high %v1996_v20, %v1996_v20 }
 0x543   :  { %2365 = vmatprep.mubr.f32.mxu1 %v1980_v38  ;;  %v1821_v38 = vld [vmem:[#allocation2 + $0x38] sm:$0xff] }
 0x544   :  { %2366 = vmatmul.mubr.f32.vlgmr.msra.gmra.mrb[16].mxu1 %v1972_v25  ;;  %v10198_v55 = vpack.c.bf16 %v1885_v39, %v1821_v38  ;;  %v1823_v25 = vld [vmem:[#allocation2 + $0x48] sm:$0xff]  ;;  %v2014_v38 = vcombine.high %v2006_v45, %v2006_v45  ;;  %v1999_v39 = vcombine.high %v12527_v46, %v12527_v46  ;;  %v2023_v46 = vrot.slane %v12531_v63, %v12586_v47 }
 0x545   :  { %10193 = vmatpush1.bf16.xpose.msra.mxu1 %v10192_v36  ;;  %2435 = vmatprep.mubr.f32.mxu1 %v1981_v19  ;;  %v1820_v19 = vld [vmem:[#allocation2 + $0x30] sm:$0xff]  ;;  %v1887_v36 = vld [vmem:[#allocation2 + $0x248] sm:$0xff] }
 0x546   :  { %10195 = vmatprep.subr.bf16.mxu1 %v10194_v48  ;;  %v10200_v37 = vpack.c.bf16 %v1884_v21, %v1820_v19  ;;  %v10202_v58 = vpack.c.bf16 %v1887_v36, %v1823_v25  ;;  %v1825_v48 = vld [vmem:[#allocation2 + $0x58] sm:$0xff]  ;;  %v1891_v19 = vld [vmem:[#allocation2 + $0x268] sm:$0xff] }
 0x54c   :  { %2436 = vmatmul.mubr.f32.vlgmr.msra.gmra.mrb[16].mxu1 %v1979_v26  ;;  %v1822_v26 = vld [vmem:[#allocation2 + $0x40] sm:$0xff] }
 0x54d   :  { %10197 = vmatpush1.bf16.xpose.msra.mxu1 %v10196_v24  ;;  %2505 = vmatprep.mubr.f32.mxu1 %v1997_v41  ;;  %v10204_v23 = vpack.c.bf16 %v1886_v43, %v1822_v26  ;;  %v10206_v24 = vpack.c.bf16 %v1889_v22, %v1825_v48  ;;  %v1824_v41 = vld [vmem:[#allocation2 + $0x50] sm:$0xff]  ;;  %v2031_v43 = vcombine.high %v2023_v46, %v2023_v46 }
 0x54e   :  { %10199 = vmatprep.subr.bf16.mxu1 %v10198_v55  ;;  %v1827_v55 = vld [vmem:[#allocation2 + $0x68] sm:$0xff]  ;;  %v10208_v21 = vpack.c.bf16 %v1888_v42, %v1824_v41  ;;  %v2016_v48 = vcombine.high %v12531_v63, %v12531_v63  ;;  %v2040_v63 = vrot.slane %v12535_v29, %v12586_v47 }
 0x54f   :  { %v10210_v36 = vpack.c.bf16 %v1891_v19, %v1827_v55  ;;  %v1894_v19 = vld [vmem:[#allocation2 + $0x280] sm:$0xff] }
 0x554   :  { %2506 = vmatmul.mubr.f32.vlgmr.msra.gmra.mrb[16].mxu1 %v1989_v40  ;;  %v2013_v40 = vrot.slane %v1999_v39, %v12586_v47  ;;  %v1831_v39 = vld [vmem:[#allocation2 + $0x88] sm:$0xff] }
 0x555   :  { %10201 = vmatpush1.bf16.xpose.msra.mxu1 %v10200_v37  ;;  %2575 = vmatprep.mubr.f32.mxu1 %v1998_v59  ;;  %v1890_v37 = vld [vmem:[#allocation2 + $0x260] sm:$0xff]  ;;  %v1829_v59 = vld [vmem:[#allocation2 + $0x78] sm:$0xff] }
 0x556   :  { %10203 = vmatprep.subr.bf16.mxu1 %v10202_v58  ;;  %v2015_v25 = vcombine.high %v2013_v40, %v2013_v40  ;;  %v1893_v58 = vld [vmem:[#allocation2 + $0x278] sm:$0xff] }
 0x557   :  { %v10214_v22 = vpack.c.bf16 %v1893_v58, %v1829_v59  ;;  %v1832_v58 = vld [vmem:[#allocation2 + $0x90] sm:$0xff] }
 0x55c   :  { %2576 = vmatmul.mubr.f32.vlgmr.msra.gmra.mrb[16].mxu1 %v1996_v20  ;;  %v1826_v20 = vld [vmem:[#allocation2 + $0x60] sm:$0xff] }
 0x55d   :  { %10205 = vmatpush1.bf16.xpose.msra.mxu1 %v10204_v23  ;;  %2645 = vmatprep.mubr.f32.mxu1 %v2014_v38  ;;  %v10212_v26 = vpack.c.bf16 %v1890_v37, %v1826_v20  ;;  %v1828_v23 = vld [vmem:[#allocation2 + $0x70] sm:$0xff]  ;;  %v2048_v20 = vcombine.high %v2040_v63, %v2040_v63  ;;  %v2033_v37 = vcombine.high %v12535_v29, %v12535_v29 }
 0x55e   :  { %10207 = vmatprep.subr.bf16.mxu1 %v10206_v24  ;;  %v1892_v38 = vld [vmem:[#allocation2 + $0x270] sm:$0xff]  ;;  %v1895_v24 = vld [vmem:[#allocation2 + $0x288] sm:$0xff]  ;;  %v2057_v29 = vrot.slane %v12539_v49, %v12586_v47 }
 0x55f   :  { %v10216_v41 = vpack.c.bf16 %v1892_v38, %v1828_v23  ;;  %v10218_v55 = vpack.c.bf16 %v1895_v24, %v1831_v39  ;;  %v1898_v39 = vld [vmem:[#allocation2 + $0x2a0] sm:$0xff]  ;;  %v1837_v24 = vld [vmem:[#allocation2 + $0xb8] sm:$0xff] }
 0x564   :  { %2646 = vmatmul.mubr.f32.vlgmr.msra.gmra.mrb[16].mxu1 %v2006_v45  ;;  %v2030_v45 = vrot.slane %v2016_v48, %v12586_v47  ;;  %v1899_v48 = vld [vmem:[#allocation2 + $0x2a8] sm:$0xff] }
 0x565   :  { %10209 = vmatpush1.bf16.xpose.msra.mxu1 %v10208_v21  ;;  %2715 = vmatprep.mubr.f32.mxu1 %v2015_v25  ;;  %v1833_v21 = vld [vmem:[#allocation2 + $0x98] sm:$0xff] }
 0x566   :  { %10211 = vmatprep.subr.bf16.mxu1 %v10210_v36  ;;  %v2032_v42 = vcombine.high %v2030_v45, %v2030_v45  ;;  %v1897_v25 = vld [vmem:[#allocation2 + $0x298] sm:$0xff] }
 0x567   :  { %v10222_v59 = vpack.c.bf16 %v1897_v25, %v1833_v21  ;;  %v1836_v21 = vld [vmem:[#allocation2 + $0xb0] sm:$0xff] }
 0x568   :  { %v1900_v25 = vld [vmem:[#allocation2 + $0x2b0] sm:$0xff] }
 0x56c   :  { %2716 = vmatmul.mubr.f32.vlgmr.msra.gmra.mrb[16].mxu1 %v2013_v40  ;;  %v1830_v40 = vld [vmem:[#allocation2 + $0x80] sm:$0xff] }
 0x56d   :  { %10213 = vmatpush1.bf16.xpose.msra.mxu1 %v10212_v26  ;;  %2785 = vmatprep.mubr.f32.mxu1 %v2031_v43  ;;  %v10220_v36 = vpack.c.bf16 %v1894_v19, %v1830_v40  ;;  %v1896_v26 = vld [vmem:[#allocation2 + $0x290] sm:$0xff]  ;;  %v1835_v43 = vld [vmem:[#allocation2 + $0xa8] sm:$0xff]  ;;  %v2050_v40 = vcombine.high %v12539_v49, %v12539_v49  ;;  %v2074_v49 = vrot.slane %v12543_v31, %v12586_v47 }
 0x56e   :  { %10215 = vmatprep.subr.bf16.mxu1 %v10214_v22  ;;  %v10224_v22 = vpack.c.bf16 %v1896_v26, %v1832_v58  ;;  %v10226_v38 = vpack.c.bf16 %v1899_v48, %v1835_v43  ;;  %v1902_v26 = vld [vmem:[#allocation2 + $0x2c0] sm:$0xff]  ;;  %v1841_v43 = vld [vmem:[#allocation2 + $0xd8] sm:$0xff] }
 0x56f   :  { %v1905_v48 = vld [vmem:[#allocation2 + $0x2d8] sm:$0xff] }
 0x574   :  { %2786 = vmatmul.mubr.f32.vlgmr.msra.gmra.mrb[16].mxu1 %v2023_v46  ;;  %v2047_v46 = vrot.slane %v2033_v37, %v12586_v47  ;;  %v10232_v37 = vpack.c.bf16 %v1900_v25, %v1836_v21  ;;  %v1906_v21 = vld [vmem:[#allocation2 + $0x2e0] sm:$0xff]  ;;  %v1845_v25 = vld [vmem:[#allocation2 + $0xf8] sm:$0xff] }
 0x575   :  { %10217 = vmatpush1.bf16.xpose.msra.mxu1 %v10216_v41  ;;  %2855 = vmatprep.mubr.f32.mxu1 %v2032_v42  ;;  %v1901_v41 = vld [vmem:[#allocation2 + $0x2b8] sm:$0xff] }
 0x576   :  { %10219 = vmatprep.subr.bf16.mxu1 %v10218_v55  ;;  %v2049_v23 = vcombine.high %v2047_v46, %v2047_v46  ;;  %v2065_v55 = vcombine.high %v2057_v29, %v2057_v29  ;;  %v10230_v19 = vpack.c.bf16 %v1901_v41, %v1837_v24  ;;  %v1904_v24 = vld [vmem:[#allocation2 + $0x2d0] sm:$0xff]  ;;  %v1843_v41 = vld [vmem:[#allocation2 + $0xe8] sm:$0xff] }
 0x57c   :  { %2856 = vmatmul.mubr.f32.vlgmr.msra.gmra.mrb[16].mxu1 %v2030_v45  ;;  %v1834_v45 = vld [vmem:[#allocation2 + $0xa0] sm:$0xff] }
 0x57d   :  { %10221 = vmatpush1.bf16.xpose.msra.mxu1 %v10220_v36  ;;  %2925 = vmatprep.mubr.f32.mxu1 %v2048_v20  ;;  %v10228_v42 = vpack.c.bf16 %v1898_v39, %v1834_v45  ;;  %v1839_v36 = vld [vmem:[#allocation2 + $0xc8] sm:$0xff]  ;;  %v10238_v45 = vpack.c.bf16 %v1905_v48, %v1841_v43  ;;  %v1840_v39 = vld [vmem:[#allocation2 + $0xd0] sm:$0xff] }
 0x57e   :  { %10223 = vmatprep.subr.bf16.mxu1 %v10222_v59  ;;  %v1903_v20 = vld [vmem:[#allocation2 + $0x2c8] sm:$0xff] }
 0x57f   :  { %v10234_v58 = vpack.c.bf16 %v1903_v20, %v1839_v36  ;;  %v1909_v36 = vld [vmem:[#allocation2 + $0x2f8] sm:$0xff]  ;;  %v1847_v43 = vld [vmem:[#allocation2 + $0x108] sm:$0xff] }
 0x580   :  { %v1911_v48 = vld [vmem:[#allocation2 + $0x308] sm:$0xff] }
 0x584   :  { %2926 = vmatmul.mubr.f32.vlgmr.msra.gmra.mrb[16].mxu1 %v2040_v63  ;;  %v2064_v63 = vrot.slane %v2050_v40, %v12586_v47 }
 0x585   :  { %10225 = vmatpush1.bf16.xpose.msra.mxu1 %v10224_v22  ;;  %2995 = vmatprep.mubr.f32.mxu1 %v2049_v23  ;;  %v2082_v23 = vcombine.high %v2074_v49, %v2074_v49 }
 0x586   :  { %10227 = vmatprep.subr.bf16.mxu1 %v10226_v38  ;;  %v2066_v59 = vcombine.high %v2064_v63, %v2064_v63  ;;  %v2067_v38 = vcombine.high %v12543_v31, %v12543_v31  ;;  %v2091_v31 = vrot.slane %v12547_v27, %v12586_v47 }
 0x58c   :  { %2996 = vmatmul.mubr.f32.vlgmr.msra.gmra.mrb[16].mxu1 %v2047_v46  ;;  %v1838_v46 = vld [vmem:[#allocation2 + $0xc0] sm:$0xff] }
 0x58d   :  { %10229 = vmatpush1.bf16.xpose.msra.mxu1 %v10228_v42  ;;  %3065 = vmatprep.mubr.f32.mxu1 %v2065_v55  ;;  %v10236_v22 = vpack.c.bf16 %v1902_v26, %v1838_v46  ;;  %v1907_v42 = vld [vmem:[#allocation2 + $0x2e8] sm:$0xff]  ;;  %v10240_v55 = vpack.c.bf16 %v1904_v24, %v1840_v39  ;;  %v1844_v46 = vld [vmem:[#allocation2 + $0xf0] sm:$0xff]  ;;  %v1849_v39 = vld [vmem:[#allocation2 + $0x118] sm:$0xff] }
 0x58e   :  { %10231 = vmatprep.subr.bf16.mxu1 %v10230_v19  ;;  %v10242_v19 = vpack.c.bf16 %v1907_v42, %v1843_v41  ;;  %v1908_v26 = vld [vmem:[#allocation2 + $0x2f0] sm:$0xff]  ;;  %v1913_v24 = vld [vmem:[#allocation2 + $0x318] sm:$0xff] }
 0x594   :  { %3066 = vmatmul.mubr.f32.vlgmr.msra.gmra.mrb[16].mxu1 %v2057_v29  ;;  %v2081_v29 = vrot.slane %v2067_v38, %v12586_v47  ;;  %v10250_v38 = vpack.c.bf16 %v1911_v48, %v1847_v43  ;;  %v2118_v48 = vcombine.high %v12561_v50, %v12561_v50 }
 0x595   :  { %10233 = vmatpush1.bf16.xpose.msra.mxu1 %v10232_v37  ;;  %3135 = vmatprep.mubr.f32.mxu1 %v2066_v59  ;;  %v2099_v37 = vcombine.high %v2091_v31, %v2091_v31  ;;  %v2084_v59 = vcombine.high %v12547_v27, %v12547_v27  ;;  %v2108_v27 = vrot.slane %v12553_v30, %v12586_v47 }
 0x596   :  { %10235 = vmatprep.subr.bf16.mxu1 %v10234_v58  ;;  %v2083_v40 = vcombine.high %v2081_v29, %v2081_v29  ;;  %v10246_v58 = vpack.c.bf16 %v1909_v36, %v1845_v25  ;;  %v1915_v25 = vld [vmem:[#allocation2 + $0x328] sm:$0xff] }
 0x597   :  { %v2116_v42 = vcombine.high %v2108_v27, %v2108_v27 }
 0x59c   :  { %3136 = vmatmul.mubr.f32.vlgmr.msra.gmra.mrb[16].mxu1 %v2064_v63  ;;  %v1842_v63 = vld [vmem:[#allocation2 + $0xe0] sm:$0xff] }
 0x59d   :  { %10237 = vmatpush1.bf16.xpose.msra.mxu1 %v10236_v22  ;;  %3205 = vmatprep.mubr.f32.mxu1 %v2082_v23  ;;  %v10244_v20 = vpack.c.bf16 %v1906_v21, %v1842_v63  ;;  %v10248_v22 = vpack.c.bf16 %v1908_v26, %v1844_v46  ;;  %v1912_v63 = vld [vmem:[#allocation2 + $0x310] sm:$0xff]  ;;  %v1851_v21 = vld [vmem:[#allocation2 + $0x128] sm:$0xff]  ;;  %v1917_v46 = vld [vmem:[#allocation2 + $0x338] sm:$0xff] }
 0x59e   :  { %10239 = vmatprep.subr.bf16.mxu1 %v10238_v45  ;;  %v1846_v45 = vld [vmem:[#allocation2 + $0x100] sm:$0xff] }
 0x5a4   :  { %3206 = vmatmul.mubr.f32.vlgmr.msra.gmra.mrb[16].mxu1 %v2074_v49  ;;  %v2098_v49 = vrot.slane %v2084_v59, %v12586_v47  ;;  %v1850_v59 = vld [vmem:[#allocation2 + $0x120] sm:$0xff] }
 0x5a5   :  { %10241 = vmatpush1.bf16.xpose.msra.mxu1 %v10240_v55  ;;  %3275 = vmatprep.mubr.f32.mxu1 %v2083_v40  ;;  %v2101_v55 = vcombine.high %v12553_v30, %v12553_v30  ;;  %v10254_v40 = vpack.c.bf16 %v1913_v24, %v1849_v39  ;;  %v2125_v30 = vrot.slane %v12561_v50, %v12586_v47 }
 0x5a6   :  { %10243 = vmatprep.subr.bf16.mxu1 %v10242_v19  ;;  %v2100_v23 = vcombine.high %v2098_v49, %v2098_v49  ;;  %v2142_v50 = vrot.slane %v12569_v60, %v12586_v47 }
 0x5a7   :  { %v2115_v19 = vrot.slane %v2101_v55, %v12586_v47  ;;  %v2133_v43 = vcombine.high %v2125_v30, %v2125_v30  ;;  %v1918_v55 = vld [vmem:[#allocation2 + $0x340] sm:$0xff] }
 0x5ac   :  { %3276 = vmatmul.mubr.f32.vlgmr.msra.gmra.mrb[16].mxu1 %v2081_v29  ;;  %v1910_v29 = vld [vmem:[#allocation2 + $0x300] sm:$0xff] }
 0x5ad   :  { %10245 = vmatpush1.bf16.xpose.msra.mxu1 %v10244_v20  ;;  %3345 = vmatprep.mubr.f32.mxu1 %v2099_v37  ;;  %v10252_v41 = vpack.c.bf16 %v1910_v29, %v1846_v45  ;;  %v2117_v20 = vcombine.high %v2115_v19, %v2115_v19  ;;  %v10258_v37 = vpack.c.bf16 %v1915_v25, %v1851_v21  ;;  %v1855_v45 = vld [vmem:[#allocation2 + $0x148] sm:$0xff] }
 0x5ae   :  { %10247 = vmatprep.subr.bf16.mxu1 %v10246_v58  ;;  %v1914_v58 = vld [vmem:[#allocation2 + $0x320] sm:$0xff]  ;;  %v1919_v29 = vld [vmem:[#allocation2 + $0x348] sm:$0xff]  ;;  %v2135_v21 = vcombine.high %v12569_v60, %v12569_v60  ;;  %v2159_v60 = vrot.slane %v12575_v44, %v12586_v47 }
 0x5af   :  { %v10260_v26 = vpack.c.bf16 %v1914_v58, %v1850_v59  ;;  %v1923_v59 = vld [vmem:[#allocation2 + $0x368] sm:$0xff] }
 0x5b4   :  { %3346 = vmatmul.mubr.f32.vlgmr.msra.gmra.mrb[16].mxu1 %v2091_v31  ;;  %v1848_v31 = vld [vmem:[#allocation2 + $0x110] sm:$0xff] }
 0x5b5   :  { %10249 = vmatpush1.bf16.xpose.msra.mxu1 %v10248_v22  ;;  %3415 = vmatprep.mubr.f32.mxu1 %v2100_v23  ;;  %v10256_v36 = vpack.c.bf16 %v1912_v63, %v1848_v31  ;;  %v2132_v23 = vrot.slane %v2118_v48, %v12586_v47  ;;  %v2150_v63 = vcombine.high %v2142_v50, %v2142_v50  ;;  %v1861_v48 = vld [vmem:[#allocation2 + $0x178] sm:$0xff] }
 0x5b6   :  { %10251 = vmatprep.subr.bf16.mxu1 %v10250_v38  ;;  %v1852_v38 = vld [vmem:[#allocation2 + $0x130] sm:$0xff] }
 0x5b7   :  { %v2134_v24 = vcombine.high %v2132_v23, %v2132_v23 }
 0x5bc   :  { %3416 = vmatmul.mubr.f32.vlgmr.msra.gmra.mrb[16].mxu1 %v2098_v49  ;;  %v1853_v49 = vld [vmem:[#allocation2 + $0x138] sm:$0xff] }
 0x5bd   :  { %10253 = vmatpush1.bf16.xpose.msra.mxu1 %v10252_v41  ;;  %3485 = vmatprep.mubr.f32.mxu1 %v2116_v42  ;;  %v10262_v22 = vpack.c.bf16 %v1917_v46, %v1853_v49  ;;  %v10266_v41 = vpack.c.bf16 %v1919_v29, %v1855_v45  ;;  %v1854_v42 = vld [vmem:[#allocation2 + $0x140] sm:$0xff] }
 0x5be   :  { %10255 = vmatprep.subr.bf16.mxu1 %v10254_v40  ;;  %v1857_v40 = vld [vmem:[#allocation2 + $0x158] sm:$0xff]  ;;  %v10268_v31 = vpack.c.bf16 %v1918_v55, %v1854_v42 }
 0x5c4   :  { %3486 = vmatmul.mubr.f32.vlgmr.msra.gmra.mrb[16].mxu1 %v2108_v27  ;;  %v1916_v27 = vld [vmem:[#allocation2 + $0x330] sm:$0xff] }
 0x5c5   :  { %10257 = vmatpush1.bf16.xpose.msra.mxu1 %v10256_v36  ;;  %3555 = vmatprep.mubr.f32.mxu1 %v2117_v20  ;;  %v10264_v39 = vpack.c.bf16 %v1916_v27, %v1852_v38  ;;  %v2149_v36 = vrot.slane %v2135_v21, %v12586_v47  ;;  %v1856_v20 = vld [vmem:[#allocation2 + $0x150] sm:$0xff]  ;;  %v2167_v38 = vcombine.high %v2159_v60, %v2159_v60  ;;  %v1929_v21 = vld [vmem:[#allocation2 + $0x398] sm:$0xff] }
 0x5c6   :  { %10259 = vmatprep.subr.bf16.mxu1 %v10258_v37  ;;  %v1920_v37 = vld [vmem:[#allocation2 + $0x350] sm:$0xff]  ;;  %v2152_v27 = vcombine.high %v12575_v44, %v12575_v44  ;;  %v2176_v44 = vrot.slane %v12577_v61, %v12586_v47 }
 0x5c7   :  { %v10272_v58 = vpack.c.bf16 %v1920_v37, %v1856_v20  ;;  %v2151_v49 = vcombine.high %v2149_v36, %v2149_v36  ;;  %v2169_v20 = vcombine.high %v12577_v61, %v12577_v61  ;;  %v2193_v61 = vrot.slane %v12579_v56, %v12586_v47 }
 0x5c8   :  { %v2166_v29 = vrot.slane %v2152_v27, %v12586_v47 }
 0x5ca   :  { %v2168_v55 = vcombine.high %v2166_v29, %v2166_v29 }
 0x5cc   :  { %3556 = vmatmul.mubr.f32.vlgmr.msra.gmra.mrb[16].mxu1 %v2115_v19  ;;  %v1921_v19 = vld [vmem:[#allocation2 + $0x358] sm:$0xff] }
 0x5cd   :  { %10261 = vmatpush1.bf16.xpose.msra.mxu1 %v10260_v26  ;;  %3625 = vmatprep.mubr.f32.mxu1 %v2133_v43  ;;  %v10270_v25 = vpack.c.bf16 %v1921_v19, %v1857_v40  ;;  %v1858_v26 = vld [vmem:[#allocation2 + $0x160] sm:$0xff] }
 0x5ce   :  { %10263 = vmatprep.subr.bf16.mxu1 %v10262_v22  ;;  %v1922_v43 = vld [vmem:[#allocation2 + $0x360] sm:$0xff]  ;;  %v1925_v22 = vld [vmem:[#allocation2 + $0x378] sm:$0xff] }
 0x5cf   :  { %v10278_v45 = vpack.c.bf16 %v1925_v22, %v1861_v48  ;;  %v1862_v19 = vld [vmem:[#allocation2 + $0x180] sm:$0xff] }
 0x5d0   :  { %v1866_v48 = vld [vmem:[#allocation2 + $0x1a0] sm:$0xff] }
 0x5d1   :  { %v1930_v22 = vld [vmem:[#allocation2 + $0x3a0] sm:$0xff] }
 0x5d2   :  { %v10292_v27 = vpack.c.bf16 %v1930_v22, %v1866_v48  ;;  %v1874_v48 = vld [vmem:[#allocation2 + $0x1e0] sm:$0xff] }
 0x5d3   :  { %v1938_v22 = vld [vmem:[#allocation2 + $0x3e0] sm:$0xff] }
 0x5d4   :  { %3626 = vmatmul.mubr.f32.vlgmr.msra.gmra.mrb[16].mxu1 %v2125_v30  ;;  %v1859_v30 = vld [vmem:[#allocation2 + $0x168] sm:$0xff] }
 0x5d5   :  { %10265 = vmatpush1.bf16.xpose.msra.mxu1 %v10264_v39  ;;  %3695 = vmatprep.mubr.f32.mxu1 %v2134_v24  ;;  %v10274_v46 = vpack.c.bf16 %v1923_v59, %v1859_v30  ;;  %v1860_v39 = vld [vmem:[#allocation2 + $0x170] sm:$0xff]  ;;  %v2183_v30 = vrot.slane %v2169_v20, %v12586_v47 }
 0x5d6   :  { %10267 = vmatprep.subr.bf16.mxu1 %v10266_v41  ;;  %v1924_v24 = vld [vmem:[#allocation2 + $0x370] sm:$0xff]  ;;  %v1863_v41 = vld [vmem:[#allocation2 + $0x188] sm:$0xff] }
 0x5d7   :  { %v10280_v42 = vpack.c.bf16 %v1924_v24, %v1860_v39  ;;  %v1864_v59 = vld [vmem:[#allocation2 + $0x190] sm:$0xff] }
 0x5dc   :  { %3696 = vmatmul.mubr.f32.vlgmr.msra.gmra.mrb[16].mxu1 %v2132_v23  ;;  %v10276_v23 = vpack.c.bf16 %v1922_v43, %v1858_v26  ;;  %v2185_v26 = vcombine.high %v2183_v30, %v2183_v30 }
 0x5dd   :  { %10269 = vmatpush1.bf16.xpose.msra.mxu1 %v10268_v31  ;;  %3765 = vmatprep.mubr.f32.mxu1 %v2150_v63  ;;  %v1926_v31 = vld [vmem:[#allocation2 + $0x380] sm:$0xff]  ;;  %v1865_v63 = vld [vmem:[#allocation2 + $0x198] sm:$0xff] }
 0x5de   :  { %10271 = vmatprep.subr.bf16.mxu1 %v10270_v25  ;;  %v10284_v25 = vpack.c.bf16 %v1926_v31, %v1862_v19  ;;  %v10286_v37 = vpack.c.bf16 %v1929_v21, %v1865_v63  ;;  %v1870_v31 = vld [vmem:[#allocation2 + $0x1c0] sm:$0xff]  ;;  %v1873_v21 = vld [vmem:[#allocation2 + $0x1d8] sm:$0xff] }
 0x5df   :  { %v1934_v63 = vld [vmem:[#allocation2 + $0x3c0] sm:$0xff] }
 0x5e4   :  { %3766 = vmatmul.mubr.f32.vlgmr.msra.gmra.mrb[16].mxu1 %v2142_v50  ;;  %v1927_v50 = vld [vmem:[#allocation2 + $0x388] sm:$0xff] }
 0x5e5   :  { %10273 = vmatpush1.bf16.xpose.msra.mxu1 %v10272_v58  ;;  %3835 = vmatprep.mubr.f32.mxu1 %v2151_v49  ;;  %v10282_v40 = vpack.c.bf16 %v1927_v50, %v1863_v41  ;;  %v1928_v58 = vld [vmem:[#allocation2 + $0x390] sm:$0xff]  ;;  %v1867_v49 = vld [vmem:[#allocation2 + $0x1a8] sm:$0xff] }
 0x5e6   :  { %10275 = vmatprep.subr.bf16.mxu1 %v10274_v46  ;;  %v1931_v46 = vld [vmem:[#allocation2 + $0x3a8] sm:$0xff]  ;;  %v1868_v41 = vld [vmem:[#allocation2 + $0x1b0] sm:$0xff] }
 0x5e7   :  { %v10290_v43 = vpack.c.bf16 %v1931_v46, %v1867_v49  ;;  %v1932_v50 = vld [vmem:[#allocation2 + $0x3b0] sm:$0xff]  ;;  %v1875_v46 = vld [vmem:[#allocation2 + $0x1e8] sm:$0xff] }
 0x5e8   :  { %v1936_v49 = vld [vmem:[#allocation2 + $0x3d0] sm:$0xff] }
 0x5ec   :  { %3836 = vmatmul.mubr.f32.vlgmr.msra.gmra.mrb[16].mxu1 %v2149_v36  ;;  %v2184_v36 = vcombine.high %v2176_v44, %v2176_v44 }
 0x5ed   :  { %10277 = vmatpush1.bf16.xpose.msra.mxu1 %v10276_v23  ;;  %3905 = vmatprep.mubr.f32.mxu1 %v2167_v38  ;;  %v1869_v23 = vld [vmem:[#allocation2 + $0x1b8] sm:$0xff] }
 0x5ee   :  { %10279 = vmatprep.subr.bf16.mxu1 %v10278_v45  ;;  %v1933_v38 = vld [vmem:[#allocation2 + $0x3b8] sm:$0xff]  ;;  %v2201_v45 = vcombine.high %v2193_v61, %v2193_v61 }
 0x5ef   :  { %v10294_v39 = vpack.c.bf16 %v1933_v38, %v1869_v23  ;;  %v1877_v23 = vld [vmem:[#allocation2 + $0x1f8] sm:$0xff] }
 0x5f0   :  { %v1941_v38 = vld [vmem:[#allocation2 + $0x3f8] sm:$0xff] }
 0x5f4   :  { %3906 = vmatmul.mubr.f32.vlgmr.msra.gmra.mrb[16].mxu1 %v2159_v60  ;;  %v10288_v60 = vpack.c.bf16 %v1928_v58, %v1864_v59  ;;  %v1872_v58 = vld [vmem:[#allocation2 + $0x1d0] sm:$0xff] }
 0x5f5   :  { %10281 = vmatpush1.bf16.xpose.msra.mxu1 %v10280_v42  ;;  %3975 = vmatprep.mubr.f32.mxu1 %v2168_v55  ;;  %v1871_v42 = vld [vmem:[#allocation2 + $0x1c8] sm:$0xff] }
 0x5f6   :  { %10283 = vmatprep.subr.bf16.mxu1 %v10282_v40  ;;  %v1935_v55 = vld [vmem:[#allocation2 + $0x3c8] sm:$0xff]  ;;  %v10296_v40 = vpack.c.bf16 %v1932_v50, %v1868_v41  ;;  %v1876_v41 = vld [vmem:[#allocation2 + $0x1f0] sm:$0xff] }
 0x5f7   :  { %v10298_v19 = vpack.c.bf16 %v1935_v55, %v1871_v42  ;;  %v1940_v50 = vld [vmem:[#allocation2 + $0x3f0] sm:$0xff] }
 0x5f8   :  { %v10312_v42 = vpack.c.bf16 %v1940_v50, %v1876_v41 }
 0x5fc   :  { %3976 = vmatmul.mubr.f32.vlgmr.msra.gmra.mrb[16].mxu1 %v2166_v29  ;;  %v2186_v29 = vcombine.high %v12579_v56, %v12579_v56  ;;  %v2210_v56 = vrot.slane %v12581_v52, %v12586_v47 }
 0x5fd   :  { %10285 = vmatpush1.bf16.xpose.msra.mxu1 %v10284_v25  ;;  %4045 = vmatprep.mubr.f32.mxu1 %v2184_v36  ;;  %v1937_v25 = vld [vmem:[#allocation2 + $0x3d8] sm:$0xff]  ;;  %v10300_v36 = vpack.c.bf16 %v1934_v63, %v1870_v31  ;;  %v4554_v31 = vld [vmem:[#allocation21 + $0x8] sm:$0xff]  ;;  %v4553_v63 = vld [vmem:[#allocation21] sm:$0xff] }
 0x5fe   :  { %10287 = vmatprep.subr.bf16.mxu1 %v10286_v37  ;;  %v2200_v24 = vrot.slane %v2186_v29, %v12586_v47  ;;  %v2218_v20 = vcombine.high %v2210_v56, %v2210_v56  ;;  %v2203_v37 = vcombine.high %v12581_v52, %v12581_v52  ;;  %v2227_v52 = vrot.slane %v12583_v57, %v12586_v47 }
 0x5ff   :  { %v2220_v29 = vcombine.high %v12583_v57, %v12583_v57 }
 0x600   :  { %v2217_v59 = vrot.slane %v2203_v37, %v12586_v47 }
 0x604   :  { %4046 = vmatmul.mubr.f32.vlgmr.msra.gmra.mrb[16].mxu1 %v2176_v44  ;;  %v2202_v44 = vcombine.high %v2200_v24, %v2200_v24 }
 0x605   :  { %10289 = vmatpush1.bf16.xpose.msra.mxu1 %v10288_v60  ;;  %4115 = vmatprep.mubr.f32.mxu1 %v2185_v26  ;;  %v1939_v60 = vld [vmem:[#allocation2 + $0x3e8] sm:$0xff]  ;;  %v10304_v26 = vpack.c.bf16 %v1936_v49, %v1872_v58 }
 0x606   :  { %10291 = vmatprep.subr.bf16.mxu1 %v10290_v43  ;;  %v2219_v43 = vcombine.high %v2217_v59, %v2217_v59 }
 0x60c   :  { %4116 = vmatmul.mubr.f32.vlgmr.msra.gmra.mrb[16].mxu1 %v2183_v30  ;;  %v10302_v30 = vpack.c.bf16 %v1937_v25, %v1873_v21  ;;  %v4543_v25 = vld [vmem:[%s16132_s24] sm:$0x3] }
 0x60d   :  { %10293 = vmatpush1.bf16.xpose.msra.mxu1 %v10292_v27  ;;  %4185 = vmatprep.mubr.f32.mxu1 %v2201_v45  ;;  %v10308_v27 = vpack.c.bf16 %v1938_v22, %v1874_v48  ;;  %v2235_v45 = vcombine.high %v2227_v52, %v2227_v52 }
 0x60e   :  { %10295 = vmatprep.subr.bf16.mxu1 %v10294_v39  ;;  %v10310_v39 = vpack.c.bf16 %v1941_v38, %v1877_v23 }
 0x614   :  { %4186 = vmatmul.mubr.f32.vlgmr.msra.gmra.mrb[16].mxu1 %v2193_v61  ;;  %v10306_v61 = vpack.c.bf16 %v1939_v60, %v1875_v46 }
 0x615   :  { %10297 = vmatpush1.bf16.xpose.msra.mxu1 %v10296_v40  ;;  %4255 = vmatprep.mubr.f32.mxu1 %v2202_v44  ;;  %v9734_v40 = vld [vmem:[#allocation19] ss:$0 sm:$0xff] }
 0x616   :  { %10299 = vmatprep.subr.bf16.mxu1 %v10298_v19 }
 0x61c   :  { %4256 = vmatmul.mubr.f32.vlgmr.msra.gmra.mrb[16].mxu1 %v2200_v24  ;;  %v2234_v24 = vrot.slane %v2220_v29, %v12586_v47 }
 0x61d   :  { %10301 = vmatpush1.bf16.xpose.msra.mxu1 %v10300_v36  ;;  %4325 = vmatprep.mubr.f32.mxu1 %v2218_v20 }
 0x61e   :  { %10303 = vmatprep.subr.bf16.mxu1 %v10302_v30  ;;  %v2236_v55 = vcombine.high %v2234_v24, %v2234_v24  ;;  %v4555_v30 = vld [vmem:[#allocation22] sm:$0x3] }
 0x61f   :  { %v4564_v58 = vrot.slane %v4555_v30, %v12396_v51 }
 0x624   :  { %4326 = vmatmul.mubr.f32.vlgmr.msra.gmra.mrb[16].mxu1 %v2210_v56 }
 0x625   :  { %10305 = vmatpush1.bf16.xpose.msra.mxu1 %v10304_v26  ;;  %4395 = vmatprep.mubr.f32.mxu1 %v2219_v43 }
 0x626   :  { %10307 = vmatprep.subr.bf16.mxu1 %v10306_v61 }
 0x62c   :  { %4396 = vmatmul.mubr.f32.vlgmr.msra.gmra.mrb[16].mxu1 %v2217_v59  ;;  %v4560_v59 = vrot.slane %v4555_v30, %v12393_v28 }
 0x62d   :  { %10309 = vmatpush1.bf16.xpose.msra.mxu1 %v10308_v27  ;;  %4465 = vmatprep.mubr.f32.mxu1 %v2235_v45 }
 0x62e   :  { %10311 = vmatprep.subr.bf16.mxu1 %v10310_v39 }
 0x634   :  { %4466 = vmatmul.mubr.f32.vlgmr.msra.gmra.mrb[16].mxu1 %v2227_v52 }
 0x635   :  { %10313 = vmatpush1.bf16.xpose.msra.mxu1 %v10312_v42  ;;  %4535 = vmatprep.mubr.f32.mxu1 %v2236_v55 }
 0x636   :  { %4570 = vmatprep.subr.mxu1 %v4554_v31 }
 0x63c   :  { %4536 = vmatmul.mubr.f32.vlgmr.msra.gmra.mrb[16].mxu1 %v2234_v24 }
 0x63d   :  { %4634 = vmatprep.mubr.f32.mxu1 %v16127_v62  ;;  %4571 = vmatpush1.msra.mxu1 %v4553_v63 }
 0x70f   :  { %v4537_v44 = vpop.f32.mrb[16].mxu1 }
 0x710   :  { %v10518_v57 = vadd.f32 %v9734_v40, %v4537_v44  ;;  %v4539_v19 = vpop.f32.mrb[17].mxu1 }
 0x712   :  { %4542 = vst.msk [vmem:[%s15908_s18] sm:$0x3] %vm4541_vm0, %v10518_v57  ;;  %v4544_v47 = vmul.f32 0.5, %v10518_v57 }
 0x714   :  { %v4545_v56 = vmul.f32 1.442695, %v4544_v47 }
 0x716   :  { %10624 = vpow2.f32 %v4545_v56 }
 0x720   :  { %v10625_v21 = vpop.eup %10624 }
 0x721   :  { %4548 = vrot.lane.b32.xlu0 %v10625_v21, %s11263_s6 }
 0x793   :  { %v4549_v36 = vpop.permute.xlu0 %4548 }
 0x794   :  { %v4551_v20 = vmul.f32 %v4549_v36, %v4543_v25 }
 0x796   :  { %v4552_v37 = vadd.f32 %v10518_v57, %v4551_v20 }
 0x798   :  { %9735 = vmatmul.mubr.msk.f32.vlgmr.msra.gmra.mrb[18].mxu1 %vm721_vm7, %v4552_v37 }
 0x86b   :  { %v4636_v49 = vpop.f32.mrb[18].mxu1 }
 0x86c   :  { %v12678_v46 = vadd.f32 %v4636_v49, %v4560_v59  ;;  %v4638_v60 = vpop.f32.mrb[19].mxu1 }
 0x86d   :  { %v12680_v26 = vadd.f32 %v4638_v60, %v4564_v58 }
 0x86e   :  { %11232 = dma.done.wait [#allocation9 + $0x1], 12288 }
 0x86f   :  { %11233 = vsyncadd [#allocation9 + $0x1], 4294955008  ;;  %4811 = vmatprep.mubr.f32.mxu0 %v12680_v26  ;;  %v4661_v43 = vld [vmem:[#allocation3 + $0x80] sm:$0xff]  ;;  %v4662_v61 = vld [vmem:[#allocation3 + $0x88] sm:$0xff] }
 0x870   :  { %v4645_v52 = vld [vmem:[#allocation3] sm:$0xff]  ;;  %v10314_v48 = vpack.c.bf16 %v4662_v61, %v4661_v43  ;;  %v4646_v22 = vld [vmem:[#allocation3 + $0x8] sm:$0xff]  ;;  %v4663_v23 = vld [vmem:[#allocation3 + $0x90] sm:$0xff] }
 0x871   :  { %v4664_v38 = vld [vmem:[#allocation3 + $0x98] sm:$0xff]  ;;  %v10316_v27 = vpack.c.bf16 %v4646_v22, %v4645_v52  ;;  %v4647_v29 = vld [vmem:[#allocation3 + $0x10] sm:$0xff]  ;;  %v4665_v24 = vld [vmem:[#allocation3 + $0xa0] sm:$0xff] }
 0x872   :  { %v10318_v45 = vpack.c.bf16 %v4664_v38, %v4663_v23  ;;  %v4648_v39 = vld [vmem:[#allocation3 + $0x18] sm:$0xff]  ;;  %10315 = vmatprep.subr.bf16.mxu0 %v10314_v48  ;;  %v4666_v41 = vld [vmem:[#allocation3 + $0xa8] sm:$0xff]  ;;  %v4649_v55 = vld [vmem:[#allocation3 + $0x20] sm:$0xff] }
 0x873   :  { %10317 = vmatpush3.bf16.msra.mxu0 %v10316_v27  ;;  %v10320_v50 = vpack.c.bf16 %v4648_v39, %v4647_v29  ;;  %v10322_v42 = vpack.c.bf16 %v4666_v41, %v4665_v24  ;;  %v4650_v40 = vld [vmem:[#allocation3 + $0x28] sm:$0xff]  ;;  %v4667_v44 = vld [vmem:[#allocation3 + $0xb0] sm:$0xff]  ;;  %v4668_v57 = vld [vmem:[#allocation3 + $0xb8] sm:$0xff] }
 0x874   :  { %10319 = vmatprep.subr.bf16.mxu0 %v10318_v45  ;;  %v10324_v19 = vpack.c.bf16 %v4650_v40, %v4649_v55  ;;  %v10326_v47 = vpack.c.bf16 %v4668_v57, %v4667_v44  ;;  %v4651_v56 = vld [vmem:[#allocation3 + $0x30] sm:$0xff]  ;;  %v4652_v31 = vld [vmem:[#allocation3 + $0x38] sm:$0xff]  ;;  %v4669_v63 = vld [vmem:[#allocation3 + $0xc0] sm:$0xff] }
 0x875   :  { %v4670_v21 = vld [vmem:[#allocation3 + $0xc8] sm:$0xff]  ;;  %v10328_v25 = vpack.c.bf16 %v4652_v31, %v4651_v56  ;;  %v4653_v20 = vld [vmem:[#allocation3 + $0x40] sm:$0xff]  ;;  %v4671_v30 = vld [vmem:[#allocation3 + $0xd0] sm:$0xff] }
 0x876   :  { %v10330_v36 = vpack.c.bf16 %v4670_v21, %v4669_v63  ;;  %v4654_v37 = vld [vmem:[#allocation3 + $0x48] sm:$0xff]  ;;  %v4672_v59 = vld [vmem:[#allocation3 + $0xd8] sm:$0xff]  ;;  %v4655_v60 = vld [vmem:[#allocation3 + $0x50] sm:$0xff] }
 0x877   :  { %10321 = vmatpush3.bf16.msra.mxu0 %v10320_v50  ;;  %v10332_v58 = vpack.c.bf16 %v4654_v37, %v4653_v20  ;;  %v10334_v49 = vpack.c.bf16 %v4672_v59, %v4671_v30  ;;  %v4656_v43 = vld [vmem:[#allocation3 + $0x58] sm:$0xff]  ;;  %v4673_v61 = vld [vmem:[#allocation3 + $0xe0] sm:$0xff]  ;;  %v4674_v52 = vld [vmem:[#allocation3 + $0xe8] sm:$0xff] }
 0x878   :  { %10323 = vmatprep.subr.bf16.mxu0 %v10322_v42  ;;  %v10336_v48 = vpack.c.bf16 %v4656_v43, %v4655_v60  ;;  %v10338_v22 = vpack.c.bf16 %v4674_v52, %v4673_v61  ;;  %v4657_v23 = vld [vmem:[#allocation3 + $0x60] sm:$0xff]  ;;  %v4658_v38 = vld [vmem:[#allocation3 + $0x68] sm:$0xff]  ;;  %v4675_v27 = vld [vmem:[#allocation3 + $0xf0] sm:$0xff] }
 0x879   :  { %v4676_v45 = vld [vmem:[#allocation3 + $0xf8] sm:$0xff]  ;;  %v10340_v29 = vpack.c.bf16 %v4658_v38, %v4657_v23  ;;  %v4659_v24 = vld [vmem:[#allocation3 + $0x70] sm:$0xff]  ;;  %v4693_v50 = vld [vmem:[#allocation3 + $0x180] sm:$0xff] }
 0x87a   :  { %v10342_v39 = vpack.c.bf16 %v4676_v45, %v4675_v27  ;;  %v4660_v41 = vld [vmem:[#allocation3 + $0x78] sm:$0xff]  ;;  %v4694_v42 = vld [vmem:[#allocation3 + $0x188] sm:$0xff]  ;;  %v4677_v44 = vld [vmem:[#allocation3 + $0x100] sm:$0xff] }
 0x87b   :  { %10325 = vmatpush3.bf16.msra.mxu0 %v10324_v19  ;;  %v10344_v55 = vpack.c.bf16 %v4660_v41, %v4659_v24  ;;  %v10346_v40 = vpack.c.bf16 %v4694_v42, %v4693_v50  ;;  %v4678_v57 = vld [vmem:[#allocation3 + $0x108] sm:$0xff]  ;;  %v4695_v19 = vld [vmem:[#allocation3 + $0x190] sm:$0xff]  ;;  %v4680_v21 = vld [vmem:[#allocation3 + $0x118] sm:$0xff] }
 0x87c   :  { %10327 = vmatprep.subr.bf16.mxu0 %v10326_v47  ;;  %v4696_v47 = vld [vmem:[#allocation3 + $0x198] sm:$0xff]  ;;  %v10348_v56 = vpack.c.bf16 %v4678_v57, %v4677_v44  ;;  %v4679_v63 = vld [vmem:[#allocation3 + $0x110] sm:$0xff]  ;;  %v4681_v30 = vld [vmem:[#allocation3 + $0x120] sm:$0xff] }
 0x87d   :  { %v10350_v31 = vpack.c.bf16 %v4696_v47, %v4695_v19  ;;  %v10352_v20 = vpack.c.bf16 %v4680_v21, %v4679_v63  ;;  %v4682_v59 = vld [vmem:[#allocation3 + $0x128] sm:$0xff]  ;;  %v4683_v61 = vld [vmem:[#allocation3 + $0x130] sm:$0xff]  ;;  %v4684_v52 = vld [vmem:[#allocation3 + $0x138] sm:$0xff] }
 0x87e   :  { %v10356_v60 = vpack.c.bf16 %v4682_v59, %v4681_v30  ;;  %v10360_v23 = vpack.c.bf16 %v4684_v52, %v4683_v61  ;;  %v4685_v27 = vld [vmem:[#allocation3 + $0x140] sm:$0xff]  ;;  %v4703_v45 = vld [vmem:[#allocation3 + $0x1d0] sm:$0xff]  ;;  %v4688_v50 = vld [vmem:[#allocation3 + $0x158] sm:$0xff] }
 0x87f   :  { %10329 = vmatpush3.bf16.msra.mxu0 %v10328_v25  ;;  %v4697_v25 = vld [vmem:[#allocation3 + $0x1a0] sm:$0xff]  ;;  %v4687_v41 = vld [vmem:[#allocation3 + $0x150] sm:$0xff]  ;;  %v4690_v19 = vld [vmem:[#allocation3 + $0x168] sm:$0xff] }
 0x880   :  { %10331 = vmatprep.subr.bf16.mxu0 %v10330_v36  ;;  %v4698_v36 = vld [vmem:[#allocation3 + $0x1a8] sm:$0xff]  ;;  %v4705_v42 = vld [vmem:[#allocation3 + $0x1e0] sm:$0xff]  ;;  %v4707_v47 = vld [vmem:[#allocation3 + $0x1f0] sm:$0xff] }
 0x881   :  { %v10354_v37 = vpack.c.bf16 %v4698_v36, %v4697_v25  ;;  %v4689_v57 = vld [vmem:[#allocation3 + $0x160] sm:$0xff]  ;;  %v4691_v21 = vld [vmem:[#allocation3 + $0x170] sm:$0xff]  ;;  %v4692_v25 = vld [vmem:[#allocation3 + $0x178] sm:$0xff] }
 0x882   :  { %v4725_v36 = vld [vmem:[#allocation3 + $0x280] sm:$0xff]  ;;  %v4711_v52 = vld [vmem:[#allocation3 + $0x210] sm:$0xff] }
 0x883   :  { %10333 = vmatpush3.bf16.msra.mxu0 %v10332_v58  ;;  %v4699_v58 = vld [vmem:[#allocation3 + $0x1b0] sm:$0xff]  ;;  %v4709_v59 = vld [vmem:[#allocation3 + $0x200] sm:$0xff] }
 0x884   :  { %10335 = vmatprep.subr.bf16.mxu0 %v10334_v49  ;;  %v4700_v49 = vld [vmem:[#allocation3 + $0x1b8] sm:$0xff] }
 0x885   :  { %v10358_v43 = vpack.c.bf16 %v4700_v49, %v4699_v58  ;;  %v4710_v58 = vld [vmem:[#allocation3 + $0x208] sm:$0xff]  ;;  %v4727_v49 = vld [vmem:[#allocation3 + $0x290] sm:$0xff] }
 0x887   :  { %10337 = vmatpush3.bf16.msra.mxu0 %v10336_v48  ;;  %v4701_v48 = vld [vmem:[#allocation3 + $0x1c0] sm:$0xff] }
 0x888   :  { %10339 = vmatprep.subr.bf16.mxu0 %v10338_v22  ;;  %v4702_v22 = vld [vmem:[#allocation3 + $0x1c8] sm:$0xff] }
 0x889   :  { %v10362_v38 = vpack.c.bf16 %v4702_v22, %v4701_v48  ;;  %v4712_v48 = vld [vmem:[#allocation3 + $0x218] sm:$0xff]  ;;  %v4729_v22 = vld [vmem:[#allocation3 + $0x2a0] sm:$0xff] }
 0x88b   :  { %10341 = vmatpush3.bf16.msra.mxu0 %v10340_v29  ;;  %v4704_v29 = vld [vmem:[#allocation3 + $0x1d8] sm:$0xff] }
 0x88c   :  { %10343 = vmatprep.subr.bf16.mxu0 %v10342_v39  ;;  %v10366_v24 = vpack.c.bf16 %v4704_v29, %v4703_v45  ;;  %v4714_v45 = vld [vmem:[#allocation3 + $0x228] sm:$0xff]  ;;  %v4731_v29 = vld [vmem:[#allocation3 + $0x2b0] sm:$0xff] }
 0x88f   :  { %10345 = vmatpush3.bf16.msra.mxu0 %v10344_v55  ;;  %v4706_v55 = vld [vmem:[#allocation3 + $0x1e8] sm:$0xff] }
 0x890   :  { %10347 = vmatprep.subr.bf16.mxu0 %v10346_v40  ;;  %v10368_v40 = vpack.c.bf16 %v4688_v50, %v4687_v41  ;;  %v10370_v44 = vpack.c.bf16 %v4706_v55, %v4705_v42  ;;  %v4715_v50 = vld [vmem:[#allocation3 + $0x230] sm:$0xff]  ;;  %v4716_v42 = vld [vmem:[#allocation3 + $0x238] sm:$0xff]  ;;  %v4733_v55 = vld [vmem:[#allocation3 + $0x2c0] sm:$0xff] }
 0x892   :  { %4812 = vmatmul.mubr.f32.vlgmr.msra.gmra.mrb[24].mxu0 %v12678_v46 }
 0x893   :  { %10349 = vmatpush3.bf16.msra.mxu0 %v10348_v56  ;;  %4881 = vmatprep.mubr.f32.mxu0 %v12680_v26  ;;  %v4686_v26 = vld [vmem:[#allocation3 + $0x148] sm:$0xff]  ;;  %v4708_v56 = vld [vmem:[#allocation3 + $0x1f8] sm:$0xff] }
 0x894   :  { %10351 = vmatprep.subr.bf16.mxu0 %v10350_v31  ;;  %v10364_v39 = vpack.c.bf16 %v4686_v26, %v4685_v27  ;;  %v10372_v31 = vpack.c.bf16 %v4690_v19, %v4689_v57  ;;  %v10374_v63 = vpack.c.bf16 %v4708_v56, %v4707_v47  ;;  %v4713_v26 = vld [vmem:[#allocation3 + $0x220] sm:$0xff]  ;;  %v4718_v19 = vld [vmem:[#allocation3 + $0x248] sm:$0xff]  ;;  %v4735_v47 = vld [vmem:[#allocation3 + $0x2d0] sm:$0xff] }
 0x895   :  { %v4717_v57 = vld [vmem:[#allocation3 + $0x240] sm:$0xff]  ;;  %v4736_v56 = vld [vmem:[#allocation3 + $0x2d8] sm:$0xff] }
 0x897   :  { %10353 = vmatpush3.bf16.msra.mxu0 %v10352_v20  ;;  %v4726_v20 = vld [vmem:[#allocation3 + $0x288] sm:$0xff] }
 0x898   :  { %10355 = vmatprep.subr.bf16.mxu0 %v10354_v37  ;;  %v10376_v37 = vpack.c.bf16 %v4692_v25, %v4691_v21  ;;  %v10378_v30 = vpack.c.bf16 %v4726_v20, %v4725_v36  ;;  %v4719_v21 = vld [vmem:[#allocation3 + $0x250] sm:$0xff]  ;;  %v4720_v25 = vld [vmem:[#allocation3 + $0x258] sm:$0xff]  ;;  %v4737_v36 = vld [vmem:[#allocation3 + $0x2e0] sm:$0xff] }
 0x899   :  { %v4738_v20 = vld [vmem:[#allocation3 + $0x2e8] sm:$0xff] }
 0x89b   :  { %10357 = vmatpush3.bf16.msra.mxu0 %v10356_v60  ;;  %v4728_v60 = vld [vmem:[#allocation3 + $0x298] sm:$0xff] }
 0x89c   :  { %10359 = vmatprep.subr.bf16.mxu0 %v10358_v43  ;;  %v10380_v43 = vpack.c.bf16 %v4710_v58, %v4709_v59  ;;  %v10382_v61 = vpack.c.bf16 %v4728_v60, %v4727_v49  ;;  %v4721_v59 = vld [vmem:[#allocation3 + $0x260] sm:$0xff]  ;;  %v4722_v58 = vld [vmem:[#allocation3 + $0x268] sm:$0xff]  ;;  %v4739_v49 = vld [vmem:[#allocation3 + $0x2f0] sm:$0xff] }
 0x89d   :  { %v4740_v60 = vld [vmem:[#allocation3 + $0x2f8] sm:$0xff] }
 0x89f   :  { %10361 = vmatpush3.bf16.msra.mxu0 %v10360_v23  ;;  %v4730_v23 = vld [vmem:[#allocation3 + $0x2a8] sm:$0xff] }
 0x8a0   :  { %10363 = vmatprep.subr.bf16.mxu0 %v10362_v38  ;;  %v10384_v38 = vpack.c.bf16 %v4712_v48, %v4711_v52  ;;  %v10386_v27 = vpack.c.bf16 %v4730_v23, %v4729_v22  ;;  %v4723_v52 = vld [vmem:[#allocation3 + $0x270] sm:$0xff]  ;;  %v4724_v48 = vld [vmem:[#allocation3 + $0x278] sm:$0xff] }
 0x8a1   :  { %v10408_v22 = vpack.c.bf16 %v4724_v48, %v4723_v52 }
 0x8a3   :  { %10365 = vmatpush3.bf16.msra.mxu0 %v10364_v39  ;;  %v4732_v39 = vld [vmem:[#allocation3 + $0x2b8] sm:$0xff] }
 0x8a4   :  { %10367 = vmatprep.subr.bf16.mxu0 %v10366_v24  ;;  %v10388_v24 = vpack.c.bf16 %v4714_v45, %v4713_v26  ;;  %v10390_v41 = vpack.c.bf16 %v4732_v39, %v4731_v29 }
 0x8a7   :  { %10369 = vmatpush3.bf16.msra.mxu0 %v10368_v40  ;;  %v4734_v40 = vld [vmem:[#allocation3 + $0x2c8] sm:$0xff] }
 0x8a8   :  { %10371 = vmatprep.subr.bf16.mxu0 %v10370_v44  ;;  %v10394_v44 = vpack.c.bf16 %v4734_v40, %v4733_v55 }
 0x8ab   :  { %10373 = vmatpush3.bf16.msra.mxu0 %v10372_v31  ;;  %v10396_v31 = vpack.c.bf16 %v4718_v19, %v4717_v57 }
 0x8ac   :  { %10375 = vmatprep.subr.bf16.mxu0 %v10374_v63  ;;  %v10398_v63 = vpack.c.bf16 %v4736_v56, %v4735_v47 }
 0x8af   :  { %10377 = vmatpush3.bf16.msra.mxu0 %v10376_v37  ;;  %v10400_v37 = vpack.c.bf16 %v4720_v25, %v4719_v21 }
 0x8b0   :  { %10379 = vmatprep.subr.bf16.mxu0 %v10378_v30  ;;  %v10402_v30 = vpack.c.bf16 %v4738_v20, %v4737_v36 }
 0x8b2   :  { %4882 = vmatmul.mubr.f32.vlgmr.msra.gmra.mrb[26].mxu0 %v12678_v46  ;;  %v10392_v46 = vpack.c.bf16 %v4716_v42, %v4715_v50 }
 0x8b3   :  { %10381 = vmatpush3.bf16.msra.mxu0 %v10380_v43  ;;  %4951 = vmatprep.mubr.f32.mxu0 %v16127_v62  ;;  %v10404_v43 = vpack.c.bf16 %v4722_v58, %v4721_v59 }
 0x8b4   :  { %10383 = vmatprep.subr.bf16.mxu0 %v10382_v61  ;;  %v10406_v61 = vpack.c.bf16 %v4740_v60, %v4739_v49 }
 0x8b7   :  { %10385 = vmatpush3.bf16.msra.mxu0 %v10384_v38  ;;  %v9736_v38 = vld [vmem:[#allocation24] ss:$0 sm:$0xff] }
 0x8b8   :  { %10387 = vmatprep.subr.bf16.mxu0 %v10386_v27 }
 0x8bb   :  { %10389 = vmatpush3.bf16.msra.mxu0 %v10388_v24 }
 0x8bc   :  { %10391 = vmatprep.subr.bf16.mxu0 %v10390_v41 }
 0x8bf   :  { %10393 = vmatpush3.bf16.msra.mxu0 %v10392_v46 }
 0x8c0   :  { %10395 = vmatprep.subr.bf16.mxu0 %v10394_v44 }
 0x8c3   :  { %10397 = vmatpush3.bf16.msra.mxu0 %v10396_v31 }
 0x8c4   :  { %10399 = vmatprep.subr.bf16.mxu0 %v10398_v63 }
 0x8c7   :  { %10401 = vmatpush3.bf16.msra.mxu0 %v10400_v37 }
 0x8c8   :  { %10403 = vmatprep.subr.bf16.mxu0 %v10402_v30 }
 0x8cb   :  { %10405 = vmatpush3.bf16.msra.mxu0 %v10404_v43 }
 0x8cc   :  { %10407 = vmatprep.subr.bf16.mxu0 %v10406_v61 }
 0x8cf   :  { %10409 = vmatpush3.bf16.msra.mxu0 %v10408_v22 }
 0x8d2   :  { %4952 = vmatmul.mubr.f32.vlgmr.msra.gmra.mrb[28].mxu0 %v16127_v62 }
 0x965   :  { %v9792_v23 = vpop.f32.mrb[24].mxu0 }
 0x966   :  { %v9793_v27 = vpop.f32.mrb[25].mxu0 }
 0x967   :  { %v9794_v26 = vadd.f32 %v9793_v27, %v9792_v23 }
 0x969   :  { %v4814_v45 = vadd.f32 %v9794_v26, %v9736_v38 }
 0x96b   :  { %v12688_v29 = vmax.f32 %v4814_v45, 0.0 }
 0x96d   :  { %v4962_v39 = vrot.slane %v12688_v29, %v12393_v28  ;;  %v5029_v42 = vrot.slane %v12688_v29, %v12396_v51 }
 0x96f   :  { %4972 = vbcast.lane.b32.xlu1 %v4962_v39, 272  ;;  %4964 = vbcast.lane.b32.xlu0 %v4962_v39, 256 }
 0x973   :  { %4976 = vbcast.lane.b32.xlu1 %v4962_v39, 280  ;;  %4968 = vbcast.lane.b32.xlu0 %v4962_v39, 264 }
 0x977   :  { %4984 = vbcast.lane.b32.xlu1 %v4962_v39, 296  ;;  %4980 = vbcast.lane.b32.xlu0 %v4962_v39, 288 }
 0x97b   :  { %4992 = vbcast.lane.b32.xlu1 %v4962_v39, 312  ;;  %4988 = vbcast.lane.b32.xlu0 %v4962_v39, 304 }
 0x97f   :  { %5000 = vbcast.lane.b32.xlu1 %v4962_v39, 328  ;;  %4996 = vbcast.lane.b32.xlu0 %v4962_v39, 320 }
 0x983   :  { %5008 = vbcast.lane.b32.xlu1 %v4962_v39, 344  ;;  %5004 = vbcast.lane.b32.xlu0 %v4962_v39, 336 }
 0x985   :  { %v9827_v24 = vpop.f32.mrb[26].mxu0 }
 0x986   :  { %v9828_v41 = vpop.f32.mrb[27].mxu0 }
 0x987   :  { %v9829_v50 = vadd.f32 %v9828_v41, %v9827_v24  ;;  %5016 = vbcast.lane.b32.xlu1 %v4962_v39, 360  ;;  %5012 = vbcast.lane.b32.xlu0 %v4962_v39, 352 }
 0x989   :  { %v4884_v46 = vadd.f32 %v9829_v50, %v9736_v38 }
 0x98b   :  { %5024 = vbcast.lane.b32.xlu1 %v4962_v39, 376  ;;  %5020 = vbcast.lane.b32.xlu0 %v4962_v39, 368  ;;  %v11264_v39 = vmov 1966171168  }
 0x98c   :  { %v5095_v24 = vunpack.c.l.s4 %v11264_v39 }
 0x98f   :  { %5035 = vbcast.lane.b32.xlu1 %v5029_v42, 264  ;;  %5031 = vbcast.lane.b32.xlu0 %v5029_v42, 256 }
 0x993   :  { %5043 = vbcast.lane.b32.xlu1 %v5029_v42, 280  ;;  %5039 = vbcast.lane.b32.xlu0 %v5029_v42, 272 }
 0x997   :  { %5051 = vbcast.lane.b32.xlu1 %v5029_v42, 296  ;;  %5047 = vbcast.lane.b32.xlu0 %v5029_v42, 288 }
 0x99b   :  { %5059 = vbcast.lane.b32.xlu1 %v5029_v42, 312  ;;  %5055 = vbcast.lane.b32.xlu0 %v5029_v42, 304 }
 0x99f   :  { %5067 = vbcast.lane.b32.xlu1 %v5029_v42, 328  ;;  %5063 = vbcast.lane.b32.xlu0 %v5029_v42, 320 }
 0x9a3   :  { %5075 = vbcast.lane.b32.xlu1 %v5029_v42, 344  ;;  %5071 = vbcast.lane.b32.xlu0 %v5029_v42, 336 }
 0x9a5   :  { %v9862_v55 = vpop.f32.mrb[28].mxu0 }
 0x9a6   :  { %v9863_v40 = vpop.f32.mrb[29].mxu0 }
 0x9a7   :  { %v9864_v44 = vadd.f32 %v9863_v40, %v9862_v55  ;;  %5083 = vbcast.lane.b32.xlu1 %v5029_v42, 360  ;;  %5079 = vbcast.lane.b32.xlu0 %v5029_v42, 352 }
 0x9a9   :  { %v4954_v57 = vadd.f32 %v9864_v44, %v4884_v46 }
 0x9ab   :  { %v12694_v19 = vmax.f32 %v4954_v57, 0.0  ;;  %5091 = vbcast.lane.b32.xlu1 %v5029_v42, 376  ;;  %5087 = vbcast.lane.b32.xlu0 %v5029_v42, 368  ;;  %v5096_v42 = vunpack.c.0.s8 %v5095_v24 }
 0x9ad   :  { %v5161_v47 = vrot.slane %v12694_v19, %v12393_v28  ;;  %v5228_v56 = vrot.slane %v12694_v19, %v12396_v51  ;;  %v12743_v46 = vsub.s32 %v5096_v42, %v11957_v53 }
 0x9af   :  { %5167 = vbcast.lane.b32.xlu1 %v5161_v47, 264  ;;  %5163 = vbcast.lane.b32.xlu0 %v5161_v47, 256  ;;  %16133 = vst [vmem:[#allocation117_spill] sm:$0xff] %v12743_v46 }
 0x9b3   :  { %5175 = vbcast.lane.b32.xlu1 %v5161_v47, 280  ;;  %5171 = vbcast.lane.b32.xlu0 %v5161_v47, 272 }
 0x9b7   :  { %5183 = vbcast.lane.b32.xlu1 %v5161_v47, 296  ;;  %5179 = vbcast.lane.b32.xlu0 %v5161_v47, 288 }
 0x9bb   :  { %5191 = vbcast.lane.b32.xlu1 %v5161_v47, 312  ;;  %5187 = vbcast.lane.b32.xlu0 %v5161_v47, 304 }
 0x9bf   :  { %5199 = vbcast.lane.b32.xlu1 %v5161_v47, 328  ;;  %5195 = vbcast.lane.b32.xlu0 %v5161_v47, 320 }
 0x9c3   :  { %5207 = vbcast.lane.b32.xlu1 %v5161_v47, 344  ;;  %5203 = vbcast.lane.b32.xlu0 %v5161_v47, 336 }
 0x9c7   :  { %5215 = vbcast.lane.b32.xlu1 %v5161_v47, 360  ;;  %5211 = vbcast.lane.b32.xlu0 %v5161_v47, 352 }
 0x9cb   :  { %5223 = vbcast.lane.b32.xlu1 %v5161_v47, 376  ;;  %5219 = vbcast.lane.b32.xlu0 %v5161_v47, 368  ;;  %v12751_v47 = vrot.slane %v12688_v29, %v12743_v46 }
 0x9cd   :  { %v5108_v42 = vrot.slane %v12751_v47, %v12743_v46 }
 0x9cf   :  { %5234 = vbcast.lane.b32.xlu1 %v5228_v56, 264  ;;  %5230 = vbcast.lane.b32.xlu0 %v5228_v56, 256  ;;  %v12770_v29 = vrot.slane %v5108_v42, %v12393_v28 }
 0x9d3   :  { %5242 = vbcast.lane.b32.xlu1 %v5228_v56, 280  ;;  %5238 = vbcast.lane.b32.xlu0 %v5228_v56, 272 }
 0x9d7   :  { %5250 = vbcast.lane.b32.xlu1 %v5228_v56, 296  ;;  %5246 = vbcast.lane.b32.xlu0 %v5228_v56, 288 }
 0x9db   :  { %5258 = vbcast.lane.b32.xlu1 %v5228_v56, 312  ;;  %5254 = vbcast.lane.b32.xlu0 %v5228_v56, 304 }
 0x9df   :  { %5266 = vbcast.lane.b32.xlu1 %v5228_v56, 328  ;;  %5262 = vbcast.lane.b32.xlu0 %v5228_v56, 320 }
 0x9e1   :  { %v4973_v31 = vpop.permute.xlu1 %4972  ;;  %v4965_v63 = vpop.permute.xlu0 %4964 }
 0x9e2   :  { %v5126_v16 = vmul.f32 %v12770_v29, %v4965_v63  ;;  %v5128_v11 = vmul.f32 %v12770_v29, %v4973_v31 }
 0x9e3   :  { %5274 = vbcast.lane.b32.xlu1 %v5228_v56, 344  ;;  %5270 = vbcast.lane.b32.xlu0 %v5228_v56, 336 }
 0x9e5   :  { %v4977_v21 = vpop.permute.xlu1 %4976  ;;  %v4969_v25 = vpop.permute.xlu0 %4968 }
 0x9e6   :  { %v5127_v33 = vmul.f32 %v12770_v29, %v4969_v25 }
 0x9e7   :  { %5282 = vbcast.lane.b32.xlu1 %v5228_v56, 360  ;;  %5278 = vbcast.lane.b32.xlu0 %v5228_v56, 352 }
 0x9e9   :  { %v12700_v36 = vpop.permute.xlu1 %4984  ;;  %v4981_v20 = vpop.permute.xlu0 %4980 }
 0x9eb   :  { %5290 = vbcast.lane.b32.xlu1 %v5228_v56, 376  ;;  %5286 = vbcast.lane.b32.xlu0 %v5228_v56, 368  ;;  %v12755_v56 = vrot.slane %v12694_v19, %v12743_v46 }
 0x9ed   :  { %v12702_v37 = vpop.permute.xlu1 %4992  ;;  %v12704_v30 = vpop.permute.xlu0 %4988  ;;  %v5307_v51 = vrot.slane %v12755_v56, %v12743_v46 }
 0x9ef   :  { %v12773_v19 = vrot.slane %v5307_v51, %v12393_v28 }
 0x9f1   :  { %v12706_v59 = vpop.permute.xlu1 %5000  ;;  %v12708_v58 = vpop.permute.xlu0 %4996 }
 0x9f5   :  { %v12710_v49 = vpop.permute.xlu1 %5008  ;;  %v12712_v60 = vpop.permute.xlu0 %5004 }
 0x9f9   :  { %v12714_v43 = vpop.permute.xlu1 %5016  ;;  %v12716_v61 = vpop.permute.xlu0 %5012 }
 0x9fd   :  { %v12718_v52 = vpop.permute.xlu1 %5024  ;;  %v12720_v48 = vpop.permute.xlu0 %5020 }
 0xa01   :  { %v12722_v22 = vpop.permute.xlu1 %5035  ;;  %v12724_v23 = vpop.permute.xlu0 %5031 }
 0xa05   :  { %v12726_v38 = vpop.permute.xlu1 %5043  ;;  %v12728_v27 = vpop.permute.xlu0 %5039 }
 0xa09   :  { %v12730_v26 = vpop.permute.xlu1 %5051  ;;  %v12732_v45 = vpop.permute.xlu0 %5047 }
 0xa0d   :  { %v12734_v41 = vpop.permute.xlu1 %5059  ;;  %v12736_v50 = vpop.permute.xlu0 %5055 }
 0xa11   :  { %v12738_v55 = vpop.permute.xlu1 %5067  ;;  %v12740_v40 = vpop.permute.xlu0 %5063 }
 0xa15   :  { %v12745_v44 = vpop.permute.xlu1 %5075  ;;  %v12747_v57 = vpop.permute.xlu0 %5071 }
 0xa19   :  { %v12757_v39 = vpop.permute.xlu1 %5083  ;;  %v12759_v24 = vpop.permute.xlu0 %5079 }
 0xa1d   :  { %v12765_v18 = vpop.permute.xlu1 %5091  ;;  %v12767_v35 = vpop.permute.xlu0 %5087 }
 0xa21   :  { %v5168_v34 = vpop.permute.xlu1 %5167  ;;  %v5164_v17 = vpop.permute.xlu0 %5163 }
 0xa22   :  { %v5326_v32 = vmul.f32 %v12773_v19, %v5168_v34  ;;  %v5325_v15 = vmul.f32 %v12773_v19, %v5164_v17 }
 0xa24   :  { %v12779_v14 = vadd.f32 %v5326_v32, %v5127_v33  ;;  %v12781_v13 = vadd.f32 %v5325_v15, %v5126_v16  ;;  %v5129_v32 = vmul.f32 %v12770_v29, %v4977_v21  ;;  %v5130_v15 = vmul.f32 %v12770_v29, %v4981_v20 }
 0xa25   :  { %v5176_v12 = vpop.permute.xlu1 %5175  ;;  %v5172_v42 = vpop.permute.xlu0 %5171  ;;  %v5132_v21 = vmul.f32 %v12770_v29, %v12704_v30  ;;  %v5134_v30 = vmul.f32 %v12770_v29, %v12708_v58  ;;  %v5136_v58 = vmul.f32 %v12770_v29, %v12712_v60 }
 0xa26   :  { %v5327_v51 = vmul.f32 %v12773_v19, %v5172_v42  ;;  %5391 = vmax.xlane.f32.xlu1 %v12779_v14  ;;  %5389 = vmax.xlane.f32.xlu0 %v12781_v13  ;;  %v5328_v63 = vmul.f32 %v12773_v19, %v5176_v12 }
 0xa28   :  { %v12788_v25 = vadd.f32 %v5327_v51, %v5128_v11  ;;  %v12795_v31 = vadd.f32 %v5328_v63, %v5129_v32  ;;  %v5131_v11 = vmul.f32 %v12770_v29, %v12700_v36  ;;  %v5133_v36 = vmul.f32 %v12770_v29, %v12702_v37 }
 0xa29   :  { %v5184_v34 = vpop.permute.xlu1 %5183  ;;  %v5180_v17 = vpop.permute.xlu0 %5179  ;;  %v5135_v37 = vmul.f32 %v12770_v29, %v12706_v59 }
 0xa2a   :  { %v5329_v16 = vmul.f32 %v12773_v19, %v5180_v17  ;;  %5393 = vmax.xlane.f32.xlu0 %v12788_v25  ;;  %v5330_v33 = vmul.f32 %v12773_v19, %v5184_v34 }
 0xa2c   :  { %v12797_v42 = vadd.f32 %v5329_v16, %v5130_v15  ;;  %v12807_v63 = vadd.f32 %v5330_v33, %v5131_v11 }
 0xa2d   :  { %v5192_v10 = vpop.permute.xlu1 %5191  ;;  %v5188_v12 = vpop.permute.xlu0 %5187 }
 0xa2e   :  { %v5331_v20 = vmul.f32 %v12773_v19, %v5188_v12  ;;  %5395 = vmax.xlane.f32.xlu0 %v12795_v31  ;;  %5397 = vmax.xlane.f32.xlu1 %v12797_v42  ;;  %v5332_v51 = vmul.f32 %v12773_v19, %v5192_v10 }
 0xa30   :  { %v12809_v34 = vadd.f32 %v5331_v20, %v5132_v21  ;;  %v12819_v16 = vadd.f32 %v5332_v51, %v5133_v36  ;;  %v5101_v20 = vcombine.high %v12751_v47, %v12751_v47  ;;  %v5300_v51 = vcombine.high %v12755_v56, %v12755_v56 }
 0xa31   :  { %v5200_v17 = vpop.permute.xlu1 %5199  ;;  %v5196_v32 = vpop.permute.xlu0 %5195 }
 0xa32   :  { %v5333_v15 = vmul.f32 %v12773_v19, %v5196_v32  ;;  %5399 = vmax.xlane.f32.xlu0 %v12807_v63  ;;  %5401 = vmax.xlane.f32.xlu1 %v12809_v34  ;;  %v5334_v10 = vmul.f32 %v12773_v19, %v5200_v17  ;;  %v5115_v47 = vrot.slane %v5101_v20, %v12743_v46 }
 0xa33   :  { %v5314_v56 = vrot.slane %v5300_v51, %v12743_v46 }
 0xa34   :  { %v12821_v33 = vadd.f32 %v5333_v15, %v5134_v30  ;;  %v12835_v32 = vadd.f32 %v5334_v10, %v5135_v37  ;;  %v5137_v30 = vmul.f32 %v12770_v29, %v12710_v49  ;;  %v5138_v15 = vmul.f32 %v12770_v29, %v12716_v61 }
 0xa35   :  { %v5208_v12 = vpop.permute.xlu1 %5207  ;;  %v5204_v11 = vpop.permute.xlu0 %5203  ;;  %v5139_v61 = vmul.f32 %v12770_v29, %v12714_v43  ;;  %v12861_v20 = vrot.slane %v5115_v47, %v12393_v28  ;;  %v12864_v51 = vrot.slane %v5314_v56, %v12393_v28 }
 0xa36   :  { %v5335_v21 = vmul.f32 %v12773_v19, %v5204_v11  ;;  %5403 = vmax.xlane.f32.xlu0 %v12819_v16  ;;  %5405 = vmax.xlane.f32.xlu1 %v12821_v33  ;;  %v5336_v17 = vmul.f32 %v12773_v19, %v5208_v12 }
 0xa38   :  { %v12837_v59 = vadd.f32 %v5335_v21, %v5136_v58  ;;  %v12849_v12 = vadd.f32 %v5336_v17, %v5137_v30  ;;  %v5140_v21 = vmul.f32 %v12770_v29, %v12720_v48 }
 0xa39   :  { %v5216_v36 = vpop.permute.xlu1 %5215  ;;  %v5212_v60 = vpop.permute.xlu0 %5211 }
 0xa3a   :  { %v5337_v11 = vmul.f32 %v12773_v19, %v5212_v60  ;;  %5407 = vmax.xlane.f32.xlu0 %v12835_v32  ;;  %5409 = vmax.xlane.f32.xlu1 %v12837_v59  ;;  %v5338_v10 = vmul.f32 %v12773_v19, %v5216_v36 }
 0xa3c   :  { %v12851_v37 = vadd.f32 %v5337_v11, %v5138_v15  ;;  %v12867_v36 = vadd.f32 %v5338_v10, %v5139_v61  ;;  %v5141_v15 = vmul.f32 %v12770_v29, %v12718_v52  ;;  %v5142_v11 = vmul.f32 %v12861_v20, %v12724_v23 }
 0xa3d   :  { %v5224_v49 = vpop.permute.xlu1 %5223  ;;  %v5220_v58 = vpop.permute.xlu0 %5219  ;;  %v5143_v52 = vmul.f32 %v12861_v20, %v12722_v22  ;;  %v5144_v23 = vmul.f32 %v12861_v20, %v12728_v27  ;;  %v5145_v22 = vmul.f32 %v12861_v20, %v12726_v38  ;;  %v5146_v27 = vmul.f32 %v12861_v20, %v12732_v45 }
 0xa3e   :  { %v5339_v60 = vmul.f32 %v12773_v19, %v5220_v58  ;;  %5411 = vmax.xlane.f32.xlu0 %v12849_v12  ;;  %5413 = vmax.xlane.f32.xlu1 %v12851_v37  ;;  %v5340_v17 = vmul.f32 %v12773_v19, %v5224_v49  ;;  %v5147_v38 = vmul.f32 %v12861_v20, %v12730_v26 }
 0xa3f   :  { %v5148_v45 = vmul.f32 %v12861_v20, %v12736_v50  ;;  %v5149_v26 = vmul.f32 %v12861_v20, %v12734_v41  ;;  %v5150_v50 = vmul.f32 %v12861_v20, %v12740_v40  ;;  %v5151_v41 = vmul.f32 %v12861_v20, %v12738_v55 }
 0xa40   :  { %v12869_v43 = vadd.f32 %v5339_v60, %v5140_v21  ;;  %v12879_v10 = vadd.f32 %v5340_v17, %v5141_v15  ;;  %v5152_v40 = vmul.f32 %v12861_v20, %v12747_v57  ;;  %v5153_v55 = vmul.f32 %v12861_v20, %v12745_v44 }
 0xa41   :  { %v5235_v30 = vpop.permute.xlu1 %5234  ;;  %v5231_v48 = vpop.permute.xlu0 %5230  ;;  %v5154_v57 = vmul.f32 %v12861_v20, %v12759_v24  ;;  %v5155_v44 = vmul.f32 %v12861_v20, %v12757_v39  ;;  %v5156_v24 = vmul.f32 %v12861_v20, %v12767_v35 }
 0xa42   :  { %v5341_v47 = vmul.f32 %v12864_v51, %v5231_v48  ;;  %5415 = vmax.xlane.f32.xlu0 %v12867_v36  ;;  %5417 = vmax.xlane.f32.xlu1 %v12869_v43  ;;  %v5342_v56 = vmul.f32 %v12864_v51, %v5235_v30 }
 0xa44   :  { %v12881_v49 = vadd.f32 %v5341_v47, %v5142_v11  ;;  %v12891_v17 = vadd.f32 %v5342_v56, %v5143_v52 }
 0xa45   :  { %v5243_v58 = vpop.permute.xlu1 %5242  ;;  %v5239_v61 = vpop.permute.xlu0 %5238 }
 0xa46   :  { %v5343_v21 = vmul.f32 %v12864_v51, %v5239_v61  ;;  %5419 = vmax.xlane.f32.xlu0 %v12879_v10  ;;  %5421 = vmax.xlane.f32.xlu1 %v12881_v49  ;;  %v5344_v60 = vmul.f32 %v12864_v51, %v5243_v58 }
 0xa48   :  { %v12893_v30 = vadd.f32 %v5343_v21, %v5144_v23  ;;  %v12903_v56 = vadd.f32 %v5344_v60, %v5145_v22 }
 0xa49   :  { %v5251_v48 = vpop.permute.xlu1 %5250  ;;  %v5247_v15 = vpop.permute.xlu0 %5246 }
 0xa4a   :  { %v5345_v11 = vmul.f32 %v12864_v51, %v5247_v15  ;;  %5423 = vmax.xlane.f32.xlu0 %v12891_v17  ;;  %5425 = vmax.xlane.f32.xlu1 %v12893_v30  ;;  %v5346_v47 = vmul.f32 %v12864_v51, %v5251_v48 }
 0xa4c   :  { %v12905_v58 = vadd.f32 %v5345_v11, %v5146_v27  ;;  %v12915_v60 = vadd.f32 %v5346_v47, %v5147_v38 }
 0xa4d   :  { %v5259_v61 = vpop.permute.xlu1 %5258  ;;  %v5255_v52 = vpop.permute.xlu0 %5254 }
 0xa4e   :  { %v5347_v23 = vmul.f32 %v12864_v51, %v5255_v52  ;;  %5427 = vmax.xlane.f32.xlu0 %v12903_v56  ;;  %5429 = vmax.xlane.f32.xlu1 %v12905_v58  ;;  %v5348_v21 = vmul.f32 %v12864_v51, %v5259_v61 }
 0xa50   :  { %v12917_v48 = vadd.f32 %v5347_v23, %v5148_v45  ;;  %v12927_v47 = vadd.f32 %v5348_v21, %v5149_v26 }
 0xa51   :  { %v5267_v15 = vpop.permute.xlu1 %5266  ;;  %v5263_v22 = vpop.permute.xlu0 %5262 }
 0xa52   :  { %v5349_v27 = vmul.f32 %v12864_v51, %v5263_v22  ;;  %5431 = vmax.xlane.f32.xlu0 %v12915_v60  ;;  %5433 = vmax.xlane.f32.xlu1 %v12917_v48  ;;  %v5350_v11 = vmul.f32 %v12864_v51, %v5267_v15 }
 0xa54   :  { %v12929_v61 = vadd.f32 %v5349_v27, %v5150_v50  ;;  %v12939_v21 = vadd.f32 %v5350_v11, %v5151_v41 }
 0xa55   :  { %v5275_v52 = vpop.permute.xlu1 %5274  ;;  %v5271_v38 = vpop.permute.xlu0 %5270 }
 0xa56   :  { %v5351_v45 = vmul.f32 %v12864_v51, %v5271_v38  ;;  %5435 = vmax.xlane.f32.xlu0 %v12927_v47  ;;  %5437 = vmax.xlane.f32.xlu1 %v12929_v61  ;;  %v5352_v23 = vmul.f32 %v12864_v51, %v5275_v52 }
 0xa58   :  { %v12941_v15 = vadd.f32 %v5351_v45, %v5152_v40  ;;  %v12951_v11 = vadd.f32 %v5352_v23, %v5153_v55 }
 0xa59   :  { %v5283_v22 = vpop.permute.xlu1 %5282  ;;  %v5279_v26 = vpop.permute.xlu0 %5278 }
 0xa5a   :  { %v5353_v50 = vmul.f32 %v12864_v51, %v5279_v26  ;;  %5439 = vmax.xlane.f32.xlu0 %v12939_v21  ;;  %5441 = vmax.xlane.f32.xlu1 %v12941_v15  ;;  %v5354_v27 = vmul.f32 %v12864_v51, %v5283_v22  ;;  %v5157_v26 = vmul.f32 %v12861_v20, %v12765_v18 }
 0xa5c   :  { %v12953_v52 = vadd.f32 %v5353_v50, %v5154_v57  ;;  %v12963_v23 = vadd.f32 %v5354_v27, %v5155_v44 }
 0xa5d   :  { %v5291_v38 = vpop.permute.xlu1 %5290  ;;  %v5287_v41 = vpop.permute.xlu0 %5286 }
 0xa5e   :  { %v5355_v40 = vmul.f32 %v12864_v51, %v5287_v41  ;;  %5443 = vmax.xlane.f32.xlu0 %v12951_v11  ;;  %5445 = vmax.xlane.f32.xlu1 %v12953_v52  ;;  %v5356_v45 = vmul.f32 %v12864_v51, %v5291_v38 }
 0xa60   :  { %v12965_v22 = vadd.f32 %v5355_v40, %v5156_v24  ;;  %v12971_v35 = vadd.f32 %v5356_v45, %v5157_v26 }
 0xa62   :  { %5447 = vmax.xlane.f32.xlu0 %v12963_v23  ;;  %5449 = vmax.xlane.f32.xlu1 %v12965_v22 }
 0xa66   :  { %5451 = vmax.xlane.f32.xlu0 %v12971_v35 }
 0xab3   :  { %v5392_v39 = vpop.xlane.xlu1 %5391  ;;  %v5390_v55 = vpop.xlane.xlu0 %5389 }
 0xab4   :  { %v5454_v57 = vsub.f32 %v12779_v14, %v5392_v39  ;;  %v5453_v50 = vsub.f32 %v12781_v13, %v5390_v55 }
 0xab6   :  { %v5487_v27 = vmul.f32 1.442695, %v5454_v57  ;;  %v5485_v38 = vmul.f32 1.442695, %v5453_v50 }
 0xab7   :  { %v5394_v41 = vpop.xlane.xlu0 %5393 }
 0xab8   :  { %10626 = vpow2.f32 %v5487_v27  ;;  %v5455_v18 = vsub.f32 %v12788_v25, %v5394_v41 }
 0xab9   :  { %10628 = vpow2.f32 %v5485_v38 }
 0xaba   :  { %v5489_v44 = vmul.f32 1.442695, %v5455_v18 }
 0xabb   :  { %v5398_v24 = vpop.xlane.xlu1 %5397  ;;  %v5396_v40 = vpop.xlane.xlu0 %5395 }
 0xabc   :  { %10630 = vpow2.f32 %v5489_v44  ;;  %v5457_v45 = vsub.f32 %v12797_v42, %v5398_v24  ;;  %v5456_v26 = vsub.f32 %v12795_v31, %v5396_v40 }
 0xabe   :  { %v5493_v46 = vmul.f32 1.442695, %v5457_v45  ;;  %v5491_v28 = vmul.f32 1.442695, %v5456_v26 }
 0xabf   :  { %v5402_v14 = vpop.xlane.xlu1 %5401  ;;  %v5400_v39 = vpop.xlane.xlu0 %5399 }
 0xac0   :  { %10632 = vpow2.f32 %v5493_v46  ;;  %v5459_v13 = vsub.f32 %v12809_v34, %v5402_v14  ;;  %v5458_v55 = vsub.f32 %v12807_v63, %v5400_v39 }
 0xac1   :  { %10634 = vpow2.f32 %v5491_v28 }
 0xac2   :  { %v12981_v25 = vpop.eup %10626  ;;  %v5497_v57 = vmul.f32 1.442695, %v5459_v13  ;;  %v5495_v50 = vmul.f32 1.442695, %v5458_v55 }
 0xac3   :  { %v12983_v27 = vpop.eup %10628  ;;  %5551 = vadd.xlane.f32.xlu0 %v12981_v25  ;;  %v5406_v42 = vpop.xlane.xlu1 %5405 }
 0xac4   :  { %v5404_v31 = vpop.xlane.xlu0 %5403  ;;  %10636 = vpow2.f32 %v5497_v57  ;;  %v5461_v38 = vsub.f32 %v12821_v33, %v5406_v42  ;;  %5549 = vadd.xlane.f32.xlu1 %v12983_v27 }
 0xac5   :  { %v5460_v46 = vsub.f32 %v12819_v16, %v5404_v31  ;;  %10638 = vpow2.f32 %v5495_v50 }
 0xac6   :  { %v12989_v63 = vpop.eup %10630  ;;  %v5501_v28 = vmul.f32 1.442695, %v5461_v38 }
 0xac7   :  { %v5499_v34 = vmul.f32 1.442695, %v5460_v46  ;;  %v5410_v41 = vpop.xlane.xlu1 %5409 }
 0xac8   :  { %v5408_v18 = vpop.xlane.xlu0 %5407  ;;  %10640 = vpow2.f32 %v5501_v28  ;;  %v5463_v44 = vsub.f32 %v12837_v59, %v5410_v41  ;;  %5553 = vadd.xlane.f32.xlu1 %v12989_v63 }
 0xac9   :  { %v5462_v24 = vsub.f32 %v12835_v32, %v5408_v18  ;;  %10642 = vpow2.f32 %v5499_v34 }
 0xaca   :  { %v12994_v33 = vpop.eup %10632  ;;  %v5505_v40 = vmul.f32 1.442695, %v5463_v44 }
 0xacb   :  { %v5503_v45 = vmul.f32 1.442695, %v5462_v24  ;;  %v12996_v16 = vpop.eup %10634  ;;  %v5414_v26 = vpop.xlane.xlu1 %5413 }
 0xacc   :  { %v5412_v14 = vpop.xlane.xlu0 %5411  ;;  %10644 = vpow2.f32 %v5505_v40  ;;  %v5465_v39 = vsub.f32 %v12851_v37, %v5414_v26  ;;  %5557 = vadd.xlane.f32.xlu1 %v12994_v33  ;;  %5555 = vadd.xlane.f32.xlu0 %v12996_v16 }
 0xacd   :  { %v5464_v59 = vsub.f32 %v12849_v12, %v5412_v14  ;;  %10646 = vpow2.f32 %v5503_v45 }
 0xace   :  { %v13002_v32 = vpop.eup %10636  ;;  %v5509_v13 = vmul.f32 1.442695, %v5465_v39 }
 0xacf   :  { %v5507_v55 = vmul.f32 1.442695, %v5464_v59  ;;  %v13004_v57 = vpop.eup %10638  ;;  %v5418_v50 = vpop.xlane.xlu1 %5417 }
 0xad0   :  { %v5416_v42 = vpop.xlane.xlu0 %5415  ;;  %10648 = vpow2.f32 %v5509_v13  ;;  %v5467_v31 = vsub.f32 %v12869_v43, %v5418_v50  ;;  %5561 = vadd.xlane.f32.xlu1 %v13002_v32  ;;  %5559 = vadd.xlane.f32.xlu0 %v13004_v57 }
 0xad1   :  { %v5466_v37 = vsub.f32 %v12867_v36, %v5416_v42  ;;  %10650 = vpow2.f32 %v5507_v55 }
 0xad2   :  { %v13010_v12 = vpop.eup %10640  ;;  %v5513_v38 = vmul.f32 1.442695, %v5467_v31 }
 0xad3   :  { %v5511_v46 = vmul.f32 1.442695, %v5466_v37  ;;  %v13012_v28 = vpop.eup %10642  ;;  %v5422_v34 = vpop.xlane.xlu1 %5421 }
 0xad4   :  { %v5420_v41 = vpop.xlane.xlu0 %5419  ;;  %10652 = vpow2.f32 %v5513_v38  ;;  %v5469_v18 = vsub.f32 %v12881_v49, %v5422_v34  ;;  %5565 = vadd.xlane.f32.xlu1 %v13010_v12  ;;  %5563 = vadd.xlane.f32.xlu0 %v13012_v28 }
 0xad5   :  { %v5468_v43 = vsub.f32 %v12879_v10, %v5420_v41  ;;  %10654 = vpow2.f32 %v5511_v46 }
 0xad6   :  { %v13018_v36 = vpop.eup %10644  ;;  %v5517_v44 = vmul.f32 1.442695, %v5469_v18 }
 0xad7   :  { %v5515_v24 = vmul.f32 1.442695, %v5468_v43  ;;  %v13020_v40 = vpop.eup %10646  ;;  %v5426_v45 = vpop.xlane.xlu1 %5425 }
 0xad8   :  { %v5424_v26 = vpop.xlane.xlu0 %5423  ;;  %10656 = vpow2.f32 %v5517_v44  ;;  %v5471_v14 = vsub.f32 %v12893_v30, %v5426_v45  ;;  %5569 = vadd.xlane.f32.xlu1 %v13018_v36  ;;  %5567 = vadd.xlane.f32.xlu0 %v13020_v40 }
 0xad9   :  { %v5470_v49 = vsub.f32 %v12891_v17, %v5424_v26  ;;  %10658 = vpow2.f32 %v5515_v24 }
 0xada   :  { %v13026_v10 = vpop.eup %10648  ;;  %v5521_v39 = vmul.f32 1.442695, %v5471_v14 }
 0xadb   :  { %v5519_v59 = vmul.f32 1.442695, %v5470_v49  ;;  %v13028_v13 = vpop.eup %10650  ;;  %v5430_v55 = vpop.xlane.xlu1 %5429 }
 0xadc   :  { %v5428_v50 = vpop.xlane.xlu0 %5427  ;;  %10660 = vpow2.f32 %v5521_v39  ;;  %v5473_v42 = vsub.f32 %v12905_v58, %v5430_v55  ;;  %5573 = vadd.xlane.f32.xlu1 %v13026_v10  ;;  %5571 = vadd.xlane.f32.xlu0 %v13028_v13 }
 0xadd   :  { %v5472_v30 = vsub.f32 %v12903_v56, %v5428_v50  ;;  %10662 = vpow2.f32 %v5519_v59 }
 0xade   :  { %v13034_v17 = vpop.eup %10652  ;;  %v5525_v31 = vmul.f32 1.442695, %v5473_v42 }
 0xadf   :  { %v5523_v37 = vmul.f32 1.442695, %v5472_v30  ;;  %v13036_v38 = vpop.eup %10654  ;;  %v5434_v46 = vpop.xlane.xlu1 %5433 }
 0xae0   :  { %v5432_v34 = vpop.xlane.xlu0 %5431  ;;  %10664 = vpow2.f32 %v5525_v31  ;;  %v5475_v41 = vsub.f32 %v12917_v48, %v5434_v46  ;;  %5577 = vadd.xlane.f32.xlu1 %v13034_v17  ;;  %5575 = vadd.xlane.f32.xlu0 %v13036_v38 }
 0xae1   :  { %v5474_v58 = vsub.f32 %v12915_v60, %v5432_v34  ;;  %10666 = vpow2.f32 %v5523_v37 }
 0xae2   :  { %v13042_v56 = vpop.eup %10656  ;;  %v5529_v18 = vmul.f32 1.442695, %v5475_v41 }
 0xae3   :  { %v5527_v43 = vmul.f32 1.442695, %v5474_v58  ;;  %v13044_v44 = vpop.eup %10658  ;;  %v5438_v24 = vpop.xlane.xlu1 %5437 }
 0xae4   :  { %v5436_v45 = vpop.xlane.xlu0 %5435  ;;  %10668 = vpow2.f32 %v5529_v18  ;;  %v5477_v26 = vsub.f32 %v12929_v61, %v5438_v24  ;;  %5581 = vadd.xlane.f32.xlu1 %v13042_v56  ;;  %5579 = vadd.xlane.f32.xlu0 %v13044_v44 }
 0xae5   :  { %v5476_v48 = vsub.f32 %v12927_v47, %v5436_v45  ;;  %10670 = vpow2.f32 %v5527_v43 }
 0xae6   :  { %v13050_v60 = vpop.eup %10660  ;;  %v5533_v14 = vmul.f32 1.442695, %v5477_v26 }
 0xae7   :  { %v5531_v49 = vmul.f32 1.442695, %v5476_v48  ;;  %v13052_v39 = vpop.eup %10662  ;;  %v5442_v59 = vpop.xlane.xlu1 %5441 }
 0xae8   :  { %v5440_v55 = vpop.xlane.xlu0 %5439  ;;  %10672 = vpow2.f32 %v5533_v14  ;;  %v5479_v50 = vsub.f32 %v12941_v15, %v5442_v59  ;;  %5585 = vadd.xlane.f32.xlu1 %v13050_v60  ;;  %5583 = vadd.xlane.f32.xlu0 %v13052_v39 }
 0xae9   :  { %v5478_v61 = vsub.f32 %v12939_v21, %v5440_v55  ;;  %10674 = vpow2.f32 %v5531_v49 }
 0xaea   :  { %v13058_v47 = vpop.eup %10664  ;;  %v5537_v42 = vmul.f32 1.442695, %v5479_v50 }
 0xaeb   :  { %v5535_v30 = vmul.f32 1.442695, %v5478_v61  ;;  %v13060_v31 = vpop.eup %10666  ;;  %v5446_v37 = vpop.xlane.xlu1 %5445 }
 0xaec   :  { %v5444_v46 = vpop.xlane.xlu0 %5443  ;;  %10676 = vpow2.f32 %v5537_v42  ;;  %v5481_v34 = vsub.f32 %v12953_v52, %v5446_v37  ;;  %5589 = vadd.xlane.f32.xlu1 %v13058_v47  ;;  %5587 = vadd.xlane.f32.xlu0 %v13060_v31 }
 0xaed   :  { %v5480_v15 = vsub.f32 %v12951_v11, %v5444_v46  ;;  %10678 = vpow2.f32 %v5535_v30 }
 0xaee   :  { %v13066_v21 = vpop.eup %10668  ;;  %v5541_v41 = vmul.f32 1.442695, %v5481_v34 }
 0xaef   :  { %v5539_v58 = vmul.f32 1.442695, %v5480_v15  ;;  %v13068_v18 = vpop.eup %10670  ;;  %v5450_v43 = vpop.xlane.xlu1 %5449 }
 0xaf0   :  { %v5448_v24 = vpop.xlane.xlu0 %5447  ;;  %10680 = vpow2.f32 %v5541_v41  ;;  %v5483_v45 = vsub.f32 %v12965_v22, %v5450_v43  ;;  %5593 = vadd.xlane.f32.xlu1 %v13066_v21  ;;  %5591 = vadd.xlane.f32.xlu0 %v13068_v18 }
 0xaf1   :  { %v5482_v52 = vsub.f32 %v12963_v23, %v5448_v24  ;;  %10682 = vpow2.f32 %v5539_v58 }
 0xaf2   :  { %v13074_v11 = vpop.eup %10672  ;;  %v5545_v26 = vmul.f32 1.442695, %v5483_v45 }
 0xaf3   :  { %v5543_v48 = vmul.f32 1.442695, %v5482_v52  ;;  %v13076_v14 = vpop.eup %10674 }
 0xaf4   :  { %v5452_v49 = vpop.xlane.xlu0 %5451  ;;  %10684 = vpow2.f32 %v5545_v26  ;;  %5597 = vadd.xlane.f32.xlu1 %v13074_v11  ;;  %5595 = vadd.xlane.f32.xlu0 %v13076_v14 }
 0xaf5   :  { %v5484_v22 = vsub.f32 %v12971_v35, %v5452_v49  ;;  %10686 = vpow2.f32 %v5543_v48 }
 0xaf6   :  { %v13081_v59 = vpop.eup %10676 }
 0xaf7   :  { %v5547_v55 = vmul.f32 1.442695, %v5484_v22  ;;  %v13083_v23 = vpop.eup %10678 }
 0xaf8   :  { %5601 = vadd.xlane.f32.xlu1 %v13081_v59  ;;  %5599 = vadd.xlane.f32.xlu0 %v13083_v23 }
 0xaf9   :  { %10688 = vpow2.f32 %v5547_v55 }
 0xafa   :  { %v13087_v50 = vpop.eup %10680 }
 0xafb   :  { %v13089_v61 = vpop.eup %10682 }
 0xafc   :  { %5605 = vadd.xlane.f32.xlu1 %v13087_v50  ;;  %5603 = vadd.xlane.f32.xlu0 %v13089_v61 }
 0xafe   :  { %v13093_v35 = vpop.eup %10684 }
 0xaff   :  { %v13095_v42 = vpop.eup %10686 }
 0xb00   :  { %5609 = vadd.xlane.f32.xlu1 %v13093_v35  ;;  %5607 = vadd.xlane.f32.xlu0 %v13095_v42 }
 0xb03   :  { %v13099_v30 = vpop.eup %10688 }
 0xb04   :  { %5611 = vadd.xlane.f32.xlu0 %v13099_v30 }
 0xb50   :  { %v5552_v37 = vpop.xlane.xlu0 %5551 }
 0xb51   :  { %v5550_v46 = vpop.xlane.xlu1 %5549  ;;  %10690 = vrcp.f32 %v5552_v37 }
 0xb52   :  { %10692 = vrcp.f32 %v5550_v46 }
 0xb55   :  { %v5554_v34 = vpop.xlane.xlu1 %5553 }
 0xb56   :  { %10694 = vrcp.f32 %v5554_v34 }
 0xb59   :  { %v5558_v15 = vpop.xlane.xlu1 %5557  ;;  %v5556_v41 = vpop.xlane.xlu0 %5555 }
 0xb5a   :  { %10696 = vrcp.f32 %v5558_v15 }
 0xb5b   :  { %v10691_v58 = vpop.eup %10690  ;;  %10698 = vrcp.f32 %v5556_v41 }
 0xb5c   :  { %v10693_v43 = vpop.eup %10692  ;;  %v13103_v24 = vmul.f32 %v10691_v58, %v12981_v25 }
 0xb5d   :  { %v5562_v45 = vpop.xlane.xlu1 %5561  ;;  %v5560_v52 = vpop.xlane.xlu0 %5559  ;;  %v13106_v26 = vmul.f32 %v10693_v43, %v12983_v27 }
 0xb5e   :  { %10700 = vrcp.f32 %v5562_v45  ;;  %v5742_v48 = vmul.f32 %v13103_v24, %v12770_v29  ;;  %5710 = vst [vmem:[#allocation28 + $0x8] sm:$0xff] %v13103_v24 }
 0xb5f   :  { %10702 = vrcp.f32 %v5560_v52  ;;  %5709 = vst [vmem:[#allocation28] sm:$0xff] %v13106_v26  ;;  %v5741_v49 = vmul.f32 %v13106_v26, %v12770_v29 }
 0xb60   :  { %v10695_v22 = vpop.eup %10694  ;;  %5775 = vadd.xlane.f32.xlu0 %v5742_v48 }
 0xb61   :  { %5773 = vadd.xlane.f32.xlu1 %v5741_v49  ;;  %v5566_v25 = vpop.xlane.xlu1 %5565  ;;  %v5564_v55 = vpop.xlane.xlu0 %5563  ;;  %v13115_v27 = vmul.f32 %v10695_v22, %v12989_v63 }
 0xb62   :  { %10704 = vrcp.f32 %v5566_v25 }
 0xb63   :  { %10706 = vrcp.f32 %v5564_v55  ;;  %v5743_v37 = vmul.f32 %v13115_v27, %v12770_v29  ;;  %5711 = vst [vmem:[#allocation28 + $0x10] sm:$0xff] %v13115_v27 }
 0xb64   :  { %v10697_v46 = vpop.eup %10696 }
 0xb65   :  { %v10699_v34 = vpop.eup %10698  ;;  %5777 = vadd.xlane.f32.xlu1 %v5743_v37  ;;  %v5570_v15 = vpop.xlane.xlu1 %5569  ;;  %v13121_v58 = vmul.f32 %v10697_v46, %v12994_v33 }
 0xb66   :  { %v5568_v41 = vpop.xlane.xlu0 %5567  ;;  %10708 = vrcp.f32 %v5570_v15  ;;  %v13124_v43 = vmul.f32 %v10699_v34, %v12996_v16 }
 0xb67   :  { %10710 = vrcp.f32 %v5568_v41  ;;  %v5745_v63 = vmul.f32 %v13121_v58, %v12770_v29  ;;  %5713 = vst [vmem:[#allocation28 + $0x20] sm:$0xff] %v13121_v58 }
 0xb68   :  { %v10701_v45 = vpop.eup %10700  ;;  %v5744_v52 = vmul.f32 %v13124_v43, %v12770_v29  ;;  %5712 = vst [vmem:[#allocation28 + $0x18] sm:$0xff] %v13124_v43 }
 0xb69   :  { %v10703_v48 = vpop.eup %10702  ;;  %5781 = vadd.xlane.f32.xlu1 %v5745_v63  ;;  %v5574_v33 = vpop.xlane.xlu1 %5573  ;;  %v13133_v22 = vmul.f32 %v10701_v45, %v13002_v32 }
 0xb6a   :  { %v5572_v49 = vpop.xlane.xlu0 %5571  ;;  %10712 = vrcp.f32 %v5574_v33  ;;  %5779 = vadd.xlane.f32.xlu0 %v5744_v52  ;;  %v13136_v16 = vmul.f32 %v10703_v48, %v13004_v57 }
 0xb6b   :  { %10714 = vrcp.f32 %v5572_v49  ;;  %v5747_v25 = vmul.f32 %v13133_v22, %v12770_v29  ;;  %5715 = vst [vmem:[#allocation28 + $0x30] sm:$0xff] %v13133_v22 }
 0xb6c   :  { %v10705_v55 = vpop.eup %10704  ;;  %v5746_v37 = vmul.f32 %v13136_v16, %v12770_v29  ;;  %5714 = vst [vmem:[#allocation28 + $0x28] sm:$0xff] %v13136_v16 }
 0xb6d   :  { %v10707_v46 = vpop.eup %10706  ;;  %5785 = vadd.xlane.f32.xlu1 %v5747_v25  ;;  %v5578_v32 = vpop.xlane.xlu1 %5577  ;;  %v13145_v15 = vmul.f32 %v10705_v55, %v13010_v12 }
 0xb6e   :  { %v5576_v34 = vpop.xlane.xlu0 %5575  ;;  %10716 = vrcp.f32 %v5578_v32  ;;  %5783 = vadd.xlane.f32.xlu0 %v5746_v37  ;;  %v13148_v57 = vmul.f32 %v10707_v46, %v13012_v28 }
 0xb6f   :  { %10718 = vrcp.f32 %v5576_v34  ;;  %v5749_v41 = vmul.f32 %v13145_v15, %v12770_v29  ;;  %5717 = vst [vmem:[#allocation28 + $0x40] sm:$0xff] %v13145_v15 }
 0xb70   :  { %v10709_v63 = vpop.eup %10708  ;;  %v5748_v45 = vmul.f32 %v13148_v57, %v12770_v29  ;;  %5716 = vst [vmem:[#allocation28 + $0x38] sm:$0xff] %v13148_v57 }
 0xb71   :  { %v10711_v52 = vpop.eup %10710  ;;  %5789 = vadd.xlane.f32.xlu1 %v5749_v41  ;;  %v5582_v12 = vpop.xlane.xlu1 %5581  ;;  %v13157_v33 = vmul.f32 %v10709_v63, %v13018_v36 }
 0xb72   :  { %v5580_v48 = vpop.xlane.xlu0 %5579  ;;  %10720 = vrcp.f32 %v5582_v12  ;;  %5787 = vadd.xlane.f32.xlu0 %v5748_v45  ;;  %v13160_v28 = vmul.f32 %v10711_v52, %v13020_v40 }
 0xb73   :  { %10722 = vrcp.f32 %v5580_v48  ;;  %v5751_v49 = vmul.f32 %v13157_v33, %v12770_v29  ;;  %5719 = vst [vmem:[#allocation28 + $0x50] sm:$0xff] %v13157_v33 }
 0xb74   :  { %v10713_v25 = vpop.eup %10712  ;;  %v5750_v55 = vmul.f32 %v13160_v28, %v12770_v29  ;;  %5718 = vst [vmem:[#allocation28 + $0x48] sm:$0xff] %v13160_v28 }
 0xb75   :  { %v10715_v37 = vpop.eup %10714  ;;  %5793 = vadd.xlane.f32.xlu1 %v5751_v49  ;;  %v5586_v36 = vpop.xlane.xlu1 %5585  ;;  %v13169_v32 = vmul.f32 %v10713_v25, %v13026_v10 }
 0xb76   :  { %v5584_v46 = vpop.xlane.xlu0 %5583  ;;  %10724 = vrcp.f32 %v5586_v36  ;;  %5791 = vadd.xlane.f32.xlu0 %v5750_v55  ;;  %v13172_v40 = vmul.f32 %v10715_v37, %v13028_v13 }
 0xb77   :  { %10726 = vrcp.f32 %v5584_v46  ;;  %v5753_v34 = vmul.f32 %v13169_v32, %v12770_v29  ;;  %5721 = vst [vmem:[#allocation28 + $0x60] sm:$0xff] %v13169_v32 }
 0xb78   :  { %v10717_v41 = vpop.eup %10716  ;;  %v5752_v63 = vmul.f32 %v13172_v40, %v12770_v29  ;;  %5720 = vst [vmem:[#allocation28 + $0x58] sm:$0xff] %v13172_v40 }
 0xb79   :  { %v10719_v45 = vpop.eup %10718  ;;  %5797 = vadd.xlane.f32.xlu1 %v5753_v34  ;;  %v5590_v10 = vpop.xlane.xlu1 %5589  ;;  %v13181_v12 = vmul.f32 %v10717_v41, %v13034_v17 }
 0xb7a   :  { %v5588_v52 = vpop.xlane.xlu0 %5587  ;;  %10728 = vrcp.f32 %v5590_v10  ;;  %5795 = vadd.xlane.f32.xlu0 %v5752_v63  ;;  %v13184_v13 = vmul.f32 %v10719_v45, %v13036_v38 }
 0xb7b   :  { %10730 = vrcp.f32 %v5588_v52  ;;  %v5755_v48 = vmul.f32 %v13181_v12, %v12770_v29  ;;  %5723 = vst [vmem:[#allocation28 + $0x70] sm:$0xff] %v13181_v12 }
 0xb7c   :  { %v10721_v49 = vpop.eup %10720  ;;  %v5754_v25 = vmul.f32 %v13184_v13, %v12770_v29  ;;  %5722 = vst [vmem:[#allocation28 + $0x68] sm:$0xff] %v13184_v13 }
 0xb7d   :  { %v10723_v55 = vpop.eup %10722  ;;  %5801 = vadd.xlane.f32.xlu1 %v5755_v48  ;;  %v5594_v17 = vpop.xlane.xlu1 %5593  ;;  %v13193_v36 = vmul.f32 %v10721_v49, %v13042_v56 }
 0xb7e   :  { %v5592_v37 = vpop.xlane.xlu0 %5591  ;;  %10732 = vrcp.f32 %v5594_v17  ;;  %5799 = vadd.xlane.f32.xlu0 %v5754_v25  ;;  %v13196_v38 = vmul.f32 %v10723_v55, %v13044_v44 }
 0xb7f   :  { %10734 = vrcp.f32 %v5592_v37  ;;  %v5757_v46 = vmul.f32 %v13193_v36, %v12861_v20  ;;  %5725 = vst [vmem:[#allocation28 + $0x80] sm:$0xff] %v13193_v36 }
 0xb80   :  { %v10725_v34 = vpop.eup %10724  ;;  %v5756_v41 = vmul.f32 %v13196_v38, %v12770_v29  ;;  %5724 = vst [vmem:[#allocation28 + $0x78] sm:$0xff] %v13196_v38 }
 0xb81   :  { %v10727_v63 = vpop.eup %10726  ;;  %5805 = vadd.xlane.f32.xlu1 %v5757_v46  ;;  %v5598_v56 = vpop.xlane.xlu1 %5597  ;;  %v13205_v10 = vmul.f32 %v10725_v34, %v13050_v60 }
 0xb82   :  { %v5596_v45 = vpop.xlane.xlu0 %5595  ;;  %10736 = vrcp.f32 %v5598_v56  ;;  %5803 = vadd.xlane.f32.xlu0 %v5756_v41  ;;  %v13208_v44 = vmul.f32 %v10727_v63, %v13052_v39 }
 0xb83   :  { %10738 = vrcp.f32 %v5596_v45  ;;  %v5759_v52 = vmul.f32 %v13205_v10, %v12861_v20  ;;  %5727 = vst [vmem:[#allocation28 + $0x90] sm:$0xff] %v13205_v10 }
 0xb84   :  { %v10729_v29 = vpop.eup %10728  ;;  %v5758_v48 = vmul.f32 %v13208_v44, %v12861_v20  ;;  %5726 = vst [vmem:[#allocation28 + $0x88] sm:$0xff] %v13208_v44 }
 0xb85   :  { %v10731_v49 = vpop.eup %10730  ;;  %5809 = vadd.xlane.f32.xlu1 %v5759_v52  ;;  %v5602_v60 = vpop.xlane.xlu1 %5601  ;;  %v13217_v55 = vmul.f32 %v10729_v29, %v13058_v47 }
 0xb86   :  { %v5600_v25 = vpop.xlane.xlu0 %5599  ;;  %10740 = vrcp.f32 %v5602_v60  ;;  %5807 = vadd.xlane.f32.xlu0 %v5758_v48  ;;  %v13220_v39 = vmul.f32 %v10731_v49, %v13060_v31 }
 0xb87   :  { %10742 = vrcp.f32 %v5600_v25  ;;  %v5761_v17 = vmul.f32 %v13217_v55, %v12861_v20  ;;  %5729 = vst [vmem:[#allocation28 + $0xa0] sm:$0xff] %v13217_v55 }
 0xb88   :  { %v10733_v37 = vpop.eup %10732  ;;  %v5760_v46 = vmul.f32 %v13220_v39, %v12861_v20  ;;  %5728 = vst [vmem:[#allocation28 + $0x98] sm:$0xff] %v13220_v39 }
 0xb89   :  { %v10735_v34 = vpop.eup %10734  ;;  %5813 = vadd.xlane.f32.xlu1 %v5761_v17  ;;  %v5606_v47 = vpop.xlane.xlu1 %5605  ;;  %v13229_v63 = vmul.f32 %v10733_v37, %v13066_v21 }
 0xb8a   :  { %v5604_v41 = vpop.xlane.xlu0 %5603  ;;  %10744 = vrcp.f32 %v5606_v47  ;;  %5811 = vadd.xlane.f32.xlu0 %v5760_v46  ;;  %v13232_v31 = vmul.f32 %v10735_v34, %v13068_v18 }
 0xb8b   :  { %10746 = vrcp.f32 %v5604_v41  ;;  %v5763_v56 = vmul.f32 %v13229_v63, %v12861_v20  ;;  %5731 = vst [vmem:[#allocation28 + $0xb0] sm:$0xff] %v13229_v63 }
 0xb8c   :  { %v10737_v45 = vpop.eup %10736  ;;  %v5762_v52 = vmul.f32 %v13232_v31, %v12861_v20  ;;  %5730 = vst [vmem:[#allocation28 + $0xa8] sm:$0xff] %v13232_v31 }
 0xb8d   :  { %v10739_v29 = vpop.eup %10738  ;;  %5817 = vadd.xlane.f32.xlu1 %v5763_v56  ;;  %v5610_v21 = vpop.xlane.xlu1 %5609  ;;  %v13241_v49 = vmul.f32 %v10737_v45, %v13074_v11 }
 0xb8e   :  { %v5608_v48 = vpop.xlane.xlu0 %5607  ;;  %10748 = vrcp.f32 %v5610_v21  ;;  %5815 = vadd.xlane.f32.xlu0 %v5762_v52  ;;  %v13244_v18 = vmul.f32 %v10739_v29, %v13076_v14 }
 0xb8f   :  { %10750 = vrcp.f32 %v5608_v48  ;;  %v5765_v60 = vmul.f32 %v13241_v49, %v12861_v20  ;;  %5733 = vst [vmem:[#allocation28 + $0xc0] sm:$0xff] %v13241_v49 }
 0xb90   :  { %v10741_v25 = vpop.eup %10740  ;;  %v5764_v17 = vmul.f32 %v13244_v18, %v12861_v20  ;;  %5732 = vst [vmem:[#allocation28 + $0xb8] sm:$0xff] %v13244_v18 }
 0xb91   :  { %v10743_v37 = vpop.eup %10742  ;;  %5821 = vadd.xlane.f32.xlu1 %v5765_v60  ;;  %v13253_v46 = vmul.f32 %v10741_v25, %v13081_v59 }
 0xb92   :  { %v5612_v11 = vpop.xlane.xlu0 %5611  ;;  %5819 = vadd.xlane.f32.xlu0 %v5764_v17  ;;  %v13256_v14 = vmul.f32 %v10743_v37, %v13083_v23  ;;  %v5839_v37 = vmul.f32 %v13115_v27, %v12773_v19  ;;  %v5844_v27 = vmul.f32 %v13148_v57, %v12773_v19  ;;  %v5850_v57 = vmul.f32 %v13184_v13, %v12773_v19 }
 0xb93   :  { %10752 = vrcp.f32 %v5612_v11  ;;  %v5767_v34 = vmul.f32 %v13253_v46, %v12861_v20  ;;  %5735 = vst [vmem:[#allocation28 + $0xd0] sm:$0xff] %v13253_v46  ;;  %v5838_v11 = vmul.f32 %v13103_v24, %v12773_v19  ;;  %v5845_v24 = vmul.f32 %v13145_v15, %v12773_v19 }
 0xb94   :  { %v10745_v47 = vpop.eup %10744  ;;  %v5766_v41 = vmul.f32 %v13256_v14, %v12861_v20  ;;  %5734 = vst [vmem:[#allocation28 + $0xc8] sm:$0xff] %v13256_v14  ;;  %v5851_v15 = vmul.f32 %v13181_v12, %v12773_v19  ;;  %v5857_v12 = vmul.f32 %v13217_v55, %v12864_v51  ;;  %v5856_v13 = vmul.f32 %v13220_v39, %v12864_v51 }
 0xb95   :  { %v10747_v56 = vpop.eup %10746  ;;  %5825 = vadd.xlane.f32.xlu1 %v5767_v34  ;;  %v13265_v59 = vmul.f32 %v10745_v47, %v13087_v50  ;;  %v5842_v34 = vmul.f32 %v13136_v16, %v12773_v19  ;;  %v5848_v16 = vmul.f32 %v13172_v40, %v12773_v19  ;;  %v5854_v40 = vmul.f32 %v13208_v44, %v12864_v51 }
 0xb96   :  { %5823 = vadd.xlane.f32.xlu0 %v5766_v41  ;;  %v13268_v23 = vmul.f32 %v10747_v56, %v13089_v61  ;;  %v5863_v44 = vmul.f32 %v13253_v46, %v12864_v51  ;;  %v5862_v55 = vmul.f32 %v13256_v14, %v12864_v51 }
 0xb97   :  { %v5769_v45 = vmul.f32 %v13265_v59, %v12861_v20  ;;  %5737 = vst [vmem:[#allocation28 + $0xe0] sm:$0xff] %v13265_v59  ;;  %v5865_v39 = vmul.f32 %v13265_v59, %v12864_v51 }
 0xb98   :  { %v10749_v52 = vpop.eup %10748  ;;  %v5768_v29 = vmul.f32 %v13268_v23, %v12861_v20  ;;  %5736 = vst [vmem:[#allocation28 + $0xd8] sm:$0xff] %v13268_v23 }
 0xb99   :  { %v10751_v21 = vpop.eup %10750  ;;  %5829 = vadd.xlane.f32.xlu1 %v5769_v45  ;;  %v13277_v50 = vmul.f32 %v10749_v52, %v13093_v35  ;;  %v5837_v35 = vmul.f32 %v13106_v26, %v12773_v19  ;;  %v5840_v26 = vmul.f32 %v13124_v43, %v12773_v19  ;;  %v5846_v43 = vmul.f32 %v13160_v28, %v12773_v19 }
 0xb9a   :  { %5827 = vadd.xlane.f32.xlu0 %v5768_v29  ;;  %v13280_v61 = vmul.f32 %v10751_v21, %v13095_v42  ;;  %v5852_v28 = vmul.f32 %v13196_v38, %v12773_v19  ;;  %v5861_v38 = vmul.f32 %v13241_v49, %v12864_v51 }
 0xb9b   :  { %v5771_v48 = vmul.f32 %v13277_v50, %v12861_v20  ;;  %5739 = vst [vmem:[#allocation28 + $0xf0] sm:$0xff] %v13277_v50 }
 0xb9c   :  { %v5770_v25 = vmul.f32 %v13280_v61, %v12861_v20  ;;  %5738 = vst [vmem:[#allocation28 + $0xe8] sm:$0xff] %v13280_v61  ;;  %v5866_v49 = vmul.f32 %v13280_v61, %v12864_v51 }
 0xb9d   :  { %v10753_v60 = vpop.eup %10752  ;;  %5833 = vadd.xlane.f32.xlu1 %v5771_v48 }
 0xb9e   :  { %v13289_v17 = vmul.f32 %v10753_v60, %v13099_v30  ;;  %5831 = vadd.xlane.f32.xlu0 %v5770_v25  ;;  %v5841_v30 = vmul.f32 %v13121_v58, %v12773_v19  ;;  %v5847_v58 = vmul.f32 %v13157_v33, %v12773_v19  ;;  %v5853_v33 = vmul.f32 %v13193_v36, %v12864_v51 }
 0xb9f   :  { %v5858_v36 = vmul.f32 %v13232_v31, %v12864_v51  ;;  %v5867_v31 = vmul.f32 %v13277_v50, %v12864_v51 }
 0xba0   :  { %v5772_v42 = vmul.f32 %v13289_v17, %v12861_v20  ;;  %5740 = vst [vmem:[#allocation28 + $0xf8] sm:$0xff] %v13289_v17  ;;  %v5843_v20 = vmul.f32 %v13133_v22, %v12773_v19  ;;  %v5849_v22 = vmul.f32 %v13169_v32, %v12773_v19  ;;  %v5855_v32 = vmul.f32 %v13205_v10, %v12864_v51 }
 0xba1   :  { %5869 = vadd.xlane.f32.xlu1 %v5837_v35  ;;  %v5859_v19 = vmul.f32 %v13229_v63, %v12864_v51  ;;  %v5860_v10 = vmul.f32 %v13244_v18, %v12864_v51  ;;  %v5864_v63 = vmul.f32 %v13268_v23, %v12864_v51  ;;  %v5868_v18 = vmul.f32 %v13289_v17, %v12864_v51 }
 0xba2   :  { %5835 = vadd.xlane.f32.xlu0 %v5772_v42 }
 0xba5   :  { %5873 = vadd.xlane.f32.xlu1 %v5839_v37 }
 0xba6   :  { %5871 = vadd.xlane.f32.xlu0 %v5838_v11 }
 0xba9   :  { %5877 = vadd.xlane.f32.xlu1 %v5841_v30 }
 0xbaa   :  { %5875 = vadd.xlane.f32.xlu0 %v5840_v26 }
 0xbad   :  { %5881 = vadd.xlane.f32.xlu1 %v5843_v20 }
 0xbae   :  { %5879 = vadd.xlane.f32.xlu0 %v5842_v34 }
 0xbb1   :  { %5885 = vadd.xlane.f32.xlu1 %v5845_v24 }
 0xbb2   :  { %5883 = vadd.xlane.f32.xlu0 %v5844_v27 }
 0xbb5   :  { %5889 = vadd.xlane.f32.xlu1 %v5847_v58 }
 0xbb6   :  { %5887 = vadd.xlane.f32.xlu0 %v5846_v43 }
 0xbb9   :  { %5893 = vadd.xlane.f32.xlu1 %v5849_v22 }
 0xbba   :  { %5891 = vadd.xlane.f32.xlu0 %v5848_v16 }
 0xbbd   :  { %5897 = vadd.xlane.f32.xlu1 %v5851_v15 }
 0xbbe   :  { %5895 = vadd.xlane.f32.xlu0 %v5850_v57 }
 0xbc1   :  { %5901 = vadd.xlane.f32.xlu1 %v5853_v33 }
 0xbc2   :  { %5899 = vadd.xlane.f32.xlu0 %v5852_v28 }
 0xbc5   :  { %5905 = vadd.xlane.f32.xlu1 %v5855_v32 }
 0xbc6   :  { %5903 = vadd.xlane.f32.xlu0 %v5854_v40 }
 0xbc9   :  { %5909 = vadd.xlane.f32.xlu1 %v5857_v12 }
 0xbca   :  { %5907 = vadd.xlane.f32.xlu0 %v5856_v13 }
 0xbcd   :  { %5913 = vadd.xlane.f32.xlu1 %v5859_v19 }
 0xbce   :  { %5911 = vadd.xlane.f32.xlu0 %v5858_v36 }
 0xbd1   :  { %5917 = vadd.xlane.f32.xlu1 %v5861_v38 }
 0xbd2   :  { %5915 = vadd.xlane.f32.xlu0 %v5860_v10 }
 0xbd5   :  { %5921 = vadd.xlane.f32.xlu1 %v5863_v44 }
 0xbd6   :  { %5919 = vadd.xlane.f32.xlu0 %v5862_v55 }
 0xbd9   :  { %5925 = vadd.xlane.f32.xlu1 %v5865_v39 }
 0xbda   :  { %5923 = vadd.xlane.f32.xlu0 %v5864_v63 }
 0xbdd   :  { %5929 = vadd.xlane.f32.xlu1 %v5867_v31 }
 0xbde   :  { %5927 = vadd.xlane.f32.xlu0 %v5866_v49  ;;  %v10411_v49 = vpack.c.bf16 %v11561_v1, %v11556_v0 }
 0xbe2   :  { %5931 = vadd.xlane.f32.xlu0 %v5868_v18 }
 0xbed   :  { %v13358_v46 = vpop.xlane.xlu0 %5775 }
 0xbee   :  { %v13360_v14 = vpop.xlane.xlu1 %5773 }
 0xbf2   :  { %v13364_v56 = vpop.xlane.xlu1 %5777 }
 0xbf6   :  { %v13367_v23 = vpop.xlane.xlu1 %5781 }
 0xbf7   :  { %v13370_v52 = vpop.xlane.xlu0 %5779 }
 0xbfa   :  { %v13373_v29 = vpop.xlane.xlu1 %5785 }
 0xbfb   :  { %v13376_v50 = vpop.xlane.xlu0 %5783 }
 0xbfe   :  { %v13379_v48 = vpop.xlane.xlu1 %5789 }
 0xbff   :  { %v13382_v25 = vpop.xlane.xlu0 %5787 }
 0xc02   :  { %v13385_v35 = vpop.xlane.xlu1 %5793 }
 0xc03   :  { %v13388_v37 = vpop.xlane.xlu0 %5791 }
 0xc06   :  { %v13391_v30 = vpop.xlane.xlu1 %5797 }
 0xc07   :  { %v13394_v20 = vpop.xlane.xlu0 %5795 }
 0xc0a   :  { %v13397_v24 = vpop.xlane.xlu1 %5801 }
 0xc0b   :  { %v13400_v58 = vpop.xlane.xlu0 %5799 }
 0xc0e   :  { %v13403_v22 = vpop.xlane.xlu1 %5805 }
 0xc0f   :  { %v13406_v15 = vpop.xlane.xlu0 %5803 }
 0xc12   :  { %v13409_v33 = vpop.xlane.xlu1 %5809 }
 0xc13   :  { %v13412_v32 = vpop.xlane.xlu0 %5807 }
 0xc16   :  { %v13415_v12 = vpop.xlane.xlu1 %5813 }
 0xc17   :  { %v13418_v19 = vpop.xlane.xlu0 %5811 }
 0xc1a   :  { %v13421_v38 = vpop.xlane.xlu1 %5817 }
 0xc1b   :  { %v13424_v44 = vpop.xlane.xlu0 %5815 }
 0xc1e   :  { %v13427_v39 = vpop.xlane.xlu1 %5821 }
 0xc1f   :  { %v13430_v31 = vpop.xlane.xlu0 %5819 }
 0xc22   :  { %v13433_v18 = vpop.xlane.xlu1 %5825 }
 0xc23   :  { %v13436_v27 = vpop.xlane.xlu0 %5823 }
 0xc26   :  { %v13439_v10 = vpop.xlane.xlu1 %5829 }
 0xc27   :  { %v13442_v13 = vpop.xlane.xlu0 %5827 }
 0xc2a   :  { %v13445_v36 = vpop.xlane.xlu1 %5833 }
 0xc2b   :  { %16134 = vst [vmem:[#allocation118_spill] sm:$0xff] %v13445_v36  ;;  %v13448_v26 = vpop.xlane.xlu0 %5831 }
 0xc2e   :  { %v13451_v28 = vpop.xlane.xlu1 %5869 }
 0xc2f   :  { %v13454_v40 = vpop.xlane.xlu0 %5835 }
 0xc30   :  { %16135 = vst [vmem:[#allocation119_spill] sm:$0xff] %v13454_v40 }
 0xc32   :  { %v13457_v16 = vpop.xlane.xlu1 %5873 }
 0xc33   :  { %v13460_v34 = vpop.xlane.xlu0 %5871 }
 0xc36   :  { %v13463_v42 = vpop.xlane.xlu1 %5877 }
 0xc37   :  { %v13466_v11 = vpop.xlane.xlu0 %5875 }
 0xc3a   :  { %v13469_v60 = vpop.xlane.xlu1 %5881 }
 0xc3b   :  { %v13472_v17 = vpop.xlane.xlu0 %5879 }
 0xc3e   :  { %v13475_v21 = vpop.xlane.xlu1 %5885 }
 0xc3f   :  { %v13478_v61 = vpop.xlane.xlu0 %5883 }
 0xc42   :  { %v13481_v45 = vpop.xlane.xlu1 %5889 }
 0xc43   :  { %16136 = vst [vmem:[#allocation120_spill] sm:$0xff] %v13481_v45  ;;  %v13484_v51 = vpop.xlane.xlu0 %5887 }
 0xc46   :  { %v13487_v59 = vpop.xlane.xlu1 %5893 }
 0xc47   :  { %16137 = vst [vmem:[#allocation121_spill] sm:$0xff] %v13487_v59  ;;  %v13490_v47 = vpop.xlane.xlu0 %5891 }
 0xc48   :  { %16138 = vst [vmem:[#allocation122_spill] sm:$0xff] %v13490_v47 }
 0xc4a   :  { %v13493_v41 = vpop.xlane.xlu1 %5897 }
 0xc4b   :  { %16139 = vst [vmem:[#allocation123_spill] sm:$0xff] %v13493_v41  ;;  %v13496_v40 = vpop.xlane.xlu0 %5895 }
 0xc4c   :  { %16140 = vst [vmem:[#allocation124_spill] sm:$0xff] %v13496_v40 }
 0xc4e   :  { %v13499_v36 = vpop.xlane.xlu1 %5901 }
 0xc4f   :  { %16141 = vst [vmem:[#allocation125_spill] sm:$0xff] %v13499_v36  ;;  %v13502_v45 = vpop.xlane.xlu0 %5899 }
 0xc50   :  { %16142 = vst [vmem:[#allocation126_spill] sm:$0xff] %v13502_v45 }
 0xc52   :  { %v13505_v59 = vpop.xlane.xlu1 %5905 }
 0xc53   :  { %16143 = vst [vmem:[#allocation127_spill] sm:$0xff] %v13505_v59  ;;  %v13508_v47 = vpop.xlane.xlu0 %5903 }
 0xc54   :  { %16144 = vst [vmem:[#allocation128_spill] sm:$0xff] %v13508_v47 }
 0xc56   :  { %v13511_v41 = vpop.xlane.xlu1 %5909 }
 0xc57   :  { %16145 = vst [vmem:[#allocation129_spill] sm:$0xff] %v13511_v41  ;;  %v13514_v40 = vpop.xlane.xlu0 %5907 }
 0xc58   :  { %16146 = vst [vmem:[#allocation130_spill] sm:$0xff] %v13514_v40 }
 0xc5a   :  { %v13517_v36 = vpop.xlane.xlu1 %5913 }
 0xc5b   :  { %16147 = vst [vmem:[#allocation131_spill] sm:$0xff] %v13517_v36  ;;  %v13520_v45 = vpop.xlane.xlu0 %5911 }
 0xc5c   :  { %16148 = vst [vmem:[#allocation132_spill] sm:$0xff] %v13520_v45 }
 0xc5e   :  { %v13523_v59 = vpop.xlane.xlu1 %5917 }
 0xc5f   :  { %16149 = vst [vmem:[#allocation133_spill] sm:$0xff] %v13523_v59  ;;  %v13526_v47 = vpop.xlane.xlu0 %5915 }
 0xc60   :  { %16150 = vst [vmem:[#allocation134_spill] sm:$0xff] %v13526_v47 }
 0xc62   :  { %v13529_v41 = vpop.xlane.xlu1 %5921 }
 0xc63   :  { %16151 = vst [vmem:[#allocation135_spill] sm:$0xff] %v13529_v41  ;;  %v13532_v40 = vpop.xlane.xlu0 %5919 }
 0xc64   :  { %16152 = vst [vmem:[#allocation136_spill] sm:$0xff] %v13532_v40  ;;  %v16158_v40 = vmov 0.0|0.0  }
 0xc65   :  { %10410 = vmatprep.subr.bf16.mxu0 %v16158_v40 }
 0xc66   :  { %v13535_v36 = vpop.xlane.xlu1 %5925 }
 0xc67   :  { %16153 = vst [vmem:[#allocation137_spill] sm:$0xff] %v13535_v36  ;;  %v13538_v45 = vpop.xlane.xlu0 %5923 }
 0xc68   :  { %16154 = vst [vmem:[#allocation138_spill] sm:$0xff] %v13538_v45 }
 0xc6a   :  { %v13541_v59 = vpop.xlane.xlu1 %5929 }
 0xc6b   :  { %16155 = vst [vmem:[#allocation139_spill] sm:$0xff] %v13541_v59  ;;  %v13544_v47 = vpop.xlane.xlu0 %5927 }
 0xc6c   :  { %16156 = vst [vmem:[#allocation140_spill] sm:$0xff] %v13544_v47 }
 0xc6f   :  { %v13547_v41 = vpop.xlane.xlu0 %5931 }
 0xc70   :  { %16157 = vst [vmem:[#allocation141_spill] sm:$0xff] %v13547_v41 }
 0xc71   :  { %11234 = dma.done.wait [#allocation9 + $0x2], 6144 }
 0xc72   :  { %11235 = vsyncadd [#allocation9 + $0x2], 4294961152  ;;  %10412 = vmatpush3.bf16.msra.mxu0 %v10411_v49  ;;  %v10414_v57 = vpack.c.bf16 %v11571_v3, %v11566_v2  ;;  %v10417_v43 = vpack.c.bf16 %v11581_v5, %v11576_v4  ;;  %v13558_v55 = vand.u32 127, %v16116_v54  ;;  %v10420_v63 = vpack.c.bf16 %v11591_v7, %v11586_v6 }
 0xc73   :  { %10413 = vmatprep.subr.bf16.mxu0 %v16158_v40  ;;  %vm15956_vm2 = vmmov 0   ;;  %vm6092_vm3 = vcmask 130112   ;;  %vm6099_vm4 = vcmask 195712   ;;  %v16160_v49 = vmax.f32 %v13360_v14, 0.0 }
 0xc74   :  { %9991 = vmatprep.mubr.msk.f32.mxu0 %vm15956_vm2, %v16127_v62  ;;  %v13569_v1 = vsub.s32 %v13558_v55, %v11957_v53  ;;  %v6087_v2 = vadd.s32 4294967288, %v13558_v55  ;;  %v6094_v3 = vadd.s32 4294967280, %v13558_v55  ;;  %v6101_v4 = vadd.s32 4294967272, %v13558_v55 }
 0xc75   :  { %v6108_v5 = vadd.s32 4294967264, %v13558_v55  ;;  %v6115_v6 = vadd.s32 4294967256, %v13558_v55  ;;  %v6122_v7 = vadd.s32 4294967248, %v13558_v55  ;;  %v6129_v54 = vadd.s32 4294967240, %v13558_v55 }
 0xc76   :  { %16159 = vst [vmem:[#allocation142_spill] sm:$0xff] %v13569_v1  ;;  %10415 = vmatpush3.bf16.msra.mxu0 %v10414_v57  ;;  %v6086_v0 = vrot.slane %v16160_v49, %v13569_v1  ;;  %v13582_v62 = vsub.s32 %v6087_v2, %v11957_v53  ;;  %v13585_v41 = vsub.s32 %v6094_v3, %v11957_v53  ;;  %v16168_v3 = vmax.f32 %v13358_v46, 0.0 }
 0xc77   :  { %v13588_v59 = vsub.s32 %v6101_v4, %v11957_v53  ;;  %10416 = vmatprep.subr.bf16.mxu0 %v16158_v40  ;;  %v13592_v47 = vsub.s32 %v6108_v5, %v11957_v53  ;;  %v13595_v57 = vsub.s32 %v6115_v6, %v11957_v53  ;;  %v13598_v14 = vsub.s32 %v6122_v7, %v11957_v53 }
 0xc78   :  { %16161 = vst [vmem:[#allocation143_spill] sm:$0xff] %v13582_v62  ;;  %16162 = vst [vmem:[#allocation144_spill] sm:$0xff] %v13585_v41  ;;  %v13601_v2 = vsub.s32 %v6129_v54, %v11957_v53  ;;  %v6091_v49 = vrot.slane %v16168_v3, %v13582_v62  ;;  %v16169_v4 = vmax.f32 %v13364_v56, 0.0  ;;  %v16170_v5 = vmax.f32 %v13370_v52, 0.0 }
 0xc79   :  { %16163 = vst [vmem:[#allocation145_spill] sm:$0xff] %v13588_v59  ;;  %16164 = vst [vmem:[#allocation146_spill] sm:$0xff] %v13592_v47  ;;  %vm6106_vm5 = vcmask 261312   ;;  %v16171_v6 = vmax.f32 %v13367_v23, 0.0  ;;  %vm6113_vm6 = vcmask 326912   ;;  %vm6120_vm7 = vcmask 392512  }
 0xc7a   :  { %16165 = vst [vmem:[#allocation147_spill] sm:$0xff] %v13595_v57  ;;  %16166 = vst [vmem:[#allocation148_spill] sm:$0xff] %v13598_v14  ;;  %v6098_v36 = vrot.slane %v16169_v4, %v13585_v41  ;;  %v6105_v45 = vrot.slane %v16170_v5, %v13588_v59  ;;  %vm6127_vm8 = vcmask 458112   ;;  %10418 = vmatpush3.bf16.msra.mxu0 %v10417_v43  ;;  %v6093_v46 = vsel %vm6092_vm3, %v6091_v49, %v6086_v0 }
 0xc7b   :  { %16167 = vst [vmem:[#allocation149_spill] sm:$0xff] %v13601_v2  ;;  %v6112_v7 = vrot.slane %v16171_v6, %v13592_v47  ;;  %v16172_v54 = vmax.f32 %v13376_v50, 0.0  ;;  %v6136_v3 = vadd.s32 4294967232, %v13558_v55  ;;  %v6143_v52 = vadd.s32 4294967224, %v13558_v55  ;;  %10419 = vmatprep.subr.bf16.mxu0 %v16158_v40 }
 0xc7c   :  { %v6100_v4 = vsel %vm6099_vm4, %v6098_v36, %v6093_v46  ;;  %v16173_v23 = vmax.f32 %v13373_v29, 0.0  ;;  %v16174_v43 = vmax.f32 %v13382_v25, 0.0  ;;  %v6150_v49 = vadd.s32 4294967216, %v13558_v55 }
 0xc7d   :  { %v6119_v56 = vrot.slane %v16172_v54, %v13595_v57  ;;  %v6107_v50 = vsel %vm6106_vm5, %v6105_v45, %v6100_v4  ;;  %v13632_v6 = vsub.s32 %v6136_v3, %v11957_v53  ;;  %v13635_v54 = vsub.s32 %v6143_v52, %v11957_v53 }
 0xc7e   :  { %v6126_v5 = vrot.slane %v16173_v23, %v13598_v14  ;;  %v6133_v0 = vrot.slane %v16174_v43, %v13601_v2  ;;  %v6157_v36 = vadd.s32 4294967208, %v13558_v55  ;;  %v6114_v46 = vsel %vm6113_vm6, %v6112_v7, %v6107_v50  ;;  %10421 = vmatpush3.bf16.msra.mxu0 %v10420_v63 }
 0xc7f   :  { %16175 = vst [vmem:[#allocation150_spill] sm:$0xff] %v13632_v6  ;;  %16176 = vst [vmem:[#allocation151_spill] sm:$0xff] %v13635_v54  ;;  %vm6134_vm9 = vcmask 523712   ;;  %v13640_v29 = vsub.s32 %v6150_v49, %v11957_v53  ;;  %v6164_v25 = vadd.s32 4294967200, %v13558_v55  ;;  %v6121_v23 = vsel %vm6120_vm7, %v6119_v56, %v6114_v46  ;;  %10422 = vmatprep.subr.bf16.mxu0 %v16158_v40  ;;  %v16185_v46 = vld [vmem:[#allocation53_spill] sm:$0xff] }
 0xc80   :  { %v16178_v45 = vmax.f32 %v13379_v48, 0.0  ;;  %vm6141_vm11 = vcmask 589312   ;;  %v16179_v52 = vmax.f32 %v13388_v37, 0.0  ;;  %v6128_v7 = vsel %vm6127_vm8, %v6126_v5, %v6121_v23 }
 0xc81   :  { %16177 = vst [vmem:[#allocation152_spill] sm:$0xff] %v13640_v29  ;;  %vm15959_vm12 = vcmask 654912   ;;  %v13653_v43 = vsub.s32 %v6157_v36, %v11957_v53  ;;  %v6135_v63 = vsel %vm6134_vm9, %v6133_v0, %v6128_v7  ;;  %v16181_v56 = vmax.f32 %v13385_v35, 0.0  ;;  %v16184_v36 = vld [vmem:[#allocation52_spill] sm:$0xff] }
 0xc82   :  { %v6140_v3 = vrot.slane %v16178_v45, %v13632_v6  ;;  %v6147_v4 = vrot.slane %v16179_v52, %v13635_v54  ;;  %vm15958_vm13 = vcmask 720512   ;;  %v13661_v37 = vsub.s32 %v6164_v25, %v11957_v53  ;;  %v16186_v45 = vld [vmem:[#allocation54_spill] sm:$0xff] }
 0xc83   :  { %16180 = vst [vmem:[#allocation153_spill] sm:$0xff] %v13653_v43  ;;  %v6154_v48 = vrot.slane %v16181_v56, %v13640_v29  ;;  %v6171_v50 = vadd.s32 4294967192, %v13558_v55  ;;  %v16183_v5 = vpack.c.bf16 %v11601_v9, %v11596_v8  ;;  %v10426_v23 = vpack.c.bf16 %v16185_v46, %v16184_v36 }
 0xc84   :  { %v6142_v49 = vsel %vm6141_vm11, %v6140_v3, %v6135_v63  ;;  %16182 = vst [vmem:[#allocation154_spill] sm:$0xff] %v13661_v37  ;;  %v6178_v35 = vadd.s32 4294967184, %v13558_v55  ;;  %v16187_v3 = vld [vmem:[#allocation55_spill] sm:$0xff]  ;;  %v16188_v25 = vmax.f32 %v13394_v20, 0.0  ;;  %v16189_v8 = vmax.f32 %v13403_v22, 0.0 }
 0xc85   :  { %10424 = vmatpush3.bf16.msra.mxu0 %v16183_v5  ;;  %v6149_v0 = vsel %vm15959_vm12, %v6147_v4, %v6142_v49  ;;  %v10429_v52 = vpack.c.bf16 %v16187_v3, %v16186_v45  ;;  %v16190_v63 = vmax.f32 %v13412_v32, 0.0  ;;  %vm6162_vm14 = vcmask 786112  }
 0xc86   :  { %10425 = vmatprep.subr.bf16.mxu0 %v16158_v40  ;;  %v6161_v7 = vrot.slane %v16188_v25, %v13653_v43  ;;  %v6195_v9 = vrot.slane %v16189_v8, %v13569_v1  ;;  %v6156_v4 = vsel %vm15958_vm13, %v6154_v48, %v6149_v0  ;;  %vm6169_vm15 = vcmask 851712  }
 0xc87   :  { %v6199_v56 = vrot.slane %v16190_v63, %v13582_v62  ;;  %v16191_v49 = vmax.f32 %v13409_v33, 0.0  ;;  %v16192_v20 = vmax.f32 %v13391_v30, 0.0  ;;  %v13691_v46 = vsub.s32 %v6171_v50, %v11957_v53 }
 0xc88   :  { %v16194_v32 = vmax.f32 %v13418_v19, 0.0  ;;  %v13698_v48 = vsub.s32 %v6178_v35, %v11957_v53  ;;  %v6185_v33 = vadd.s32 4294967176, %v13558_v55  ;;  %v16196_v30 = vmax.f32 %v13415_v12, 0.0 }
 0xc89   :  { %v6204_v5 = vrot.slane %v16191_v49, %v13585_v41  ;;  %v6168_v36 = vrot.slane %v16192_v20, %v13661_v37  ;;  %16193 = vst [vmem:[#allocation52_spill] sm:$0xff] %v13691_v46  ;;  %v6200_v22 = vsel %vm6092_vm3, %v6199_v56, %v6195_v9  ;;  %10427 = vmatpush3.bf16.msra.mxu0 %v10426_v23  ;;  %v16197_v19 = vmax.f32 %v13424_v44, 0.0  ;;  %v16201_v56 = vld [vmem:[#allocation56_spill] sm:$0xff] }
 0xc8a   :  { %v6209_v45 = vrot.slane %v16194_v32, %v13588_v59  ;;  %16195 = vst [vmem:[#allocation53_spill] sm:$0xff] %v13698_v48  ;;  %v6214_v3 = vrot.slane %v16196_v30, %v13592_v47  ;;  %10428 = vmatprep.subr.bf16.mxu0 %v16158_v40  ;;  %v6163_v50 = vsel %vm6162_vm14, %v6161_v7, %v6156_v4  ;;  %v16198_v35 = vmax.f32 %v13421_v38, 0.0  ;;  %v16202_v4 = vld [vmem:[#allocation57_spill] sm:$0xff] }
 0xc8b   :  { %v6205_v0 = vsel %vm6099_vm4, %v6204_v5, %v6200_v22  ;;  %v6219_v23 = vrot.slane %v16197_v19, %v13595_v57  ;;  %v16199_v12 = vmax.f32 %v13430_v31, 0.0  ;;  %v16200_v63 = vmax.f32 %v13427_v39, 0.0 }
 0xc8c   :  { %v6210_v25 = vsel %vm6106_vm5, %v6209_v45, %v6205_v0  ;;  %v6224_v55 = vrot.slane %v16198_v35, %v13598_v14  ;;  %v10432_v49 = vpack.c.bf16 %v16202_v4, %v16201_v56  ;;  %v16203_v44 = vmax.f32 %v13400_v58, 0.0 }
 0xc8d   :  { %v6215_v8 = vsel %vm6113_vm6, %v6214_v3, %v6210_v25  ;;  %v6229_v9 = vrot.slane %v16199_v12, %v13601_v2  ;;  %v6234_v7 = vrot.slane %v16200_v63, %v13632_v6  ;;  %v16204_v20 = vmax.f32 %v13436_v27, 0.0  ;;  %10430 = vmatpush3.bf16.msra.mxu0 %v10429_v52 }
 0xc8e   :  { %v6175_v5 = vrot.slane %v16203_v44, %v13691_v46  ;;  %v6220_v38 = vsel %vm6120_vm7, %v6219_v23, %v6215_v8  ;;  %v6170_v31 = vsel %vm6169_vm15, %v6168_v36, %v6163_v50  ;;  %vm16025_vm0 = vcmask 917312   ;;  %10431 = vmatprep.subr.bf16.mxu0 %v16158_v40 }
 0xc8f   :  { %v6239_v22 = vrot.slane %v16204_v20, %v13635_v54  ;;  %v13732_v39 = vsub.s32 %v6185_v33, %v11957_v53  ;;  %v6225_v32 = vsel %vm6127_vm8, %v6224_v55, %v6220_v38  ;;  %v16206_v58 = vmax.f32 %v13397_v24, 0.0 }
 0xc90   :  { %v6230_v0 = vsel %vm6134_vm9, %v6229_v9, %v6225_v32  ;;  %v16207_v27 = vmax.f32 %v13433_v18, 0.0  ;;  %v16208_v36 = vmax.f32 %v13451_v28, 0.0  ;;  %v16209_v3 = vmax.f32 %v13460_v34, 0.0 }
 0xc91   :  { %16205 = vst [vmem:[#allocation54_spill] sm:$0xff] %v13732_v39  ;;  %v6182_v45 = vrot.slane %v16206_v58, %v13698_v48  ;;  %v6235_v33 = vsel %vm6141_vm11, %v6234_v7, %v6230_v0  ;;  %v16210_v24 = vmax.f32 %v13457_v16, 0.0  ;;  %v16211_v19 = vmax.f32 %v13466_v11, 0.0  ;;  %10433 = vmatpush3.bf16.msra.mxu0 %v10432_v49 }
 0xc92   :  { %v6244_v52 = vrot.slane %v16207_v27, %v13640_v29  ;;  %v6309_v30 = vrot.slane %v16208_v36, %v13569_v1  ;;  %v6313_v50 = vrot.slane %v16209_v3, %v13582_v62  ;;  %v6177_v18 = vsel %vm16025_vm0, %v6175_v5, %v6170_v31 }
 0xc93   :  { %v6318_v25 = vrot.slane %v16210_v24, %v13585_v41  ;;  %v6323_v23 = vrot.slane %v16211_v19, %v13588_v59  ;;  %vm16024_vm1 = vcmask 982912   ;;  %v6240_v28 = vsel %vm15959_vm12, %v6239_v22, %v6235_v33  ;;  %v16230_v19 = vld [vmem:[#allocation122_spill] sm:$0xff] }
 0xc94   :  { %v16212_v35 = vmax.f32 %v13463_v42, 0.0  ;;  %v16213_v34 = vmax.f32 %v13442_v13, 0.0  ;;  %v6314_v16 = vsel %vm6092_vm3, %v6313_v50, %v6309_v30  ;;  %v16214_v11 = vmax.f32 %v13472_v17, 0.0  ;;  %v16226_v30 = vld [vmem:[#allocation128_spill] sm:$0xff]  ;;  %v16228_v50 = vld [vmem:[#allocation127_spill] sm:$0xff] }
 0xc95   :  { %v6245_v9 = vsel %vm15958_vm13, %v6244_v52, %v6240_v28  ;;  %v6319_v63 = vsel %vm6099_vm4, %v6318_v25, %v6314_v16  ;;  %v16215_v7 = vmax.f32 %v13469_v60, 0.0  ;;  %v6184_v56 = vsel %vm16024_vm1, %v6182_v45, %v6177_v18  ;;  %v16224_v52 = vld [vmem:[#allocation120_spill] sm:$0xff]  ;;  %v16232_v28 = vld [vmem:[#allocation130_spill] sm:$0xff] }
 0xc96   :  { %v6328_v55 = vrot.slane %v16212_v35, %v13592_v47  ;;  %v6249_v8 = vrot.slane %v16213_v34, %v13653_v43  ;;  %v6333_v12 = vrot.slane %v16214_v11, %v13595_v57  ;;  %v16216_v13 = vmax.f32 %v13406_v15, 0.0  ;;  %v16234_v34 = vld [vmem:[#allocation129_spill] sm:$0xff] }
 0xc97   :  { %v6338_v42 = vrot.slane %v16215_v7, %v13598_v14  ;;  %v6324_v49 = vsel %vm6106_vm5, %v6323_v23, %v6319_v63  ;;  %v16217_v17 = vmax.f32 %v13478_v61, 0.0  ;;  %v16218_v5 = vmax.f32 %v13439_v10, 0.0  ;;  %v16222_v10 = vld [vmem:[#allocation125_spill] sm:$0xff] }
 0xc98   :  { %v6189_v4 = vrot.slane %v16216_v13, %v13732_v39  ;;  %v16219_v60 = vmax.f32 %v13448_v26, 0.0  ;;  %v6329_v22 = vsel %vm6113_vm6, %v6328_v55, %v6324_v49  ;;  %v16220_v15 = vmax.f32 %v13475_v21, 0.0 }
 0xc99   :  { %v6343_v44 = vrot.slane %v16217_v17, %v13601_v2  ;;  %v6254_v38 = vrot.slane %v16218_v5, %v13661_v37  ;;  %v6250_v32 = vsel %vm6162_vm14, %v6249_v8, %v6245_v9  ;;  %v6334_v58 = vsel %vm6120_vm7, %v6333_v12, %v6329_v22  ;;  %v16236_v12 = vld [vmem:[#allocation121_spill] sm:$0xff] }
 0xc9a   :  { %v6259_v20 = vrot.slane %v16219_v60, %v13691_v46  ;;  %v6348_v31 = vrot.slane %v16220_v15, %v13632_v6  ;;  %v16221_v61 = vmax.f32 %v13484_v51, 0.0  ;;  %v16223_v0 = vmax.f32 %v16222_v10, 0.0  ;;  %v16240_v60 = vld [vmem:[#allocation131_spill] sm:$0xff] }
 0xc9b   :  { %vm16023_vm2 = vcmask 1048512   ;;  %v6339_v26 = vsel %vm6127_vm8, %v6338_v42, %v6334_v58  ;;  %v16225_v36 = vmax.f32 %v16224_v52, 0.0  ;;  %v16227_v33 = vmax.f32 %v16226_v30, 0.0  ;;  %v16238_v42 = vld [vmem:[#allocation132_spill] sm:$0xff] }
 0xc9c   :  { %v6353_v45 = vrot.slane %v16221_v61, %v13635_v54  ;;  %v6388_v27 = vrot.slane %v16223_v0, %v13569_v1  ;;  %v16229_v24 = vmax.f32 %v16228_v50, 0.0  ;;  %v6344_v25 = vsel %vm6134_vm9, %v6343_v44, %v6339_v26  ;;  %v16242_v58 = vld [vmem:[#allocation124_spill] sm:$0xff] }
 0xc9d   :  { %v6358_v21 = vrot.slane %v16225_v36, %v13640_v29  ;;  %v6392_v3 = vrot.slane %v16227_v33, %v13582_v62  ;;  %v16231_v23 = vmax.f32 %v16230_v19, 0.0  ;;  %v16233_v35 = vmax.f32 %v16232_v28, 0.0  ;;  %v16252_v28 = vld [vmem:[#allocation119_spill] sm:$0xff] }
 0xc9e   :  { %v6397_v51 = vrot.slane %v16229_v24, %v13585_v41  ;;  %v16235_v8 = vmax.f32 %v16234_v34, 0.0  ;;  %v6349_v11 = vsel %vm6141_vm11, %v6348_v31, %v6344_v25  ;;  %v16237_v9 = vmax.f32 %v16236_v12, 0.0  ;;  %v16250_v25 = vld [vmem:[#allocation136_spill] sm:$0xff] }
 0xc9f   :  { %v6363_v18 = vrot.slane %v16231_v23, %v13653_v43  ;;  %v6402_v55 = vrot.slane %v16233_v35, %v13588_v59  ;;  %v6393_v7 = vsel %vm6092_vm3, %v6392_v3, %v6388_v27  ;;  %v16239_v13 = vmax.f32 %v16238_v42, 0.0  ;;  %v16244_v27 = vld [vmem:[#allocation134_spill] sm:$0xff] }
 0xca0   :  { %v6407_v16 = vrot.slane %v16235_v8, %v13592_v47  ;;  %v6368_v63 = vrot.slane %v16237_v9, %v13661_v37  ;;  %v6255_v17 = vsel %vm6169_vm15, %v6254_v38, %v6250_v32  ;;  %v6354_v44 = vsel %vm15959_vm12, %v6353_v45, %v6349_v11  ;;  %v16246_v32 = vld [vmem:[#allocation118_spill] sm:$0xff] }
 0xca1   :  { %v6412_v49 = vrot.slane %v16239_v13, %v13595_v57  ;;  %v6398_v5 = vsel %vm6099_vm4, %v6397_v51, %v6393_v7  ;;  %v16241_v22 = vmax.f32 %v16240_v60, 0.0  ;;  %v6359_v31 = vsel %vm15958_vm13, %v6358_v21, %v6354_v44  ;;  %v16248_v21 = vld [vmem:[#allocation133_spill] sm:$0xff]  ;;  %v16258_v7 = vld [vmem:[#allocation138_spill] sm:$0xff] }
 0xca2   :  { %v16243_v61 = vmax.f32 %v16242_v58, 0.0  ;;  %v6403_v0 = vsel %vm6106_vm5, %v6402_v55, %v6398_v5  ;;  %v16245_v26 = vmax.f32 %v16244_v27, 0.0  ;;  %v16247_v45 = vmax.f32 %v16246_v32, 0.0  ;;  %v16254_v55 = vld [vmem:[#allocation123_spill] sm:$0xff]  ;;  %v16264_v58 = vld [vmem:[#allocation126_spill] sm:$0xff]  ;;  %v16266_v27 = vld [vmem:[#allocation140_spill] sm:$0xff] }
 0xca3   :  { %v6417_v15 = vrot.slane %v16241_v22, %v13598_v14  ;;  %v6364_v36 = vsel %vm6162_vm14, %v6363_v18, %v6359_v31  ;;  %v6408_v30 = vsel %vm6113_vm6, %v6407_v16, %v6403_v0  ;;  %v16249_v33 = vmax.f32 %v16248_v21, 0.0  ;;  %v16262_v22 = vld [vmem:[#allocation137_spill] sm:$0xff] }
 0xca4   :  { %v6373_v10 = vrot.slane %v16243_v61, %v13691_v46  ;;  %v6422_v38 = vrot.slane %v16245_v26, %v13601_v2  ;;  %v6264_v52 = vrot.slane %v16247_v45, %v13698_v48  ;;  %v6260_v50 = vsel %vm16025_vm0, %v6259_v20, %v6255_v17  ;;  %v16256_v20 = vld [vmem:[#allocation135_spill] sm:$0xff] }
 0xca5   :  { %v6427_v3 = vrot.slane %v16249_v33, %v13632_v6  ;;  %v6369_v24 = vsel %vm6169_vm15, %v6368_v63, %v6364_v36  ;;  %v6413_v51 = vsel %vm6120_vm7, %v6412_v49, %v6408_v30  ;;  %v16251_v19 = vmax.f32 %v16250_v25, 0.0  ;;  %v16260_v49 = vld [vmem:[#allocation74_spill] sm:$0xff]  ;;  %v16261_v17 = vld [vmem:[#allocation75_spill] sm:$0xff] }
 0xca6   :  { %v16253_v35 = vmax.f32 %v16252_v28, 0.0  ;;  %v16255_v34 = vmax.f32 %v16254_v55, 0.0  ;;  %v6418_v16 = vsel %vm6127_vm8, %v6417_v15, %v6413_v51  ;;  %v16257_v11 = vmax.f32 %v16256_v20, 0.0  ;;  %v16268_v36 = vld [vmem:[#allocation139_spill] sm:$0xff] }
 0xca7   :  { %v6432_v23 = vrot.slane %v16251_v19, %v13635_v54  ;;  %v6374_v9 = vsel %vm16025_vm0, %v6373_v10, %v6369_v24  ;;  %v6423_v63 = vsel %vm6134_vm9, %v6422_v38, %v6418_v16  ;;  %v16259_v42 = vmax.f32 %v16258_v7, 0.0  ;;  %v16275_v16 = vld [vmem:[#allocation77_spill] sm:$0xff] }
 0xca8   :  { %v6269_v18 = vrot.slane %v16253_v35, %v13732_v39  ;;  %v6378_v8 = vrot.slane %v16255_v34, %v13698_v48  ;;  %v6437_v12 = vrot.slane %v16257_v11, %v13640_v29  ;;  %v10434_v44 = vpack.c.bf16 %v16261_v17, %v16260_v49  ;;  %v16272_v35 = vld [vmem:[#allocation58_spill] sm:$0xff] }
 0xca9   :  { %v6442_v13 = vrot.slane %v16259_v42, %v13653_v43  ;;  %v6265_v5 = vsel %vm16024_vm1, %v6264_v52, %v6260_v50  ;;  %v6428_v60 = vsel %vm6141_vm11, %v6427_v3, %v6423_v63  ;;  %v16263_v15 = vmax.f32 %v16262_v22, 0.0  ;;  %v16270_v50 = vld [vmem:[#allocation141_spill] sm:$0xff]  ;;  %v16278_v42 = vld [vmem:[#allocation78_spill] sm:$0xff] }
 0xcaa   :  { %v16265_v61 = vmax.f32 %v16264_v58, 0.0  ;;  %v6433_v0 = vsel %vm15959_vm12, %v6432_v23, %v6428_v60  ;;  %v16267_v26 = vmax.f32 %v16266_v27, 0.0  ;;  %10435 = vmatprep.subr.bf16.mxu0 %v10434_v44  ;;  %v6191_v32 = vsel %vm16023_vm2, %v6189_v4, %v6184_v56  ;;  %v16277_v63 = vld [vmem:[#allocation61_spill] sm:$0xff]  ;;  %v16280_v17 = vld [vmem:[#allocation62_spill] sm:$0xff]  ;;  %v16281_v44 = vld [vmem:[#allocation63_spill] sm:$0xff] }
 0xcab   :  { %v6447_v31 = vrot.slane %v16263_v15, %v13661_v37  ;;  %v6379_v45 = vsel %vm16024_vm1, %v6378_v8, %v6374_v9  ;;  %v6438_v52 = vsel %vm15958_vm13, %v6437_v12, %v6433_v0  ;;  %v16269_v30 = vmax.f32 %v16268_v36, 0.0  ;;  %v16274_v8 = vld [vmem:[#allocation76_spill] sm:$0xff]  ;;  %v16283_v22 = vld [vmem:[#allocation81_spill] sm:$0xff]  ;;  %v16287_v0 = vld [vmem:[#allocation83_spill] sm:$0xff] }
 0xcac   :  { %v6383_v10 = vrot.slane %v16265_v61, %v13732_v39  ;;  %v6452_v38 = vrot.slane %v16267_v26, %v13691_v46  ;;  %v6270_v33 = vsel %vm16023_vm2, %v6269_v18, %v6265_v5  ;;  %vm6271_vm11 = vcmask 1041409   ;;  %v16273_v18 = vld [vmem:[#allocation59_spill] sm:$0xff]  ;;  %v16276_v9 = vld [vmem:[#allocation60_spill] sm:$0xff]  ;;  %v16285_v58 = vld [vmem:[#allocation65_spill] sm:$0xff] }
 0xcad   :  { %v6457_v21 = vrot.slane %v16269_v30, %v13698_v48  ;;  %v6443_v3 = vsel %vm6162_vm14, %v6442_v13, %v6438_v52  ;;  %v16271_v24 = vmax.f32 %v16270_v50, 0.0  ;;  %vm6464_vm13 = vcmask 1043459   ;;  %v16279_v13 = vld [vmem:[#allocation79_spill] sm:$0xff]  ;;  %v16282_v60 = vld [vmem:[#allocation80_spill] sm:$0xff]  ;;  %v16288_v26 = vld [vmem:[#allocation66_spill] sm:$0xff] }
 0xcae   :  { %v6448_v25 = vsel %vm6169_vm15, %v6447_v31, %v6443_v3  ;;  %v6384_v56 = vsel %vm16023_vm2, %v6383_v10, %v6379_v45  ;;  %v6272_v19 = vsel %vm6271_vm11, %v6270_v33, %v6191_v32  ;;  %vm6467_vm12 = vcmask 1041408   ;;  %v16284_v31 = vld [vmem:[#allocation64_spill] sm:$0xff]  ;;  %v16286_v10 = vld [vmem:[#allocation82_spill] sm:$0xff]  ;;  %v16291_v52 = vld [vmem:[#allocation85_spill] sm:$0xff] }
 0xcaf   :  { %v6462_v51 = vrot.slane %v16271_v24, %v13732_v39  ;;  %v6453_v4 = vsel %vm16025_vm0, %v6452_v38, %v6448_v25  ;;  %v10436_v55 = vpack.c.bf16 %v16273_v18, %v16272_v35  ;;  %v10438_v20 = vpack.c.bf16 %v16275_v16, %v16274_v8  ;;  %v16289_v38 = vld [vmem:[#allocation67_spill] sm:$0xff]  ;;  %v16290_v45 = vld [vmem:[#allocation84_spill] sm:$0xff]  ;;  %v16294_v3 = vld [vmem:[#allocation86_spill] sm:$0xff] }
 0xcb0   :  { %v6458_v23 = vsel %vm16024_vm1, %v6457_v21, %v6453_v4  ;;  %v10440_v7 = vpack.c.bf16 %v16277_v63, %v16276_v9  ;;  %v10442_v49 = vpack.c.bf16 %v16279_v13, %v16278_v42  ;;  %v10444_v5 = vpack.c.bf16 %v16281_v44, %v16280_v17  ;;  %v16292_v30 = vld [vmem:[#allocation68_spill] sm:$0xff]  ;;  %v16293_v21 = vld [vmem:[#allocation69_spill] sm:$0xff]  ;;  %v16295_v50 = vld [vmem:[#allocation87_spill] sm:$0xff] }
 0xcb1   :  { %v6463_v28 = vsel %vm16023_vm2, %v6462_v51, %v6458_v23  ;;  %v10446_v15 = vpack.c.bf16 %v16283_v22, %v16282_v60  ;;  %v10448_v61 = vpack.c.bf16 %v16285_v58, %v16284_v31  ;;  %v10450_v27 = vpack.c.bf16 %v16287_v0, %v16286_v10  ;;  %v16296_v51 = vld [vmem:[#allocation70_spill] sm:$0xff]  ;;  %v16297_v25 = vld [vmem:[#allocation71_spill] sm:$0xff]  ;;  %v16298_v4 = vld [vmem:[#allocation88_spill] sm:$0xff] }
 0xcb2   :  { %v6465_v34 = vsel %vm6464_vm13, %v6463_v28, %v6384_v56  ;;  %v6469_v11 = vsel %vm6271_vm11, %v6463_v28, %v6384_v56  ;;  %v10452_v32 = vpack.c.bf16 %v16289_v38, %v16288_v26  ;;  %v10454_v36 = vpack.c.bf16 %v16291_v52, %v16290_v45  ;;  %v16300_v28 = vld [vmem:[#allocation72_spill] sm:$0xff]  ;;  %v16301_v35 = vld [vmem:[#allocation73_spill] sm:$0xff] }
 0xcb3   :  { %v6468_v12 = vsel %vm6467_vm12, %v6272_v19, %v6465_v34  ;;  %v10456_v33 = vpack.c.bf16 %v16293_v21, %v16292_v30  ;;  %v10458_v24 = vpack.c.bf16 %v16295_v50, %v16294_v3  ;;  %v10460_v56 = vpack.c.bf16 %v16297_v25, %v16296_v51  ;;  %v16299_v19 = vld [vmem:[#allocation89_spill] sm:$0xff]  ;;  %v16303_v63 = vld [vmem:[#allocation116_spill] sm:$0xff] }
 0xcb4   :  { %9992 = vmatmul.mubr.f32.vlgmr.msra.gmra.mrb[30].mxu0 %v6468_v12  ;;  %v10462_v23 = vpack.c.bf16 %v16299_v19, %v16298_v4  ;;  %v10464_v18 = vpack.c.bf16 %v16301_v35, %v16300_v28  ;;  %v13942_v42 = vsub.s32 2, %v11957_v53  ;;  %v13949_v60 = vsub.s32 3, %v11957_v53  ;;  %v16308_v39 = vld [vmem:[#allocation117_spill] sm:$0xff] }
 0xcb5   :  { %10437 = vmatpush3.bf16.msra.mxu0 %v10436_v55  ;;  %9738 = vmatprep.mubr.msk.f32.mxu0 %vm6467_vm12, %v6469_v11  ;;  %v9737_v55 = vld [vmem:[#allocation25] ss:$0 sm:$0xff] }
 0xcb6   :  { %10439 = vmatprep.subr.bf16.mxu0 %v10438_v20  ;;  %v16302_v11 = vld [vmem:[#allocation115_spill] sm:$0xff]  ;;  %16304 = vst [vmem:[#allocation55_spill] sm:$0xff] %v13942_v42  ;;  %16305 = vst [vmem:[#allocation56_spill] sm:$0xff] %v13949_v60 }
 0xcb9   :  { %10441 = vmatpush3.bf16.msra.mxu0 %v10440_v7 }
 0xcba   :  { %10443 = vmatprep.subr.bf16.mxu0 %v10442_v49 }
 0xcbd   :  { %10445 = vmatpush3.bf16.msra.mxu0 %v10444_v5 }
 0xcbe   :  { %10447 = vmatprep.subr.bf16.mxu0 %v10446_v15 }
 0xcc1   :  { %10449 = vmatpush3.bf16.msra.mxu0 %v10448_v61 }
 0xcc2   :  { %10451 = vmatprep.subr.bf16.mxu0 %v10450_v27 }
 0xcc5   :  { %10453 = vmatpush3.bf16.msra.mxu0 %v10452_v32 }
 0xcc6   :  { %10455 = vmatprep.subr.bf16.mxu0 %v10454_v36 }
 0xcc9   :  { %10457 = vmatpush3.bf16.msra.mxu0 %v10456_v33 }
 0xcca   :  { %10459 = vmatprep.subr.bf16.mxu0 %v10458_v24 }
 0xccd   :  { %10461 = vmatpush3.bf16.msra.mxu0 %v10460_v56 }
 0xcce   :  { %10463 = vmatprep.subr.bf16.mxu0 %v10462_v23 }
 0xcd1   :  { %10465 = vmatpush3.bf16.msra.mxu0 %v10464_v18 }
 0xcd4   :  { %6613 = vmatmul.mubr.f32.vlgmr.msra.gmra.mrb[32].mxu0 %v6468_v12 }
 0xd87   :  { %v6544_v34 = vpop.f32.mrb[30].mxu0 }
 0xd88   :  { %v6545_v8 = vadd.f32 %v9737_v55, %v6544_v34  ;;  %v9993_v16 = vpop.f32.mrb[31].mxu0 }
 0xd8a   :  { %v13935_v20 = vmax.f32 %v6545_v8, 0.0 }
 0xd8c   :  { %v6623_v9 = vrot.slane %v13935_v20, %v16302_v11  ;;  %v6658_v12 = vrot.slane %v13935_v20, %v16303_v63  ;;  %v6877_v44 = vrot.slane %v13935_v20, %v13942_v42  ;;  %v6912_v31 = vrot.slane %v13935_v20, %v13949_v60 }
 0xd8d   :  { %v6697_v48 = vrot.slane %v13935_v20, %v16308_v39 }
 0xd8e   :  { %6633 = vbcast.lane.b32.xlu1 %v6623_v9, 272  ;;  %6625 = vbcast.lane.b32.xlu0 %v6623_v9, 256 }
 0xd8f   :  { %v6698_v29 = vcombine.high %v6697_v48, %v6697_v48 }
 0xd92   :  { %6637 = vbcast.lane.b32.xlu1 %v6623_v9, 280  ;;  %6629 = vbcast.lane.b32.xlu0 %v6623_v9, 264 }
 0xd96   :  { %6645 = vbcast.lane.b32.xlu1 %v6623_v9, 296  ;;  %6641 = vbcast.lane.b32.xlu0 %v6623_v9, 288 }
 0xd9a   :  { %6653 = vbcast.lane.b32.xlu1 %v6623_v9, 312  ;;  %6649 = vbcast.lane.b32.xlu0 %v6623_v9, 304 }
 0xd9e   :  { %6664 = vbcast.lane.b32.xlu1 %v6658_v12, 264  ;;  %6660 = vbcast.lane.b32.xlu0 %v6658_v12, 256 }
 0xda2   :  { %6672 = vbcast.lane.b32.xlu1 %v6658_v12, 280  ;;  %6668 = vbcast.lane.b32.xlu0 %v6658_v12, 272 }
 0xda6   :  { %6680 = vbcast.lane.b32.xlu1 %v6658_v12, 296  ;;  %6676 = vbcast.lane.b32.xlu0 %v6658_v12, 288 }
 0xda7   :  { %v9914_v7 = vpop.f32.mrb[32].mxu0 }
 0xda8   :  { %v9915_v13 = vpop.f32.mrb[33].mxu0 }
 0xda9   :  { %v9916_v49 = vadd.f32 %v9915_v13, %v9914_v7 }
 0xdaa   :  { %6688 = vbcast.lane.b32.xlu1 %v6658_v12, 312  ;;  %6684 = vbcast.lane.b32.xlu0 %v6658_v12, 304 }
 0xdab   :  { %v6615_v17 = vadd.f32 %v9916_v49, %v9737_v55 }
 0xdad   :  { %v13946_v5 = vmax.f32 %v6615_v17, 0.0 }
 0xdae   :  { %6883 = vbcast.lane.b32.xlu1 %v6877_v44, 264  ;;  %6879 = vbcast.lane.b32.xlu0 %v6877_v44, 256 }
 0xdaf   :  { %v6991_v22 = vrot.slane %v13946_v5, %v13942_v42  ;;  %v7026_v15 = vrot.slane %v13946_v5, %v13949_v60  ;;  %v6742_v58 = vrot.slane %v13946_v5, %v16302_v11  ;;  %v6777_v61 = vrot.slane %v13946_v5, %v16303_v63 }
 0xdb0   :  { %v6816_v37 = vrot.slane %v13946_v5, %v16308_v39  ;;  %v6705_v42 = vrot.slane %v6697_v48, %v16308_v39  ;;  %v6712_v63 = vrot.slane %v6698_v29, %v16308_v39 }
 0xdb2   :  { %6891 = vbcast.lane.b32.xlu1 %v6877_v44, 280  ;;  %6887 = vbcast.lane.b32.xlu0 %v6877_v44, 272  ;;  %v6817_v54 = vcombine.high %v6816_v37, %v6816_v37  ;;  %v6824_v6 = vrot.slane %v6816_v37, %v16308_v39  ;;  %v14047_v57 = vrot.slane %v6705_v42, %v16302_v11 }
 0xdb3   :  { %v6944_v37 = vcombine.high %v6705_v42, %v6705_v42  ;;  %v6945_v48 = vcombine.high %v6712_v63, %v6712_v63  ;;  %v14061_v42 = vrot.slane %v6712_v63, %v16302_v11 }
 0xdb4   :  { %v6831_v20 = vrot.slane %v6817_v54, %v16308_v39  ;;  %v14040_v5 = vrot.slane %v6824_v6, %v16302_v11  ;;  %v7058_v41 = vcombine.high %v6824_v6, %v6824_v6 }
 0xdb6   :  { %6899 = vbcast.lane.b32.xlu1 %v6877_v44, 296  ;;  %6895 = vbcast.lane.b32.xlu0 %v6877_v44, 288  ;;  %v7059_v29 = vcombine.high %v6831_v20, %v6831_v20 }
 0xdb8   :  { %v14079_v63 = vrot.slane %v7059_v29, %v16302_v11 }
 0xdba   :  { %6907 = vbcast.lane.b32.xlu1 %v6877_v44, 312  ;;  %6903 = vbcast.lane.b32.xlu0 %v6877_v44, 304 }
 0xdbe   :  { %6918 = vbcast.lane.b32.xlu1 %v6912_v31, 264  ;;  %6914 = vbcast.lane.b32.xlu0 %v6912_v31, 256 }
 0xdc2   :  { %6926 = vbcast.lane.b32.xlu1 %v6912_v31, 280  ;;  %6922 = vbcast.lane.b32.xlu0 %v6912_v31, 272 }
 0xdc6   :  { %6934 = vbcast.lane.b32.xlu1 %v6912_v31, 296  ;;  %6930 = vbcast.lane.b32.xlu0 %v6912_v31, 288 }
 0xdca   :  { %6942 = vbcast.lane.b32.xlu1 %v6912_v31, 312  ;;  %6938 = vbcast.lane.b32.xlu0 %v6912_v31, 304 }
 0xdce   :  { %6748 = vbcast.lane.b32.xlu1 %v6742_v58, 264  ;;  %6744 = vbcast.lane.b32.xlu0 %v6742_v58, 256 }
 0xdd2   :  { %6756 = vbcast.lane.b32.xlu1 %v6742_v58, 280  ;;  %6752 = vbcast.lane.b32.xlu0 %v6742_v58, 272 }
 0xdd6   :  { %6764 = vbcast.lane.b32.xlu1 %v6742_v58, 296  ;;  %6760 = vbcast.lane.b32.xlu0 %v6742_v58, 288 }
 0xdda   :  { %6772 = vbcast.lane.b32.xlu1 %v6742_v58, 312  ;;  %6768 = vbcast.lane.b32.xlu0 %v6742_v58, 304 }
 0xdde   :  { %6783 = vbcast.lane.b32.xlu1 %v6777_v61, 264  ;;  %6779 = vbcast.lane.b32.xlu0 %v6777_v61, 256 }
 0xde2   :  { %6791 = vbcast.lane.b32.xlu1 %v6777_v61, 280  ;;  %6787 = vbcast.lane.b32.xlu0 %v6777_v61, 272 }
 0xde6   :  { %6799 = vbcast.lane.b32.xlu1 %v6777_v61, 296  ;;  %6795 = vbcast.lane.b32.xlu0 %v6777_v61, 288 }
 0xdea   :  { %6807 = vbcast.lane.b32.xlu1 %v6777_v61, 312  ;;  %6803 = vbcast.lane.b32.xlu0 %v6777_v61, 304 }
 0xdee   :  { %6997 = vbcast.lane.b32.xlu1 %v6991_v22, 264  ;;  %6993 = vbcast.lane.b32.xlu0 %v6991_v22, 256 }
 0xdf2   :  { %7005 = vbcast.lane.b32.xlu1 %v6991_v22, 280  ;;  %7001 = vbcast.lane.b32.xlu0 %v6991_v22, 272 }
 0xdf6   :  { %7013 = vbcast.lane.b32.xlu1 %v6991_v22, 296  ;;  %7009 = vbcast.lane.b32.xlu0 %v6991_v22, 288 }
 0xdfa   :  { %7021 = vbcast.lane.b32.xlu1 %v6991_v22, 312  ;;  %7017 = vbcast.lane.b32.xlu0 %v6991_v22, 304 }
 0xdfe   :  { %7032 = vbcast.lane.b32.xlu1 %v7026_v15, 264  ;;  %7028 = vbcast.lane.b32.xlu0 %v7026_v15, 256 }
 0xe00   :  { %v13961_v10 = vpop.permute.xlu1 %6633  ;;  %v13963_v0 = vpop.permute.xlu0 %6625 }
 0xe01   :  { %v6723_v54 = vmul.f32 %v14047_v57, %v13963_v0  ;;  %v14070_v0 = vrot.slane %v6831_v20, %v16302_v11 }
 0xe02   :  { %7040 = vbcast.lane.b32.xlu1 %v7026_v15, 280  ;;  %7036 = vbcast.lane.b32.xlu0 %v7026_v15, 272 }
 0xe04   :  { %v13965_v27 = vpop.permute.xlu1 %6637  ;;  %v13967_v26 = vpop.permute.xlu0 %6629 }
 0xe05   :  { %v6724_v39 = vmul.f32 %v14047_v57, %v13967_v26  ;;  %v6725_v26 = vmul.f32 %v14047_v57, %v13961_v10 }
 0xe06   :  { %7048 = vbcast.lane.b32.xlu1 %v7026_v15, 296  ;;  %7044 = vbcast.lane.b32.xlu0 %v7026_v15, 288 }
 0xe08   :  { %v13969_v38 = vpop.permute.xlu1 %6645  ;;  %v13971_v32 = vpop.permute.xlu0 %6641 }
 0xe09   :  { %v6728_v20 = vmul.f32 %v14047_v57, %v13969_v38 }
 0xe0a   :  { %7056 = vbcast.lane.b32.xlu1 %v7026_v15, 312  ;;  %7052 = vbcast.lane.b32.xlu0 %v7026_v15, 304 }
 0xe0c   :  { %v13973_v45 = vpop.permute.xlu1 %6653  ;;  %v13975_v52 = vpop.permute.xlu0 %6649 }
 0xe10   :  { %v13977_v36 = vpop.permute.xlu1 %6664  ;;  %v13979_v30 = vpop.permute.xlu0 %6660 }
 0xe14   :  { %v13981_v21 = vpop.permute.xlu1 %6672  ;;  %v13983_v33 = vpop.permute.xlu0 %6668 }
 0xe18   :  { %v13985_v3 = vpop.permute.xlu1 %6680  ;;  %v13987_v50 = vpop.permute.xlu0 %6676 }
 0xe1c   :  { %v13989_v24 = vpop.permute.xlu1 %6688  ;;  %v13991_v51 = vpop.permute.xlu0 %6684 }
 0xe20   :  { %v6884_v25 = vpop.permute.xlu1 %6883  ;;  %v6880_v56 = vpop.permute.xlu0 %6879 }
 0xe24   :  { %v13993_v4 = vpop.permute.xlu1 %6891  ;;  %v13995_v19 = vpop.permute.xlu0 %6887 }
 0xe28   :  { %v13997_v23 = vpop.permute.xlu1 %6899  ;;  %v13999_v28 = vpop.permute.xlu0 %6895 }
 0xe2c   :  { %v14001_v35 = vpop.permute.xlu1 %6907  ;;  %v14003_v18 = vpop.permute.xlu0 %6903 }
 0xe30   :  { %v14005_v55 = vpop.permute.xlu1 %6918  ;;  %v14007_v34 = vpop.permute.xlu0 %6914 }
 0xe34   :  { %v14009_v8 = vpop.permute.xlu1 %6926  ;;  %v14011_v16 = vpop.permute.xlu0 %6922 }
 0xe38   :  { %v14013_v9 = vpop.permute.xlu1 %6934  ;;  %v14015_v12 = vpop.permute.xlu0 %6930 }
 0xe3c   :  { %v14017_v7 = vpop.permute.xlu1 %6942  ;;  %v14019_v13 = vpop.permute.xlu0 %6938 }
 0xe3d   :  { %16306 = vst [vmem:[#allocation57_spill] sm:$0xff] %v14017_v7  ;;  %16307 = vst [vmem:[#allocation125_spill] sm:$0xff] %v14019_v13  ;;  %v14067_v7 = vrot.slane %v6945_v48, %v16302_v11  ;;  %v14076_v13 = vrot.slane %v7058_v41, %v16302_v11 }
 0xe40   :  { %v6749_v49 = vpop.permute.xlu1 %6748  ;;  %v6745_v17 = vpop.permute.xlu0 %6744 }
 0xe41   :  { %v6843_v47 = vmul.f32 %v14040_v5, %v6749_v49  ;;  %v6842_v59 = vmul.f32 %v14040_v5, %v6745_v17  ;;  %v14064_v49 = vrot.slane %v6944_v37, %v16302_v11 }
 0xe43   :  { %v6859_v6 = vadd.f32 %v6843_v47, %v6724_v39  ;;  %v6858_v17 = vadd.f32 %v6842_v59, %v6723_v54  ;;  %v6957_v47 = vmul.f32 %v14064_v49, %v6884_v25  ;;  %v6956_v59 = vmul.f32 %v14064_v49, %v6880_v56 }
 0xe44   :  { %v6757_v44 = vpop.permute.xlu1 %6756  ;;  %v6753_v22 = vpop.permute.xlu0 %6752  ;;  %v6726_v39 = vmul.f32 %v14047_v57, %v13965_v27  ;;  %v6727_v25 = vmul.f32 %v14047_v57, %v13971_v32  ;;  %v6730_v27 = vmul.f32 %v14047_v57, %v13973_v45  ;;  %v6958_v38 = vmul.f32 %v14064_v49, %v13995_v19 }
 0xe45   :  { %v6844_v62 = vmul.f32 %v14040_v5, %v6753_v22  ;;  %v6845_v22 = vmul.f32 %v14040_v5, %v6757_v44  ;;  %v6973_v54 = vadd.f32 %v6957_v47, %v6859_v6  ;;  %v6972_v11 = vadd.f32 %v6956_v59, %v6858_v17 }
 0xe46   :  { %v6729_v56 = vmul.f32 %v14047_v57, %v13975_v52  ;;  %v6959_v6 = vmul.f32 %v14064_v49, %v13993_v4 }
 0xe47   :  { %v6860_v37 = vadd.f32 %v6844_v62, %v6725_v26  ;;  %v6861_v62 = vadd.f32 %v6845_v22, %v6726_v39  ;;  %v6731_v39 = vmul.f32 %v14061_v42, %v13979_v30 }
 0xe48   :  { %v6765_v15 = vpop.permute.xlu1 %6764  ;;  %v6761_v31 = vpop.permute.xlu0 %6760 }
 0xe49   :  { %v6846_v10 = vmul.f32 %v14040_v5, %v6761_v31  ;;  %v6847_v31 = vmul.f32 %v14040_v5, %v6765_v15  ;;  %v6974_v59 = vadd.f32 %v6958_v38, %v6860_v37  ;;  %v6732_v15 = vmul.f32 %v14061_v42, %v13977_v36 }
 0xe4a   :  { %v6960_v37 = vmul.f32 %v14064_v49, %v13999_v28 }
 0xe4b   :  { %v6862_v32 = vadd.f32 %v6846_v10, %v6727_v25  ;;  %v6863_v10 = vadd.f32 %v6847_v31, %v6728_v20  ;;  %v6963_v31 = vmul.f32 %v14064_v49, %v14001_v35 }
 0xe4c   :  { %v14021_v58 = vpop.permute.xlu1 %6772  ;;  %v6769_v61 = vpop.permute.xlu0 %6768 }
 0xe4d   :  { %v6848_v17 = vmul.f32 %v14040_v5, %v6769_v61  ;;  %v6849_v4 = vmul.f32 %v14040_v5, %v14021_v58  ;;  %v6975_v61 = vadd.f32 %v6959_v6, %v6861_v62  ;;  %v6976_v20 = vadd.f32 %v6960_v37, %v6862_v32 }
 0xe4e   :  { %v6734_v62 = vmul.f32 %v14061_v42, %v13981_v21 }
 0xe50   :  { %v14027_v46 = vpop.permute.xlu1 %6783  ;;  %v14029_v43 = vpop.permute.xlu0 %6779 }
 0xe51   :  { %v6850_v36 = vmul.f32 %v14070_v0, %v14029_v43  ;;  %v6962_v43 = vmul.f32 %v14064_v49, %v14003_v18  ;;  %v6851_v6 = vmul.f32 %v14070_v0, %v14027_v46 }
 0xe54   :  { %v14032_v53 = vpop.permute.xlu1 %6791  ;;  %v14034_v60 = vpop.permute.xlu0 %6787 }
 0xe55   :  { %v6852_v21 = vmul.f32 %v14070_v0, %v14034_v60  ;;  %v6853_v60 = vmul.f32 %v14070_v0, %v14032_v53 }
 0xe58   :  { %v14042_v2 = vpop.permute.xlu1 %6799  ;;  %v14044_v14 = vpop.permute.xlu0 %6795 }
 0xe5c   :  { %v14056_v1 = vpop.permute.xlu1 %6807  ;;  %v14058_v40 = vpop.permute.xlu0 %6803 }
 0xe60   :  { %v6998_v44 = vpop.permute.xlu1 %6997  ;;  %v6994_v48 = vpop.permute.xlu0 %6993 }
 0xe61   :  { %v7071_v41 = vmul.f32 %v14076_v13, %v6998_v44  ;;  %v7070_v29 = vmul.f32 %v14076_v13, %v6994_v48 }
 0xe63   :  { %v14099_v26 = vadd.f32 %v7071_v41, %v6973_v54  ;;  %v14101_v44 = vadd.f32 %v7070_v29, %v6972_v11  ;;  %v6961_v41 = vmul.f32 %v14064_v49, %v13997_v23  ;;  %v6864_v29 = vadd.f32 %v6848_v17, %v6729_v56 }
 0xe64   :  { %v7006_v45 = vpop.permute.xlu1 %7005  ;;  %v7002_v47 = vpop.permute.xlu0 %7001  ;;  %v6733_v23 = vmul.f32 %v14061_v42, %v13983_v33  ;;  %v6865_v56 = vadd.f32 %v6849_v4, %v6730_v27  ;;  %v6965_v4 = vmul.f32 %v14067_v7, %v14005_v55 }
 0xe65   :  { %v7073_v19 = vmul.f32 %v14076_v13, %v7006_v45  ;;  %v7072_v22 = vmul.f32 %v14076_v13, %v7002_v47  ;;  %v7105_v52 = vsel %vm881_vm10, %v14099_v26, -inf  ;;  %v7102_v11 = vsel %vm881_vm10, %v14101_v44, -inf }
 0xe66   :  { %7106 = vmax.xlane.f32.xlu1 %v7105_v52  ;;  %7103 = vmax.xlane.f32.xlu0 %v7102_v11  ;;  %v6977_v32 = vadd.f32 %v6961_v41, %v6863_v10  ;;  %v6866_v45 = vadd.f32 %v6850_v36, %v6731_v39  ;;  %v6978_v27 = vadd.f32 %v6962_v43, %v6864_v29 }
 0xe67   :  { %v14120_v48 = vadd.f32 %v7072_v22, %v6974_v59  ;;  %v14126_v25 = vadd.f32 %v7073_v19, %v6975_v61  ;;  %v6964_v22 = vmul.f32 %v14067_v7, %v14007_v34  ;;  %v6979_v52 = vadd.f32 %v6963_v31, %v6865_v56 }
 0xe68   :  { %v7014_v58 = vpop.permute.xlu1 %7013  ;;  %v7010_v54 = vpop.permute.xlu0 %7009  ;;  %v6736_v11 = vmul.f32 %v14061_v42, %v13985_v3  ;;  %v6867_v61 = vadd.f32 %v6851_v6, %v6732_v15  ;;  %v6868_v37 = vadd.f32 %v6852_v21, %v6733_v23  ;;  %v6854_v10 = vmul.f32 %v14070_v0, %v14044_v14 }
 0xe69   :  { %v7075_v38 = vmul.f32 %v14076_v13, %v7014_v58  ;;  %v7074_v30 = vmul.f32 %v14076_v13, %v7010_v54  ;;  %v7108_v28 = vsel %vm881_vm10, %v14120_v48, -inf  ;;  %v7111_v18 = vsel %vm881_vm10, %v14126_v25, -inf }
 0xe6a   :  { %7109 = vmax.xlane.f32.xlu0 %v7108_v28  ;;  %v6980_v53 = vadd.f32 %v6964_v22, %v6866_v45  ;;  %v6735_v15 = vmul.f32 %v14061_v42, %v13987_v50  ;;  %v6966_v14 = vmul.f32 %v14067_v7, %v14011_v16  ;;  %v6869_v54 = vadd.f32 %v6853_v60, %v6734_v62 }
 0xe6b   :  { %v14142_v17 = vadd.f32 %v7074_v30, %v6976_v20  ;;  %v14152_v19 = vadd.f32 %v7075_v38, %v6977_v32  ;;  %v6967_v38 = vmul.f32 %v14067_v7, %v14009_v8  ;;  %v6855_v30 = vmul.f32 %v14070_v0, %v14042_v2 }
 0xe6c   :  { %v7022_v47 = vpop.permute.xlu1 %7021  ;;  %v7018_v33 = vpop.permute.xlu0 %7017  ;;  %v6981_v20 = vadd.f32 %v6965_v4, %v6867_v61  ;;  %v6870_v23 = vadd.f32 %v6854_v10, %v6735_v15  ;;  %v6856_v43 = vmul.f32 %v14070_v0, %v14058_v40  ;;  %v6982_v62 = vadd.f32 %v6966_v14, %v6868_v37  ;;  %v16310_v37 = vld [vmem:[#allocation57_spill] sm:$0xff] }
 0xe6d   :  { %v7077_v59 = vmul.f32 %v14076_v13, %v7022_v47  ;;  %v7076_v35 = vmul.f32 %v14076_v13, %v7018_v33  ;;  %v7114_v46 = vsel %vm881_vm10, %v14142_v17, -inf  ;;  %v7117_v3 = vsel %vm881_vm10, %v14152_v19, -inf }
 0xe6e   :  { %7112 = vmax.xlane.f32.xlu0 %v7111_v18  ;;  %7115 = vmax.xlane.f32.xlu1 %v7114_v46  ;;  %v6737_v32 = vmul.f32 %v14061_v42, %v13991_v51  ;;  %v6968_v40 = vmul.f32 %v14067_v7, %v14015_v12  ;;  %v6983_v45 = vadd.f32 %v6967_v38, %v6869_v54 }
 0xe6f   :  { %v14162_v39 = vadd.f32 %v7076_v35, %v6978_v27  ;;  %v14166_v29 = vadd.f32 %v7077_v59, %v6979_v52  ;;  %v6738_v21 = vmul.f32 %v14061_v42, %v13989_v24  ;;  %v6871_v47 = vadd.f32 %v6855_v30, %v6736_v11  ;;  %v16309_v52 = vld [vmem:[#allocation125_spill] sm:$0xff] }
 0xe70   :  { %v7033_v34 = vpop.permute.xlu1 %7032  ;;  %v7029_v41 = vpop.permute.xlu0 %7028  ;;  %v6857_v33 = vmul.f32 %v14070_v0, %v14056_v1  ;;  %v6969_v27 = vmul.f32 %v14067_v7, %v14013_v9  ;;  %v6872_v59 = vadd.f32 %v6856_v43, %v6737_v32  ;;  %v6984_v12 = vadd.f32 %v6968_v40, %v6870_v23 }
 0xe71   :  { %v7079_v36 = vmul.f32 %v14079_v63, %v7033_v34  ;;  %v7078_v58 = vmul.f32 %v14079_v63, %v7029_v41  ;;  %v7120_v55 = vsel %vm881_vm10, %v14162_v39, -inf  ;;  %v7123_v16 = vsel %vm881_vm10, %v14166_v29, -inf }
 0xe72   :  { %7118 = vmax.xlane.f32.xlu0 %v7117_v3  ;;  %7121 = vmax.xlane.f32.xlu1 %v7120_v55  ;;  %v6970_v11 = vmul.f32 %v14067_v7, %v16309_v52  ;;  %v6873_v9 = vadd.f32 %v6857_v33, %v6738_v21  ;;  %v6985_v61 = vadd.f32 %v6969_v27, %v6871_v47 }
 0xe73   :  { %v14182_v28 = vadd.f32 %v7078_v58, %v6980_v53  ;;  %v14192_v6 = vadd.f32 %v7079_v36, %v6981_v20  ;;  %v6971_v10 = vmul.f32 %v14067_v7, %v16310_v37 }
 0xe74   :  { %v7041_v50 = vpop.permute.xlu1 %7040  ;;  %v7037_v56 = vpop.permute.xlu0 %7036  ;;  %v6986_v36 = vadd.f32 %v6970_v11, %v6872_v59 }
 0xe75   :  { %v7081_v31 = vmul.f32 %v14079_v63, %v7041_v50  ;;  %v7080_v8 = vmul.f32 %v14079_v63, %v7037_v56  ;;  %v7126_v2 = vsel %vm881_vm10, %v14182_v28, -inf  ;;  %v7129_v24 = vsel %vm881_vm10, %v14192_v6, -inf }
 0xe76   :  { %7124 = vmax.xlane.f32.xlu0 %v7123_v16  ;;  %7127 = vmax.xlane.f32.xlu1 %v7126_v2  ;;  %v6987_v54 = vadd.f32 %v6971_v10, %v6873_v9 }
 0xe77   :  { %v14202_v18 = vadd.f32 %v7080_v8, %v6982_v62  ;;  %v14206_v46 = vadd.f32 %v7081_v31, %v6983_v45 }
 0xe78   :  { %v7049_v51 = vpop.permute.xlu1 %7048  ;;  %v7045_v35 = vpop.permute.xlu0 %7044 }
 0xe79   :  { %v7083_v22 = vmul.f32 %v14079_v63, %v7049_v51  ;;  %v7082_v60 = vmul.f32 %v14079_v63, %v7045_v35  ;;  %v7132_v1 = vsel %vm881_vm10, %v14202_v18, -inf  ;;  %v7135_v53 = vsel %vm881_vm10, %v14206_v46, -inf }
 0xe7a   :  { %7130 = vmax.xlane.f32.xlu0 %v7129_v24  ;;  %7133 = vmax.xlane.f32.xlu1 %v7132_v1 }
 0xe7b   :  { %v14216_v4 = vadd.f32 %v7082_v60, %v6984_v12  ;;  %v14226_v15 = vadd.f32 %v7083_v22, %v6985_v61 }
 0xe7c   :  { %v7057_v34 = vpop.permute.xlu1 %7056  ;;  %v7053_v41 = vpop.permute.xlu0 %7052 }
 0xe7d   :  { %v7085_v58 = vmul.f32 %v14079_v63, %v7057_v34  ;;  %v7084_v3 = vmul.f32 %v14079_v63, %v7053_v41  ;;  %v7138_v55 = vsel %vm881_vm10, %v14216_v4, -inf  ;;  %v7141_v38 = vsel %vm881_vm10, %v14226_v15, -inf }
 0xe7e   :  { %7136 = vmax.xlane.f32.xlu0 %v7135_v53  ;;  %7139 = vmax.xlane.f32.xlu1 %v7138_v55 }
 0xe7f   :  { %v14228_v14 = vadd.f32 %v7084_v3, %v6986_v36  ;;  %v14234_v20 = vadd.f32 %v7085_v58, %v6987_v54 }
 0xe81   :  { %v7144_v30 = vsel %vm881_vm10, %v14228_v14, -inf  ;;  %v7147_v23 = vsel %vm881_vm10, %v14234_v20, -inf }
 0xe82   :  { %7142 = vmax.xlane.f32.xlu0 %v7141_v38  ;;  %7145 = vmax.xlane.f32.xlu1 %v7144_v30 }
 0xe86   :  { %7148 = vmax.xlane.f32.xlu0 %v7147_v23 }
 0xef3   :  { %v7107_v43 = vpop.xlane.xlu1 %7106  ;;  %v7104_v50 = vpop.xlane.xlu0 %7103 }
 0xef4   :  { %v7151_v56 = vsub.f32 %v14099_v26, %v7107_v43  ;;  %v7150_v16 = vsub.f32 %v14101_v44, %v7104_v50 }
 0xef6   :  { %v7168_v62 = vmul.f32 1.442695, %v7151_v56  ;;  %v7166_v31 = vmul.f32 1.442695, %v7150_v16 }
 0xef7   :  { %v7110_v8 = vpop.xlane.xlu0 %7109 }
 0xef8   :  { %10754 = vpow2.f32 %v7168_v62  ;;  %v7152_v2 = vsub.f32 %v14120_v48, %v7110_v8 }
 0xef9   :  { %10756 = vpow2.f32 %v7166_v31 }
 0xefa   :  { %v7170_v32 = vmul.f32 1.442695, %v7152_v2 }
 0xefb   :  { %v7116_v40 = vpop.xlane.xlu1 %7115  ;;  %v7113_v45 = vpop.xlane.xlu0 %7112 }
 0xefc   :  { %10758 = vpow2.f32 %v7170_v32  ;;  %v7154_v21 = vsub.f32 %v14142_v17, %v7116_v40  ;;  %v7153_v47 = vsub.f32 %v14126_v25, %v7113_v45 }
 0xefe   :  { %v7174_v33 = vmul.f32 1.442695, %v7154_v21  ;;  %v7172_v27 = vmul.f32 1.442695, %v7153_v47 }
 0xeff   :  { %v7122_v26 = vpop.xlane.xlu1 %7121  ;;  %v7119_v59 = vpop.xlane.xlu0 %7118 }
 0xf00   :  { %10760 = vpow2.f32 %v7174_v33  ;;  %v7156_v44 = vsub.f32 %v14162_v39, %v7122_v26  ;;  %v7155_v51 = vsub.f32 %v14152_v19, %v7119_v59 }
 0xf01   :  { %10762 = vpow2.f32 %v7172_v27 }
 0xf02   :  { %v14245_v48 = vpop.eup %10754  ;;  %v7178_v35 = vmul.f32 1.442695, %v7156_v44  ;;  %v7176_v12 = vmul.f32 1.442695, %v7155_v51 }
 0xf03   :  { %v14247_v22 = vpop.eup %10756  ;;  %v7128_v60 = vpop.xlane.xlu1 %7127  ;;  %v7201_v25 = vsel %vm881_vm10, %v14245_v48, 0.0 }
 0xf04   :  { %v7125_v17 = vpop.xlane.xlu0 %7124  ;;  %10764 = vpow2.f32 %v7178_v35  ;;  %v7158_v24 = vsub.f32 %v14182_v28, %v7128_v60  ;;  %7202 = vadd.xlane.f32.xlu0 %v7201_v25  ;;  %v7198_v19 = vsel %vm881_vm10, %v14247_v22, 0.0 }
 0xf05   :  { %v7157_v1 = vsub.f32 %v14166_v29, %v7125_v17  ;;  %10766 = vpow2.f32 %v7176_v12  ;;  %7199 = vadd.xlane.f32.xlu1 %v7198_v19 }
 0xf06   :  { %v14255_v39 = vpop.eup %10758  ;;  %v7182_v52 = vmul.f32 1.442695, %v7158_v24 }
 0xf07   :  { %v7180_v11 = vmul.f32 1.442695, %v7157_v1  ;;  %v7134_v9 = vpop.xlane.xlu1 %7133  ;;  %v7204_v37 = vsel %vm881_vm10, %v14255_v39, 0.0 }
 0xf08   :  { %v7131_v61 = vpop.xlane.xlu0 %7130  ;;  %10768 = vpow2.f32 %v7182_v52  ;;  %v7160_v28 = vsub.f32 %v14202_v18, %v7134_v9 }
 0xf09   :  { %v7159_v29 = vsub.f32 %v14192_v6, %v7131_v61  ;;  %10770 = vpow2.f32 %v7180_v11  ;;  %7205 = vadd.xlane.f32.xlu1 %v7204_v37 }
 0xf0a   :  { %v14261_v10 = vpop.eup %10760  ;;  %v7186_v34 = vmul.f32 1.442695, %v7160_v28 }
 0xf0b   :  { %v7184_v41 = vmul.f32 1.442695, %v7159_v29  ;;  %v14263_v53 = vpop.eup %10762  ;;  %v7140_v36 = vpop.xlane.xlu1 %7139  ;;  %v7210_v3 = vsel %vm881_vm10, %v14261_v10, 0.0 }
 0xf0c   :  { %v7137_v58 = vpop.xlane.xlu0 %7136  ;;  %10772 = vpow2.f32 %v7186_v34  ;;  %v7162_v55 = vsub.f32 %v14216_v4, %v7140_v36  ;;  %v7207_v6 = vsel %vm881_vm10, %v14263_v53, 0.0 }
 0xf0d   :  { %v7161_v18 = vsub.f32 %v14206_v46, %v7137_v58  ;;  %10774 = vpow2.f32 %v7184_v41  ;;  %7211 = vadd.xlane.f32.xlu1 %v7210_v3  ;;  %7208 = vadd.xlane.f32.xlu0 %v7207_v6 }
 0xf0e   :  { %v14271_v54 = vpop.eup %10764  ;;  %v7190_v38 = vmul.f32 1.442695, %v7162_v55 }
 0xf0f   :  { %v7188_v30 = vmul.f32 1.442695, %v7161_v18  ;;  %v14273_v23 = vpop.eup %10766  ;;  %v7146_v43 = vpop.xlane.xlu1 %7145  ;;  %v7216_v56 = vsel %vm881_vm10, %v14271_v54, 0.0 }
 0xf10   :  { %v7143_v50 = vpop.xlane.xlu0 %7142  ;;  %10776 = vpow2.f32 %v7190_v38  ;;  %v7164_v46 = vsub.f32 %v14228_v14, %v7146_v43  ;;  %v7213_v16 = vsel %vm881_vm10, %v14273_v23, 0.0 }
 0xf11   :  { %v7163_v4 = vsub.f32 %v14226_v15, %v7143_v50  ;;  %10778 = vpow2.f32 %v7188_v30  ;;  %7217 = vadd.xlane.f32.xlu1 %v7216_v56  ;;  %7214 = vadd.xlane.f32.xlu0 %v7213_v16 }
 0xf12   :  { %v14281_v62 = vpop.eup %10768  ;;  %v7194_v31 = vmul.f32 1.442695, %v7164_v46 }
 0xf13   :  { %v7192_v8 = vmul.f32 1.442695, %v7163_v4  ;;  %v14283_v2 = vpop.eup %10770  ;;  %v7222_v40 = vsel %vm881_vm10, %v14281_v62, 0.0 }
 0xf14   :  { %v7149_v32 = vpop.xlane.xlu0 %7148  ;;  %10780 = vpow2.f32 %v7194_v31  ;;  %v7219_v15 = vsel %vm881_vm10, %v14283_v2, 0.0 }
 0xf15   :  { %v7165_v14 = vsub.f32 %v14234_v20, %v7149_v32  ;;  %10782 = vpow2.f32 %v7192_v8  ;;  %7223 = vadd.xlane.f32.xlu1 %v7222_v40  ;;  %7220 = vadd.xlane.f32.xlu0 %v7219_v15 }
 0xf16   :  { %v14290_v45 = vpop.eup %10772 }
 0xf17   :  { %v7196_v21 = vmul.f32 1.442695, %v7165_v14  ;;  %v14292_v47 = vpop.eup %10774  ;;  %v7228_v33 = vsel %vm881_vm10, %v14290_v45, 0.0 }
 0xf18   :  { %v7225_v27 = vsel %vm881_vm10, %v14292_v47, 0.0 }
 0xf19   :  { %10784 = vpow2.f32 %v7196_v21  ;;  %7229 = vadd.xlane.f32.xlu1 %v7228_v33  ;;  %7226 = vadd.xlane.f32.xlu0 %v7225_v27 }
 0xf1a   :  { %v14298_v20 = vpop.eup %10776 }
 0xf1b   :  { %v14300_v26 = vpop.eup %10778  ;;  %v7234_v59 = vsel %vm881_vm10, %v14298_v20, 0.0 }
 0xf1c   :  { %v7231_v44 = vsel %vm881_vm10, %v14300_v26, 0.0 }
 0xf1d   :  { %7235 = vadd.xlane.f32.xlu1 %v7234_v59  ;;  %7232 = vadd.xlane.f32.xlu0 %v7231_v44 }
 0xf1e   :  { %v14306_v51 = vpop.eup %10780 }
 0xf1f   :  { %v14308_v35 = vpop.eup %10782  ;;  %v7240_v12 = vsel %vm881_vm10, %v14306_v51, 0.0 }
 0xf20   :  { %v7237_v60 = vsel %vm881_vm10, %v14308_v35, 0.0 }
 0xf21   :  { %7241 = vadd.xlane.f32.xlu1 %v7240_v12  ;;  %7238 = vadd.xlane.f32.xlu0 %v7237_v60 }
 0xf23   :  { %v14314_v17 = vpop.eup %10784 }
 0xf24   :  { %v7243_v25 = vsel %vm881_vm10, %v14314_v17, 0.0 }
 0xf25   :  { %7244 = vadd.xlane.f32.xlu0 %v7243_v25 }
 0xf91   :  { %v7203_v24 = vpop.xlane.xlu0 %7202 }
 0xf92   :  { %v7200_v1 = vpop.xlane.xlu1 %7199  ;;  %10786 = vrcp.f32 %v7203_v24 }
 0xf93   :  { %10788 = vrcp.f32 %v7200_v1 }
 0xf96   :  { %v7206_v19 = vpop.xlane.xlu1 %7205 }
 0xf97   :  { %10790 = vrcp.f32 %v7206_v19 }
 0xf9a   :  { %v7212_v52 = vpop.xlane.xlu1 %7211  ;;  %v7209_v11 = vpop.xlane.xlu0 %7208 }
 0xf9b   :  { %10792 = vrcp.f32 %v7212_v52 }
 0xf9c   :  { %v10787_v9 = vpop.eup %10786  ;;  %10794 = vrcp.f32 %v7209_v11 }
 0xf9d   :  { %v10789_v61 = vpop.eup %10788  ;;  %v14319_v37 = vmul.f32 %v10787_v9, %v14245_v48 }
 0xf9e   :  { %v14322_v28 = vmul.f32 %v10789_v61, %v14247_v22  ;;  %v7218_v29 = vpop.xlane.xlu1 %7217  ;;  %v7215_v34 = vpop.xlane.xlu0 %7214 }
 0xf9f   :  { %7295 = vst.msk [vmem:[#allocation29 + $0x8] sm:$0xff] %vm881_vm10, %v14319_v37  ;;  %10796 = vrcp.f32 %v7218_v29  ;;  %v7311_v41 = vmul.f32 %v14319_v37, %v14047_v57 }
 0xfa0   :  { %7294 = vst.msk [vmem:[#allocation29] sm:$0xff] %vm881_vm10, %v14322_v28  ;;  %10798 = vrcp.f32 %v7215_v34  ;;  %v7310_v48 = vmul.f32 %v14322_v28, %v14047_v57 }
 0xfa1   :  { %v10791_v36 = vpop.eup %10790  ;;  %v7329_v22 = vsel %vm881_vm10, %v7311_v41, 0.0 }
 0xfa2   :  { %v14334_v58 = vmul.f32 %v10791_v36, %v14255_v39  ;;  %v7224_v3 = vpop.xlane.xlu1 %7223  ;;  %v7221_v55 = vpop.xlane.xlu0 %7220  ;;  %v7326_v18 = vsel %vm881_vm10, %v7310_v48, 0.0  ;;  %7330 = vadd.xlane.f32.xlu0 %v7329_v22 }
 0xfa3   :  { %10800 = vrcp.f32 %v7224_v3  ;;  %7327 = vadd.xlane.f32.xlu1 %v7326_v18 }
 0xfa4   :  { %7296 = vst.msk [vmem:[#allocation29 + $0x10] sm:$0xff] %vm881_vm10, %v14334_v58  ;;  %10802 = vrcp.f32 %v7221_v55  ;;  %v7312_v6 = vmul.f32 %v14334_v58, %v14047_v57 }
 0xfa5   :  { %v10793_v38 = vpop.eup %10792 }
 0xfa6   :  { %v10795_v30 = vpop.eup %10794  ;;  %v14342_v43 = vmul.f32 %v10793_v38, %v14261_v10  ;;  %v7230_v39 = vpop.xlane.xlu1 %7229  ;;  %v7332_v56 = vsel %vm881_vm10, %v7312_v6, 0.0 }
 0xfa7   :  { %v7227_v50 = vpop.xlane.xlu0 %7226  ;;  %v14346_v46 = vmul.f32 %v10795_v30, %v14263_v53  ;;  %10804 = vrcp.f32 %v7230_v39  ;;  %7333 = vadd.xlane.f32.xlu1 %v7332_v56  ;;  %v7374_v56 = vmul.f32 %v14322_v28, %v14040_v5 }
 0xfa8   :  { %7298 = vst.msk [vmem:[#allocation29 + $0x20] sm:$0xff] %vm881_vm10, %v14342_v43  ;;  %10806 = vrcp.f32 %v7227_v50  ;;  %v7314_v4 = vmul.f32 %v14342_v43, %v14047_v57 }
 0xfa9   :  { %v10797_v16 = vpop.eup %10796  ;;  %7297 = vst.msk [vmem:[#allocation29 + $0x18] sm:$0xff] %vm881_vm10, %v14346_v46  ;;  %v7313_v10 = vmul.f32 %v14346_v46, %v14047_v57 }
 0xfaa   :  { %v10799_v31 = vpop.eup %10798  ;;  %v14357_v53 = vmul.f32 %v10797_v16, %v14271_v54  ;;  %v7236_v8 = vpop.xlane.xlu1 %7235  ;;  %v7338_v40 = vsel %vm881_vm10, %v7314_v4, 0.0 }
 0xfab   :  { %v7233_v32 = vpop.xlane.xlu0 %7232  ;;  %v14361_v14 = vmul.f32 %v10799_v31, %v14273_v23  ;;  %10808 = vrcp.f32 %v7236_v8  ;;  %7339 = vadd.xlane.f32.xlu1 %v7338_v40  ;;  %v7335_v15 = vsel %vm881_vm10, %v7313_v10, 0.0  ;;  %v7390_v10 = vsel %vm881_vm10, %v7374_v56, 0.0 }
 0xfac   :  { %7300 = vst.msk [vmem:[#allocation29 + $0x30] sm:$0xff] %vm881_vm10, %v14357_v53  ;;  %10810 = vrcp.f32 %v7233_v32  ;;  %7336 = vadd.xlane.f32.xlu0 %v7335_v15  ;;  %v7316_v54 = vmul.f32 %v14357_v53, %v14047_v57  ;;  %v7376_v31 = vmul.f32 %v14334_v58, %v14040_v5  ;;  %v7375_v8 = vmul.f32 %v14319_v37, %v14040_v5 }
 0xfad   :  { %v10801_v21 = vpop.eup %10800  ;;  %7299 = vst.msk [vmem:[#allocation29 + $0x28] sm:$0xff] %vm881_vm10, %v14361_v14  ;;  %v7315_v23 = vmul.f32 %v14361_v14, %v14047_v57  ;;  %v7378_v40 = vmul.f32 %v14342_v43, %v14040_v5  ;;  %v7377_v15 = vmul.f32 %v14346_v46, %v14040_v5  ;;  %v7444_v56 = vmul.f32 %v14357_v53, %v14064_v49 }
 0xfae   :  { %v10803_v33 = vpop.eup %10802  ;;  %v14373_v27 = vmul.f32 %v10801_v21, %v14281_v62  ;;  %v7242_v59 = vpop.xlane.xlu1 %7241  ;;  %v7344_v12 = vsel %vm881_vm10, %v7316_v54, 0.0  ;;  %v7396_v32 = vsel %vm881_vm10, %v7376_v31, 0.0  ;;  %v7380_v21 = vmul.f32 %v14357_v53, %v14040_v5 }
 0xfaf   :  { %v7239_v44 = vpop.xlane.xlu0 %7238  ;;  %v14377_v60 = vmul.f32 %v10803_v33, %v14283_v2  ;;  %10812 = vrcp.f32 %v7242_v59  ;;  %7345 = vadd.xlane.f32.xlu1 %v7344_v12  ;;  %v7341_v25 = vsel %vm881_vm10, %v7315_v23, 0.0  ;;  %v7402_v54 = vsel %vm881_vm10, %v7378_v40, 0.0 }
 0xfb0   :  { %7302 = vst.msk [vmem:[#allocation29 + $0x40] sm:$0xff] %vm881_vm10, %v14373_v27  ;;  %10814 = vrcp.f32 %v7239_v44  ;;  %7342 = vadd.xlane.f32.xlu0 %v7341_v25  ;;  %v7318_v62 = vmul.f32 %v14373_v27, %v14061_v42  ;;  %v7399_v23 = vsel %vm881_vm10, %v7377_v15, 0.0  ;;  %v7379_v33 = vmul.f32 %v14361_v14, %v14040_v5 }
 0xfb1   :  { %v10805_v24 = vpop.eup %10804  ;;  %7301 = vst.msk [vmem:[#allocation29 + $0x38] sm:$0xff] %vm881_vm10, %v14377_v60  ;;  %v7317_v2 = vmul.f32 %v14377_v60, %v14047_v57  ;;  %v7408_v59 = vsel %vm881_vm10, %v7380_v21, 0.0  ;;  %v7382_v44 = vmul.f32 %v14373_v27, %v14070_v0  ;;  %v7381_v25 = vmul.f32 %v14377_v60, %v14040_v5 }
 0xfb2   :  { %v10807_v1 = vpop.eup %10806  ;;  %v14389_v19 = vmul.f32 %v10805_v24, %v14290_v45  ;;  %v7350_v11 = vsel %vm881_vm10, %v7318_v62, 0.0  ;;  %v7405_v12 = vsel %vm881_vm10, %v7379_v33, 0.0 }
 0xfb3   :  { %v7245_v52 = vpop.xlane.xlu0 %7244  ;;  %v14393_v9 = vmul.f32 %v10807_v1, %v14292_v47  ;;  %7351 = vadd.xlane.f32.xlu1 %v7350_v11  ;;  %v7347_v61 = vsel %vm881_vm10, %v7317_v2, 0.0  ;;  %v7414_v62 = vsel %vm881_vm10, %v7382_v44, 0.0  ;;  %v7411_v2 = vsel %vm881_vm10, %v7381_v25, 0.0 }
 0xfb4   :  { %10816 = vrcp.f32 %v7245_v52  ;;  %7304 = vst.msk [vmem:[#allocation29 + $0x50] sm:$0xff] %vm881_vm10, %v14389_v19  ;;  %7348 = vadd.xlane.f32.xlu0 %v7347_v61  ;;  %v7320_v57 = vmul.f32 %v14389_v19, %v14061_v42  ;;  %v7384_v24 = vmul.f32 %v14389_v19, %v14070_v0  ;;  %v7448_v40 = vmul.f32 %v14389_v19, %v14067_v7 }
 0xfb5   :  { %v10809_v29 = vpop.eup %10808  ;;  %7303 = vst.msk [vmem:[#allocation29 + $0x48] sm:$0xff] %vm881_vm10, %v14393_v9  ;;  %v7319_v45 = vmul.f32 %v14393_v9, %v14061_v42  ;;  %v7383_v1 = vmul.f32 %v14393_v9, %v14070_v0  ;;  %v7447_v15 = vmul.f32 %v14393_v9, %v14067_v7 }
 0xfb6   :  { %v10811_v47 = vpop.eup %10810  ;;  %v14405_v34 = vmul.f32 %v10809_v29, %v14298_v20  ;;  %v7356_v41 = vsel %vm881_vm10, %v7320_v57, 0.0  ;;  %v7420_v52 = vsel %vm881_vm10, %v7384_v24, 0.0 }
 0xfb7   :  { %v14409_v48 = vmul.f32 %v10811_v47, %v14300_v26  ;;  %7357 = vadd.xlane.f32.xlu1 %v7356_v41  ;;  %v7353_v36 = vsel %vm881_vm10, %v7319_v45, 0.0  ;;  %v7417_v5 = vsel %vm881_vm10, %v7383_v1, 0.0 }
 0xfb8   :  { %7306 = vst.msk [vmem:[#allocation29 + $0x60] sm:$0xff] %vm881_vm10, %v14405_v34  ;;  %7354 = vadd.xlane.f32.xlu0 %v7353_v36  ;;  %v7322_v22 = vmul.f32 %v14405_v34, %v14061_v42  ;;  %v7386_v11 = vmul.f32 %v14405_v34, %v14070_v0  ;;  %v7438_v36 = vmul.f32 %v14322_v28, %v14064_v49 }
 0xfb9   :  { %v10813_v3 = vpop.eup %10812  ;;  %7305 = vst.msk [vmem:[#allocation29 + $0x58] sm:$0xff] %vm881_vm10, %v14409_v48  ;;  %v7321_v20 = vmul.f32 %v14409_v48, %v14061_v42  ;;  %v7385_v61 = vmul.f32 %v14409_v48, %v14070_v0  ;;  %v7450_v21 = vmul.f32 %v14405_v34, %v14067_v7 }
 0xfba   :  { %v10815_v55 = vpop.eup %10814  ;;  %v14421_v26 = vmul.f32 %v10813_v3, %v14306_v51  ;;  %v7362_v18 = vsel %vm881_vm10, %v7322_v22, 0.0  ;;  %v7426_v57 = vsel %vm881_vm10, %v7386_v11, 0.0 }
 0xfbb   :  { %v14425_v6 = vmul.f32 %v10815_v55, %v14308_v35  ;;  %7363 = vadd.xlane.f32.xlu1 %v7362_v18  ;;  %v7359_v38 = vsel %vm881_vm10, %v7321_v20, 0.0  ;;  %v7423_v45 = vsel %vm881_vm10, %v7385_v61, 0.0  ;;  %v7454_v20 = vsel %vm881_vm10, %v7438_v36, 0.0 }
 0xfbc   :  { %7308 = vst.msk [vmem:[#allocation29 + $0x70] sm:$0xff] %vm881_vm10, %v14421_v26  ;;  %7360 = vadd.xlane.f32.xlu0 %v7359_v38  ;;  %v7324_v30 = vmul.f32 %v14421_v26, %v14061_v42  ;;  %v7388_v29 = vmul.f32 %v14421_v26, %v14070_v0  ;;  %v7440_v55 = vmul.f32 %v14334_v58, %v14064_v49  ;;  %v7490_v33 = vsel %vm881_vm10, %v7450_v21, 0.0 }
 0xfbd   :  { %7307 = vst.msk [vmem:[#allocation29 + $0x68] sm:$0xff] %vm881_vm10, %v14425_v6  ;;  %v7323_v51 = vmul.f32 %v14425_v6, %v14061_v42  ;;  %v7387_v47 = vmul.f32 %v14425_v6, %v14070_v0  ;;  %v7439_v38 = vmul.f32 %v14319_v37, %v14064_v49  ;;  %v7506_v61 = vmul.f32 %v14342_v43, %v14076_v13 }
 0xfbe   :  { %v10817_v39 = vpop.eup %10816  ;;  %v7368_v50 = vsel %vm881_vm10, %v7324_v30, 0.0  ;;  %v7432_v41 = vsel %vm881_vm10, %v7388_v29, 0.0  ;;  %v7460_v30 = vsel %vm881_vm10, %v7440_v55, 0.0  ;;  %v7508_v29 = vmul.f32 %v14357_v53, %v14076_v13 }
 0xfbf   :  { %v14437_v35 = vmul.f32 %v10817_v39, %v14314_v17  ;;  %7369 = vadd.xlane.f32.xlu1 %v7368_v50  ;;  %v7365_v4 = vsel %vm881_vm10, %v7323_v51, 0.0  ;;  %v7429_v22 = vsel %vm881_vm10, %v7387_v47, 0.0  ;;  %v7442_v39 = vmul.f32 %v14342_v43, %v14064_v49 }
 0xfc0   :  { %7366 = vadd.xlane.f32.xlu0 %v7365_v4  ;;  %v7441_v51 = vmul.f32 %v14346_v46, %v14064_v49  ;;  %v7536_v43 = vsel %vm881_vm10, %v7508_v29, 0.0  ;;  %v7510_v47 = vmul.f32 %v14373_v27, %v14079_v63  ;;  %v7512_v36 = vmul.f32 %v14389_v19, %v14079_v63 }
 0xfc1   :  { %7309 = vst.msk [vmem:[#allocation29 + $0x78] sm:$0xff] %vm881_vm10, %v14437_v35  ;;  %v7325_v16 = vmul.f32 %v14437_v35, %v14061_v42  ;;  %v7393_v42 = vsel %vm881_vm10, %v7375_v8, 0.0  ;;  %v7389_v3 = vmul.f32 %v14437_v35, %v14070_v0  ;;  %v7457_v0 = vsel %vm881_vm10, %v7439_v38, 0.0 }
 0xfc2   :  { %v7466_v50 = vsel %vm881_vm10, %v7442_v39, 0.0  ;;  %v7463_v4 = vsel %vm881_vm10, %v7441_v51, 0.0  ;;  %v7445_v8 = vmul.f32 %v14377_v60, %v14064_v49  ;;  %v7542_v53 = vsel %vm881_vm10, %v7510_v47, 0.0 }
 0xfc3   :  { %v7371_v17 = vsel %vm881_vm10, %v7325_v16, 0.0  ;;  %7391 = vadd.xlane.f32.xlu1 %v7390_v10  ;;  %v7435_v18 = vsel %vm881_vm10, %v7389_v3, 0.0  ;;  %v7443_v16 = vmul.f32 %v14361_v14, %v14064_v49  ;;  %v7472_v10 = vsel %vm881_vm10, %v7444_v56, 0.0 }
 0xfc4   :  { %7372 = vadd.xlane.f32.xlu0 %v7371_v17  ;;  %v7446_v17 = vmul.f32 %v14373_v27, %v14067_v7  ;;  %v7481_v49 = vsel %vm881_vm10, %v7447_v15, 0.0  ;;  %v7548_v27 = vsel %vm881_vm10, %v7512_v36, 0.0  ;;  %v7514_v3 = vmul.f32 %v14405_v34, %v14079_v63 }
 0xfc5   :  { %v7469_v31 = vsel %vm881_vm10, %v7443_v16, 0.0  ;;  %v7515_v55 = vmul.f32 %v14425_v6, %v14079_v63  ;;  %v16339_v16 = vld [vmem:[#allocation142_spill] sm:$0xff] }
 0xfc6   :  { %v7554_v19 = vsel %vm881_vm10, %v7514_v3, 0.0 }
 0xfc7   :  { %7397 = vadd.xlane.f32.xlu1 %v7396_v32  ;;  %v7478_v32 = vsel %vm881_vm10, %v7446_v17, 0.0 }
 0xfc8   :  { %7394 = vadd.xlane.f32.xlu0 %v7393_v42  ;;  %v7475_v42 = vsel %vm881_vm10, %v7445_v8, 0.0 }
 0xfcb   :  { %7403 = vadd.xlane.f32.xlu1 %v7402_v54  ;;  %v7484_v54 = vsel %vm881_vm10, %v7448_v40, 0.0 }
 0xfcc   :  { %7400 = vadd.xlane.f32.xlu0 %v7399_v23  ;;  %v7449_v23 = vmul.f32 %v14409_v48, %v14067_v7 }
 0xfce   :  { %v7487_v44 = vsel %vm881_vm10, %v7449_v23, 0.0 }
 0xfcf   :  { %7409 = vadd.xlane.f32.xlu1 %v7408_v59  ;;  %v7452_v59 = vmul.f32 %v14421_v26, %v14067_v7 }
 0xfd0   :  { %7406 = vadd.xlane.f32.xlu0 %v7405_v12  ;;  %v7451_v12 = vmul.f32 %v14425_v6, %v14067_v7  ;;  %v16334_v6 = vld [vmem:[#allocation91_spill] sm:$0xff] }
 0xfd1   :  { %v7496_v25 = vsel %vm881_vm10, %v7452_v59, 0.0 }
 0xfd2   :  { %v7493_v24 = vsel %vm881_vm10, %v7451_v12, 0.0 }
 0xfd3   :  { %7415 = vadd.xlane.f32.xlu1 %v7414_v62  ;;  %v7502_v62 = vmul.f32 %v14322_v28, %v14076_v13 }
 0xfd4   :  { %7412 = vadd.xlane.f32.xlu0 %v7411_v2  ;;  %v7453_v2 = vmul.f32 %v14437_v35, %v14067_v7 }
 0xfd5   :  { %v7518_v1 = vsel %vm881_vm10, %v7502_v62, 0.0 }
 0xfd6   :  { %v7499_v11 = vsel %vm881_vm10, %v7453_v2, 0.0 }
 0xfd7   :  { %7421 = vadd.xlane.f32.xlu1 %v7420_v52  ;;  %v7504_v52 = vmul.f32 %v14334_v58, %v14076_v13  ;;  %v7530_v58 = vsel %vm881_vm10, %v7506_v61, 0.0 }
 0xfd8   :  { %7418 = vadd.xlane.f32.xlu0 %v7417_v5  ;;  %v7503_v5 = vmul.f32 %v14319_v37, %v14076_v13 }
 0xfd9   :  { %v7524_v28 = vsel %vm881_vm10, %v7504_v52, 0.0 }
 0xfda   :  { %v7521_v7 = vsel %vm881_vm10, %v7503_v5, 0.0 }
 0xfdb   :  { %7427 = vadd.xlane.f32.xlu1 %v7426_v57  ;;  %v7505_v57 = vmul.f32 %v14346_v46, %v14076_v13 }
 0xfdc   :  { %7424 = vadd.xlane.f32.xlu0 %v7423_v45  ;;  %v7507_v45 = vmul.f32 %v14361_v14, %v14076_v13 }
 0xfdd   :  { %v7527_v37 = vsel %vm881_vm10, %v7505_v57, 0.0 }
 0xfde   :  { %v7533_v46 = vsel %vm881_vm10, %v7507_v45, 0.0 }
 0xfdf   :  { %7433 = vadd.xlane.f32.xlu1 %v7432_v41  ;;  %v7509_v41 = vmul.f32 %v14377_v60, %v14076_v13  ;;  %v7513_v60 = vmul.f32 %v14409_v48, %v14079_v63  ;;  %v7517_v48 = vmul.f32 %v14437_v35, %v14079_v63 }
 0xfe0   :  { %7430 = vadd.xlane.f32.xlu0 %v7429_v22  ;;  %v7511_v22 = vmul.f32 %v14393_v9, %v14079_v63 }
 0xfe1   :  { %v7539_v14 = vsel %vm881_vm10, %v7509_v41, 0.0  ;;  %v7551_v9 = vsel %vm881_vm10, %v7513_v60, 0.0  ;;  %v7563_v38 = vsel %vm881_vm10, %v7517_v48, 0.0 }
 0xfe2   :  { %v7545_v13 = vsel %vm881_vm10, %v7511_v22, 0.0 }
 0xfe3   :  { %7455 = vadd.xlane.f32.xlu1 %v7454_v20  ;;  %v7516_v20 = vmul.f32 %v14421_v26, %v14079_v63 }
 0xfe4   :  { %7436 = vadd.xlane.f32.xlu0 %v7435_v18  ;;  %v7557_v18 = vsel %vm881_vm10, %v7515_v55, 0.0 }
 0xfe5   :  { %v7560_v34 = vsel %vm881_vm10, %v7516_v20, 0.0 }
 0xfe7   :  { %7461 = vadd.xlane.f32.xlu1 %v7460_v30 }
 0xfe8   :  { %7458 = vadd.xlane.f32.xlu0 %v7457_v0 }
 0xfeb   :  { %7467 = vadd.xlane.f32.xlu1 %v7466_v50 }
 0xfec   :  { %7464 = vadd.xlane.f32.xlu0 %v7463_v4 }
 0xfef   :  { %7473 = vadd.xlane.f32.xlu1 %v7472_v10 }
 0xff0   :  { %7470 = vadd.xlane.f32.xlu0 %v7469_v31 }
 0xff3   :  { %7479 = vadd.xlane.f32.xlu1 %v7478_v32 }
 0xff4   :  { %7476 = vadd.xlane.f32.xlu0 %v7475_v42 }
 0xff7   :  { %7485 = vadd.xlane.f32.xlu1 %v7484_v54 }
 0xff8   :  { %7482 = vadd.xlane.f32.xlu0 %v7481_v49 }
 0xffb   :  { %7491 = vadd.xlane.f32.xlu1 %v7490_v33 }
 0xffc   :  { %7488 = vadd.xlane.f32.xlu0 %v7487_v44 }
 0xfff   :  { %7497 = vadd.xlane.f32.xlu1 %v7496_v25 }
0x1000   :  { %7494 = vadd.xlane.f32.xlu0 %v7493_v24 }
0x1003   :  { %7519 = vadd.xlane.f32.xlu1 %v7518_v1 }
0x1004   :  { %7500 = vadd.xlane.f32.xlu0 %v7499_v11 }
0x1007   :  { %7525 = vadd.xlane.f32.xlu1 %v7524_v28 }
0x1008   :  { %7522 = vadd.xlane.f32.xlu0 %v7521_v7 }
0x100b   :  { %7531 = vadd.xlane.f32.xlu1 %v7530_v58 }
0x100c   :  { %7528 = vadd.xlane.f32.xlu0 %v7527_v37 }
0x100f   :  { %7537 = vadd.xlane.f32.xlu1 %v7536_v43 }
0x1010   :  { %7534 = vadd.xlane.f32.xlu0 %v7533_v46 }
0x1013   :  { %7543 = vadd.xlane.f32.xlu1 %v7542_v53 }
0x1014   :  { %7540 = vadd.xlane.f32.xlu0 %v7539_v14 }
0x1017   :  { %7549 = vadd.xlane.f32.xlu1 %v7548_v27 }
0x1018   :  { %7546 = vadd.xlane.f32.xlu0 %v7545_v13 }
0x101b   :  { %7555 = vadd.xlane.f32.xlu1 %v7554_v19 }
0x101c   :  { %7552 = vadd.xlane.f32.xlu0 %v7551_v9 }
0x101f   :  { %7561 = vadd.xlane.f32.xlu1 %v7560_v34 }
0x1020   :  { %7558 = vadd.xlane.f32.xlu0 %v7557_v18 }
0x1024   :  { %7564 = vadd.xlane.f32.xlu0 %v7563_v38 }
0x102f   :  { %v14590_v26 = vpop.xlane.xlu0 %7330 }
0x1030   :  { %16311 = vst [vmem:[#allocation120_spill] sm:$0xff] %v14590_v26  ;;  %v14592_v30 = vpop.xlane.xlu1 %7327 }
0x1031   :  { %16312 = vst [vmem:[#allocation128_spill] sm:$0xff] %v14592_v30 }
0x1034   :  { %v14596_v0 = vpop.xlane.xlu1 %7333 }
0x1035   :  { %16313 = vst [vmem:[#allocation127_spill] sm:$0xff] %v14596_v0 }
0x1038   :  { %v14599_v50 = vpop.xlane.xlu1 %7339 }
0x1039   :  { %16314 = vst [vmem:[#allocation122_spill] sm:$0xff] %v14599_v50  ;;  %v14602_v35 = vpop.xlane.xlu0 %7336  ;;  %v16338_v50 = vld [vmem:[#allocation95_spill] sm:$0xff] }
0x103a   :  { %16315 = vst [vmem:[#allocation130_spill] sm:$0xff] %v14602_v35 }
0x103c   :  { %v14605_v4 = vpop.xlane.xlu1 %7345 }
0x103d   :  { %16316 = vst [vmem:[#allocation129_spill] sm:$0xff] %v14605_v4  ;;  %v14608_v10 = vpop.xlane.xlu0 %7342  ;;  %v16336_v4 = vld [vmem:[#allocation93_spill] sm:$0xff] }
0x103e   :  { %16317 = vst [vmem:[#allocation121_spill] sm:$0xff] %v14608_v10  ;;  %v16337_v10 = vld [vmem:[#allocation94_spill] sm:$0xff] }
0x103f   :  { %v10473_v35 = vpack.c.bf16 %v16338_v50, %v16337_v10 }
0x1040   :  { %v14611_v31 = vpop.xlane.xlu1 %7351 }
0x1041   :  { %16318 = vst [vmem:[#allocation132_spill] sm:$0xff] %v14611_v31  ;;  %v14614_v32 = vpop.xlane.xlu0 %7348  ;;  %v16335_v31 = vld [vmem:[#allocation92_spill] sm:$0xff] }
0x1042   :  { %16319 = vst [vmem:[#allocation131_spill] sm:$0xff] %v14614_v32  ;;  %v10470_v21 = vpack.c.bf16 %v16336_v4, %v16335_v31 }
0x1044   :  { %v14617_v42 = vpop.xlane.xlu1 %7357 }
0x1045   :  { %16320 = vst [vmem:[#allocation124_spill] sm:$0xff] %v14617_v42  ;;  %v14620_v54 = vpop.xlane.xlu0 %7354  ;;  %v16333_v42 = vld [vmem:[#allocation90_spill] sm:$0xff] }
0x1046   :  { %16321 = vst [vmem:[#allocation134_spill] sm:$0xff] %v14620_v54  ;;  %v10467_v54 = vpack.c.bf16 %v16334_v6, %v16333_v42 }
0x1048   :  { %v14623_v49 = vpop.xlane.xlu1 %7363 }
0x1049   :  { %16322 = vst [vmem:[#allocation118_spill] sm:$0xff] %v14623_v49  ;;  %v14626_v33 = vpop.xlane.xlu0 %7360 }
0x104a   :  { %16323 = vst [vmem:[#allocation133_spill] sm:$0xff] %v14626_v33  ;;  %v16332_v33 = vmov 0.0|0.0  }
0x104b   :  { %10466 = vmatprep.subr.bf16.mxu0 %v16332_v33 }
0x104c   :  { %v14629_v44 = vpop.xlane.xlu1 %7369 }
0x104d   :  { %16324 = vst [vmem:[#allocation136_spill] sm:$0xff] %v14629_v44  ;;  %v14632_v25 = vpop.xlane.xlu0 %7366 }
0x104e   :  { %16325 = vst [vmem:[#allocation119_spill] sm:$0xff] %v14632_v25 }
0x1050   :  { %v14635_v24 = vpop.xlane.xlu1 %7391 }
0x1051   :  { %v14638_v1 = vpop.xlane.xlu0 %7372  ;;  %v16340_v0 = vmax.f32 %v14635_v24, 0.0 }
0x1052   :  { %16326 = vst [vmem:[#allocation123_spill] sm:$0xff] %v14638_v1 }
0x1053   :  { %v7773_v26 = vrot.slane %v16340_v0, %v16339_v16 }
0x1054   :  { %v14641_v11 = vpop.xlane.xlu1 %7397 }
0x1055   :  { %v14644_v28 = vpop.xlane.xlu0 %7394 }
0x1058   :  { %v14647_v7 = vpop.xlane.xlu1 %7403 }
0x1059   :  { %v14650_v58 = vpop.xlane.xlu0 %7400 }
0x105c   :  { %v14653_v37 = vpop.xlane.xlu1 %7409 }
0x105d   :  { %v14656_v43 = vpop.xlane.xlu0 %7406 }
0x1060   :  { %v14659_v46 = vpop.xlane.xlu1 %7415 }
0x1061   :  { %v14662_v53 = vpop.xlane.xlu0 %7412 }
0x1064   :  { %v14665_v14 = vpop.xlane.xlu1 %7421 }
0x1065   :  { %v14668_v27 = vpop.xlane.xlu0 %7418 }
0x1068   :  { %v14671_v13 = vpop.xlane.xlu1 %7427 }
0x1069   :  { %v14674_v19 = vpop.xlane.xlu0 %7424 }
0x106c   :  { %v14677_v9 = vpop.xlane.xlu1 %7433 }
0x106d   :  { %v14680_v34 = vpop.xlane.xlu0 %7430 }
0x1070   :  { %v14683_v48 = vpop.xlane.xlu1 %7455 }
0x1071   :  { %v14686_v52 = vpop.xlane.xlu0 %7436 }
0x1074   :  { %v14689_v62 = vpop.xlane.xlu1 %7461 }
0x1075   :  { %v14692_v23 = vpop.xlane.xlu0 %7458 }
0x1078   :  { %v14695_v15 = vpop.xlane.xlu1 %7467 }
0x1079   :  { %v14698_v8 = vpop.xlane.xlu0 %7464 }
0x107c   :  { %v14701_v17 = vpop.xlane.xlu1 %7473 }
0x107d   :  { %v14704_v56 = vpop.xlane.xlu0 %7470 }
0x1080   :  { %v14707_v39 = vpop.xlane.xlu1 %7479 }
0x1081   :  { %v14710_v40 = vpop.xlane.xlu0 %7476 }
0x1084   :  { %v14713_v59 = vpop.xlane.xlu1 %7485 }
0x1085   :  { %v14716_v38 = vpop.xlane.xlu0 %7482 }
0x1088   :  { %v14719_v12 = vpop.xlane.xlu1 %7491 }
0x1089   :  { %v14722_v55 = vpop.xlane.xlu0 %7488 }
0x108c   :  { %v14725_v18 = vpop.xlane.xlu1 %7497 }
0x108d   :  { %v14728_v60 = vpop.xlane.xlu0 %7494 }
0x1090   :  { %v14731_v20 = vpop.xlane.xlu1 %7519 }
0x1091   :  { %v14734_v22 = vpop.xlane.xlu0 %7500 }
0x1094   :  { %v14737_v3 = vpop.xlane.xlu1 %7525 }
0x1095   :  { %v14740_v41 = vpop.xlane.xlu0 %7522 }
0x1098   :  { %v14743_v36 = vpop.xlane.xlu1 %7531 }
0x1099   :  { %v14746_v45 = vpop.xlane.xlu0 %7528 }
0x109c   :  { %v14749_v47 = vpop.xlane.xlu1 %7537 }
0x109d   :  { %v14752_v57 = vpop.xlane.xlu0 %7534 }
0x10a0   :  { %v14755_v29 = vpop.xlane.xlu1 %7543 }
0x10a1   :  { %v14758_v5 = vpop.xlane.xlu0 %7540 }
0x10a4   :  { %v14761_v61 = vpop.xlane.xlu1 %7549 }
0x10a5   :  { %v14764_v2 = vpop.xlane.xlu0 %7546 }
0x10a8   :  { %v14767_v1 = vpop.xlane.xlu1 %7555 }
0x10a9   :  { %16327 = vst [vmem:[#allocation135_spill] sm:$0xff] %v14767_v1  ;;  %v14770_v44 = vpop.xlane.xlu0 %7552 }
0x10aa   :  { %16328 = vst [vmem:[#allocation138_spill] sm:$0xff] %v14770_v44 }
0x10ac   :  { %v14773_v25 = vpop.xlane.xlu1 %7561 }
0x10ad   :  { %16329 = vst [vmem:[#allocation74_spill] sm:$0xff] %v14773_v25  ;;  %v14776_v32 = vpop.xlane.xlu0 %7558 }
0x10ae   :  { %16330 = vst [vmem:[#allocation75_spill] sm:$0xff] %v14776_v32 }
0x10b1   :  { %v14779_v49 = vpop.xlane.xlu0 %7564 }
0x10b2   :  { %16331 = vst [vmem:[#allocation137_spill] sm:$0xff] %v14779_v49 }
0x10b3   :  { %11236 = dma.done.wait [#allocation9 + $0x3], 3072 }
0x10b4   :  { %11237 = vsyncadd [#allocation9 + $0x3], 4294964224  ;;  %v16341_v63 = vld [vmem:[#allocation143_spill] sm:$0xff]  ;;  %v16342_v51 = vmax.f32 %v14644_v28, 0.0  ;;  %v16343_v49 = vld [vmem:[#allocation144_spill] sm:$0xff]  ;;  %v16344_v25 = vmax.f32 %v14641_v11, 0.0  ;;  %10468 = vmatpush3.bf16.msra.mxu0 %v10467_v54 }
0x10b5   :  { %v16345_v42 = vld [vmem:[#allocation145_spill] sm:$0xff]  ;;  %v16346_v4 = vmax.f32 %v14650_v58, 0.0  ;;  %v16347_v32 = vld [vmem:[#allocation146_spill] sm:$0xff]  ;;  %v16348_v50 = vmax.f32 %v14647_v7, 0.0  ;;  %v16349_v24 = vmov 0.0   ;;  %vm16350_vm15 = vmmov 0   ;;  %10469 = vmatprep.subr.bf16.mxu0 %v16332_v33 }
0x10b6   :  { %v7777_v30 = vrot.slane %v16342_v51, %v16341_v63  ;;  %v7782_v6 = vrot.slane %v16344_v25, %v16343_v49  ;;  %10010 = vmatprep.mubr.msk.f32.mxu0 %vm16350_vm15, %v16349_v24  ;;  %v16351_v0 = vld [vmem:[#allocation147_spill] sm:$0xff]  ;;  %v16352_v28 = vmax.f32 %v14656_v43, 0.0  ;;  %v16353_v1 = vld [vmem:[#allocation148_spill] sm:$0xff]  ;;  %v16354_v11 = vmax.f32 %v14653_v37, 0.0  ;;  %v16355_v44 = vld [vmem:[#allocation149_spill] sm:$0xff]  ;;  %s11266_s18 = smov [#allocation29]  }
0x10b7   :  { %v7787_v31 = vrot.slane %v16346_v4, %v16345_v42  ;;  %v7792_v10 = vrot.slane %v16348_v50, %v16347_v32  ;;  %v16356_v58 = vmax.f32 %v14662_v53, 0.0  ;;  %v16357_v7 = vmax.f32 %v14659_v46, 0.0  ;;  %s11267_s8 = smov [#allocation28]  }
0x10b8   :  { %v7797_v51 = vrot.slane %v16352_v28, %v16351_v0  ;;  %v7802_v25 = vrot.slane %v16354_v11, %v16353_v1  ;;  %v7778_v54 = vsel %vm6092_vm3, %v7777_v30, %v7773_v26  ;;  %v16358_v43 = vmax.f32 %v14668_v27, 0.0  ;;  %10471 = vmatpush3.bf16.msra.mxu0 %v10470_v21  ;;  %s9612_s23 = sshll.u32 %s11267_s8, 4  ;;  %s15701_s23 = int_to_ptr.vmem [resolvable:$true] %s9612_s23 }
0x10b9   :  { %v7807_v4 = vrot.slane %v16356_v58, %v16355_v44  ;;  %v7812_v50 = vrot.slane %v16357_v7, %v16339_v16  ;;  %v16359_v37 = vmax.f32 %v14665_v14, 0.0  ;;  %v16360_v53 = vmax.f32 %v14674_v19, 0.0  ;;  %10472 = vmatprep.subr.bf16.mxu0 %v16332_v33 }
0x10ba   :  { %v7816_v28 = vrot.slane %v16358_v43, %v16341_v63  ;;  %v7783_v24 = vsel %vm6099_vm4, %v7782_v6, %v7778_v54  ;;  %v16361_v46 = vmax.f32 %v14671_v13, 0.0  ;;  %v16362_v26 = vmax.f32 %v14680_v34, 0.0 }
0x10bb   :  { %v7821_v11 = vrot.slane %v16359_v37, %v16343_v49  ;;  %v7826_v58 = vrot.slane %v16360_v53, %v16345_v42  ;;  %v16363_v27 = vmax.f32 %v14677_v9, 0.0  ;;  %v7788_v14 = vsel %vm6106_vm5, %v7787_v31, %v7783_v24 }
0x10bc   :  { %v7831_v7 = vrot.slane %v16361_v46, %v16347_v32  ;;  %v7836_v30 = vrot.slane %v16362_v26, %v16351_v0  ;;  %v7817_v37 = vsel %vm6092_vm3, %v7816_v28, %v7812_v50  ;;  %v16364_v19 = vmax.f32 %v14686_v52, 0.0  ;;  %10474 = vmatpush3.bf16.msra.mxu0 %v10473_v35 }
0x10bd   :  { %v7841_v43 = vrot.slane %v16363_v27, %v16353_v1  ;;  %v16365_v13 = vmax.f32 %v14683_v48, 0.0  ;;  %v7793_v34 = vsel %vm6113_vm6, %v7792_v10, %v7788_v14  ;;  %v7822_v53 = vsel %vm6099_vm4, %v7821_v11, %v7817_v37  ;;  %10475 = vmatprep.subr.bf16.mxu0 %v16332_v33 }
0x10be   :  { %v7846_v6 = vrot.slane %v16364_v19, %v16355_v44  ;;  %v16366_v9 = vmax.f32 %v14692_v23, 0.0  ;;  %v16367_v31 = vmax.f32 %v14689_v62, 0.0  ;;  %v7798_v52 = vsel %vm6120_vm7, %v7797_v51, %v7793_v34 }
0x10bf   :  { %v7869_v54 = vrot.slane %v16365_v13, %v16339_v16  ;;  %v7827_v48 = vsel %vm6106_vm5, %v7826_v58, %v7822_v53  ;;  %v16368_v21 = vmax.f32 %v14698_v8, 0.0  ;;  %v16369_v50 = vmax.f32 %v14695_v15, 0.0 }
0x10c0   :  { %v7873_v46 = vrot.slane %v16366_v9, %v16341_v63  ;;  %v7878_v24 = vrot.slane %v16367_v31, %v16343_v49  ;;  %v7803_v23 = vsel %vm6127_vm8, %v7802_v25, %v7798_v52  ;;  %v7832_v11 = vsel %vm6113_vm6, %v7831_v7, %v7827_v48 }
0x10c1   :  { %v7883_v10 = vrot.slane %v16368_v21, %v16345_v42  ;;  %v7888_v28 = vrot.slane %v16369_v50, %v16347_v32  ;;  %v16370_v26 = vmax.f32 %v14704_v56, 0.0  ;;  %v7837_v58 = vsel %vm6120_vm7, %v7836_v30, %v7832_v11 }
0x10c2   :  { %v7874_v62 = vsel %vm6092_vm3, %v7873_v46, %v7869_v54  ;;  %v16371_v8 = vmax.f32 %v14701_v17, 0.0  ;;  %v7842_v15 = vsel %vm6127_vm8, %v7841_v43, %v7837_v58  ;;  %v16372_v7 = vmax.f32 %v14710_v40, 0.0 }
0x10c3   :  { %v7893_v51 = vrot.slane %v16370_v26, %v16351_v0  ;;  %v7879_v27 = vsel %vm6099_vm4, %v7878_v24, %v7874_v62  ;;  %v16373_v56 = vmax.f32 %v14707_v39, 0.0  ;;  %v14885_v30 = vsel %vm6134_vm9, %v7807_v4, %v7803_v23 }
0x10c4   :  { %v7898_v14 = vrot.slane %v16371_v8, %v16353_v1  ;;  %v7884_v25 = vsel %vm6106_vm5, %v7883_v10, %v7879_v27  ;;  %v7903_v37 = vrot.slane %v16372_v7, %v16355_v44  ;;  %v16374_v35 = vmax.f32 %v14716_v38, 0.0 }
0x10c5   :  { %v7908_v19 = vrot.slane %v16373_v56, %v16339_v16  ;;  %v7889_v17 = vsel %vm6113_vm6, %v7888_v28, %v7884_v25  ;;  %v16375_v13 = vmax.f32 %v14713_v59, 0.0  ;;  %v14895_v54 = vsel %vm6134_vm9, %v7846_v6, %v7842_v15 }
0x10c6   :  { %v7912_v43 = vrot.slane %v16374_v35, %v16341_v63  ;;  %v7894_v39 = vsel %vm6120_vm7, %v7893_v51, %v7889_v17  ;;  %v16376_v34 = vmax.f32 %v14722_v55, 0.0  ;;  %v16377_v53 = vmax.f32 %v14719_v12, 0.0 }
0x10c7   :  { %v7917_v40 = vrot.slane %v16375_v13, %v16343_v49  ;;  %v7899_v38 = vsel %vm6127_vm8, %v7898_v14, %v7894_v39  ;;  %v16378_v59 = vmax.f32 %v14728_v60, 0.0  ;;  %v16379_v6 = vmax.f32 %v14725_v18, 0.0 }
0x10c8   :  { %v7922_v4 = vrot.slane %v16376_v34, %v16345_v42  ;;  %v7927_v9 = vrot.slane %v16377_v53, %v16347_v32  ;;  %v7913_v46 = vsel %vm6092_vm3, %v7912_v43, %v7908_v19  ;;  %v14913_v52 = vsel %vm6134_vm9, %v7903_v37, %v7899_v38  ;;  %v16394_v43 = vld [vmem:[#allocation135_spill] sm:$0xff]  ;;  %v16398_v38 = vld [vmem:[#allocation74_spill] sm:$0xff] }
0x10c9   :  { %v7932_v31 = vrot.slane %v16378_v59, %v16351_v0  ;;  %v7937_v24 = vrot.slane %v16379_v6, %v16353_v1  ;;  %v7918_v55 = vsel %vm6099_vm4, %v7917_v40, %v7913_v46  ;;  %v16380_v12 = vmax.f32 %v14734_v22, 0.0 }
0x10ca   :  { %v16381_v21 = vmax.f32 %v14731_v20, 0.0  ;;  %v7923_v60 = vsel %vm6106_vm5, %v7922_v4, %v7918_v55  ;;  %v16382_v50 = vmax.f32 %v14740_v41, 0.0  ;;  %v16383_v28 = vmax.f32 %v14737_v3, 0.0 }
0x10cb   :  { %v7942_v48 = vrot.slane %v16380_v12, %v16355_v44  ;;  %v16384_v11 = vmax.f32 %v14746_v45, 0.0  ;;  %v7928_v22 = vsel %vm6113_vm6, %v7927_v9, %v7923_v60  ;;  %v16385_v20 = vmax.f32 %v14743_v36, 0.0 }
0x10cc   :  { %v7966_v10 = vrot.slane %v16381_v21, %v16339_v16  ;;  %v7970_v18 = vrot.slane %v16382_v50, %v16341_v63  ;;  %v7975_v23 = vrot.slane %v16383_v28, %v16343_v49  ;;  %v16386_v51 = vmax.f32 %v14752_v57, 0.0  ;;  %v16402_v28 = vld [vmem:[#allocation96_spill] sm:$0xff] }
0x10cd   :  { %v7980_v62 = vrot.slane %v16384_v11, %v16345_v42  ;;  %v7985_v26 = vrot.slane %v16385_v20, %v16347_v32  ;;  %v16387_v41 = vmax.f32 %v14749_v47, 0.0  ;;  %v7933_v3 = vsel %vm6120_vm7, %v7932_v31, %v7928_v22  ;;  %v16400_v31 = vld [vmem:[#allocation137_spill] sm:$0xff] }
0x10ce   :  { %v7990_v58 = vrot.slane %v16386_v51, %v16351_v0  ;;  %v7971_v8 = vsel %vm6092_vm3, %v7970_v18, %v7966_v10  ;;  %v16388_v45 = vmax.f32 %v14758_v5, 0.0  ;;  %v16389_v36 = vmax.f32 %v14755_v29, 0.0  ;;  %v16392_v29 = vld [vmem:[#allocation138_spill] sm:$0xff] }
0x10cf   :  { %v7995_v27 = vrot.slane %v16387_v41, %v16353_v1  ;;  %v7938_v25 = vsel %vm6127_vm8, %v7937_v24, %v7933_v3  ;;  %v7976_v57 = vsel %vm6099_vm4, %v7975_v23, %v7971_v8  ;;  %v16390_v47 = vmax.f32 %v14764_v2, 0.0  ;;  %v16403_v23 = vld [vmem:[#allocation97_spill] sm:$0xff] }
0x10d0   :  { %v8000_v14 = vrot.slane %v16388_v45, %v16355_v44  ;;  %v8005_v15 = vrot.slane %v16389_v36, %v16339_v16  ;;  %v16391_v37 = vmax.f32 %v14761_v61, 0.0  ;;  %v14959_v19 = vsel %vm6134_vm9, %v7942_v48, %v7938_v25  ;;  %v16396_v61 = vld [vmem:[#allocation75_spill] sm:$0xff]  ;;  %v16410_v45 = vld [vmem:[#allocation130_spill] sm:$0xff] }
0x10d1   :  { %v8009_v7 = vrot.slane %v16390_v47, %v16341_v63  ;;  %v7981_v5 = vsel %vm6106_vm5, %v7980_v62, %v7976_v57  ;;  %v16393_v17 = vmax.f32 %v16392_v29, 0.0  ;;  %v16395_v13 = vmax.f32 %v16394_v43, 0.0  ;;  %v16404_v62 = vld [vmem:[#allocation128_spill] sm:$0xff] }
0x10d2   :  { %v8014_v56 = vrot.slane %v16391_v37, %v16343_v49  ;;  %v7986_v2 = vsel %vm6113_vm6, %v7985_v26, %v7981_v5  ;;  %v16397_v34 = vmax.f32 %v16396_v61, 0.0  ;;  %v16399_v46 = vmax.f32 %v16398_v38, 0.0  ;;  %v16406_v26 = vld [vmem:[#allocation120_spill] sm:$0xff]  ;;  %v16414_v37 = vld [vmem:[#allocation121_spill] sm:$0xff] }
0x10d3   :  { %v8019_v35 = vrot.slane %v16393_v17, %v16345_v42  ;;  %v8024_v40 = vrot.slane %v16395_v13, %v16347_v32  ;;  %v8010_v39 = vsel %vm6092_vm3, %v8009_v7, %v8005_v15  ;;  %v7991_v53 = vsel %vm6120_vm7, %v7990_v58, %v7986_v2  ;;  %v16412_v15 = vld [vmem:[#allocation122_spill] sm:$0xff]  ;;  %v16423_v38 = vld [vmem:[#allocation124_spill] sm:$0xff] }
0x10d4   :  { %v8029_v4 = vrot.slane %v16397_v34, %v16351_v0  ;;  %v8015_v9 = vsel %vm6099_vm4, %v8014_v56, %v8010_v39  ;;  %v8034_v59 = vrot.slane %v16399_v46, %v16353_v1  ;;  %v16401_v6 = vmax.f32 %v16400_v31, 0.0 }
0x10d5   :  { %v7996_v55 = vsel %vm6127_vm8, %v7995_v27, %v7991_v53  ;;  %v8020_v12 = vsel %vm6106_vm5, %v8019_v35, %v8015_v9  ;;  %v8048_v48 = vsel %vm6271_vm11, %v14895_v54, %v14885_v30  ;;  %v8050_v21 = vsel %vm6464_vm13, %v14959_v19, %v14913_v52  ;;  %v16408_v27 = vld [vmem:[#allocation127_spill] sm:$0xff]  ;;  %v16416_v35 = vld [vmem:[#allocation129_spill] sm:$0xff] }
0x10d6   :  { %v8039_v24 = vrot.slane %v16401_v6, %v16355_v44  ;;  %vm7944_vm2 = vcmask 1045509   ;;  %v8001_v10 = vsel %vm6134_vm9, %v8000_v14, %v7996_v55  ;;  %v8025_v60 = vsel %vm6113_vm6, %v8024_v40, %v8020_v12  ;;  %v16418_v40 = vld [vmem:[#allocation132_spill] sm:$0xff] }
0x10d7   :  { %v8054_v50 = vsel %vm6467_vm12, %v8048_v48, %v8050_v21  ;;  %v8030_v18 = vsel %vm6120_vm7, %v8029_v4, %v8025_v60  ;;  %v10476_v11 = vpack.c.bf16 %v16403_v23, %v16402_v28  ;;  %v16405_v22 = vmax.f32 %v16404_v62, 0.0  ;;  %v16421_v4 = vld [vmem:[#allocation134_spill] sm:$0xff]  ;;  %v16431_v62 = vld [vmem:[#allocation119_spill] sm:$0xff] }
0x10d8   :  { %v16407_v51 = vmax.f32 %v16406_v26, 0.0  ;;  %v8035_v41 = vsel %vm6127_vm8, %v8034_v59, %v8030_v18  ;;  %v16409_v3 = vmax.f32 %v16408_v27, 0.0  ;;  %v16411_v14 = vmax.f32 %v16410_v45, 0.0  ;;  %v16427_v48 = vld [vmem:[#allocation118_spill] sm:$0xff]  ;;  %v16429_v18 = vld [vmem:[#allocation131_spill] sm:$0xff] }
0x10d9   :  { %v7677_v20 = vrot.slane %v16405_v22, %v16339_v16  ;;  %v16413_v25 = vmax.f32 %v16412_v15, 0.0  ;;  %v8040_v47 = vsel %vm6134_vm9, %v8039_v24, %v8035_v41  ;;  %vm8046_vm1 = vcmask 1045504   ;;  %10477 = vmatpush3.bf16.msra.mxu0 %v10476_v11  ;;  %v16425_v24 = vld [vmem:[#allocation133_spill] sm:$0xff] }
0x10da   :  { %v7681_v58 = vrot.slane %v16407_v51, %v16341_v63  ;;  %v7686_v8 = vrot.slane %v16409_v3, %v16343_v49  ;;  %v7691_v36 = vrot.slane %v16411_v14, %v16345_v42  ;;  %v16415_v56 = vmax.f32 %v16414_v37, 0.0  ;;  %10478 = vmatprep.subr.bf16.mxu0 %v16332_v33 }
0x10db   :  { %v7696_v57 = vrot.slane %v16413_v25, %v16347_v32  ;;  %v8052_v29 = vsel %vm7944_vm2, %v8040_v47, %v8001_v10  ;;  %v16417_v43 = vmax.f32 %v16416_v35, 0.0  ;;  %v16419_v2 = vmax.f32 %v16418_v40, 0.0  ;;  %v16437_v35 = vld [vmem:[#allocation98_spill] sm:$0xff] }
0x10dc   :  { %v7682_v7 = vsel %vm6092_vm3, %v7681_v58, %v7677_v20  ;;  %v7701_v5 = vrot.slane %v16415_v56, %v16351_v0  ;;  %vm16420_vm0 = vcmask 1043456   ;;  %v16422_v53 = vmax.f32 %v16421_v4, 0.0  ;;  %v16433_v58 = vld [vmem:[#allocation136_spill] sm:$0xff] }
0x10dd   :  { %v7687_v17 = vsel %vm6099_vm4, %v7686_v8, %v7682_v7  ;;  %v7706_v13 = vrot.slane %v16417_v43, %v16353_v1  ;;  %v7716_v39 = vrot.slane %v16419_v2, %v16339_v16  ;;  %v8055_v61 = vsel %vm16420_vm0, %v8054_v50, %v8052_v29  ;;  %v16435_v8 = vld [vmem:[#allocation123_spill] sm:$0xff]  ;;  %v16441_v2 = vld [vmem:[#allocation101_spill] sm:$0xff] }
0x10de   :  { %v7692_v34 = vsel %vm6106_vm5, %v7691_v36, %v7687_v17  ;;  %v7720_v9 = vrot.slane %v16422_v53, %v16341_v63  ;;  %v16424_v46 = vmax.f32 %v16423_v38, 0.0  ;;  %v8056_v31 = vsel %vm8046_vm1, %v8055_v61, 0.0  ;;  %v16438_v43 = vld [vmem:[#allocation99_spill] sm:$0xff]  ;;  %v16447_v53 = vld [vmem:[#allocation106_spill] sm:$0xff] }
0x10df   :  { %v7697_v6 = vsel %vm6113_vm6, %v7696_v57, %v7692_v34  ;;  %v16426_v55 = vmax.f32 %v16425_v24, 0.0  ;;  %v16428_v21 = vmax.f32 %v16427_v48, 0.0  ;;  %8137 = vrot.lane.b32.xlu0 %v8056_v31, %s11261_s3  ;;  %v16430_v28 = vmax.f32 %v16429_v18, 0.0  ;;  %v16446_v34 = vld [vmem:[#allocation105_spill] sm:$0xff]  ;;  %v16452_v24 = vld [vmem:[#allocation111_spill] sm:$0xff]  ;;  %s9624_s3 = sshll.u32 %s11266_s18, 4  ;;  %s9625_s3 = int_to_ptr.vmem [resolvable:$true] %s9624_s3 }
0x10e0   :  { %v7725_v59 = vrot.slane %v16424_v46, %v16343_v49  ;;  %v7702_v50 = vsel %vm6120_vm7, %v7701_v5, %v7697_v6  ;;  %v7721_v11 = vsel %vm6092_vm3, %v7720_v9, %v7716_v39  ;;  %v16432_v22 = vmax.f32 %v16431_v62, 0.0  ;;  %v16448_v9 = vld [vmem:[#allocation107_spill] sm:$0xff]  ;;  %v16449_v46 = vld [vmem:[#allocation108_spill] sm:$0xff]  ;;  %v16451_v6 = vld [vmem:[#allocation110_spill] sm:$0xff]  ;;  %s11152_s7 = scalar_lea.vmem %s9625_s3, 2048  ;;  %p11157_p7 = scmp.lt.s32.totalorder %s9625_s3, %s9625_s3 }
0x10e1   :  { %v7730_v12 = vrot.slane %v16426_v55, %v16345_v42  ;;  %v7735_v60 = vrot.slane %v16428_v21, %v16347_v32  ;;  %v7711_v23 = vrot.slane %v16430_v28, %v16355_v44  ;;  %v7707_v26 = vsel %vm6127_vm8, %v7706_v13, %v7702_v50  ;;  %v16454_v48 = vld [vmem:[#allocation113_spill] sm:$0xff]  ;;  %v9739_v18 = vld [vmem:[#allocation27] ss:$0 sm:$0xff]  ;;  %p11153_p6 = scmp.ne.s32.totalorder %s9625_s3, %s11152_s7  ;;  %p11158_p8 = scmp.lt.s32.totalorder %s11152_s7, %s11152_s7 }
0x10e2   :  { %v7740_v20 = vrot.slane %v16432_v22, %v16351_v0  ;;  %v7726_v51 = vsel %vm6099_vm4, %v7725_v59, %v7721_v11  ;;  %v16434_v41 = vmax.f32 %v16433_v58, 0.0  ;;  %v16436_v45 = vmax.f32 %v16435_v8, 0.0  ;;  %v16450_v59 = vld [vmem:[#allocation109_spill] sm:$0xff]  ;;  %v16458_v8 = vld [vmem:[#allocation56_spill] sm:$0xff] }
0x10e3   :  { %v7731_v3 = vsel %vm6106_vm5, %v7730_v12, %v7726_v51  ;;  %v7712_v15 = vsel %vm6134_vm9, %v7711_v23, %v7707_v26  ;;  %vm8041_vm0 = vcmask 1047559   ;;  %v7848_v57 = vsel %vm6464_vm13, %v14895_v54, %v14885_v30  ;;  %v16440_v54 = vld [vmem:[#allocation100_spill] sm:$0xff]  ;;  %v16455_v51 = vld [vmem:[#allocation115_spill] sm:$0xff]  ;;  %p11159_p9 = por %p11158_p8, %p11157_p7 }
0x10e4   :  { %v7745_v27 = vrot.slane %v16434_v41, %v16353_v1  ;;  %v7750_v14 = vrot.slane %v16436_v45, %v16355_v44  ;;  %v7736_v36 = vsel %vm6113_vm6, %v7735_v60, %v7731_v3  ;;  %v7945_v56 = vsel %vm7944_vm2, %v14959_v19, %v14913_v52  ;;  %v16443_v52 = vld [vmem:[#allocation102_spill] sm:$0xff]  ;;  %v16444_v19 = vld [vmem:[#allocation103_spill] sm:$0xff]  ;;  %v16453_v12 = vld [vmem:[#allocation112_spill] sm:$0xff] }
0x10e5   :  { %v7741_v25 = vsel %vm6120_vm7, %v7740_v20, %v7736_v36  ;;  %v8042_v29 = vsel %vm8041_vm0, %v8040_v47, %v8001_v10  ;;  %v10479_v13 = vpack.c.bf16 %v16438_v43, %v16437_v35  ;;  %vm16439_vm6 = vcmask 1043456   ;;  %v16445_v47 = vld [vmem:[#allocation104_spill] sm:$0xff]  ;;  %p11160_p10 = pnand %p11159_p9, %p11153_p6 }
0x10e6   :  { %v7746_v7 = vsel %vm6127_vm8, %v7745_v27, %v7741_v25  ;;  %v10482_v39 = vpack.c.bf16 %v16441_v2, %v16440_v54  ;;  %v16442_v61 = vmov 0.0   ;;  %v10485_v10 = vpack.c.bf16 %v16444_v19, %v16443_v52  ;;  %v16457_v27 = vld [vmem:[#allocation55_spill] sm:$0xff] }
0x10e7   :  { %v7751_v37 = vsel %vm6134_vm9, %v7750_v14, %v7746_v7  ;;  %v10488_v4 = vpack.c.bf16 %v16446_v34, %v16445_v47  ;;  %v10491_v38 = vpack.c.bf16 %v16448_v9, %v16447_v53  ;;  %v10494_v31 = vpack.c.bf16 %v16450_v59, %v16449_v46  ;;  %v16459_v14 = vld [vmem:[#allocation114_spill] sm:$0xff] }
0x10e8   :  { %v7752_v5 = vsel %vm6271_vm11, %v7751_v37, %v7712_v15  ;;  %v10497_v55 = vpack.c.bf16 %v16452_v24, %v16451_v6  ;;  %v10500_v21 = vpack.c.bf16 %v16454_v48, %v16453_v12  ;;  %v8523_v36 = vsub.s32 4, %v16459_v14 }
0x10e9   :  { %v8044_v17 = vsel %vm6467_vm12, %v7752_v5, %v7848_v57  ;;  %v8542_v25 = vsub.s32 5, %v16459_v14  ;;  %v8697_v7 = vsub.s32 6, %v16459_v14 }
0x10ea   :  { %v8045_v40 = vsel %vm16439_vm6, %v8044_v17, %v7945_v56  ;;  %v8716_v56 = vsub.s32 7, %v16459_v14 }
0x10eb   :  { %v8047_v30 = vsel %vm8046_vm1, %v8045_v40, %v8042_v29  ;;  %vm8827_vm1 = vcmask 261120  }
0x10ec   :  { %10011 = vmatmul.mubr.msk.f32.vlgmr.msra.gmra.mrb[34].mxu0 %vm881_vm10, %v8047_v30 }
0x10ed   :  { %10480 = vmatpush3.bf16.msra.mxu0 %v10479_v13  ;;  %10045 = vmatprep.mubr.msk.f32.mxu0 %vm16350_vm15, %v16442_v61 }
0x10ee   :  { %10481 = vmatprep.subr.bf16.mxu0 %v16332_v33 }
0x10f1   :  { %10483 = vmatpush3.bf16.msra.mxu0 %v10482_v39 }
0x10f2   :  { %10484 = vmatprep.subr.bf16.mxu0 %v16332_v33 }
0x10f5   :  { %10486 = vmatpush3.bf16.msra.mxu0 %v10485_v10 }
0x10f6   :  { %10487 = vmatprep.subr.bf16.mxu0 %v16332_v33 }
0x10f9   :  { %10489 = vmatpush3.bf16.msra.mxu0 %v10488_v4 }
0x10fa   :  { %10490 = vmatprep.subr.bf16.mxu0 %v16332_v33 }
0x10fd   :  { %10492 = vmatpush3.bf16.msra.mxu0 %v10491_v38 }
0x10fe   :  { %10493 = vmatprep.subr.bf16.mxu0 %v16332_v33 }
0x1101   :  { %10495 = vmatpush3.bf16.msra.mxu0 %v10494_v31 }
0x1102   :  { %10496 = vmatprep.subr.bf16.mxu0 %v16332_v33 }
0x1105   :  { %10498 = vmatpush3.bf16.msra.mxu0 %v10497_v55 }
0x1106   :  { %10499 = vmatprep.subr.bf16.mxu0 %v16332_v33  ;;  %v16456_v33 = vld [vmem:[#allocation116_spill] sm:$0xff] }
0x1109   :  { %10501 = vmatpush3.bf16.msra.mxu0 %v10500_v21 }
0x1151   :  { %v8138_v60 = vpop.permute.xlu0 %8137 }
0x1152   :  { %v8140_v50 = vsel %vm881_vm10, %v8047_v30, %v8138_v60 }
0x1153   :  { %10046 = vmatmul.mubr.f32.vlgmr.msra.gmra.mrb[36].mxu0 %v8140_v50 }
0x11bf   :  { %v8132_v28 = vpop.f32.mrb[34].mxu0 }
0x11c0   :  { %v8133_v23 = vadd.f32 %v9739_v18, %v8132_v28  ;;  %v10012_v11 = vpop.f32.mrb[35].mxu0 }
0x11c2   :  { %v9741_v62 = vmul.f32 -1.442695, %v8133_v23 }
0x11c4   :  { %10818 = vpow2.f32 %v9741_v62 }
0x11ce   :  { %v10819_v22 = vpop.eup %10818 }
0x11cf   :  { %v8214_v20 = vadd.f32 1.0, %v10819_v22 }
0x11d1   :  { %10820 = vrcp.f32 %v8214_v20 }
0x11db   :  { %v15101_v26 = vpop.eup %10820 }
0x11dc   :  { %v8226_v58 = vrot.slane %v15101_v26, %v16455_v51  ;;  %v8245_v41 = vrot.slane %v15101_v26, %v16456_v33  ;;  %v8392_v3 = vrot.slane %v15101_v26, %v16457_v27  ;;  %v8411_v45 = vrot.slane %v15101_v26, %v16458_v8 }
0x11dd   :  { %v8524_v15 = vrot.slane %v15101_v26, %v8523_v36  ;;  %v8543_v57 = vrot.slane %v15101_v26, %v8542_v25  ;;  %v8698_v37 = vrot.slane %v15101_v26, %v8697_v7  ;;  %v8717_v5 = vrot.slane %v15101_v26, %v8716_v56 }
0x11de   :  { %8232 = vbcast.lane.b32.xlu1 %v8226_v58, 264  ;;  %8228 = vbcast.lane.b32.xlu0 %v8226_v58, 256 }
0x11e2   :  { %8247 = vbcast.lane.b32.xlu1 %v8245_v41, 256  ;;  %8251 = vbcast.lane.b32.xlu0 %v8245_v41, 264 }
0x11e6   :  { %8236 = vbcast.lane.b32.xlu1 %v8226_v58, 272  ;;  %8255 = vbcast.lane.b32.xlu0 %v8245_v41, 272 }
0x11ea   :  { %8240 = vbcast.lane.b32.xlu1 %v8226_v58, 280  ;;  %8259 = vbcast.lane.b32.xlu0 %v8245_v41, 280 }
0x11ee   :  { %8394 = vbcast.lane.b32.xlu1 %v8392_v3, 256  ;;  %8398 = vbcast.lane.b32.xlu0 %v8392_v3, 264 }
0x11f2   :  { %8413 = vbcast.lane.b32.xlu1 %v8411_v45, 256  ;;  %8417 = vbcast.lane.b32.xlu0 %v8411_v45, 264 }
0x11f6   :  { %8402 = vbcast.lane.b32.xlu1 %v8392_v3, 272  ;;  %8421 = vbcast.lane.b32.xlu0 %v8411_v45, 272 }
0x11fa   :  { %8406 = vbcast.lane.b32.xlu1 %v8392_v3, 280  ;;  %8425 = vbcast.lane.b32.xlu0 %v8411_v45, 280 }
0x11fe   :  { %8526 = vbcast.lane.b32.xlu1 %v8524_v15, 256  ;;  %8530 = vbcast.lane.b32.xlu0 %v8524_v15, 264 }
0x1202   :  { %8545 = vbcast.lane.b32.xlu1 %v8543_v57, 256  ;;  %8549 = vbcast.lane.b32.xlu0 %v8543_v57, 264 }
0x1206   :  { %8534 = vbcast.lane.b32.xlu1 %v8524_v15, 272  ;;  %8553 = vbcast.lane.b32.xlu0 %v8543_v57, 272 }
0x120a   :  { %8538 = vbcast.lane.b32.xlu1 %v8524_v15, 280  ;;  %8557 = vbcast.lane.b32.xlu0 %v8543_v57, 280 }
0x120e   :  { %8700 = vbcast.lane.b32.xlu1 %v8698_v37, 256  ;;  %8704 = vbcast.lane.b32.xlu0 %v8698_v37, 264 }
0x1212   :  { %8719 = vbcast.lane.b32.xlu1 %v8717_v5, 256  ;;  %8723 = vbcast.lane.b32.xlu0 %v8717_v5, 264 }
0x1216   :  { %8708 = vbcast.lane.b32.xlu1 %v8698_v37, 272  ;;  %8727 = vbcast.lane.b32.xlu0 %v8717_v5, 272 }
0x121a   :  { %8712 = vbcast.lane.b32.xlu1 %v8698_v37, 280  ;;  %8731 = vbcast.lane.b32.xlu0 %v8717_v5, 280  ;;  %v8559_v37 = vcombine.high %v15101_v26, %v15101_v26 }
0x1226   :  { %v8207_v29 = vpop.f32.mrb[36].mxu0 }
0x1227   :  { %v8208_v17 = vadd.f32 %v9739_v18, %v8207_v29  ;;  %v10047_v35 = vpop.f32.mrb[37].mxu0  ;;  %v16465_v29 = vld [vmem:[#allocation117_spill] sm:$0xff] }
0x1229   :  { %v9742_v43 = vmul.f32 -1.442695, %v8208_v17  ;;  %v8268_v17 = vrot.slane %v15101_v26, %v16465_v29 }
0x122b   :  { %10822 = vpow2.f32 %v9742_v43  ;;  %v8566_v43 = vrot.slane %v8559_v37, %v16465_v29 }
0x1235   :  { %v10823_v13 = vpop.eup %10822 }
0x1236   :  { %v8220_v40 = vadd.f32 1.0, %v10823_v13 }
0x1238   :  { %10824 = vrcp.f32 %v8220_v40 }
0x1242   :  { %v15123_v30 = vpop.eup %10824 }
0x1243   :  { %v8305_v54 = vrot.slane %v15123_v30, %v16455_v51  ;;  %v8324_v2 = vrot.slane %v15123_v30, %v16456_v33  ;;  %v8458_v39 = vrot.slane %v15123_v30, %v16457_v27  ;;  %v8477_v61 = vrot.slane %v15123_v30, %v16458_v8 }
0x1244   :  { %v8611_v34 = vrot.slane %v15123_v30, %v8523_v36  ;;  %v8630_v9 = vrot.slane %v15123_v30, %v8542_v25  ;;  %v8764_v6 = vrot.slane %v15123_v30, %v8697_v7  ;;  %v8783_v12 = vrot.slane %v15123_v30, %v8716_v56 }
0x1245   :  { %8307 = vbcast.lane.b32.xlu1 %v8305_v54, 256  ;;  %8311 = vbcast.lane.b32.xlu0 %v8305_v54, 264  ;;  %v8646_v35 = vcombine.high %v15123_v30, %v15123_v30  ;;  %v8347_v13 = vrot.slane %v15123_v30, %v16465_v29  ;;  %v8574_v30 = vrot.slane %v8566_v43, %v16465_v29 }
0x1247   :  { %v8355_v1 = vrot.slane %v8347_v13, %v16465_v29 }
0x1249   :  { %8326 = vbcast.lane.b32.xlu1 %v8324_v2, 256  ;;  %8330 = vbcast.lane.b32.xlu0 %v8324_v2, 264 }
0x124d   :  { %8315 = vbcast.lane.b32.xlu1 %v8305_v54, 272  ;;  %8334 = vbcast.lane.b32.xlu0 %v8324_v2, 272 }
0x1250   :  { %v15133_v52 = vpop.permute.xlu1 %8232  ;;  %v15135_v19 = vpop.permute.xlu0 %8228 }
0x1251   :  { %8319 = vbcast.lane.b32.xlu1 %v8305_v54, 280  ;;  %8338 = vbcast.lane.b32.xlu0 %v8324_v2, 280  ;;  %v8269_v2 = vcombine.high %v8268_v17, %v8268_v17 }
0x1254   :  { %v15137_v10 = vpop.permute.xlu1 %8247  ;;  %v15139_v47 = vpop.permute.xlu0 %8251 }
0x1255   :  { %8460 = vbcast.lane.b32.xlu1 %v8458_v39, 256  ;;  %8464 = vbcast.lane.b32.xlu0 %v8458_v39, 264 }
0x1258   :  { %v15142_v4 = vpop.permute.xlu1 %8236  ;;  %v15144_v53 = vpop.permute.xlu0 %8255 }
0x1259   :  { %8479 = vbcast.lane.b32.xlu1 %v8477_v61, 256  ;;  %8483 = vbcast.lane.b32.xlu0 %v8477_v61, 264 }
0x125c   :  { %v15147_v38 = vpop.permute.xlu1 %8240  ;;  %v15149_v46 = vpop.permute.xlu0 %8259 }
0x125d   :  { %8468 = vbcast.lane.b32.xlu1 %v8458_v39, 272  ;;  %8487 = vbcast.lane.b32.xlu0 %v8477_v61, 272 }
0x1260   :  { %v15151_v59 = vpop.permute.xlu1 %8394  ;;  %v15153_v31 = vpop.permute.xlu0 %8398 }
0x1261   :  { %8472 = vbcast.lane.b32.xlu1 %v8458_v39, 280  ;;  %8491 = vbcast.lane.b32.xlu0 %v8477_v61, 280  ;;  %v8653_v39 = vrot.slane %v8646_v35, %v16465_v29  ;;  %v8567_v61 = vcombine.high %v8566_v43, %v8566_v43 }
0x1263   :  { %v8654_v37 = vcombine.high %v8653_v39, %v8653_v39  ;;  %v8581_v44 = vrot.slane %v8567_v61, %v16465_v29  ;;  %v8661_v42 = vrot.slane %v8653_v39, %v16465_v29 }
0x1264   :  { %v15158_v24 = vpop.permute.xlu1 %8413  ;;  %v15160_v55 = vpop.permute.xlu0 %8417 }
0x1265   :  { %8613 = vbcast.lane.b32.xlu1 %v8611_v34, 256  ;;  %8617 = vbcast.lane.b32.xlu0 %v8611_v34, 264  ;;  %v8734_v16 = vcombine.high %v8581_v44, %v8581_v44 }
0x1268   :  { %v15165_v48 = vpop.permute.xlu1 %8402  ;;  %v15167_v21 = vpop.permute.xlu0 %8421 }
0x1269   :  { %8632 = vbcast.lane.b32.xlu1 %v8630_v9, 256  ;;  %8636 = vbcast.lane.b32.xlu0 %v8630_v9, 264 }
0x126c   :  { %v15169_v60 = vpop.permute.xlu1 %8406  ;;  %v15171_v50 = vpop.permute.xlu0 %8425 }
0x126d   :  { %8621 = vbcast.lane.b32.xlu1 %v8611_v34, 272  ;;  %8640 = vbcast.lane.b32.xlu0 %v8630_v9, 272 }
0x1270   :  { %v15173_v18 = vpop.permute.xlu1 %8526  ;;  %v15175_v28 = vpop.permute.xlu0 %8530 }
0x1271   :  { %8625 = vbcast.lane.b32.xlu1 %v8611_v34, 280  ;;  %8644 = vbcast.lane.b32.xlu0 %v8630_v9, 280  ;;  %v8348_v34 = vcombine.high %v8347_v13, %v8347_v13 }
0x1273   :  { %v8362_v0 = vrot.slane %v8348_v34, %v16465_v29 }
0x1274   :  { %v15177_v23 = vpop.permute.xlu1 %8545  ;;  %v15179_v11 = vpop.permute.xlu0 %8549 }
0x1275   :  { %8766 = vbcast.lane.b32.xlu1 %v8764_v6, 256  ;;  %8770 = vbcast.lane.b32.xlu0 %v8764_v6, 264  ;;  %v8494_v43 = vcombine.high %v8362_v0, %v8362_v0 }
0x1278   :  { %v15181_v62 = vpop.permute.xlu1 %8534  ;;  %v15183_v22 = vpop.permute.xlu0 %8553 }
0x1279   :  { %8785 = vbcast.lane.b32.xlu1 %v8783_v12, 256  ;;  %8789 = vbcast.lane.b32.xlu0 %v8783_v12, 264 }
0x127c   :  { %v15185_v20 = vpop.permute.xlu1 %8538  ;;  %v15187_v58 = vpop.permute.xlu0 %8557 }
0x127d   :  { %8774 = vbcast.lane.b32.xlu1 %v8764_v6, 272  ;;  %8793 = vbcast.lane.b32.xlu0 %v8783_v12, 272 }
0x1280   :  { %v15189_v33 = vpop.permute.xlu1 %8700  ;;  %v15191_v41 = vpop.permute.xlu0 %8704 }
0x1281   :  { %8778 = vbcast.lane.b32.xlu1 %v8764_v6, 280  ;;  %8797 = vbcast.lane.b32.xlu0 %v8783_v12, 280  ;;  %v8276_v6 = vrot.slane %v8268_v17, %v16465_v29  ;;  %v8283_v12 = vrot.slane %v8269_v2, %v16465_v29  ;;  %v8668_v17 = vrot.slane %v8654_v37, %v16465_v29 }
0x1282   :  { %v8733_v2 = vcombine.high %v8574_v30, %v8574_v30  ;;  %v15260_v37 = vrot.slane %v8574_v30, %v16455_v51  ;;  %v15281_v30 = vrot.slane %v8494_v43, %v16455_v51 }
0x1283   :  { %v8427_v49 = vcombine.high %v8276_v6, %v8276_v6  ;;  %v8428_v63 = vcombine.high %v8283_v12, %v8283_v12  ;;  %v15244_v61 = vrot.slane %v8276_v6, %v16455_v51  ;;  %v15247_v13 = vrot.slane %v8283_v12, %v16455_v51 }
0x1284   :  { %v15193_v27 = vpop.permute.xlu1 %8719  ;;  %v15195_v3 = vpop.permute.xlu0 %8723  ;;  %v15263_v6 = vrot.slane %v8581_v44, %v16455_v51  ;;  %v15266_v12 = vrot.slane %v8733_v2, %v16455_v51  ;;  %v15284_v44 = vrot.slane %v8661_v42, %v16455_v51 }
0x1285   :  { %16460 = vst [vmem:[#allocation126_spill] sm:$0xff] %v15195_v3  ;;  %16466 = vst [vmem:[#allocation59_spill] sm:$0xff] %v15244_v61  ;;  %v15254_v39 = vrot.slane %v8427_v49, %v16455_v51  ;;  %v15257_v29 = vrot.slane %v8428_v63, %v16455_v51  ;;  %v15269_v3 = vrot.slane %v8734_v16, %v16455_v51 }
0x1286   :  { %16467 = vst [vmem:[#allocation76_spill] sm:$0xff] %v15247_v13  ;;  %v15275_v49 = vrot.slane %v8362_v0, %v16455_v51  ;;  %v8295_v2 = vmul.f32 %v15244_v61, %v15133_v52  ;;  %v8294_v16 = vmul.f32 %v15244_v61, %v15135_v19  ;;  %v15295_v0 = vrot.slane %v8668_v17, %v16455_v51 }
0x1287   :  { %16470 = vst [vmem:[#allocation61_spill] sm:$0xff] %v15257_v29  ;;  %16471 = vst [vmem:[#allocation78_spill] sm:$0xff] %v15269_v3  ;;  %v8299_v19 = vmul.f32 %v15247_v13, %v15139_v47 }
0x1288   :  { %v15197_v8 = vpop.permute.xlu1 %8708  ;;  %v15199_v45 = vpop.permute.xlu0 %8727 }
0x1289   :  { %16461 = vst [vmem:[#allocation140_spill] sm:$0xff] %v15197_v8  ;;  %16462 = vst [vmem:[#allocation139_spill] sm:$0xff] %v15199_v45  ;;  %v8799_v45 = vcombine.high %v8661_v42, %v8661_v42  ;;  %v8800_v8 = vcombine.high %v8668_v17, %v8668_v17  ;;  %v8298_v42 = vmul.f32 %v15247_v13, %v15137_v10 }
0x128a   :  { %v8296_v17 = vmul.f32 %v15244_v61, %v15142_v4  ;;  %v8301_v10 = vmul.f32 %v15247_v13, %v15149_v46  ;;  %v8440_v4 = vmul.f32 %v15254_v39, %v15153_v31  ;;  %v8441_v46 = vmul.f32 %v15254_v39, %v15165_v48 }
0x128b   :  { %v15305_v3 = vrot.slane %v8800_v8, %v16455_v51  ;;  %v8593_v48 = vmul.f32 %v15260_v37, %v15175_v28 }
0x128c   :  { %v15201_v14 = vpop.permute.xlu1 %8712  ;;  %v15203_v36 = vpop.permute.xlu0 %8731 }
0x128d   :  { %16463 = vst [vmem:[#allocation141_spill] sm:$0xff] %v15201_v14  ;;  %16464 = vst [vmem:[#allocation58_spill] sm:$0xff] %v15203_v36  ;;  %v8493_v36 = vcombine.high %v8355_v1, %v8355_v1 }
0x128f   :  { %v15278_v63 = vrot.slane %v8493_v36, %v16455_v51  ;;  %v15298_v36 = vrot.slane %v8799_v45, %v16455_v51  ;;  %v8300_v45 = vmul.f32 %v15247_v13, %v15144_v53  ;;  %v8443_v53 = vmul.f32 %v15257_v29, %v15158_v24 }
0x1290   :  { %v15339_v24 = vmul.f32 %v15257_v29, %v15171_v50  ;;  %v8596_v13 = vmul.f32 %v15263_v6, %v15177_v23  ;;  %v8597_v50 = vmul.f32 %v15263_v6, %v15179_v11 }
0x1291   :  { %16472 = vst [vmem:[#allocation79_spill] sm:$0xff] %v15298_v36  ;;  %v8297_v36 = vmul.f32 %v15244_v61, %v15147_v38  ;;  %v8444_v38 = vmul.f32 %v15257_v29, %v15160_v55  ;;  %v8592_v55 = vmul.f32 %v15260_v37, %v15173_v18  ;;  %v15355_v18 = vmul.f32 %v15260_v37, %v15181_v62 }
0x1292   :  { %v8598_v62 = vmul.f32 %v15263_v6, %v15183_v22 }
0x12b7   :  { %v8308_v15 = vpop.permute.xlu1 %8307  ;;  %v8312_v25 = vpop.permute.xlu0 %8311 }
0x12bb   :  { %v15205_v57 = vpop.permute.xlu1 %8326  ;;  %v15207_v7 = vpop.permute.xlu0 %8330 }
0x12bc   :  { %v8378_v47 = vmul.f32 %v15275_v49, %v15207_v7 }
0x12be   :  { %v8386_v61 = vadd.f32 %v8378_v47, %v8299_v19 }
0x12bf   :  { %v15211_v56 = vpop.permute.xlu1 %8315  ;;  %v15213_v5 = vpop.permute.xlu0 %8334 }
0x12c0   :  { %v8379_v23 = vmul.f32 %v15275_v49, %v15213_v5  ;;  %v8745_v5 = vmul.f32 %v15266_v12, %v15189_v33 }
0x12c3   :  { %v15222_v40 = vpop.permute.xlu1 %8319  ;;  %v15224_v54 = vpop.permute.xlu0 %8338 }
0x12c7   :  { %v15227_v9 = vpop.permute.xlu1 %8460  ;;  %v15229_v26 = vpop.permute.xlu0 %8464 }
0x12cb   :  { %v15237_v35 = vpop.permute.xlu1 %8479  ;;  %v15239_v32 = vpop.permute.xlu0 %8483 }
0x12cc   :  { %v8510_v11 = vmul.f32 %v15281_v30, %v15239_v32  ;;  %v8387_v32 = vadd.f32 %v8379_v23, %v8300_v45 }
0x12cf   :  { %v15249_v34 = vpop.permute.xlu1 %8468  ;;  %v15251_v14 = vpop.permute.xlu0 %8487 }
0x12d0   :  { %16468 = vst [vmem:[#allocation77_spill] sm:$0xff] %v15249_v34  ;;  %16469 = vst [vmem:[#allocation60_spill] sm:$0xff] %v15251_v14  ;;  %v15272_v14 = vrot.slane %v8355_v1, %v16455_v51  ;;  %v8377_v51 = vmul.f32 %v15275_v49, %v15205_v57  ;;  %v15335_v57 = vmul.f32 %v15254_v39, %v15169_v60 }
0x12d1   :  { %v8505_v60 = vmul.f32 %v15278_v63, %v15227_v9 }
0x12d2   :  { %v8373_v43 = vmul.f32 %v15272_v14, %v8308_v15  ;;  %v8374_v52 = vmul.f32 %v15272_v14, %v8312_v25  ;;  %v8439_v15 = vmul.f32 %v15254_v39, %v15151_v59  ;;  %v8445_v25 = vmul.f32 %v15257_v29, %v15167_v21 }
0x12d3   :  { %v15290_v1 = vpop.permute.xlu1 %8472  ;;  %v15292_v34 = vpop.permute.xlu0 %8491  ;;  %v8385_v21 = vadd.f32 %v8377_v51, %v8298_v42  ;;  %v8375_v28 = vmul.f32 %v15272_v14, %v15211_v56  ;;  %v15373_v56 = vmul.f32 %v15263_v6, %v15187_v58  ;;  %v8452_v51 = vadd.f32 %v8444_v38, %v8386_v61  ;;  %v16473_v61 = vld [vmem:[#allocation78_spill] sm:$0xff] }
0x12d4   :  { %v8381_v7 = vadd.f32 %v8373_v43, %v8294_v16  ;;  %v8382_v31 = vadd.f32 %v8374_v52, %v8295_v2  ;;  %v8506_v2 = vmul.f32 %v15278_v63, %v15229_v26  ;;  %v8509_v26 = vmul.f32 %v15281_v30, %v15237_v35 }
0x12d5   :  { %v15369_v52 = vmul.f32 %v15260_v37, %v15185_v20  ;;  %v8451_v35 = vadd.f32 %v8443_v53, %v8385_v21  ;;  %v8383_v47 = vadd.f32 %v8375_v28, %v8296_v17  ;;  %v8376_v22 = vmul.f32 %v15272_v14, %v15222_v40 }
0x12d6   :  { %v8447_v43 = vadd.f32 %v8439_v15, %v8381_v7  ;;  %v8448_v9 = vadd.f32 %v8440_v4, %v8382_v31  ;;  %v8380_v20 = vmul.f32 %v15275_v49, %v15224_v54  ;;  %v8518_v58 = vadd.f32 %v8510_v11, %v8452_v51 }
0x12d7   :  { %v8614_v8 = vpop.permute.xlu1 %8613  ;;  %v8618_v59 = vpop.permute.xlu0 %8617  ;;  %v8517_v31 = vadd.f32 %v8509_v26, %v8451_v35  ;;  %v8746_v53 = vmul.f32 %v15266_v12, %v15191_v41  ;;  %v8749_v17 = vmul.f32 %v16473_v61, %v15193_v27  ;;  %v16474_v45 = vld [vmem:[#allocation77_spill] sm:$0xff]  ;;  %v16475_v38 = vld [vmem:[#allocation60_spill] sm:$0xff]  ;;  %v8449_v23 = vadd.f32 %v8441_v46, %v8383_v47  ;;  %v16478_v47 = vld [vmem:[#allocation79_spill] sm:$0xff] }
0x12d8   :  { %v8513_v19 = vadd.f32 %v8505_v60, %v8447_v43  ;;  %v8514_v15 = vadd.f32 %v8506_v2, %v8448_v9  ;;  %v8679_v29 = vmul.f32 %v15284_v44, %v8614_v8  ;;  %v8680_v33 = vmul.f32 %v15284_v44, %v8618_v59 }
0x12d9   :  { %v8507_v40 = vmul.f32 %v15278_v63, %v16474_v45  ;;  %v8511_v54 = vmul.f32 %v15281_v30, %v16475_v38  ;;  %v8384_v59 = vadd.f32 %v8376_v22, %v8297_v36  ;;  %v8388_v28 = vadd.f32 %v8380_v20, %v8301_v10  ;;  %v16477_v10 = vld [vmem:[#allocation140_spill] sm:$0xff] }
0x12da   :  { %v8600_v21 = vadd.f32 %v8592_v55, %v8513_v19  ;;  %v8601_v60 = vadd.f32 %v8593_v48, %v8514_v15  ;;  %v8453_v41 = vadd.f32 %v8445_v25, %v8387_v32  ;;  %v8604_v11 = vadd.f32 %v8596_v13, %v8517_v31 }
0x12db   :  { %v8633_v16 = vpop.permute.xlu1 %8632  ;;  %v8637_v42 = vpop.permute.xlu0 %8636  ;;  %v8605_v35 = vadd.f32 %v8597_v50, %v8518_v58  ;;  %v8515_v51 = vadd.f32 %v8507_v40, %v8449_v23  ;;  %v8508_v55 = vmul.f32 %v15278_v63, %v15290_v1  ;;  %v8512_v48 = vmul.f32 %v15281_v30, %v15292_v34 }
0x12dc   :  { %v8683_v2 = vmul.f32 %v15295_v0, %v8633_v16  ;;  %v8684_v8 = vmul.f32 %v15295_v0, %v8637_v42  ;;  %v8687_v27 = vadd.f32 %v8679_v29, %v8600_v21  ;;  %v8688_v26 = vadd.f32 %v8680_v33, %v8601_v60  ;;  %v16476_v16 = vld [vmem:[#allocation126_spill] sm:$0xff] }
0x12dd   :  { %v8519_v45 = vadd.f32 %v8511_v54, %v8453_v41  ;;  %v8750_v36 = vmul.f32 %v16473_v61, %v16476_v16  ;;  %v8747_v46 = vmul.f32 %v15266_v12, %v16477_v10  ;;  %v8450_v29 = vadd.f32 %v15335_v57, %v8384_v59  ;;  %v16480_v16 = vld [vmem:[#allocation141_spill] sm:$0xff] }
0x12de   :  { %v8691_v25 = vadd.f32 %v8683_v2, %v8604_v11  ;;  %v8692_v42 = vadd.f32 %v8684_v8, %v8605_v35  ;;  %v8454_v13 = vadd.f32 %v15339_v24, %v8388_v28  ;;  %v8753_v22 = vadd.f32 %v8745_v5, %v8687_v27 }
0x12df   :  { %v8622_v4 = vpop.permute.xlu1 %8621  ;;  %v8641_v7 = vpop.permute.xlu0 %8640  ;;  %v8754_v20 = vadd.f32 %v8746_v53, %v8688_v26  ;;  %v8516_v31 = vadd.f32 %v8508_v55, %v8450_v29  ;;  %v8602_v33 = vadd.f32 %v15355_v18, %v8515_v51  ;;  %v8606_v40 = vadd.f32 %v8598_v62, %v8519_v45  ;;  %v16479_v62 = vld [vmem:[#allocation139_spill] sm:$0xff] }
0x12e0   :  { %v8681_v50 = vmul.f32 %v15284_v44, %v8622_v4  ;;  %v8685_v19 = vmul.f32 %v15295_v0, %v8641_v7  ;;  %v8520_v58 = vadd.f32 %v8512_v48, %v8454_v13  ;;  %v8757_v24 = vadd.f32 %v8749_v17, %v8691_v25 }
0x12e1   :  { %v8758_v54 = vadd.f32 %v8750_v36, %v8692_v42  ;;  %v8751_v17 = vmul.f32 %v16473_v61, %v16479_v62  ;;  %v8603_v28 = vadd.f32 %v15369_v52, %v8516_v31  ;;  %v16481_v36 = vld [vmem:[#allocation58_spill] sm:$0xff] }
0x12e2   :  { %v8689_v4 = vadd.f32 %v8681_v50, %v8602_v33  ;;  %v8693_v21 = vadd.f32 %v8685_v19, %v8606_v40  ;;  %v8607_v23 = vadd.f32 %v15373_v56, %v8520_v58  ;;  %v8748_v56 = vmul.f32 %v15266_v12, %v16480_v16 }
0x12e3   :  { %v8626_v43 = vpop.permute.xlu1 %8625  ;;  %v8645_v9 = vpop.permute.xlu0 %8644  ;;  %v8752_v10 = vmul.f32 %v16473_v61, %v16481_v36 }
0x12e4   :  { %v8682_v7 = vmul.f32 %v15284_v44, %v8626_v43  ;;  %v8686_v60 = vmul.f32 %v15295_v0, %v8645_v9  ;;  %v8755_v35 = vadd.f32 %v8747_v46, %v8689_v4  ;;  %v8759_v51 = vadd.f32 %v8751_v17, %v8693_v21 }
0x12e6   :  { %v8690_v9 = vadd.f32 %v8682_v7, %v8603_v28  ;;  %v8694_v27 = vadd.f32 %v8686_v60, %v8607_v23 }
0x12e7   :  { %v8767_v1 = vpop.permute.xlu1 %8766  ;;  %v8771_v15 = vpop.permute.xlu0 %8770 }
0x12e8   :  { %v8811_v34 = vmul.f32 %v16478_v47, %v8767_v1  ;;  %v8812_v32 = vmul.f32 %v16478_v47, %v8771_v15  ;;  %v8756_v13 = vadd.f32 %v8748_v56, %v8690_v9  ;;  %v8760_v50 = vadd.f32 %v8752_v10, %v8694_v27 }
0x12ea   :  { %v8819_v57 = vadd.f32 %v8811_v34, %v8753_v22  ;;  %v8820_v38 = vadd.f32 %v8812_v32, %v8754_v20 }
0x12eb   :  { %v8786_v2 = vpop.permute.xlu1 %8785  ;;  %v8790_v8 = vpop.permute.xlu0 %8789 }
0x12ec   :  { %v8815_v5 = vmul.f32 %v15305_v3, %v8786_v2  ;;  %v8816_v53 = vmul.f32 %v15305_v3, %v8790_v8  ;;  %v8828_v59 = vsel %vm8827_vm1, %v8819_v57, -inf  ;;  %v8831_v18 = vsel %vm8827_vm1, %v8820_v38, -inf }
0x12ed   :  { %8829 = vmax.xlane.f32.xlu1 %v8828_v59  ;;  %8832 = vmax.xlane.f32.xlu0 %v8831_v18 }
0x12ee   :  { %v8823_v41 = vadd.f32 %v8815_v5, %v8757_v24  ;;  %v8824_v43 = vadd.f32 %v8816_v53, %v8758_v54 }
0x12ef   :  { %v8775_v26 = vpop.permute.xlu1 %8774  ;;  %v8794_v11 = vpop.permute.xlu0 %8793 }
0x12f0   :  { %v8813_v45 = vmul.f32 %v16478_v47, %v8775_v26  ;;  %v8817_v55 = vmul.f32 %v15305_v3, %v8794_v11  ;;  %v8840_v48 = vsel %vm8827_vm1, %v8823_v41, -inf  ;;  %v8843_v52 = vsel %vm8827_vm1, %v8824_v43, -inf }
0x12f1   :  { %8841 = vmax.xlane.f32.xlu0 %v8840_v48  ;;  %8844 = vmax.xlane.f32.xlu1 %v8843_v52 }
0x12f2   :  { %v8821_v25 = vadd.f32 %v8813_v45, %v8755_v35  ;;  %v8825_v42 = vadd.f32 %v8817_v55, %v8759_v51 }
0x12f3   :  { %v8779_v46 = vpop.permute.xlu1 %8778  ;;  %v8798_v29 = vpop.permute.xlu0 %8797 }
0x12f4   :  { %v8814_v19 = vmul.f32 %v16478_v47, %v8779_v46  ;;  %v8818_v1 = vmul.f32 %v15305_v3, %v8798_v29  ;;  %v8834_v15 = vsel %vm8827_vm1, %v8821_v25, -inf  ;;  %v8846_v34 = vsel %vm8827_vm1, %v8825_v42, -inf }
0x12f5   :  { %8835 = vmax.xlane.f32.xlu0 %v8834_v15  ;;  %8847 = vmax.xlane.f32.xlu1 %v8846_v34 }
0x12f6   :  { %v8822_v32 = vadd.f32 %v8814_v19, %v8756_v13  ;;  %v8826_v22 = vadd.f32 %v8818_v1, %v8760_v50 }
0x12f8   :  { %v8837_v20 = vsel %vm8827_vm1, %v8822_v32, -inf  ;;  %v8849_v31 = vsel %vm8827_vm1, %v8826_v22, -inf }
0x12f9   :  { %8838 = vmax.xlane.f32.xlu0 %v8837_v20  ;;  %8850 = vmax.xlane.f32.xlu1 %v8849_v31 }
0x137a   :  { %v8830_v58 = vpop.xlane.xlu1 %8829  ;;  %v8833_v33 = vpop.xlane.xlu0 %8832 }
0x137b   :  { %v8852_v40 = vsub.f32 %v8819_v57, %v8830_v58  ;;  %v8853_v24 = vsub.f32 %v8820_v38, %v8833_v33  ;;  %v16482_v33 = vld [vmem:[#allocation59_spill] sm:$0xff] }
0x137d   :  { %v8860_v54 = vmul.f32 1.442695, %v8852_v40  ;;  %v8862_v4 = vmul.f32 1.442695, %v8853_v24 }
0x137e   :  { %v8845_v21 = vpop.xlane.xlu1 %8844  ;;  %v8842_v7 = vpop.xlane.xlu0 %8841 }
0x137f   :  { %10826 = vpow2.f32 %v8860_v54  ;;  %v8857_v60 = vsub.f32 %v8824_v43, %v8845_v21  ;;  %v8856_v2 = vsub.f32 %v8823_v41, %v8842_v7 }
0x1380   :  { %10828 = vpow2.f32 %v8862_v4 }
0x1381   :  { %v8870_v8 = vmul.f32 1.442695, %v8857_v60  ;;  %v8868_v5 = vmul.f32 1.442695, %v8856_v2 }
0x1382   :  { %v8848_v53 = vpop.xlane.xlu1 %8847  ;;  %v8836_v59 = vpop.xlane.xlu0 %8835 }
0x1383   :  { %10830 = vpow2.f32 %v8870_v8  ;;  %v8858_v18 = vsub.f32 %v8825_v42, %v8848_v53  ;;  %v8854_v62 = vsub.f32 %v8821_v25, %v8836_v59 }
0x1384   :  { %10832 = vpow2.f32 %v8868_v5 }
0x1385   :  { %v8872_v17 = vmul.f32 1.442695, %v8858_v18  ;;  %v8864_v28 = vmul.f32 1.442695, %v8854_v62 }
0x1386   :  { %v8851_v57 = vpop.xlane.xlu1 %8850  ;;  %v8839_v38 = vpop.xlane.xlu0 %8838 }
0x1387   :  { %10834 = vpow2.f32 %v8872_v17  ;;  %v8859_v23 = vsub.f32 %v8826_v22, %v8851_v57  ;;  %v8855_v9 = vsub.f32 %v8822_v32, %v8839_v38 }
0x1388   :  { %10836 = vpow2.f32 %v8864_v28 }
0x1389   :  { %v10827_v27 = vpop.eup %10826  ;;  %v8874_v43 = vmul.f32 1.442695, %v8859_v23  ;;  %v8866_v41 = vmul.f32 1.442695, %v8855_v9  ;;  %v16483_v23 = vld [vmem:[#allocation76_spill] sm:$0xff] }
0x138a   :  { %v10829_v26 = vpop.eup %10828  ;;  %v8876_v11 = vsel %vm8827_vm1, %v10827_v27, 0.0 }
0x138b   :  { %10838 = vpow2.f32 %v8874_v43  ;;  %8877 = vadd.xlane.f32.xlu0 %v8876_v11  ;;  %v8879_v35 = vsel %vm8827_vm1, %v10829_v26, 0.0 }
0x138c   :  { %10840 = vpow2.f32 %v8866_v41  ;;  %8880 = vadd.xlane.f32.xlu1 %v8879_v35 }
0x138d   :  { %v10831_v51 = vpop.eup %10830 }
0x138e   :  { %v10833_v45 = vpop.eup %10832  ;;  %v8891_v55 = vsel %vm8827_vm1, %v10831_v51, 0.0 }
0x138f   :  { %v8888_v48 = vsel %vm8827_vm1, %v10833_v45, 0.0 }
0x1390   :  { %8892 = vadd.xlane.f32.xlu1 %v8891_v55  ;;  %8889 = vadd.xlane.f32.xlu0 %v8888_v48 }
0x1391   :  { %v10835_v52 = vpop.eup %10834 }
0x1392   :  { %v10837_v16 = vpop.eup %10836  ;;  %v8894_v56 = vsel %vm8827_vm1, %v10835_v52, 0.0 }
0x1393   :  { %v8882_v36 = vsel %vm8827_vm1, %v10837_v16, 0.0 }
0x1394   :  { %8895 = vadd.xlane.f32.xlu1 %v8894_v56  ;;  %8883 = vadd.xlane.f32.xlu0 %v8882_v36 }
0x1395   :  { %v10839_v10 = vpop.eup %10838 }
0x1396   :  { %v10841_v25 = vpop.eup %10840  ;;  %v8897_v42 = vsel %vm8827_vm1, %v10839_v10, 0.0 }
0x1397   :  { %v8885_v46 = vsel %vm8827_vm1, %v10841_v25, 0.0 }
0x1398   :  { %8898 = vadd.xlane.f32.xlu1 %v8897_v42  ;;  %8886 = vadd.xlane.f32.xlu0 %v8885_v46 }
0x1418   :  { %v8878_v29 = vpop.xlane.xlu0 %8877 }
0x1419   :  { %v8881_v13 = vpop.xlane.xlu1 %8880  ;;  %10842 = vrcp.f32 %v8878_v29 }
0x141a   :  { %10844 = vrcp.f32 %v8881_v13 }
0x141d   :  { %v8893_v50 = vpop.xlane.xlu1 %8892  ;;  %v8890_v19 = vpop.xlane.xlu0 %8889 }
0x141e   :  { %10846 = vrcp.f32 %v8893_v50 }
0x141f   :  { %10848 = vrcp.f32 %v8890_v19 }
0x1421   :  { %v8896_v1 = vpop.xlane.xlu1 %8895  ;;  %v8884_v15 = vpop.xlane.xlu0 %8883 }
0x1422   :  { %10850 = vrcp.f32 %v8896_v1 }
0x1423   :  { %v10843_v34 = vpop.eup %10842  ;;  %10852 = vrcp.f32 %v8884_v15 }
0x1424   :  { %v10845_v32 = vpop.eup %10844  ;;  %v15440_v22 = vmul.f32 %v10843_v34, %v10827_v27 }
0x1425   :  { %v15442_v20 = vmul.f32 %v10845_v32, %v10829_v26  ;;  %v8899_v31 = vpop.xlane.xlu1 %8898  ;;  %v8887_v58 = vpop.xlane.xlu0 %8886 }
0x1426   :  { %8924 = vst.msk [vmem:[#allocation31] sm:$0xff] %vm8827_vm1, %v15440_v22  ;;  %10854 = vrcp.f32 %v8899_v31  ;;  %v8932_v40 = vmul.f32 %v15440_v22, %v16482_v33  ;;  %v9092_v15 = vmul.f32 %v15440_v22, %v15284_v44 }
0x1427   :  { %8925 = vst.msk [vmem:[#allocation31 + $0x8] sm:$0xff] %vm8827_vm1, %v15442_v20  ;;  %10856 = vrcp.f32 %v8887_v58  ;;  %v8933_v24 = vmul.f32 %v15442_v20, %v16482_v33  ;;  %v8965_v56 = vmul.f32 %v15442_v20, %v15272_v14  ;;  %v9061_v50 = vmul.f32 %v15442_v20, %v15260_v37 }
0x1428   :  { %v10847_v54 = vpop.eup %10846  ;;  %v8940_v4 = vsel %vm8827_vm1, %v8932_v40, 0.0  ;;  %v9100_v32 = vsel %vm8827_vm1, %v9092_v15, 0.0 }
0x1429   :  { %v10849_v21 = vpop.eup %10848  ;;  %v15453_v7 = vmul.f32 %v10847_v54, %v10831_v51  ;;  %v8943_v60 = vsel %vm8827_vm1, %v8933_v24, 0.0  ;;  %8941 = vadd.xlane.f32.xlu0 %v8940_v4  ;;  %v9071_v1 = vsel %vm8827_vm1, %v9061_v50, 0.0 }
0x142a   :  { %v15456_v2 = vmul.f32 %v10849_v21, %v10833_v45  ;;  %8944 = vadd.xlane.f32.xlu1 %v8943_v60  ;;  %v8964_v45 = vmul.f32 %v15440_v22, %v15272_v14 }
0x142b   :  { %8929 = vst.msk [vmem:[#allocation31 + $0x28] sm:$0xff] %vm8827_vm1, %v15453_v7  ;;  %v8937_v11 = vmul.f32 %v15453_v7, %v16483_v23  ;;  %v8969_v42 = vmul.f32 %v15453_v7, %v15275_v49  ;;  %v9065_v34 = vmul.f32 %v15453_v7, %v15263_v6  ;;  %v9097_v4 = vmul.f32 %v15453_v7, %v15295_v0 }
0x142c   :  { %v10851_v8 = vpop.eup %10850  ;;  %8928 = vst.msk [vmem:[#allocation31 + $0x20] sm:$0xff] %vm8827_vm1, %v15456_v2  ;;  %v8936_v9 = vmul.f32 %v15456_v2, %v16483_v23  ;;  %v8972_v48 = vsel %vm8827_vm1, %v8964_v45, 0.0  ;;  %v9064_v13 = vmul.f32 %v15456_v2, %v15263_v6  ;;  %v9096_v58 = vmul.f32 %v15456_v2, %v15295_v0 }
0x142d   :  { %v10853_v5 = vpop.eup %10852  ;;  %v15462_v53 = vmul.f32 %v10851_v8, %v10835_v52  ;;  %v8955_v51 = vsel %vm8827_vm1, %v8937_v11, 0.0  ;;  %v8987_v29 = vsel %vm8827_vm1, %v8969_v42, 0.0  ;;  %v9083_v31 = vsel %vm8827_vm1, %v9065_v34, 0.0 }
0x142e   :  { %v15464_v59 = vmul.f32 %v10853_v5, %v10837_v16  ;;  %v8952_v43 = vsel %vm8827_vm1, %v8936_v9, 0.0  ;;  %v8968_v16 = vmul.f32 %v15456_v2, %v15275_v49  ;;  %v9080_v19 = vsel %vm8827_vm1, %v9064_v13, 0.0 }
0x142f   :  { %8930 = vst.msk [vmem:[#allocation31 + $0x30] sm:$0xff] %vm8827_vm1, %v15462_v53  ;;  %v8938_v26 = vmul.f32 %v15462_v53, %v16483_v23  ;;  %v9112_v40 = vsel %vm8827_vm1, %v9096_v58, 0.0  ;;  %v9115_v60 = vsel %vm8827_vm1, %v9097_v4, 0.0  ;;  %v8996_v8 = vmul.f32 %v15440_v22, %v15254_v39 }
0x1430   :  { %v10855_v18 = vpop.eup %10854  ;;  %8926 = vst.msk [vmem:[#allocation31 + $0x10] sm:$0xff] %vm8827_vm1, %v15464_v59  ;;  %v8934_v62 = vmul.f32 %v15464_v59, %v16482_v33  ;;  %v8984_v36 = vsel %vm8827_vm1, %v8968_v16, 0.0  ;;  %v8966_v54 = vmul.f32 %v15464_v59, %v15272_v14  ;;  %v8970_v5 = vmul.f32 %v15462_v53, %v15275_v49 }
0x1431   :  { %v10857_v17 = vpop.eup %10856  ;;  %v15472_v28 = vmul.f32 %v10855_v18, %v10839_v10  ;;  %v8958_v35 = vsel %vm8827_vm1, %v8938_v26, 0.0  ;;  %v8975_v10 = vsel %vm8827_vm1, %v8965_v56, 0.0  ;;  %v9004_v18 = vsel %vm8827_vm1, %v8996_v8, 0.0 }
0x1432   :  { %v15474_v57 = vmul.f32 %v10857_v17, %v10841_v25  ;;  %v8946_v38 = vsel %vm8827_vm1, %v8934_v62, 0.0  ;;  %v9060_v25 = vmul.f32 %v15440_v22, %v15260_v37  ;;  %v8978_v21 = vsel %vm8827_vm1, %v8966_v54, 0.0  ;;  %v16484_v17 = vld [vmem:[#allocation61_spill] sm:$0xff] }
0x1433   :  { %8931 = vst.msk [vmem:[#allocation31 + $0x38] sm:$0xff] %vm8827_vm1, %v15472_v28  ;;  %8947 = vadd.xlane.f32.xlu0 %v8946_v38  ;;  %v8939_v55 = vmul.f32 %v15472_v28, %v16483_v23  ;;  %v8990_v62 = vsel %vm8827_vm1, %v8970_v5, 0.0  ;;  %v9000_v38 = vmul.f32 %v15456_v2, %v16484_v17  ;;  %v8997_v23 = vmul.f32 %v15442_v20, %v15254_v39 }
0x1434   :  { %8927 = vst.msk [vmem:[#allocation31 + $0x18] sm:$0xff] %vm8827_vm1, %v15474_v57  ;;  %v8935_v27 = vmul.f32 %v15474_v57, %v16482_v33  ;;  %v9068_v46 = vsel %vm8827_vm1, %v9060_v25, 0.0  ;;  %v9093_v33 = vmul.f32 %v15442_v20, %v15284_v44  ;;  %v9028_v34 = vmul.f32 %v15440_v22, %v15278_v63 }
0x1435   :  { %v8961_v52 = vsel %vm8827_vm1, %v8939_v55, 0.0  ;;  %v9016_v9 = vsel %vm8827_vm1, %v9000_v38, 0.0  ;;  %v9063_v54 = vmul.f32 %v15474_v57, %v15260_v37  ;;  %v9033_v4 = vmul.f32 %v15453_v7, %v15281_v30 }
0x1436   :  { %v8949_v41 = vsel %vm8827_vm1, %v8935_v27, 0.0  ;;  %v9103_v24 = vsel %vm8827_vm1, %v9093_v33, 0.0  ;;  %v9007_v27 = vsel %vm8827_vm1, %v8997_v23, 0.0  ;;  %v9029_v33 = vmul.f32 %v15442_v20, %v15278_v63 }
0x1437   :  { %8953 = vadd.xlane.f32.xlu0 %v8952_v43  ;;  %8950 = vadd.xlane.f32.xlu1 %v8949_v41  ;;  %v9062_v43 = vmul.f32 %v15464_v59, %v15260_v37  ;;  %v9001_v41 = vmul.f32 %v15453_v7, %v16484_v17  ;;  %v9095_v8 = vmul.f32 %v15474_v57, %v15284_v44 }
0x1438   :  { %v9067_v5 = vmul.f32 %v15472_v28, %v15263_v6  ;;  %v9099_v38 = vmul.f32 %v15472_v28, %v15295_v0 }
0x1439   :  { %v9074_v26 = vsel %vm8827_vm1, %v9062_v43, 0.0  ;;  %v9019_v11 = vsel %vm8827_vm1, %v9001_v41, 0.0  ;;  %v9157_v41 = vmul.f32 %v15442_v20, %v16478_v47 }
0x143a   :  { %v9089_v37 = vsel %vm8827_vm1, %v9067_v5, 0.0 }
0x143b   :  { %8959 = vadd.xlane.f32.xlu0 %v8958_v35  ;;  %8956 = vadd.xlane.f32.xlu1 %v8955_v51  ;;  %v9094_v35 = vmul.f32 %v15464_v59, %v15284_v44  ;;  %v9066_v51 = vmul.f32 %v15462_v53, %v15263_v6  ;;  %v9121_v44 = vsel %vm8827_vm1, %v9099_v38, 0.0  ;;  %v9156_v6 = vmul.f32 %v15440_v22, %v16478_v47 }
0x143d   :  { %v9106_v45 = vsel %vm8827_vm1, %v9094_v35, 0.0  ;;  %v9086_v55 = vsel %vm8827_vm1, %v9066_v51, 0.0  ;;  %v9161_v35 = vmul.f32 %v15453_v7, %v15305_v3 }
0x143f   :  { %8973 = vadd.xlane.f32.xlu0 %v8972_v48  ;;  %8962 = vadd.xlane.f32.xlu1 %v8961_v52  ;;  %v9124_v48 = vmul.f32 %v15440_v22, %v15266_v12  ;;  %v9098_v52 = vmul.f32 %v15462_v53, %v15295_v0  ;;  %v9160_v0 = vmul.f32 %v15456_v2, %v15305_v3  ;;  %v9167_v22 = vsel %vm8827_vm1, %v9157_v41, 0.0 }
0x1441   :  { %v9132_v16 = vsel %vm8827_vm1, %v9124_v48, 0.0  ;;  %v9118_v56 = vsel %vm8827_vm1, %v9098_v52, 0.0  ;;  %v9034_v48 = vmul.f32 %v15462_v53, %v15281_v30 }
0x1443   :  { %8985 = vadd.xlane.f32.xlu0 %v8984_v36  ;;  %8976 = vadd.xlane.f32.xlu1 %v8975_v10  ;;  %v9128_v36 = vmul.f32 %v15456_v2, %v16473_v61  ;;  %v9125_v10 = vmul.f32 %v15442_v20, %v15266_v12  ;;  %v9030_v20 = vmul.f32 %v15464_v59, %v15278_v63 }
0x1445   :  { %v9144_v25 = vsel %vm8827_vm1, %v9128_v36, 0.0  ;;  %v9135_v42 = vsel %vm8827_vm1, %v9125_v10, 0.0  ;;  %v9031_v10 = vmul.f32 %v15474_v57, %v15278_v63 }
0x1447   :  { %9069 = vadd.xlane.f32.xlu0 %v9068_v46  ;;  %8988 = vadd.xlane.f32.xlu1 %v8987_v29  ;;  %v8967_v46 = vmul.f32 %v15474_v57, %v15272_v14  ;;  %v9129_v29 = vmul.f32 %v15453_v7, %v16473_v61  ;;  %v9127_v7 = vmul.f32 %v15474_v57, %v15266_v12 }
0x1449   :  { %v8981_v13 = vsel %vm8827_vm1, %v8967_v46, 0.0  ;;  %v9147_v50 = vsel %vm8827_vm1, %v9129_v29, 0.0  ;;  %v9141_v52 = vsel %vm8827_vm1, %v9127_v7, 0.0  ;;  %v9035_v46 = vmul.f32 %v15472_v28, %v15281_v30 }
0x144b   :  { %9081 = vadd.xlane.f32.xlu0 %v9080_v19  ;;  %9072 = vadd.xlane.f32.xlu1 %v9071_v1  ;;  %v8998_v19 = vmul.f32 %v15464_v59, %v15254_v39  ;;  %v8971_v1 = vmul.f32 %v15472_v28, %v15275_v49  ;;  %v9032_v49 = vmul.f32 %v15456_v2, %v15281_v30  ;;  %v9179_v2 = vsel %vm8827_vm1, %v9161_v35, 0.0 }
0x144c   :  { %v9057_v63 = vsel %vm8827_vm1, %v9035_v46, 0.0 }
0x144d   :  { %v9010_v15 = vsel %vm8827_vm1, %v8998_v19, 0.0  ;;  %v8993_v14 = vsel %vm8827_vm1, %v8971_v1, 0.0  ;;  %v16486_v1 = vld [vmem:[#allocation143_spill] sm:$0xff] }
0x144f   :  { %9101 = vadd.xlane.f32.xlu0 %v9100_v32  ;;  %9084 = vadd.xlane.f32.xlu1 %v9083_v31  ;;  %v9002_v32 = vmul.f32 %v15462_v53, %v16484_v17  ;;  %v9036_v31 = vsel %vm8827_vm1, %v9028_v34, 0.0  ;;  %v16487_v34 = vld [vmem:[#allocation144_spill] sm:$0xff] }
0x1451   :  { %v9022_v58 = vsel %vm8827_vm1, %v9002_v32, 0.0 }
0x1453   :  { %9113 = vadd.xlane.f32.xlu0 %v9112_v40  ;;  %9104 = vadd.xlane.f32.xlu1 %v9103_v24  ;;  %v9048_v40 = vsel %vm8827_vm1, %v9032_v49, 0.0  ;;  %v9039_v24 = vsel %vm8827_vm1, %v9029_v33, 0.0 }
0x1457   :  { %8979 = vadd.xlane.f32.xlu0 %v8978_v21  ;;  %9116 = vadd.xlane.f32.xlu1 %v9115_v60  ;;  %v9077_v21 = vsel %vm8827_vm1, %v9063_v54, 0.0  ;;  %v9051_v60 = vsel %vm8827_vm1, %v9033_v4, 0.0 }
0x145b   :  { %9005 = vadd.xlane.f32.xlu0 %v9004_v18  ;;  %8991 = vadd.xlane.f32.xlu1 %v8990_v62  ;;  %v9109_v18 = vsel %vm8827_vm1, %v9095_v8, 0.0  ;;  %v9126_v62 = vmul.f32 %v15464_v59, %v15266_v12 }
0x145d   :  { %v9138_v23 = vsel %vm8827_vm1, %v9126_v62, 0.0 }
0x145f   :  { %9017 = vadd.xlane.f32.xlu0 %v9016_v9  ;;  %9008 = vadd.xlane.f32.xlu1 %v9007_v27  ;;  %v9130_v9 = vmul.f32 %v15462_v53, %v16473_v61  ;;  %v9164_v27 = vsel %vm8827_vm1, %v9156_v6, 0.0  ;;  %v16489_v6 = vld [vmem:[#allocation146_spill] sm:$0xff] }
0x1461   :  { %v9150_v43 = vsel %vm8827_vm1, %v9130_v9, 0.0 }
0x1463   :  { %9075 = vadd.xlane.f32.xlu0 %v9074_v26  ;;  %9020 = vadd.xlane.f32.xlu1 %v9019_v11  ;;  %v9176_v26 = vsel %vm8827_vm1, %v9160_v0, 0.0  ;;  %v8999_v11 = vmul.f32 %v15474_v57, %v15254_v39 }
0x1465   :  { %v9013_v51 = vsel %vm8827_vm1, %v8999_v11, 0.0 }
0x1467   :  { %9107 = vadd.xlane.f32.xlu0 %v9106_v45  ;;  %9087 = vadd.xlane.f32.xlu1 %v9086_v55  ;;  %v9003_v45 = vmul.f32 %v15472_v28, %v16484_v17  ;;  %v9042_v55 = vsel %vm8827_vm1, %v9030_v20, 0.0  ;;  %v9158_v17 = vmul.f32 %v15464_v59, %v16478_v47 }
0x1469   :  { %v9025_v39 = vsel %vm8827_vm1, %v9003_v45, 0.0  ;;  %v9170_v36 = vsel %vm8827_vm1, %v9158_v17, 0.0 }
0x146b   :  { %9133 = vadd.xlane.f32.xlu0 %v9132_v16  ;;  %9119 = vadd.xlane.f32.xlu1 %v9118_v56  ;;  %v9054_v16 = vsel %vm8827_vm1, %v9034_v48, 0.0  ;;  %v9131_v56 = vmul.f32 %v15472_v28, %v16473_v61  ;;  %v9159_v61 = vmul.f32 %v15474_v57, %v16478_v47  ;;  %v16485_v47 = vld [vmem:[#allocation142_spill] sm:$0xff] }
0x146d   :  { %v9153_v12 = vsel %vm8827_vm1, %v9131_v56, 0.0  ;;  %v9173_v29 = vsel %vm8827_vm1, %v9159_v61, 0.0 }
0x146f   :  { %9145 = vadd.xlane.f32.xlu0 %v9144_v25  ;;  %9136 = vadd.xlane.f32.xlu1 %v9135_v42  ;;  %v9162_v25 = vmul.f32 %v15462_v53, %v15305_v3  ;;  %v9045_v42 = vsel %vm8827_vm1, %v9031_v10, 0.0  ;;  %v9163_v53 = vmul.f32 %v15472_v28, %v15305_v3  ;;  %v16488_v28 = vld [vmem:[#allocation145_spill] sm:$0xff] }
0x1471   :  { %v9182_v59 = vsel %vm8827_vm1, %v9162_v25, 0.0 }
0x1473   :  { %8982 = vadd.xlane.f32.xlu0 %v8981_v13  ;;  %9148 = vadd.xlane.f32.xlu1 %v9147_v50  ;;  %v9185_v13 = vsel %vm8827_vm1, %v9163_v53, 0.0 }
0x1477   :  { %9011 = vadd.xlane.f32.xlu0 %v9010_v15  ;;  %8994 = vadd.xlane.f32.xlu1 %v8993_v14 }
0x147b   :  { %9037 = vadd.xlane.f32.xlu0 %v9036_v31  ;;  %9023 = vadd.xlane.f32.xlu1 %v9022_v58 }
0x147f   :  { %9049 = vadd.xlane.f32.xlu0 %v9048_v40  ;;  %9040 = vadd.xlane.f32.xlu1 %v9039_v24 }
0x1483   :  { %9078 = vadd.xlane.f32.xlu0 %v9077_v21  ;;  %9052 = vadd.xlane.f32.xlu1 %v9051_v60 }
0x1487   :  { %9110 = vadd.xlane.f32.xlu0 %v9109_v18  ;;  %9090 = vadd.xlane.f32.xlu1 %v9089_v37 }
0x148b   :  { %9139 = vadd.xlane.f32.xlu0 %v9138_v23  ;;  %9122 = vadd.xlane.f32.xlu1 %v9121_v44 }
0x148f   :  { %9165 = vadd.xlane.f32.xlu0 %v9164_v27  ;;  %9151 = vadd.xlane.f32.xlu1 %v9150_v43  ;;  %v16490_v27 = vld [vmem:[#allocation147_spill] sm:$0xff] }
0x1493   :  { %9177 = vadd.xlane.f32.xlu0 %v9176_v26  ;;  %9168 = vadd.xlane.f32.xlu1 %v9167_v22 }
0x1497   :  { %9014 = vadd.xlane.f32.xlu0 %v9013_v51  ;;  %9180 = vadd.xlane.f32.xlu1 %v9179_v2 }
0x149b   :  { %9043 = vadd.xlane.f32.xlu0 %v9042_v55  ;;  %9026 = vadd.xlane.f32.xlu1 %v9025_v39 }
0x149f   :  { %9142 = vadd.xlane.f32.xlu0 %v9141_v52  ;;  %9055 = vadd.xlane.f32.xlu1 %v9054_v16 }
0x14a3   :  { %9171 = vadd.xlane.f32.xlu0 %v9170_v36  ;;  %9154 = vadd.xlane.f32.xlu1 %v9153_v12 }
0x14a7   :  { %9046 = vadd.xlane.f32.xlu0 %v9045_v42  ;;  %9183 = vadd.xlane.f32.xlu1 %v9182_v59 }
0x14ab   :  { %9174 = vadd.xlane.f32.xlu0 %v9173_v29  ;;  %9058 = vadd.xlane.f32.xlu1 %v9057_v63 }
0x14af   :  { %9186 = vadd.xlane.f32.xlu1 %v9185_v13 }
0x14b6   :  { %v8942_v50 = vpop.xlane.xlu0 %8941 }
0x14b7   :  { %v8945_v19 = vpop.xlane.xlu1 %8944  ;;  %v9199_v57 = vrot.slane %v8942_v50, %v16485_v47 }
0x14b8   :  { %v9203_v30 = vrot.slane %v8945_v19, %v16486_v1 }
0x14ba   :  { %v9204_v15 = vsel %vm6092_vm3, %v9203_v30, %v9199_v57 }
0x14c0   :  { %v8948_v14 = vpop.xlane.xlu0 %8947 }
0x14c1   :  { %v9208_v32 = vrot.slane %v8948_v14, %v16487_v34 }
0x14c3   :  { %v9209_v31 = vsel %vm6099_vm4, %v9208_v32, %v9204_v15 }
0x14c4   :  { %v8951_v58 = vpop.xlane.xlu1 %8950  ;;  %v8954_v3 = vpop.xlane.xlu0 %8953 }
0x14c5   :  { %v9213_v49 = vrot.slane %v8951_v58, %v16488_v28  ;;  %v9218_v54 = vrot.slane %v8954_v3, %v16485_v47 }
0x14c7   :  { %v9214_v33 = vsel %vm6106_vm5, %v9213_v49, %v9209_v31 }
0x14c8   :  { %v8957_v40 = vpop.xlane.xlu1 %8956  ;;  %v8960_v24 = vpop.xlane.xlu0 %8959 }
0x14c9   :  { %v9222_v4 = vrot.slane %v8957_v40, %v16486_v1  ;;  %v9227_v21 = vrot.slane %v8960_v24, %v16487_v34 }
0x14cb   :  { %v9223_v60 = vsel %vm6092_vm3, %v9222_v4, %v9218_v54 }
0x14cc   :  { %v9228_v8 = vsel %vm6099_vm4, %v9227_v21, %v9223_v60  ;;  %v8963_v5 = vpop.xlane.xlu1 %8962  ;;  %v8974_v18 = vpop.xlane.xlu0 %8973 }
0x14cd   :  { %v9232_v37 = vrot.slane %v8963_v5, %v16488_v28  ;;  %v9247_v9 = vrot.slane %v8974_v18, %v16489_v6 }
0x14cf   :  { %v9233_v62 = vsel %vm6106_vm5, %v9232_v37, %v9228_v8 }
0x14d0   :  { %v15679_v38 = vsel %vm6271_vm11, %v9233_v62, %v9214_v33  ;;  %v8977_v23 = vpop.xlane.xlu1 %8976  ;;  %v8986_v44 = vpop.xlane.xlu0 %8985 }
0x14d1   :  { %v9251_v43 = vrot.slane %v8977_v23, %v16490_v27  ;;  %v9266_v22 = vrot.slane %v8986_v44, %v16489_v6 }
0x14d3   :  { %v15684_v0 = vsel %vm6120_vm7, %v9251_v43, %v9247_v9 }
0x14d4   :  { %v8989_v41 = vpop.xlane.xlu1 %8988  ;;  %v9070_v26 = vpop.xlane.xlu0 %9069 }
0x14d5   :  { %v9270_v11 = vrot.slane %v8989_v41, %v16490_v27  ;;  %v9391_v20 = vrot.slane %v9070_v26, %v16485_v47 }
0x14d7   :  { %v15689_v35 = vsel %vm6120_vm7, %v9270_v11, %v9266_v22 }
0x14d8   :  { %v9073_v51 = vpop.xlane.xlu1 %9072  ;;  %v9082_v2 = vpop.xlane.xlu0 %9081 }
0x14d9   :  { %v9395_v45 = vrot.slane %v9073_v51, %v16486_v1  ;;  %v9410_v48 = vrot.slane %v9082_v2, %v16485_v47 }
0x14db   :  { %v15694_v55 = vsel %vm6092_vm3, %v9395_v45, %v9391_v20 }
0x14dc   :  { %v9085_v39 = vpop.xlane.xlu1 %9084  ;;  %v9102_v7 = vpop.xlane.xlu0 %9101 }
0x14dd   :  { %v9414_v52 = vrot.slane %v9085_v39, %v16486_v1  ;;  %v9439_v36 = vrot.slane %v9102_v7, %v16489_v6 }
0x14df   :  { %v15699_v16 = vsel %vm6092_vm3, %v9414_v52, %v9410_v48 }
0x14e0   :  { %v9105_v17 = vpop.xlane.xlu1 %9104  ;;  %v9114_v56 = vpop.xlane.xlu0 %9113 }
0x14e1   :  { %v9443_v12 = vrot.slane %v9105_v17, %v16490_v27 }
0x14e2   :  { %11163 = shalt.err (!%p11160_p10)
}
0x14e3   :  { %s11164_s27 = scalar_lea.hbm %s15911_s21, 2048 }
0x14e4   :  { %p11165_p11 = scmp.ne.s32.totalorder %s15911_s21, %s11164_s27  ;;  %p11168_p12 = scmp.lt.u32.totalorder %s11164_s27, %s15911_s21 }
0x14e6   :  { %p11170_p13 = pnand %p11168_p12, %p11165_p11 }
0x14e8   :  { %11173 = shalt.err (!%p11170_p13)
}
0x14e9   :  { %9630 = dma.vmem_to_hbm [thread:$0]  %s9625_s3, 2048, %s15911_s21, [#allocation30], %s11248_s12, %s11248_s12, %s11249_s30  }
0x14ea   :  { %s11174_s2 = scalar_lea.vmem %s15701_s23, 4096  ;;  %p11179_p1 = scmp.lt.s32.totalorder %s15701_s23, %s15701_s23 }
0x14eb   :  { %p11175_p0 = scmp.ne.s32.totalorder %s15701_s23, %s11174_s2  ;;  %p11180_p2 = scmp.lt.s32.totalorder %s11174_s2, %s11174_s2 }
0x14ed   :  { %p11181_p3 = por %p11180_p2, %p11179_p1 }
0x14ef   :  { %p11182_p4 = pnand %p11181_p3, %p11175_p0 }
0x14f1   :  { %11185 = shalt.err (!%p11182_p4)
}
0x14f2   :  { %s11186_s1 = scalar_lea.hbm %s15910_s20, 4096 }
0x14f3   :  { %p11187_p5 = scmp.ne.s32.totalorder %s15910_s20, %s11186_s1  ;;  %p11190_p6 = scmp.lt.u32.totalorder %s11186_s1, %s15910_s20 }
0x14f5   :  { %p11192_p7 = pnand %p11190_p6, %p11187_p5 }
0x14f7   :  { %11195 = shalt.err (!%p11192_p7)
}
0x14f8   :  { %9618 = dma.vmem_to_hbm [thread:$0]  %s15701_s23, 4096, %s15910_s20, [#allocation12], %s11248_s12, %s11248_s12, %s11249_s30   ;;  %v9444_v10 = vsel %vm6120_vm7, %v9443_v12, %v9439_v36  ;;  %v9117_v25 = vpop.xlane.xlu1 %9116  ;;  %v8980_v42 = vpop.xlane.xlu0 %8979  ;;  %v9458_v59 = vrot.slane %v9114_v56, %v16489_v6  ;;  %v16491_v46 = vld [vmem:[#allocation148_spill] sm:$0xff] }
0x14f9   :  { %s11268_s13 = smov [#allocation31]   ;;  %v9462_v61 = vrot.slane %v9117_v25, %v16490_v27  ;;  %v9256_v29 = vrot.slane %v8980_v42, %v16491_v46 }
0x14fa   :  { %s9636_s24 = sshll.u32 %s11268_s13, 4  ;;  %s9637_s24 = int_to_ptr.vmem [resolvable:$true] %s9636_s24 }
0x14fb   :  { %s11196_s18 = scalar_lea.vmem %s9637_s24, 1024  ;;  %p11201_p9 = scmp.lt.s32.totalorder %s9637_s24, %s9637_s24 }
0x14fc   :  { %p11197_p8 = scmp.ne.s32.totalorder %s9637_s24, %s11196_s18  ;;  %p11202_p10 = scmp.lt.s32.totalorder %s11196_s18, %s11196_s18 }
0x14fe   :  { %p11203_p11 = por %p11202_p10, %p11201_p9 }
0x1500   :  { %p11204_p12 = pnand %p11203_p11, %p11197_p8 }
0x1502   :  { %11207 = shalt.err (!%p11204_p12)
}
0x1503   :  { %s11208_s8 = scalar_lea.hbm %s15912_s22, 1024 }
0x1504   :  { %p11209_p13 = scmp.ne.s32.totalorder %s15912_s22, %s11208_s8  ;;  %p11212_p0 = scmp.lt.u32.totalorder %s11208_s8, %s15912_s22 }
0x1506   :  { %p11214_p1 = pnand %p11212_p0, %p11209_p13 }
0x1508   :  { %11217 = shalt.err (!%p11214_p1)
}
0x1509   :  { %9642 = dma.vmem_to_hbm [thread:$0]  %s9637_s24, 1024, %s15912_s22, [#allocation30], %s11248_s12, %s11248_s12, %s11249_s30   ;;  %v9463_v63 = vsel %vm6120_vm7, %v9462_v61, %v9458_v59  ;;  %v9257_v53 = vsel %vm6127_vm8, %v9256_v29, %v15684_v0  ;;  %v8992_v13 = vpop.xlane.xlu1 %8991  ;;  %v9006_v50 = vpop.xlane.xlu0 %9005  ;;  %v16492_v30 = vld [vmem:[#allocation150_spill] sm:$0xff]  ;;  %v16493_v14 = vld [vmem:[#allocation151_spill] sm:$0xff]  ;;  %vm16494_vm2 = vcmask 654912   ;;  %v16496_v43 = vld [vmem:[#allocation149_spill] sm:$0xff] }
0x150a   :  { %v9275_v19 = vrot.slane %v8992_v13, %v16491_v46  ;;  %v9295_v15 = vrot.slane %v9006_v50, %v16492_v30  ;;  %vm16495_vm3 = vmmov %vm16494_vm2  ;;  %vm16506_vm12 = vcmask 917312   ;;  %vm16511_vm6 = vcmask 982912  }
0x150b   :  { %vm16504_vm7 = vmmov %vm16494_vm2 }
0x150c   :  { %v9276_v47 = vsel %vm6127_vm8, %v9275_v19, %v15689_v35  ;;  %vm16507_vm13 = vmmov %vm16506_vm12 }
0x150d   :  { %v9009_v57 = vpop.xlane.xlu1 %9008  ;;  %v9018_v1 = vpop.xlane.xlu0 %9017 }
0x150e   :  { %v9299_v32 = vrot.slane %v9009_v57, %v16493_v14  ;;  %v9314_v49 = vrot.slane %v9018_v1, %v16492_v30  ;;  %v16497_v57 = vld [vmem:[#allocation152_spill] sm:$0xff] }
0x1510   :  { %v15768_v31 = vsel %vm16494_vm2, %v9299_v32, %v9295_v15  ;;  %v16498_v32 = vld [vmem:[#allocation153_spill] sm:$0xff] }
0x1511   :  { %v9021_v58 = vpop.xlane.xlu1 %9020  ;;  %v9076_v3 = vpop.xlane.xlu0 %9075 }
0x1512   :  { %v9318_v33 = vrot.slane %v9021_v58, %v16493_v14  ;;  %v9400_v40 = vrot.slane %v9076_v3, %v16487_v34 }
0x1514   :  { %v9319_v24 = vsel %vm16495_vm3, %v9318_v33, %v9314_v49  ;;  %v9401_v54 = vsel %vm6099_vm4, %v9400_v40, %v15694_v55 }
0x1515   :  { %v9088_v4 = vpop.xlane.xlu1 %9087  ;;  %v9108_v21 = vpop.xlane.xlu0 %9107 }
0x1516   :  { %v9419_v60 = vrot.slane %v9088_v4, %v16487_v34  ;;  %v9448_v8 = vrot.slane %v9108_v21, %v16491_v46 }
0x1518   :  { %v9420_v5 = vsel %vm6099_vm4, %v9419_v60, %v15699_v16  ;;  %v9449_v18 = vsel %vm6127_vm8, %v9448_v8, %v9444_v10  ;;  %vm16499_vm4 = vcmask 720512  }
0x1519   :  { %v9120_v37 = vpop.xlane.xlu1 %9119  ;;  %v15781_v62 = vpop.xlane.xlu0 %9133  ;;  %vm16509_vm15 = vmmov %vm16499_vm4 }
0x151a   :  { %v9467_v23 = vrot.slane %v9120_v37, %v16491_v46  ;;  %vm16510_vm0 = vmmov %vm16499_vm4 }
0x151c   :  { %v9468_v44 = vsel %vm6127_vm8, %v9467_v23, %v9463_v63  ;;  %vm9574_vm8 = vcmask 785408  }
0x151d   :  { %v15785_v6 = vpop.xlane.xlu1 %9136  ;;  %v15787_v9 = vpop.xlane.xlu0 %9145 }
0x1521   :  { %v15789_v27 = vpop.xlane.xlu1 %9148  ;;  %v8983_v34 = vpop.xlane.xlu0 %8982 }
0x1522   :  { %v9261_v0 = vrot.slane %v8983_v34, %v16496_v43  ;;  %v16501_v34 = vld [vmem:[#allocation52_spill] sm:$0xff] }
0x1524   :  { %v9262_v11 = vsel %vm6134_vm9, %v9261_v0, %v9257_v53  ;;  %v9487_v0 = vrot.slane %v15781_v62, %v16492_v30 }
0x1525   :  { %v8995_v41 = vpop.xlane.xlu1 %8994  ;;  %v9012_v26 = vpop.xlane.xlu0 %9011 }
0x1526   :  { %v9280_v22 = vrot.slane %v8995_v41, %v16496_v43  ;;  %v9304_v1 = vrot.slane %v9012_v26, %v16497_v57  ;;  %v9506_v41 = vrot.slane %v15787_v9, %v16492_v30 }
0x1528   :  { %v9281_v35 = vsel %vm6134_vm9, %v9280_v22, %v9276_v47  ;;  %v9305_v40 = vsel %vm16499_vm4, %v9304_v1, %v15768_v31  ;;  %v9510_v31 = vrot.slane %v15789_v27, %v16493_v14  ;;  %v16503_v27 = vld [vmem:[#allocation53_spill] sm:$0xff] }
0x1529   :  { %v9282_v51 = vsel %vm6271_vm11, %v9281_v35, %v9262_v11  ;;  %v9024_v2 = vpop.xlane.xlu1 %9023  ;;  %v15796_v20 = vpop.xlane.xlu0 %9037  ;;  %v16502_v35 = vld [vmem:[#allocation154_spill] sm:$0xff] }
0x152a   :  { %v9572_v45 = vsel %vm8827_vm1, %v15679_v38, %v9282_v51  ;;  %v9323_v15 = vrot.slane %v9024_v2, %v16497_v57 }
0x152d   :  { %v9041_v55 = vpop.xlane.xlu1 %9040  ;;  %v9050_v39 = vpop.xlane.xlu0 %9049 }
0x152e   :  { %v9362_v51 = vrot.slane %v9050_v39, %v16502_v35 }
0x1531   :  { %v9053_v7 = vpop.xlane.xlu1 %9052  ;;  %v9079_v48 = vpop.xlane.xlu0 %9078 }
0x1532   :  { %v9405_v52 = vrot.slane %v9079_v48, %v16488_v28 }
0x1534   :  { %v9406_v36 = vsel %vm6106_vm5, %v9405_v52, %v9401_v54 }
0x1535   :  { %v9091_v16 = vpop.xlane.xlu1 %9090  ;;  %v9111_v17 = vpop.xlane.xlu0 %9110 }
0x1536   :  { %v9424_v56 = vrot.slane %v9091_v16, %v16488_v28  ;;  %v9453_v10 = vrot.slane %v9111_v17, %v16496_v43 }
0x1538   :  { %v9425_v12 = vsel %vm6106_vm5, %v9424_v56, %v9420_v5  ;;  %v9454_v61 = vsel %vm6134_vm9, %v9453_v10, %v9449_v18  ;;  %vm16500_vm5 = vmmov %vm16499_vm4 }
0x1539   :  { %v9426_v25 = vsel %vm6271_vm11, %v9425_v12, %v9406_v36  ;;  %v9123_v42 = vpop.xlane.xlu1 %9122  ;;  %v9140_v38 = vpop.xlane.xlu0 %9139  ;;  %v9324_v54 = vsel %vm16500_vm5, %v9323_v15, %v9319_v24  ;;  %v9347_v24 = vrot.slane %v9041_v55, %v16501_v34  ;;  %vm16515_vm4 = vmmov %vm16506_vm12 }
0x153a   :  { %v9472_v59 = vrot.slane %v9123_v42, %v16496_v43  ;;  %v9366_v43 = vrot.slane %v9053_v7, %v16501_v34  ;;  %v9496_v26 = vrot.slane %v9140_v38, %v16497_v57  ;;  %vm16516_vm5 = vmmov %vm16515_vm4 }
0x153c   :  { %v9473_v46 = vsel %vm6134_vm9, %v9472_v59, %v9468_v44  ;;  %v9491_v44 = vrot.slane %v15785_v6, %v16493_v14  ;;  %v9343_v6 = vrot.slane %v15796_v20, %v16502_v35  ;;  %vm16505_vm9 = vmmov %vm16494_vm2  ;;  %v9367_v7 = vsel %vm16507_vm13, %v9366_v43, %v9362_v51  ;;  %v16508_v20 = vld [vmem:[#allocation54_spill] sm:$0xff] }
0x153d   :  { %v9474_v29 = vsel %vm6271_vm11, %v9473_v46, %v9454_v61  ;;  %v9152_v63 = vpop.xlane.xlu1 %9151  ;;  %v15810_v28 = vpop.xlane.xlu0 %9165  ;;  %v9511_v30 = vsel %vm16505_vm9, %v9510_v31, %v9506_v41  ;;  %vm16513_vm2 = vcmask 1048512  }
0x153e   :  { %v15813_v53 = vsel %vm8827_vm1, %v9426_v25, %v9474_v29  ;;  %v9515_v14 = vrot.slane %v9152_v63, %v16497_v57  ;;  %v9348_v9 = vsel %vm16506_vm12, %v9347_v24, %v9343_v6  ;;  %v9535_v52 = vrot.slane %v15810_v28, %v16502_v35  ;;  %vm16512_vm1 = vmmov %vm16511_vm6 }
0x153f   :  { %vm16514_vm3 = vmmov %vm16513_vm2 }
0x1540   :  { %v9516_v12 = vsel %vm16510_vm0, %v9515_v14, %v9511_v30  ;;  %vm16518_vm9 = vmmov %vm16512_vm1 }
0x1541   :  { %v9169_v13 = vpop.xlane.xlu1 %9168  ;;  %v15815_v50 = vpop.xlane.xlu0 %9177  ;;  %vm16519_vm12 = vmmov %vm16513_vm2 }
0x1542   :  { %v9539_v16 = vrot.slane %v9169_v13, %v16501_v34  ;;  %v9554_v29 = vrot.slane %v15815_v50, %v16502_v35  ;;  %vm16520_vm13 = vmmov %vm16513_vm2 }
0x1545   :  { %v15817_v19 = vpop.xlane.xlu1 %9180  ;;  %v9015_v47 = vpop.xlane.xlu0 %9014 }
0x1546   :  { %v9309_v58 = vrot.slane %v9015_v47, %v16498_v32  ;;  %v9558_v10 = vrot.slane %v15817_v19, %v16501_v34  ;;  %v9540_v19 = vsel %vm16515_vm4, %v9539_v16, %v9535_v52 }
0x1548   :  { %v9310_v4 = vsel %vm6162_vm14, %v9309_v58, %v9305_v40  ;;  %v9559_v15 = vsel %vm16516_vm5, %v9558_v10, %v9554_v29 }
0x1549   :  { %v9027_v3 = vpop.xlane.xlu1 %9026  ;;  %v9044_v49 = vpop.xlane.xlu0 %9043 }
0x154a   :  { %v9328_v33 = vrot.slane %v9027_v3, %v16498_v32  ;;  %v9352_v2 = vrot.slane %v9044_v49, %v16503_v27 }
0x154c   :  { %v9329_v21 = vsel %vm6162_vm14, %v9328_v33, %v9324_v54  ;;  %v9353_v25 = vsel %vm16511_vm6, %v9352_v2, %v9348_v9 }
0x154d   :  { %v9330_v60 = vsel %vm6271_vm11, %v9329_v21, %v9310_v4  ;;  %v9056_v8 = vpop.xlane.xlu1 %9055  ;;  %v9143_v5 = vpop.xlane.xlu0 %9142 }
0x154e   :  { %v9573_v18 = vsel %vm881_vm10, %v9572_v45, %v9330_v60  ;;  %v9492_v45 = vsel %vm16504_vm7, %v9491_v44, %v9487_v0  ;;  %v9371_v62 = vrot.slane %v9056_v8, %v16503_v27  ;;  %v9501_v17 = vrot.slane %v9143_v5, %v16498_v32  ;;  %vm16517_vm7 = vmmov %vm16512_vm1 }
0x154f   :  { %v9497_v39 = vsel %vm16509_vm15, %v9496_v26, %v9492_v45 }
0x1550   :  { %v9372_v38 = vsel %vm16512_vm1, %v9371_v62, %v9367_v7  ;;  %v9502_v47 = vsel %vm6162_vm14, %v9501_v17, %v9497_v39 }
0x1551   :  { %v9155_v37 = vpop.xlane.xlu1 %9154  ;;  %v9172_v23 = vpop.xlane.xlu0 %9171 }
0x1552   :  { %v9520_v55 = vrot.slane %v9155_v37, %v16498_v32  ;;  %v9544_v61 = vrot.slane %v9172_v23, %v16503_v27 }
0x1554   :  { %v9521_v59 = vsel %vm6162_vm14, %v9520_v55, %v9516_v12  ;;  %v9545_v3 = vsel %vm16517_vm7, %v9544_v61, %v9540_v19 }
0x1555   :  { %v9184_v22 = vpop.xlane.xlu1 %9183  ;;  %v9047_v11 = vpop.xlane.xlu0 %9046  ;;  %v9522_v32 = vsel %vm6271_vm11, %v9521_v59, %v9502_v47 }
0x1556   :  { %v9357_v48 = vrot.slane %v9047_v11, %v16508_v20  ;;  %v9563_v46 = vrot.slane %v9184_v22, %v16503_v27  ;;  %v9577_v4 = vsel %vm881_vm10, %v15813_v53, %v9522_v32 }
0x1558   :  { %v9358_v63 = vsel %vm16513_vm2, %v9357_v48, %v9353_v25  ;;  %v9564_v49 = vsel %vm16518_vm9, %v9563_v46, %v9559_v15 }
0x1559   :  { %v9059_v56 = vpop.xlane.xlu1 %9058  ;;  %v9175_v36 = vpop.xlane.xlu0 %9174 }
0x155a   :  { %v9376_v42 = vrot.slane %v9059_v56, %v16508_v20  ;;  %v9549_v13 = vrot.slane %v9175_v36, %v16508_v20 }
0x155c   :  { %v9377_v28 = vsel %vm16514_vm3, %v9376_v42, %v9372_v38  ;;  %v9550_v40 = vsel %vm16519_vm12, %v9549_v13, %v9545_v3 }
0x155d   :  { %v9378_v57 = vsel %vm6271_vm11, %v9377_v28, %v9358_v63  ;;  %v9187_v1 = vpop.xlane.xlu1 %9186 }
0x155e   :  { %v9575_v58 = vsel %vm9574_vm8, %v9573_v18, %v9378_v57  ;;  %v9568_v50 = vrot.slane %v9187_v1, %v16508_v20 }
0x155f   :  { %v9743_v33 = vmul.f32 -1.442695, %v9575_v58 }
0x1560   :  { %v9569_v54 = vsel %vm16520_vm13, %v9568_v50, %v9564_v49 }
0x1561   :  { %10858 = vpow2.f32 %v9743_v33  ;;  %v9570_v21 = vsel %vm6271_vm11, %v9569_v54, %v9550_v40 }
0x1562   :  { %v9578_v60 = vsel %vm9574_vm8, %v9577_v4, %v9570_v21 }
0x1563   :  { %v9744_v8 = vmul.f32 -1.442695, %v9578_v60 }
0x1565   :  { %10860 = vpow2.f32 %v9744_v8 }
0x156b   :  { %v10859_v5 = vpop.eup %10858 }
0x156c   :  { %v9585_v18 = vadd.f32 1.0, %v10859_v5 }
0x156e   :  { %10862 = vrcp.f32 %v9585_v18 }
0x156f   :  { %v10861_v37 = vpop.eup %10860 }
0x1570   :  { %v9586_v23 = vadd.f32 1.0, %v10861_v37 }
0x1572   :  { %10864 = vrcp.f32 %v9586_v23 }
0x1578   :  { %v10863_v44 = vpop.eup %10862 }
0x157c   :  { %v10865_v31 = vpop.eup %10864 }
0x157d   :  { %v9593_v34 = vcombine.low %v10863_v44, %v10865_v31 }
0x157f   :  { %9745 = vst.sshfl [vmem:[%s15909_s19] sm:$0x33 pattern:$0x76325410] %v9593_v34 }
0x1580   :  { %11238 = dma.done.wait [#allocation12], 4096  }
0x1581   :  { %11239 = vsyncadd [#allocation12], 4294963200 }
0x1582   :  { %11240 = dma.done.wait [#allocation30], 3072  }
0x1583   :  { %11241 = vsyncadd [#allocation30], 4294964224 }
0x1584   :  { %9656 = vsyncpa [#allocation11], 1 }
0x1585   :  { %9657 = vsyncpa [#allocation14], 1 }
0x1586   :  { %9658 = vsyncpa [#allocation17], 1 }
0x1587   :  { %9659 = vsyncpa [#allocation20], 1 }
0x1588   :  { %9660 = vsyncpa [#allocation23], 1 }
0x1589   :  { %9661 = vsyncpa [#allocation26], 1 }
0x158a   :  { %9662 = vsyncpa [#allocation12], 1 }
0x158b   :  { %9663 = vsyncpa [#allocation30], 1 }
0x158c   :  { %9664 = vsyncmov [#allocation9] }
0x158f   :  { %s9665_s30 = vpop.sfrf %9664 }
0x1590   :  { %p9746_p2 = scmp.ne.s32.totalorder %s9665_s30, 0 }
0x1592   :  { %9669 = shalt.err (%p9746_p2)  }
0x1593   :  { %9671 = vsyncmov [#allocation9 + $0x1] }
0x1596   :  { %s9672_s4 = vpop.sfrf %9671 }
0x1597   :  { %p9747_p3 = scmp.ne.s32.totalorder %s9672_s4, 0 }
0x1599   :  { %9676 = shalt.err (%p9747_p3)  }
0x159a   :  { %9678 = vsyncmov [#allocation9 + $0x2] }
0x159d   :  { %s9679_s19 = vpop.sfrf %9678 }
0x159e   :  { %p9748_p4 = scmp.ne.s32.totalorder %s9679_s19, 0 }
0x15a0   :  { %9683 = shalt.err (%p9748_p4)  }
0x15a1   :  { %9685 = vsyncmov [#allocation9 + $0x3] }
0x15a4   :  { %s9686_s0 = vpop.sfrf %9685 }
0x15a5   :  { %p9749_p5 = scmp.ne.s32.totalorder %s9686_s0, 0 }
0x15a7   :  { %9690 = shalt.err (%p9749_p5)  }

</bundles_post_ra>
